<compile_context>
chip_gen: v6e
topology: v6e:2x2x1
jax: 0.10.0
libtpu: 0.0.40
codegen_flags: <defaults>
</compile_context>

<pallas_src>
import numpy as np
import jax
import jax.numpy as jnp
from jax import lax
from jax.experimental import pallas as pl
from jax.experimental.pallas import tpu as pltpu

# ----------------------------- configuration --------------------------------
CONV_CH = [8, 16, 32, 32]          # vgg6 channels with feat_mult = 1/16
N = 2                              # batch
INPUT_CH = 3
INPUT_DIM = 16
NUM_CLASSES = 10
EPS = 1e-5

LANES = 128                        # every channel dim is zero-padded to 128
P = 16                             # row pitch of the padded-flat layout (l>=2)
BASE = 16                          # slack rows before content in the LHS scratch

# layer 1 (dense, im2col'd in the wrapper)
ROWS1 = N * INPUT_DIM * INPUT_DIM  # 512
CHUNK1 = 128

# layers 2..4 (padded-flat: image h x h, (h+2) row bands of pitch 16)
L_H = [8, 4, 2]                            # input spatial size of layers 2,3,4
L_B = [(h + 2) * P for h in L_H]           # rows per image: 160, 96, 64
L_CHUNK = [80, 96, 64]                     # conv chunk rows (divide B, mult of 16)

LHS_ROWS = BASE + N * max(L_B) + P         # 352
YBUF_ROWS = max(ROWS1, N * max(L_B))       # 512
OUT_ROWS = 8                               # logits padded to 8 rows


# ------------------------------ fused kernel --------------------------------
def _vgg_kernel(x_ref, w1_ref, wp_ref, wfc_ref, bfc_ref, out_ref,
                lhs_ref, ybuf_ref, feat_ref):
    # x_ref   : [512, 128] bf16   layer-1 im2col (lane 3k+ci = tap k, channel ci)
    # w1_ref  : [128, 128] bf16   layer-1 packed weight
    # wp_ref  : [3, 3, 128, 128] bf16  layers 2-4 dj-packed weights (per di tap)
    # wfc_ref : [128, 128] bf16   classifier weight
    # bfc_ref : [1, 128]  f32     classifier bias
    # out_ref : [8, 128]  f32     padded logits
    f32 = jnp.float32
    feat_ref[...] = jnp.zeros(feat_ref.shape, f32)

    # ------------------- layer 1: conv (one matmul per chunk) ----------------
    w1 = w1_ref[...]
    s1 = jnp.zeros((1, LANES), f32)
    s2 = jnp.zeros((1, LANES), f32)
    for c in range(ROWS1 // CHUNK1):
        r0 = c * CHUNK1
        acc = jnp.dot(x_ref[pl.ds(r0, CHUNK1), :], w1,
                      preferred_element_type=f32)
        s1 = s1 + jnp.sum(acc, axis=0, keepdims=True)
        s2 = s2 + jnp.sum(acc * acc, axis=0, keepdims=True)
        ybuf_ref[pl.ds(r0, CHUNK1), :] = acc
    cnt = float(ROWS1)
    mean = s1 * (1.0 / cnt)
    var = jnp.maximum(s2 * (1.0 / cnt) - mean * mean, 0.0)
    inv = lax.rsqrt(var + EPS)

    # zero the packed-LHS scratch for layer 2 (whole region it will read)
    lhs_ref[pl.ds(0, LHS_ROWS), :] = jnp.zeros((LHS_ROWS, LANES), jnp.bfloat16)

    # maxpool(2,2) + BN/ReLU (post-pool) + scatter into layer-2 packed LHS
    ho = INPUT_DIM // 2                      # 8
    wo = INPUT_DIM // 2                      # 8
    Bn = L_B[0]
    for n in range(N):
        for i2 in range(ho):
            top = n * INPUT_DIM * INPUT_DIM + (2 * i2) * INPUT_DIM
            a = ybuf_ref[pl.ds(top, wo, stride=2), :]
            b = ybuf_ref[pl.ds(top + 1, wo, stride=2), :]
            c_ = ybuf_ref[pl.ds(top + INPUT_DIM, wo, stride=2), :]
            d = ybuf_ref[pl.ds(top + INPUT_DIM + 1, wo, stride=2), :]
            pooled = jnp.maximum(jnp.maximum(a, b), jnp.maximum(c_, d))
            y = jnp.maximum((pooled - mean) * inv, 0.0).astype(jnp.bfloat16)
            yb = y[:, :32]
            dst = BASE + n * Bn + (i2 + 1) * P + 1
            lhs_ref[pl.ds(dst + 1, wo), pl.ds(0, 32)] = yb      # dj = -1 group
            lhs_ref[pl.ds(dst,     wo), pl.ds(32, 32)] = yb     # dj =  0 group
            lhs_ref[pl.ds(dst - 1, wo), pl.ds(64, 32)] = yb     # dj = +1 group

    # --------------- layers 2..4: dj-packed conv (3 matmuls) -----------------
    for li, h in enumerate(L_H):
        B = L_B[li]
        CH = L_CHUNK[li]
        last = (li == len(L_H) - 1)
        s1 = jnp.zeros((1, LANES), f32)
        s2 = jnp.zeros((1, LANES), f32)
        for n in range(N):
            for cs in range(B // CH):
                off = cs * CH
                row0 = n * B + off
                acc = None
                for t in range(3):           # di = t - 1 (row taps, aligned)
                    lhs = lhs_ref[pl.ds(BASE + row0 + (t - 1) * P, CH), :]
                    part = jnp.dot(lhs, wp_ref[li, t],
                                   preferred_element_type=f32)
                    acc = part if acc is None else acc + part
                # interior-row mask from an iota (only pow2 shifts / compares)
                r = lax.broadcasted_iota(jnp.int32, (CH, 1), 0) + off
                jj = jnp.bitwise_and(r, P - 1)
                interior = ((r >= P) & (r < (h + 1) * P)
                            & (jj >= 1) & (jj <= h))
                am = jnp.where(interior, acc, 0.0)
                s1 = s1 + jnp.sum(am, axis=0, keepdims=True)
                s2 = s2 + jnp.sum(am * acc, axis=0, keepdims=True)
                ybuf_ref[pl.ds(row0, CH), :] = acc
        cnt = float(N * h * h)
        mean = s1 * (1.0 / cnt)
        var = jnp.maximum(s2 * (1.0 / cnt) - mean * mean, 0.0)
        inv = lax.rsqrt(var + EPS)

        ho = h // 2
        wo = h // 2
        if not last:
            Bn = L_B[li + 1]
            znext = BASE + N * Bn + P        # only the region layer l+1 reads
            lhs_ref[pl.ds(0, znext), :] = jnp.zeros((znext, LANES), jnp.bfloat16)
        for n in range(N):
            for i2 in range(ho):
                top = n * B + (2 * i2 + 1) * P + 1
                if wo > 1:
                    a = ybuf_ref[pl.ds(top, wo, stride=2), :]
                    b = ybuf_ref[pl.ds(top + 1, wo, stride=2), :]
                    c_ = ybuf_ref[pl.ds(top + P, wo, stride=2), :]
                    d = ybuf_ref[pl.ds(top + P + 1, wo, stride=2), :]
                else:
                    a = ybuf_ref[pl.ds(top, 1), :]
                    b = ybuf_ref[pl.ds(top + 1, 1), :]
                    c_ = ybuf_ref[pl.ds(top + P, 1), :]
                    d = ybuf_ref[pl.ds(top + P + 1, 1), :]
                pooled = jnp.maximum(jnp.maximum(a, b), jnp.maximum(c_, d))
                y = jnp.maximum((pooled - mean) * inv, 0.0)
                if not last:
                    yb = y.astype(jnp.bfloat16)[:, :32]
                    dst = BASE + n * Bn + (i2 + 1) * P + 1
                    lhs_ref[pl.ds(dst + 1, wo), pl.ds(0, 32)] = yb
                    lhs_ref[pl.ds(dst,     wo), pl.ds(32, 32)] = yb
                    lhs_ref[pl.ds(dst - 1, wo), pl.ds(64, 32)] = yb
                else:
                    feat_ref[pl.ds(n, 1), :] = y

    # ---------------------- classifier: single nn.Linear ---------------------
    feats = feat_ref[...].astype(jnp.bfloat16)
    logits = jnp.dot(feats, wfc_ref[...], preferred_element_type=f32)
    out_ref[...] = logits + bfc_ref[...]


_VMEM = pl.BlockSpec(memory_space=pltpu.MemorySpace.VMEM)


def _forward_impl(x_packed, w1, wp, wfc, bfc):
    return pl.pallas_call(
        _vgg_kernel,
        out_shape=jax.ShapeDtypeStruct((OUT_ROWS, LANES), jnp.float32),
        in_specs=[_VMEM] * 5,
        out_specs=_VMEM,
        scratch_shapes=[
            pltpu.VMEM((LHS_ROWS, LANES), jnp.bfloat16),   # packed conv LHS (l>=2)
            pltpu.VMEM((YBUF_ROWS, LANES), jnp.float32),   # raw conv output
            pltpu.VMEM((OUT_ROWS, LANES), jnp.float32),    # classifier features
        ],
    )(x_packed, w1, wp, wfc, bfc)


# ------------------------------ parameters -----------------------------------
def init_params(key):
    convs = []
    cin = INPUT_CH
    for cout in CONV_CH:
        key, k = jax.random.split(key)
        w = jax.random.normal(k, (cout, cin, 3, 3), jnp.float32) * np.sqrt(2.0 / (9 * cin))
        convs.append(np.asarray(w))
        cin = cout

    # layer 1: full im2col packing (rows 3k+ci, k = di*3 + dj)
    w1 = np.zeros((LANES, LANES), np.float32)
    w0 = convs[0]                                  # [8, 3, 3, 3]
    for di in range(3):
        for dj in range(3):
            k = di * 3 + dj
            w1[3 * k:3 * k + INPUT_CH, :CONV_CH[0]] = w0[:, :, di, dj].T

    # layers 2..4: dj-packed weights [layer, di, 128, 128]; rows 32*dj + ci
    wp = np.zeros((3, 3, LANES, LANES), np.float32)
    for li in range(3):
        w = convs[li + 1]                          # [cout, cin, 3, 3]
        cout, cin = w.shape[0], w.shape[1]
        for di in range(3):
            for dj in range(3):
                wp[li, di, 32 * dj:32 * dj + cin, :cout] = w[:, :, di, dj].T

    # classifier (single nn.Linear over the 32 channels of the 1x1 feature map)
    c_last = CONV_CH[-1]
    key, kw, kb = jax.random.split(key, 3)
    wfc_t = np.asarray(jax.random.normal(kw, (c_last, NUM_CLASSES), jnp.float32)) / np.sqrt(c_last)
    bfc_t = np.asarray(jax.random.normal(kb, (NUM_CLASSES,), jnp.float32)) * 0.01
    wfc = np.zeros((LANES, LANES), np.float32)
    wfc[:c_last, :NUM_CLASSES] = wfc_t
    bfc = np.zeros((1, LANES), np.float32)
    bfc[0, :NUM_CLASSES] = bfc_t

    params = dict(
        w1=jnp.asarray(w1, jnp.bfloat16),
        wp=jnp.asarray(wp, jnp.bfloat16),
        wfc=jnp.asarray(wfc, jnp.bfloat16),
        bfc=jnp.asarray(bfc),
    )
    raw = dict(convs=[jnp.asarray(w) for w in convs],
               wfc=jnp.asarray(wfc_t), bfc=jnp.asarray(bfc_t))
    return params, raw


# -------------------------------- forward ------------------------------------
def vggn_forward(params, x_nchw):
    # x_nchw: [N, C, H, W] float32 (PyTorch convention)
    x = jnp.transpose(x_nchw, (0, 2, 3, 1)).astype(jnp.float32)      # NHWC
    xp = jnp.pad(x, ((0, 0), (1, 1), (1, 1), (0, 0)))                # [N,18,18,3]
    taps = []
    for di in range(3):
        for dj in range(3):
            taps.append(xp[:, di:di + INPUT_DIM, dj:dj + INPUT_DIM, :])
    packed = jnp.concatenate(taps, axis=-1)                          # [N,16,16,27]
    packed = packed.reshape(ROWS1, 9 * INPUT_CH)
    packed = jnp.pad(packed, ((0, 0), (0, LANES - 9 * INPUT_CH))).astype(jnp.bfloat16)
    out = _forward_impl(packed, params['w1'], params['wp'],
                        params['wfc'], params['bfc'])
    return out[:N, :NUM_CLASSES]

# TODO(synk): Dropout2d/Dropout layers (args.dropout > 0) would need an in-kernel
# PRNG mask; with dropout=0.0 they are identity and omitted here.
# TODO(synk): on v7x the gridless kernel uses one of the two TensorCores; a
# core-parallel batch split with a tiny per-layer stat exchange would add ~2x.


# ------------------------ pure-JAX reference (checking) ----------------------
def _reference_forward(raw, x_nchw):
    x = jnp.transpose(x_nchw, (0, 2, 3, 1)).astype(jnp.float32)
    h = x.astype(jnp.bfloat16)
    for w in raw['convs']:
        whwio = jnp.transpose(w.astype(jnp.bfloat16), (2, 3, 1, 0))
        y = lax.conv_general_dilated(
            h, whwio, window_strides=(1, 1), padding='SAME',
            dimension_numbers=('NHWC', 'HWIO', 'NHWC'),
            preferred_element_type=jnp.float32)
        mean = jnp.mean(y, axis=(0, 1, 2), keepdims=True)
        var = jnp.mean((y - mean) ** 2, axis=(0, 1, 2), keepdims=True)
        y = jnp.maximum((y - mean) * lax.rsqrt(var + EPS), 0.0)
        n_, hh, ww, cc = y.shape
        y = y.reshape(n_, hh // 2, 2, ww // 2, 2, cc).max(axis=(2, 4))
        h = y.astype(jnp.bfloat16)
    feats = h.reshape(N, -1).astype(jnp.bfloat16)                    # H=W=1 -> [N,32]
    return jnp.dot(feats, raw['wfc'].astype(jnp.bfloat16),
                   preferred_element_type=jnp.float32) + raw['bfc']


if __name__ == "__main__":
    key = jax.random.PRNGKey(0)
    k_x, k_p = jax.random.split(key)

    x = jax.random.normal(k_x, (N, INPUT_CH, INPUT_DIM, INPUT_DIM), jnp.float32)
    params, raw = init_params(k_p)

    fwd = jax.jit(vggn_forward)
    out = jax.block_until_ready(fwd(params, x))

    assert out.shape == (N, NUM_CLASSES), out.shape
    assert out.dtype == jnp.float32
    assert bool(jnp.all(jnp.isfinite(out)))

    ref = _reference_forward(raw, x)
    assert bool(jnp.allclose(out, ref, atol=1e-1, rtol=1e-1)), (out, ref)

    print("KERNEL_OK")
</pallas_src>

<mosaic_0001>
module attributes {stable_mosaic.version = 11 : i64} {
  func.func @_vgg_kernel(%arg0: memref<512x128xbf16, #tpu.memory_space<vmem>>, %arg1: memref<128x128xbf16, #tpu.memory_space<vmem>>, %arg2: memref<3x3x128x128xbf16, #tpu.memory_space<vmem>>, %arg3: memref<128x128xbf16, #tpu.memory_space<vmem>>, %arg4: memref<1x128xf32, #tpu.memory_space<vmem>>, %arg5: memref<8x128xf32, #tpu.memory_space<vmem>>, %arg6: memref<352x128xbf16, #tpu.memory_space<vmem>>, %arg7: memref<512x128xf32, #tpu.memory_space<vmem>>, %arg8: memref<8x128xf32, #tpu.memory_space<vmem>>) attributes {dimension_semantics = [], scalar_prefetch = 0 : i64, scratch_operands = 3 : i64, tpu.core_type = #tpu.core_type<tc>} {
    %cst = arith.constant 0.000000e+00 : f32
    %0 = vector.broadcast %cst : f32 to vector<8x128xf32>
    %c0 = arith.constant 0 : index
    %c0_0 = arith.constant 0 : index
    %1 = vector.load %arg8[%c0, %c0_0] : memref<8x128xf32, #tpu.memory_space<vmem>>, vector<8x128xf32>
    tpu.vector_store %arg8[%c0, %c0_0], %0 {strides = array<i32>} : memref<8x128xf32, #tpu.memory_space<vmem>>, vector<8x128xf32>,
    %c0_1 = arith.constant 0 : index
    %c0_2 = arith.constant 0 : index
    %2 = vector.load %arg1[%c0_1, %c0_2] : memref<128x128xbf16, #tpu.memory_space<vmem>>, vector<128x128xbf16>
    %cst_3 = arith.constant 0.000000e+00 : f32
    %3 = vector.broadcast %cst_3 : f32 to vector<1x128xf32>
    %cst_4 = arith.constant 0.000000e+00 : f32
    %4 = vector.broadcast %cst_4 : f32 to vector<1x128xf32>
    %c0_5 = arith.constant 0 : index
    %c0_6 = arith.constant 0 : index
    %5 = vector.load %arg0[%c0_5, %c0_6] : memref<512x128xbf16, #tpu.memory_space<vmem>>, vector<128x128xbf16>
    %cst_7 = arith.constant dense<0.000000e+00> : vector<128x128xf32>
    %6 = tpu.matmul %5, %2, %cst_7 {dimension_numbers = #tpu.dot_dimension_numbers<[1], [0], [0], [1], [0, 0, 1, 1], [], []>} : vector<128x128xbf16>, vector<128x128xbf16>, vector<128x128xf32> -> vector<128x128xf32>
    %cst_8 = arith.constant dense<0.000000e+00> : vector<128xf32>
    %7 = vector.multi_reduction <add>, %6, %cst_8 [0] : vector<128x128xf32> to vector<128xf32>
    %8 = vector.shape_cast %7 : vector<128xf32> to vector<1x128xf32>
    %9 = arith.addf %3, %8 : vector<1x128xf32>
    %10 = arith.mulf %6, %6 : vector<128x128xf32>
    %cst_9 = arith.constant dense<0.000000e+00> : vector<128xf32>
    %11 = vector.multi_reduction <add>, %10, %cst_9 [0] : vector<128x128xf32> to vector<128xf32>
    %12 = vector.shape_cast %11 : vector<128xf32> to vector<1x128xf32>
    %13 = arith.addf %4, %12 : vector<1x128xf32>
    %c0_10 = arith.constant 0 : index
    %c0_11 = arith.constant 0 : index
    %14 = vector.load %arg7[%c0_10, %c0_11] : memref<512x128xf32, #tpu.memory_space<vmem>>, vector<128x128xf32>
    tpu.vector_store %arg7[%c0_10, %c0_11], %6 {strides = array<i32>} : memref<512x128xf32, #tpu.memory_space<vmem>>, vector<128x128xf32>,
    %c128 = arith.constant 128 : index
    %c0_12 = arith.constant 0 : index
    %15 = vector.load %arg0[%c128, %c0_12] : memref<512x128xbf16, #tpu.memory_space<vmem>>, vector<128x128xbf16>
    %cst_13 = arith.constant dense<0.000000e+00> : vector<128x128xf32>
    %16 = tpu.matmul %15, %2, %cst_13 {dimension_numbers = #tpu.dot_dimension_numbers<[1], [0], [0], [1], [0, 0, 1, 1], [], []>} : vector<128x128xbf16>, vector<128x128xbf16>, vector<128x128xf32> -> vector<128x128xf32>
    %cst_14 = arith.constant dense<0.000000e+00> : vector<128xf32>
    %17 = vector.multi_reduction <add>, %16, %cst_14 [0] : vector<128x128xf32> to vector<128xf32>
    %18 = vector.shape_cast %17 : vector<128xf32> to vector<1x128xf32>
    %19 = arith.addf %9, %18 : vector<1x128xf32>
    %20 = arith.mulf %16, %16 : vector<128x128xf32>
    %cst_15 = arith.constant dense<0.000000e+00> : vector<128xf32>
    %21 = vector.multi_reduction <add>, %20, %cst_15 [0] : vector<128x128xf32> to vector<128xf32>
    %22 = vector.shape_cast %21 : vector<128xf32> to vector<1x128xf32>
    %23 = arith.addf %13, %22 : vector<1x128xf32>
    %c128_16 = arith.constant 128 : index
    %c0_17 = arith.constant 0 : index
    %24 = vector.load %arg7[%c128_16, %c0_17] : memref<512x128xf32, #tpu.memory_space<vmem>>, vector<128x128xf32>
    tpu.vector_store %arg7[%c128_16, %c0_17], %16 {strides = array<i32>} : memref<512x128xf32, #tpu.memory_space<vmem>>, vector<128x128xf32>,
    %c256 = arith.constant 256 : index
    %c0_18 = arith.constant 0 : index
    %25 = vector.load %arg0[%c256, %c0_18] : memref<512x128xbf16, #tpu.memory_space<vmem>>, vector<128x128xbf16>
    %cst_19 = arith.constant dense<0.000000e+00> : vector<128x128xf32>
    %26 = tpu.matmul %25, %2, %cst_19 {dimension_numbers = #tpu.dot_dimension_numbers<[1], [0], [0], [1], [0, 0, 1, 1], [], []>} : vector<128x128xbf16>, vector<128x128xbf16>, vector<128x128xf32> -> vector<128x128xf32>
    %cst_20 = arith.constant dense<0.000000e+00> : vector<128xf32>
    %27 = vector.multi_reduction <add>, %26, %cst_20 [0] : vector<128x128xf32> to vector<128xf32>
    %28 = vector.shape_cast %27 : vector<128xf32> to vector<1x128xf32>
    %29 = arith.addf %19, %28 : vector<1x128xf32>
    %30 = arith.mulf %26, %26 : vector<128x128xf32>
    %cst_21 = arith.constant dense<0.000000e+00> : vector<128xf32>
    %31 = vector.multi_reduction <add>, %30, %cst_21 [0] : vector<128x128xf32> to vector<128xf32>
    %32 = vector.shape_cast %31 : vector<128xf32> to vector<1x128xf32>
    %33 = arith.addf %23, %32 : vector<1x128xf32>
    %c256_22 = arith.constant 256 : index
    %c0_23 = arith.constant 0 : index
    %34 = vector.load %arg7[%c256_22, %c0_23] : memref<512x128xf32, #tpu.memory_space<vmem>>, vector<128x128xf32>
    tpu.vector_store %arg7[%c256_22, %c0_23], %26 {strides = array<i32>} : memref<512x128xf32, #tpu.memory_space<vmem>>, vector<128x128xf32>,
    %c384 = arith.constant 384 : index
    %c0_24 = arith.constant 0 : index
    %35 = vector.load %arg0[%c384, %c0_24] : memref<512x128xbf16, #tpu.memory_space<vmem>>, vector<128x128xbf16>
    %cst_25 = arith.constant dense<0.000000e+00> : vector<128x128xf32>
    %36 = tpu.matmul %35, %2, %cst_25 {dimension_numbers = #tpu.dot_dimension_numbers<[1], [0], [0], [1], [0, 0, 1, 1], [], []>} : vector<128x128xbf16>, vector<128x128xbf16>, vector<128x128xf32> -> vector<128x128xf32>
    %cst_26 = arith.constant dense<0.000000e+00> : vector<128xf32>
    %37 = vector.multi_reduction <add>, %36, %cst_26 [0] : vector<128x128xf32> to vector<128xf32>
    %38 = vector.shape_cast %37 : vector<128xf32> to vector<1x128xf32>
    %39 = arith.addf %29, %38 : vector<1x128xf32>
    %40 = arith.mulf %36, %36 : vector<128x128xf32>
    %cst_27 = arith.constant dense<0.000000e+00> : vector<128xf32>
    %41 = vector.multi_reduction <add>, %40, %cst_27 [0] : vector<128x128xf32> to vector<128xf32>
    %42 = vector.shape_cast %41 : vector<128xf32> to vector<1x128xf32>
    %43 = arith.addf %33, %42 : vector<1x128xf32>
    %c384_28 = arith.constant 384 : index
    %c0_29 = arith.constant 0 : index
    %44 = vector.load %arg7[%c384_28, %c0_29] : memref<512x128xf32, #tpu.memory_space<vmem>>, vector<128x128xf32>
    tpu.vector_store %arg7[%c384_28, %c0_29], %36 {strides = array<i32>} : memref<512x128xf32, #tpu.memory_space<vmem>>, vector<128x128xf32>,
    %cst_30 = arith.constant 0.001953125 : f32
    %45 = vector.broadcast %cst_30 : f32 to vector<1x128xf32>
    %46 = arith.mulf %39, %45 : vector<1x128xf32>
    %cst_31 = arith.constant 0.001953125 : f32
    %47 = vector.broadcast %cst_31 : f32 to vector<1x128xf32>
    %48 = arith.mulf %43, %47 : vector<1x128xf32>
    %49 = arith.mulf %46, %46 : vector<1x128xf32>
    %50 = arith.subf %48, %49 : vector<1x128xf32>
    %cst_32 = arith.constant 0.000000e+00 : f32
    %51 = vector.broadcast %cst_32 : f32 to vector<1x128xf32>
    %52 = arith.maximumf %50, %51 : vector<1x128xf32>
    %cst_33 = arith.constant 9.99999974E-6 : f32
    %53 = vector.broadcast %cst_33 : f32 to vector<1x128xf32>
    %54 = arith.addf %52, %53 : vector<1x128xf32>
    %55 = math.rsqrt %54 : vector<1x128xf32>
    %cst_34 = arith.constant 0.000000e+00 : bf16
    %56 = vector.broadcast %cst_34 : bf16 to vector<352x128xbf16>
    %c0_35 = arith.constant 0 : index
    %c0_36 = arith.constant 0 : index
    %57 = vector.load %arg6[%c0_35, %c0_36] : memref<352x128xbf16, #tpu.memory_space<vmem>>, vector<352x128xbf16>
    tpu.vector_store %arg6[%c0_35, %c0_36], %56 {strides = array<i32>} : memref<352x128xbf16, #tpu.memory_space<vmem>>, vector<352x128xbf16>,
    %c0_37 = arith.constant 0 : index
    %c0_38 = arith.constant 0 : index
    %58 = tpu.strided_load %arg7[%c0_37, %c0_38] {strides = array<i32: 2, 1>} : memref<512x128xf32, #tpu.memory_space<vmem>>, vector<8x128xf32>
    %c1 = arith.constant 1 : index
    %c0_39 = arith.constant 0 : index
    %59 = tpu.strided_load %arg7[%c1, %c0_39] {strides = array<i32: 2, 1>} : memref<512x128xf32, #tpu.memory_space<vmem>>, vector<8x128xf32>
    %c16 = arith.constant 16 : index
    %c0_40 = arith.constant 0 : index
    %60 = tpu.strided_load %arg7[%c16, %c0_40] {strides = array<i32: 2, 1>} : memref<512x128xf32, #tpu.memory_space<vmem>>, vector<8x128xf32>
    %c17 = arith.constant 17 : index
    %c0_41 = arith.constant 0 : index
    %61 = tpu.strided_load %arg7[%c17, %c0_41] {strides = array<i32: 2, 1>} : memref<512x128xf32, #tpu.memory_space<vmem>>, vector<8x128xf32>
    %62 = arith.maximumf %58, %59 : vector<8x128xf32>
    %63 = arith.maximumf %60, %61 : vector<8x128xf32>
    %64 = arith.maximumf %62, %63 : vector<8x128xf32>
    %65 = vector.broadcast %46 : vector<1x128xf32> to vector<8x128xf32>
    %66 = arith.subf %64, %65 : vector<8x128xf32>
    %67 = vector.broadcast %55 : vector<1x128xf32> to vector<8x128xf32>
    %68 = arith.mulf %66, %67 : vector<8x128xf32>
    %cst_42 = arith.constant 0.000000e+00 : f32
    %69 = vector.broadcast %cst_42 : f32 to vector<8x128xf32>
    %70 = arith.maximumf %68, %69 : vector<8x128xf32>
    %71 = arith.truncf %70 : vector<8x128xf32> to vector<8x128xbf16>
    %72 = vector.extract_strided_slice %71 {offsets = [0, 0], sizes = [8, 32], strides = [1, 1]} : vector<8x128xbf16> to vector<8x32xbf16>
    %c34 = arith.constant 34 : index
    %c0_43 = arith.constant 0 : index
    %73 = vector.load %arg6[%c34, %c0_43] : memref<352x128xbf16, #tpu.memory_space<vmem>>, vector<8x32xbf16>
    tpu.vector_store %arg6[%c34, %c0_43], %72 {strides = array<i32>} : memref<352x128xbf16, #tpu.memory_space<vmem>>, vector<8x32xbf16>,
    %c33 = arith.constant 33 : index
    %c32 = arith.constant 32 : index
    %74 = vector.load %arg6[%c33, %c32] : memref<352x128xbf16, #tpu.memory_space<vmem>>, vector<8x32xbf16>
    tpu.vector_store %arg6[%c33, %c32], %72 {strides = array<i32>} : memref<352x128xbf16, #tpu.memory_space<vmem>>, vector<8x32xbf16>,
    %c32_44 = arith.constant 32 : index
    %c64 = arith.constant 64 : index
    %75 = vector.load %arg6[%c32_44, %c64] : memref<352x128xbf16, #tpu.memory_space<vmem>>, vector<8x32xbf16>
    tpu.vector_store %arg6[%c32_44, %c64], %72 {strides = array<i32>} : memref<352x128xbf16, #tpu.memory_space<vmem>>, vector<8x32xbf16>,
    %c32_45 = arith.constant 32 : index
    %c0_46 = arith.constant 0 : index
    %76 = tpu.strided_load %arg7[%c32_45, %c0_46] {strides = array<i32: 2, 1>} : memref<512x128xf32, #tpu.memory_space<vmem>>, vector<8x128xf32>
    %c33_47 = arith.constant 33 : index
    %c0_48 = arith.constant 0 : index
    %77 = tpu.strided_load %arg7[%c33_47, %c0_48] {strides = array<i32: 2, 1>} : memref<512x128xf32, #tpu.memory_space<vmem>>, vector<8x128xf32>
    %c48 = arith.constant 48 : index
    %c0_49 = arith.constant 0 : index
    %78 = tpu.strided_load %arg7[%c48, %c0_49] {strides = array<i32: 2, 1>} : memref<512x128xf32, #tpu.memory_space<vmem>>, vector<8x128xf32>
    %c49 = arith.constant 49 : index
    %c0_50 = arith.constant 0 : index
    %79 = tpu.strided_load %arg7[%c49, %c0_50] {strides = array<i32: 2, 1>} : memref<512x128xf32, #tpu.memory_space<vmem>>, vector<8x128xf32>
    %80 = arith.maximumf %76, %77 : vector<8x128xf32>
    %81 = arith.maximumf %78, %79 : vector<8x128xf32>
    %82 = arith.maximumf %80, %81 : vector<8x128xf32>
    %83 = vector.broadcast %46 : vector<1x128xf32> to vector<8x128xf32>
    %84 = arith.subf %82, %83 : vector<8x128xf32>
    %85 = vector.broadcast %55 : vector<1x128xf32> to vector<8x128xf32>
    %86 = arith.mulf %84, %85 : vector<8x128xf32>
    %cst_51 = arith.constant 0.000000e+00 : f32
    %87 = vector.broadcast %cst_51 : f32 to vector<8x128xf32>
    %88 = arith.maximumf %86, %87 : vector<8x128xf32>
    %89 = arith.truncf %88 : vector<8x128xf32> to vector<8x128xbf16>
    %90 = vector.extract_strided_slice %89 {offsets = [0, 0], sizes = [8, 32], strides = [1, 1]} : vector<8x128xbf16> to vector<8x32xbf16>
    %c50 = arith.constant 50 : index
    %c0_52 = arith.constant 0 : index
    %91 = vector.load %arg6[%c50, %c0_52] : memref<352x128xbf16, #tpu.memory_space<vmem>>, vector<8x32xbf16>
    tpu.vector_store %arg6[%c50, %c0_52], %90 {strides = array<i32>} : memref<352x128xbf16, #tpu.memory_space<vmem>>, vector<8x32xbf16>,
    %c49_53 = arith.constant 49 : index
    %c32_54 = arith.constant 32 : index
    %92 = vector.load %arg6[%c49_53, %c32_54] : memref<352x128xbf16, #tpu.memory_space<vmem>>, vector<8x32xbf16>
    tpu.vector_store %arg6[%c49_53, %c32_54], %90 {strides = array<i32>} : memref<352x128xbf16, #tpu.memory_space<vmem>>, vector<8x32xbf16>,
    %c48_55 = arith.constant 48 : index
    %c64_56 = arith.constant 64 : index
    %93 = vector.load %arg6[%c48_55, %c64_56] : memref<352x128xbf16, #tpu.memory_space<vmem>>, vector<8x32xbf16>
    tpu.vector_store %arg6[%c48_55, %c64_56], %90 {strides = array<i32>} : memref<352x128xbf16, #tpu.memory_space<vmem>>, vector<8x32xbf16>,
    %c64_57 = arith.constant 64 : index
    %c0_58 = arith.constant 0 : index
    %94 = tpu.strided_load %arg7[%c64_57, %c0_58] {strides = array<i32: 2, 1>} : memref<512x128xf32, #tpu.memory_space<vmem>>, vector<8x128xf32>
    %c65 = arith.constant 65 : index
    %c0_59 = arith.constant 0 : index
    %95 = tpu.strided_load %arg7[%c65, %c0_59] {strides = array<i32: 2, 1>} : memref<512x128xf32, #tpu.memory_space<vmem>>, vector<8x128xf32>
    %c80 = arith.constant 80 : index
    %c0_60 = arith.constant 0 : index
    %96 = tpu.strided_load %arg7[%c80, %c0_60] {strides = array<i32: 2, 1>} : memref<512x128xf32, #tpu.memory_space<vmem>>, vector<8x128xf32>
    %c81 = arith.constant 81 : index
    %c0_61 = arith.constant 0 : index
    %97 = tpu.strided_load %arg7[%c81, %c0_61] {strides = array<i32: 2, 1>} : memref<512x128xf32, #tpu.memory_space<vmem>>, vector<8x128xf32>
    %98 = arith.maximumf %94, %95 : vector<8x128xf32>
    %99 = arith.maximumf %96, %97 : vector<8x128xf32>
    %100 = arith.maximumf %98, %99 : vector<8x128xf32>
    %101 = vector.broadcast %46 : vector<1x128xf32> to vector<8x128xf32>
    %102 = arith.subf %100, %101 : vector<8x128xf32>
    %103 = vector.broadcast %55 : vector<1x128xf32> to vector<8x128xf32>
    %104 = arith.mulf %102, %103 : vector<8x128xf32>
    %cst_62 = arith.constant 0.000000e+00 : f32
    %105 = vector.broadcast %cst_62 : f32 to vector<8x128xf32>
    %106 = arith.maximumf %104, %105 : vector<8x128xf32>
    %107 = arith.truncf %106 : vector<8x128xf32> to vector<8x128xbf16>
    %108 = vector.extract_strided_slice %107 {offsets = [0, 0], sizes = [8, 32], strides = [1, 1]} : vector<8x128xbf16> to vector<8x32xbf16>
    %c66 = arith.constant 66 : index
    %c0_63 = arith.constant 0 : index
    %109 = vector.load %arg6[%c66, %c0_63] : memref<352x128xbf16, #tpu.memory_space<vmem>>, vector<8x32xbf16>
    tpu.vector_store %arg6[%c66, %c0_63], %108 {strides = array<i32>} : memref<352x128xbf16, #tpu.memory_space<vmem>>, vector<8x32xbf16>,
    %c65_64 = arith.constant 65 : index
    %c32_65 = arith.constant 32 : index
    %110 = vector.load %arg6[%c65_64, %c32_65] : memref<352x128xbf16, #tpu.memory_space<vmem>>, vector<8x32xbf16>
    tpu.vector_store %arg6[%c65_64, %c32_65], %108 {strides = array<i32>} : memref<352x128xbf16, #tpu.memory_space<vmem>>, vector<8x32xbf16>,
    %c64_66 = arith.constant 64 : index
    %c64_67 = arith.constant 64 : index
    %111 = vector.load %arg6[%c64_66, %c64_67] : memref<352x128xbf16, #tpu.memory_space<vmem>>, vector<8x32xbf16>
    tpu.vector_store %arg6[%c64_66, %c64_67], %108 {strides = array<i32>} : memref<352x128xbf16, #tpu.memory_space<vmem>>, vector<8x32xbf16>,
    %c96 = arith.constant 96 : index
    %c0_68 = arith.constant 0 : index
    %112 = tpu.strided_load %arg7[%c96, %c0_68] {strides = array<i32: 2, 1>} : memref<512x128xf32, #tpu.memory_space<vmem>>, vector<8x128xf32>
    %c97 = arith.constant 97 : index
    %c0_69 = arith.constant 0 : index
    %113 = tpu.strided_load %arg7[%c97, %c0_69] {strides = array<i32: 2, 1>} : memref<512x128xf32, #tpu.memory_space<vmem>>, vector<8x128xf32>
    %c112 = arith.constant 112 : index
    %c0_70 = arith.constant 0 : index
    %114 = tpu.strided_load %arg7[%c112, %c0_70] {strides = array<i32: 2, 1>} : memref<512x128xf32, #tpu.memory_space<vmem>>, vector<8x128xf32>
    %c113 = arith.constant 113 : index
    %c0_71 = arith.constant 0 : index
    %115 = tpu.strided_load %arg7[%c113, %c0_71] {strides = array<i32: 2, 1>} : memref<512x128xf32, #tpu.memory_space<vmem>>, vector<8x128xf32>
    %116 = arith.maximumf %112, %113 : vector<8x128xf32>
    %117 = arith.maximumf %114, %115 : vector<8x128xf32>
    %118 = arith.maximumf %116, %117 : vector<8x128xf32>
    %119 = vector.broadcast %46 : vector<1x128xf32> to vector<8x128xf32>
    %120 = arith.subf %118, %119 : vector<8x128xf32>
    %121 = vector.broadcast %55 : vector<1x128xf32> to vector<8x128xf32>
    %122 = arith.mulf %120, %121 : vector<8x128xf32>
    %cst_72 = arith.constant 0.000000e+00 : f32
    %123 = vector.broadcast %cst_72 : f32 to vector<8x128xf32>
    %124 = arith.maximumf %122, %123 : vector<8x128xf32>
    %125 = arith.truncf %124 : vector<8x128xf32> to vector<8x128xbf16>
    %126 = vector.extract_strided_slice %125 {offsets = [0, 0], sizes = [8, 32], strides = [1, 1]} : vector<8x128xbf16> to vector<8x32xbf16>
    %c82 = arith.constant 82 : index
    %c0_73 = arith.constant 0 : index
    %127 = vector.load %arg6[%c82, %c0_73] : memref<352x128xbf16, #tpu.memory_space<vmem>>, vector<8x32xbf16>
    tpu.vector_store %arg6[%c82, %c0_73], %126 {strides = array<i32>} : memref<352x128xbf16, #tpu.memory_space<vmem>>, vector<8x32xbf16>,
    %c81_74 = arith.constant 81 : index
    %c32_75 = arith.constant 32 : index
    %128 = vector.load %arg6[%c81_74, %c32_75] : memref<352x128xbf16, #tpu.memory_space<vmem>>, vector<8x32xbf16>
    tpu.vector_store %arg6[%c81_74, %c32_75], %126 {strides = array<i32>} : memref<352x128xbf16, #tpu.memory_space<vmem>>, vector<8x32xbf16>,
    %c80_76 = arith.constant 80 : index
    %c64_77 = arith.constant 64 : index
    %129 = vector.load %arg6[%c80_76, %c64_77] : memref<352x128xbf16, #tpu.memory_space<vmem>>, vector<8x32xbf16>
    tpu.vector_store %arg6[%c80_76, %c64_77], %126 {strides = array<i32>} : memref<352x128xbf16, #tpu.memory_space<vmem>>, vector<8x32xbf16>,
    %c128_78 = arith.constant 128 : index
    %c0_79 = arith.constant 0 : index
    %130 = tpu.strided_load %arg7[%c128_78, %c0_79] {strides = array<i32: 2, 1>} : memref<512x128xf32, #tpu.memory_space<vmem>>, vector<8x128xf32>
    %c129 = arith.constant 129 : index
    %c0_80 = arith.constant 0 : index
    %131 = tpu.strided_load %arg7[%c129, %c0_80] {strides = array<i32: 2, 1>} : memref<512x128xf32, #tpu.memory_space<vmem>>, vector<8x128xf32>
    %c144 = arith.constant 144 : index
    %c0_81 = arith.constant 0 : index
    %132 = tpu.strided_load %arg7[%c144, %c0_81] {strides = array<i32: 2, 1>} : memref<512x128xf32, #tpu.memory_space<vmem>>, vector<8x128xf32>
    %c145 = arith.constant 145 : index
    %c0_82 = arith.constant 0 : index
    %133 = tpu.strided_load %arg7[%c145, %c0_82] {strides = array<i32: 2, 1>} : memref<512x128xf32, #tpu.memory_space<vmem>>, vector<8x128xf32>
    %134 = arith.maximumf %130, %131 : vector<8x128xf32>
    %135 = arith.maximumf %132, %133 : vector<8x128xf32>
    %136 = arith.maximumf %134, %135 : vector<8x128xf32>
    %137 = vector.broadcast %46 : vector<1x128xf32> to vector<8x128xf32>
    %138 = arith.subf %136, %137 : vector<8x128xf32>
    %139 = vector.broadcast %55 : vector<1x128xf32> to vector<8x128xf32>
    %140 = arith.mulf %138, %139 : vector<8x128xf32>
    %cst_83 = arith.constant 0.000000e+00 : f32
    %141 = vector.broadcast %cst_83 : f32 to vector<8x128xf32>
    %142 = arith.maximumf %140, %141 : vector<8x128xf32>
    %143 = arith.truncf %142 : vector<8x128xf32> to vector<8x128xbf16>
    %144 = vector.extract_strided_slice %143 {offsets = [0, 0], sizes = [8, 32], strides = [1, 1]} : vector<8x128xbf16> to vector<8x32xbf16>
    %c98 = arith.constant 98 : index
    %c0_84 = arith.constant 0 : index
    %145 = vector.load %arg6[%c98, %c0_84] : memref<352x128xbf16, #tpu.memory_space<vmem>>, vector<8x32xbf16>
    tpu.vector_store %arg6[%c98, %c0_84], %144 {strides = array<i32>} : memref<352x128xbf16, #tpu.memory_space<vmem>>, vector<8x32xbf16>,
    %c97_85 = arith.constant 97 : index
    %c32_86 = arith.constant 32 : index
    %146 = vector.load %arg6[%c97_85, %c32_86] : memref<352x128xbf16, #tpu.memory_space<vmem>>, vector<8x32xbf16>
    tpu.vector_store %arg6[%c97_85, %c32_86], %144 {strides = array<i32>} : memref<352x128xbf16, #tpu.memory_space<vmem>>, vector<8x32xbf16>,
    %c96_87 = arith.constant 96 : index
    %c64_88 = arith.constant 64 : index
    %147 = vector.load %arg6[%c96_87, %c64_88] : memref<352x128xbf16, #tpu.memory_space<vmem>>, vector<8x32xbf16>
    tpu.vector_store %arg6[%c96_87, %c64_88], %144 {strides = array<i32>} : memref<352x128xbf16, #tpu.memory_space<vmem>>, vector<8x32xbf16>,
    %c160 = arith.constant 160 : index
    %c0_89 = arith.constant 0 : index
    %148 = tpu.strided_load %arg7[%c160, %c0_89] {strides = array<i32: 2, 1>} : memref<512x128xf32, #tpu.memory_space<vmem>>, vector<8x128xf32>
    %c161 = arith.constant 161 : index
    %c0_90 = arith.constant 0 : index
    %149 = tpu.strided_load %arg7[%c161, %c0_90] {strides = array<i32: 2, 1>} : memref<512x128xf32, #tpu.memory_space<vmem>>, vector<8x128xf32>
    %c176 = arith.constant 176 : index
    %c0_91 = arith.constant 0 : index
    %150 = tpu.strided_load %arg7[%c176, %c0_91] {strides = array<i32: 2, 1>} : memref<512x128xf32, #tpu.memory_space<vmem>>, vector<8x128xf32>
    %c177 = arith.constant 177 : index
    %c0_92 = arith.constant 0 : index
    %151 = tpu.strided_load %arg7[%c177, %c0_92] {strides = array<i32: 2, 1>} : memref<512x128xf32, #tpu.memory_space<vmem>>, vector<8x128xf32>
    %152 = arith.maximumf %148, %149 : vector<8x128xf32>
    %153 = arith.maximumf %150, %151 : vector<8x128xf32>
    %154 = arith.maximumf %152, %153 : vector<8x128xf32>
    %155 = vector.broadcast %46 : vector<1x128xf32> to vector<8x128xf32>
    %156 = arith.subf %154, %155 : vector<8x128xf32>
    %157 = vector.broadcast %55 : vector<1x128xf32> to vector<8x128xf32>
    %158 = arith.mulf %156, %157 : vector<8x128xf32>
    %cst_93 = arith.constant 0.000000e+00 : f32
    %159 = vector.broadcast %cst_93 : f32 to vector<8x128xf32>
    %160 = arith.maximumf %158, %159 : vector<8x128xf32>
    %161 = arith.truncf %160 : vector<8x128xf32> to vector<8x128xbf16>
    %162 = vector.extract_strided_slice %161 {offsets = [0, 0], sizes = [8, 32], strides = [1, 1]} : vector<8x128xbf16> to vector<8x32xbf16>
    %c114 = arith.constant 114 : index
    %c0_94 = arith.constant 0 : index
    %163 = vector.load %arg6[%c114, %c0_94] : memref<352x128xbf16, #tpu.memory_space<vmem>>, vector<8x32xbf16>
    tpu.vector_store %arg6[%c114, %c0_94], %162 {strides = array<i32>} : memref<352x128xbf16, #tpu.memory_space<vmem>>, vector<8x32xbf16>,
    %c113_95 = arith.constant 113 : index
    %c32_96 = arith.constant 32 : index
    %164 = vector.load %arg6[%c113_95, %c32_96] : memref<352x128xbf16, #tpu.memory_space<vmem>>, vector<8x32xbf16>
    tpu.vector_store %arg6[%c113_95, %c32_96], %162 {strides = array<i32>} : memref<352x128xbf16, #tpu.memory_space<vmem>>, vector<8x32xbf16>,
    %c112_97 = arith.constant 112 : index
    %c64_98 = arith.constant 64 : index
    %165 = vector.load %arg6[%c112_97, %c64_98] : memref<352x128xbf16, #tpu.memory_space<vmem>>, vector<8x32xbf16>
    tpu.vector_store %arg6[%c112_97, %c64_98], %162 {strides = array<i32>} : memref<352x128xbf16, #tpu.memory_space<vmem>>, vector<8x32xbf16>,
    %c192 = arith.constant 192 : index
    %c0_99 = arith.constant 0 : index
    %166 = tpu.strided_load %arg7[%c192, %c0_99] {strides = array<i32: 2, 1>} : memref<512x128xf32, #tpu.memory_space<vmem>>, vector<8x128xf32>
    %c193 = arith.constant 193 : index
    %c0_100 = arith.constant 0 : index
    %167 = tpu.strided_load %arg7[%c193, %c0_100] {strides = array<i32: 2, 1>} : memref<512x128xf32, #tpu.memory_space<vmem>>, vector<8x128xf32>
    %c208 = arith.constant 208 : index
    %c0_101 = arith.constant 0 : index
    %168 = tpu.strided_load %arg7[%c208, %c0_101] {strides = array<i32: 2, 1>} : memref<512x128xf32, #tpu.memory_space<vmem>>, vector<8x128xf32>
    %c209 = arith.constant 209 : index
    %c0_102 = arith.constant 0 : index
    %169 = tpu.strided_load %arg7[%c209, %c0_102] {strides = array<i32: 2, 1>} : memref<512x128xf32, #tpu.memory_space<vmem>>, vector<8x128xf32>
    %170 = arith.maximumf %166, %167 : vector<8x128xf32>
    %171 = arith.maximumf %168, %169 : vector<8x128xf32>
    %172 = arith.maximumf %170, %171 : vector<8x128xf32>
    %173 = vector.broadcast %46 : vector<1x128xf32> to vector<8x128xf32>
    %174 = arith.subf %172, %173 : vector<8x128xf32>
    %175 = vector.broadcast %55 : vector<1x128xf32> to vector<8x128xf32>
    %176 = arith.mulf %174, %175 : vector<8x128xf32>
    %cst_103 = arith.constant 0.000000e+00 : f32
    %177 = vector.broadcast %cst_103 : f32 to vector<8x128xf32>
    %178 = arith.maximumf %176, %177 : vector<8x128xf32>
    %179 = arith.truncf %178 : vector<8x128xf32> to vector<8x128xbf16>
    %180 = vector.extract_strided_slice %179 {offsets = [0, 0], sizes = [8, 32], strides = [1, 1]} : vector<8x128xbf16> to vector<8x32xbf16>
    %c130 = arith.constant 130 : index
    %c0_104 = arith.constant 0 : index
    %181 = vector.load %arg6[%c130, %c0_104] : memref<352x128xbf16, #tpu.memory_space<vmem>>, vector<8x32xbf16>
    tpu.vector_store %arg6[%c130, %c0_104], %180 {strides = array<i32>} : memref<352x128xbf16, #tpu.memory_space<vmem>>, vector<8x32xbf16>,
    %c129_105 = arith.constant 129 : index
    %c32_106 = arith.constant 32 : index
    %182 = vector.load %arg6[%c129_105, %c32_106] : memref<352x128xbf16, #tpu.memory_space<vmem>>, vector<8x32xbf16>
    tpu.vector_store %arg6[%c129_105, %c32_106], %180 {strides = array<i32>} : memref<352x128xbf16, #tpu.memory_space<vmem>>, vector<8x32xbf16>,
    %c128_107 = arith.constant 128 : index
    %c64_108 = arith.constant 64 : index
    %183 = vector.load %arg6[%c128_107, %c64_108] : memref<352x128xbf16, #tpu.memory_space<vmem>>, vector<8x32xbf16>
    tpu.vector_store %arg6[%c128_107, %c64_108], %180 {strides = array<i32>} : memref<352x128xbf16, #tpu.memory_space<vmem>>, vector<8x32xbf16>,
    %c224 = arith.constant 224 : index
    %c0_109 = arith.constant 0 : index
    %184 = tpu.strided_load %arg7[%c224, %c0_109] {strides = array<i32: 2, 1>} : memref<512x128xf32, #tpu.memory_space<vmem>>, vector<8x128xf32>
    %c225 = arith.constant 225 : index
    %c0_110 = arith.constant 0 : index
    %185 = tpu.strided_load %arg7[%c225, %c0_110] {strides = array<i32: 2, 1>} : memref<512x128xf32, #tpu.memory_space<vmem>>, vector<8x128xf32>
    %c240 = arith.constant 240 : index
    %c0_111 = arith.constant 0 : index
    %186 = tpu.strided_load %arg7[%c240, %c0_111] {strides = array<i32: 2, 1>} : memref<512x128xf32, #tpu.memory_space<vmem>>, vector<8x128xf32>
    %c241 = arith.constant 241 : index
    %c0_112 = arith.constant 0 : index
    %187 = tpu.strided_load %arg7[%c241, %c0_112] {strides = array<i32: 2, 1>} : memref<512x128xf32, #tpu.memory_space<vmem>>, vector<8x128xf32>
    %188 = arith.maximumf %184, %185 : vector<8x128xf32>
    %189 = arith.maximumf %186, %187 : vector<8x128xf32>
    %190 = arith.maximumf %188, %189 : vector<8x128xf32>
    %191 = vector.broadcast %46 : vector<1x128xf32> to vector<8x128xf32>
    %192 = arith.subf %190, %191 : vector<8x128xf32>
    %193 = vector.broadcast %55 : vector<1x128xf32> to vector<8x128xf32>
    %194 = arith.mulf %192, %193 : vector<8x128xf32>
    %cst_113 = arith.constant 0.000000e+00 : f32
    %195 = vector.broadcast %cst_113 : f32 to vector<8x128xf32>
    %196 = arith.maximumf %194, %195 : vector<8x128xf32>
    %197 = arith.truncf %196 : vector<8x128xf32> to vector<8x128xbf16>
    %198 = vector.extract_strided_slice %197 {offsets = [0, 0], sizes = [8, 32], strides = [1, 1]} : vector<8x128xbf16> to vector<8x32xbf16>
    %c146 = arith.constant 146 : index
    %c0_114 = arith.constant 0 : index
    %199 = vector.load %arg6[%c146, %c0_114] : memref<352x128xbf16, #tpu.memory_space<vmem>>, vector<8x32xbf16>
    tpu.vector_store %arg6[%c146, %c0_114], %198 {strides = array<i32>} : memref<352x128xbf16, #tpu.memory_space<vmem>>, vector<8x32xbf16>,
    %c145_115 = arith.constant 145 : index
    %c32_116 = arith.constant 32 : index
    %200 = vector.load %arg6[%c145_115, %c32_116] : memref<352x128xbf16, #tpu.memory_space<vmem>>, vector<8x32xbf16>
    tpu.vector_store %arg6[%c145_115, %c32_116], %198 {strides = array<i32>} : memref<352x128xbf16, #tpu.memory_space<vmem>>, vector<8x32xbf16>,
    %c144_117 = arith.constant 144 : index
    %c64_118 = arith.constant 64 : index
    %201 = vector.load %arg6[%c144_117, %c64_118] : memref<352x128xbf16, #tpu.memory_space<vmem>>, vector<8x32xbf16>
    tpu.vector_store %arg6[%c144_117, %c64_118], %198 {strides = array<i32>} : memref<352x128xbf16, #tpu.memory_space<vmem>>, vector<8x32xbf16>,
    %c256_119 = arith.constant 256 : index
    %c0_120 = arith.constant 0 : index
    %202 = tpu.strided_load %arg7[%c256_119, %c0_120] {strides = array<i32: 2, 1>} : memref<512x128xf32, #tpu.memory_space<vmem>>, vector<8x128xf32>
    %c257 = arith.constant 257 : index
    %c0_121 = arith.constant 0 : index
    %203 = tpu.strided_load %arg7[%c257, %c0_121] {strides = array<i32: 2, 1>} : memref<512x128xf32, #tpu.memory_space<vmem>>, vector<8x128xf32>
    %c272 = arith.constant 272 : index
    %c0_122 = arith.constant 0 : index
    %204 = tpu.strided_load %arg7[%c272, %c0_122] {strides = array<i32: 2, 1>} : memref<512x128xf32, #tpu.memory_space<vmem>>, vector<8x128xf32>
    %c273 = arith.constant 273 : index
    %c0_123 = arith.constant 0 : index
    %205 = tpu.strided_load %arg7[%c273, %c0_123] {strides = array<i32: 2, 1>} : memref<512x128xf32, #tpu.memory_space<vmem>>, vector<8x128xf32>
    %206 = arith.maximumf %202, %203 : vector<8x128xf32>
    %207 = arith.maximumf %204, %205 : vector<8x128xf32>
    %208 = arith.maximumf %206, %207 : vector<8x128xf32>
    %209 = vector.broadcast %46 : vector<1x128xf32> to vector<8x128xf32>
    %210 = arith.subf %208, %209 : vector<8x128xf32>
    %211 = vector.broadcast %55 : vector<1x128xf32> to vector<8x128xf32>
    %212 = arith.mulf %210, %211 : vector<8x128xf32>
    %cst_124 = arith.constant 0.000000e+00 : f32
    %213 = vector.broadcast %cst_124 : f32 to vector<8x128xf32>
    %214 = arith.maximumf %212, %213 : vector<8x128xf32>
    %215 = arith.truncf %214 : vector<8x128xf32> to vector<8x128xbf16>
    %216 = vector.extract_strided_slice %215 {offsets = [0, 0], sizes = [8, 32], strides = [1, 1]} : vector<8x128xbf16> to vector<8x32xbf16>
    %c194 = arith.constant 194 : index
    %c0_125 = arith.constant 0 : index
    %217 = vector.load %arg6[%c194, %c0_125] : memref<352x128xbf16, #tpu.memory_space<vmem>>, vector<8x32xbf16>
    tpu.vector_store %arg6[%c194, %c0_125], %216 {strides = array<i32>} : memref<352x128xbf16, #tpu.memory_space<vmem>>, vector<8x32xbf16>,
    %c193_126 = arith.constant 193 : index
    %c32_127 = arith.constant 32 : index
    %218 = vector.load %arg6[%c193_126, %c32_127] : memref<352x128xbf16, #tpu.memory_space<vmem>>, vector<8x32xbf16>
    tpu.vector_store %arg6[%c193_126, %c32_127], %216 {strides = array<i32>} : memref<352x128xbf16, #tpu.memory_space<vmem>>, vector<8x32xbf16>,
    %c192_128 = arith.constant 192 : index
    %c64_129 = arith.constant 64 : index
    %219 = vector.load %arg6[%c192_128, %c64_129] : memref<352x128xbf16, #tpu.memory_space<vmem>>, vector<8x32xbf16>
    tpu.vector_store %arg6[%c192_128, %c64_129], %216 {strides = array<i32>} : memref<352x128xbf16, #tpu.memory_space<vmem>>, vector<8x32xbf16>,
    %c288 = arith.constant 288 : index
    %c0_130 = arith.constant 0 : index
    %220 = tpu.strided_load %arg7[%c288, %c0_130] {strides = array<i32: 2, 1>} : memref<512x128xf32, #tpu.memory_space<vmem>>, vector<8x128xf32>
    %c289 = arith.constant 289 : index
    %c0_131 = arith.constant 0 : index
    %221 = tpu.strided_load %arg7[%c289, %c0_131] {strides = array<i32: 2, 1>} : memref<512x128xf32, #tpu.memory_space<vmem>>, vector<8x128xf32>
    %c304 = arith.constant 304 : index
    %c0_132 = arith.constant 0 : index
    %222 = tpu.strided_load %arg7[%c304, %c0_132] {strides = array<i32: 2, 1>} : memref<512x128xf32, #tpu.memory_space<vmem>>, vector<8x128xf32>
    %c305 = arith.constant 305 : index
    %c0_133 = arith.constant 0 : index
    %223 = tpu.strided_load %arg7[%c305, %c0_133] {strides = array<i32: 2, 1>} : memref<512x128xf32, #tpu.memory_space<vmem>>, vector<8x128xf32>
    %224 = arith.maximumf %220, %221 : vector<8x128xf32>
    %225 = arith.maximumf %222, %223 : vector<8x128xf32>
    %226 = arith.maximumf %224, %225 : vector<8x128xf32>
    %227 = vector.broadcast %46 : vector<1x128xf32> to vector<8x128xf32>
    %228 = arith.subf %226, %227 : vector<8x128xf32>
    %229 = vector.broadcast %55 : vector<1x128xf32> to vector<8x128xf32>
    %230 = arith.mulf %228, %229 : vector<8x128xf32>
    %cst_134 = arith.constant 0.000000e+00 : f32
    %231 = vector.broadcast %cst_134 : f32 to vector<8x128xf32>
    %232 = arith.maximumf %230, %231 : vector<8x128xf32>
    %233 = arith.truncf %232 : vector<8x128xf32> to vector<8x128xbf16>
    %234 = vector.extract_strided_slice %233 {offsets = [0, 0], sizes = [8, 32], strides = [1, 1]} : vector<8x128xbf16> to vector<8x32xbf16>
    %c210 = arith.constant 210 : index
    %c0_135 = arith.constant 0 : index
    %235 = vector.load %arg6[%c210, %c0_135] : memref<352x128xbf16, #tpu.memory_space<vmem>>, vector<8x32xbf16>
    tpu.vector_store %arg6[%c210, %c0_135], %234 {strides = array<i32>} : memref<352x128xbf16, #tpu.memory_space<vmem>>, vector<8x32xbf16>,
    %c209_136 = arith.constant 209 : index
    %c32_137 = arith.constant 32 : index
    %236 = vector.load %arg6[%c209_136, %c32_137] : memref<352x128xbf16, #tpu.memory_space<vmem>>, vector<8x32xbf16>
    tpu.vector_store %arg6[%c209_136, %c32_137], %234 {strides = array<i32>} : memref<352x128xbf16, #tpu.memory_space<vmem>>, vector<8x32xbf16>,
    %c208_138 = arith.constant 208 : index
    %c64_139 = arith.constant 64 : index
    %237 = vector.load %arg6[%c208_138, %c64_139] : memref<352x128xbf16, #tpu.memory_space<vmem>>, vector<8x32xbf16>
    tpu.vector_store %arg6[%c208_138, %c64_139], %234 {strides = array<i32>} : memref<352x128xbf16, #tpu.memory_space<vmem>>, vector<8x32xbf16>,
    %c320 = arith.constant 320 : index
    %c0_140 = arith.constant 0 : index
    %238 = tpu.strided_load %arg7[%c320, %c0_140] {strides = array<i32: 2, 1>} : memref<512x128xf32, #tpu.memory_space<vmem>>, vector<8x128xf32>
    %c321 = arith.constant 321 : index
    %c0_141 = arith.constant 0 : index
    %239 = tpu.strided_load %arg7[%c321, %c0_141] {strides = array<i32: 2, 1>} : memref<512x128xf32, #tpu.memory_space<vmem>>, vector<8x128xf32>
    %c336 = arith.constant 336 : index
    %c0_142 = arith.constant 0 : index
    %240 = tpu.strided_load %arg7[%c336, %c0_142] {strides = array<i32: 2, 1>} : memref<512x128xf32, #tpu.memory_space<vmem>>, vector<8x128xf32>
    %c337 = arith.constant 337 : index
    %c0_143 = arith.constant 0 : index
    %241 = tpu.strided_load %arg7[%c337, %c0_143] {strides = array<i32: 2, 1>} : memref<512x128xf32, #tpu.memory_space<vmem>>, vector<8x128xf32>
    %242 = arith.maximumf %238, %239 : vector<8x128xf32>
    %243 = arith.maximumf %240, %241 : vector<8x128xf32>
    %244 = arith.maximumf %242, %243 : vector<8x128xf32>
    %245 = vector.broadcast %46 : vector<1x128xf32> to vector<8x128xf32>
    %246 = arith.subf %244, %245 : vector<8x128xf32>
    %247 = vector.broadcast %55 : vector<1x128xf32> to vector<8x128xf32>
    %248 = arith.mulf %246, %247 : vector<8x128xf32>
    %cst_144 = arith.constant 0.000000e+00 : f32
    %249 = vector.broadcast %cst_144 : f32 to vector<8x128xf32>
    %250 = arith.maximumf %248, %249 : vector<8x128xf32>
    %251 = arith.truncf %250 : vector<8x128xf32> to vector<8x128xbf16>
    %252 = vector.extract_strided_slice %251 {offsets = [0, 0], sizes = [8, 32], strides = [1, 1]} : vector<8x128xbf16> to vector<8x32xbf16>
    %c226 = arith.constant 226 : index
    %c0_145 = arith.constant 0 : index
    %253 = vector.load %arg6[%c226, %c0_145] : memref<352x128xbf16, #tpu.memory_space<vmem>>, vector<8x32xbf16>
    tpu.vector_store %arg6[%c226, %c0_145], %252 {strides = array<i32>} : memref<352x128xbf16, #tpu.memory_space<vmem>>, vector<8x32xbf16>,
    %c225_146 = arith.constant 225 : index
    %c32_147 = arith.constant 32 : index
    %254 = vector.load %arg6[%c225_146, %c32_147] : memref<352x128xbf16, #tpu.memory_space<vmem>>, vector<8x32xbf16>
    tpu.vector_store %arg6[%c225_146, %c32_147], %252 {strides = array<i32>} : memref<352x128xbf16, #tpu.memory_space<vmem>>, vector<8x32xbf16>,
    %c224_148 = arith.constant 224 : index
    %c64_149 = arith.constant 64 : index
    %255 = vector.load %arg6[%c224_148, %c64_149] : memref<352x128xbf16, #tpu.memory_space<vmem>>, vector<8x32xbf16>
    tpu.vector_store %arg6[%c224_148, %c64_149], %252 {strides = array<i32>} : memref<352x128xbf16, #tpu.memory_space<vmem>>, vector<8x32xbf16>,
    %c352 = arith.constant 352 : index
    %c0_150 = arith.constant 0 : index
    %256 = tpu.strided_load %arg7[%c352, %c0_150] {strides = array<i32: 2, 1>} : memref<512x128xf32, #tpu.memory_space<vmem>>, vector<8x128xf32>
    %c353 = arith.constant 353 : index
    %c0_151 = arith.constant 0 : index
    %257 = tpu.strided_load %arg7[%c353, %c0_151] {strides = array<i32: 2, 1>} : memref<512x128xf32, #tpu.memory_space<vmem>>, vector<8x128xf32>
    %c368 = arith.constant 368 : index
    %c0_152 = arith.constant 0 : index
    %258 = tpu.strided_load %arg7[%c368, %c0_152] {strides = array<i32: 2, 1>} : memref<512x128xf32, #tpu.memory_space<vmem>>, vector<8x128xf32>
    %c369 = arith.constant 369 : index
    %c0_153 = arith.constant 0 : index
    %259 = tpu.strided_load %arg7[%c369, %c0_153] {strides = array<i32: 2, 1>} : memref<512x128xf32, #tpu.memory_space<vmem>>, vector<8x128xf32>
    %260 = arith.maximumf %256, %257 : vector<8x128xf32>
    %261 = arith.maximumf %258, %259 : vector<8x128xf32>
    %262 = arith.maximumf %260, %261 : vector<8x128xf32>
    %263 = vector.broadcast %46 : vector<1x128xf32> to vector<8x128xf32>
    %264 = arith.subf %262, %263 : vector<8x128xf32>
    %265 = vector.broadcast %55 : vector<1x128xf32> to vector<8x128xf32>
    %266 = arith.mulf %264, %265 : vector<8x128xf32>
    %cst_154 = arith.constant 0.000000e+00 : f32
    %267 = vector.broadcast %cst_154 : f32 to vector<8x128xf32>
    %268 = arith.maximumf %266, %267 : vector<8x128xf32>
    %269 = arith.truncf %268 : vector<8x128xf32> to vector<8x128xbf16>
    %270 = vector.extract_strided_slice %269 {offsets = [0, 0], sizes = [8, 32], strides = [1, 1]} : vector<8x128xbf16> to vector<8x32xbf16>
    %c242 = arith.constant 242 : index
    %c0_155 = arith.constant 0 : index
    %271 = vector.load %arg6[%c242, %c0_155] : memref<352x128xbf16, #tpu.memory_space<vmem>>, vector<8x32xbf16>
    tpu.vector_store %arg6[%c242, %c0_155], %270 {strides = array<i32>} : memref<352x128xbf16, #tpu.memory_space<vmem>>, vector<8x32xbf16>,
    %c241_156 = arith.constant 241 : index
    %c32_157 = arith.constant 32 : index
    %272 = vector.load %arg6[%c241_156, %c32_157] : memref<352x128xbf16, #tpu.memory_space<vmem>>, vector<8x32xbf16>
    tpu.vector_store %arg6[%c241_156, %c32_157], %270 {strides = array<i32>} : memref<352x128xbf16, #tpu.memory_space<vmem>>, vector<8x32xbf16>,
    %c240_158 = arith.constant 240 : index
    %c64_159 = arith.constant 64 : index
    %273 = vector.load %arg6[%c240_158, %c64_159] : memref<352x128xbf16, #tpu.memory_space<vmem>>, vector<8x32xbf16>
    tpu.vector_store %arg6[%c240_158, %c64_159], %270 {strides = array<i32>} : memref<352x128xbf16, #tpu.memory_space<vmem>>, vector<8x32xbf16>,
    %c384_160 = arith.constant 384 : index
    %c0_161 = arith.constant 0 : index
    %274 = tpu.strided_load %arg7[%c384_160, %c0_161] {strides = array<i32: 2, 1>} : memref<512x128xf32, #tpu.memory_space<vmem>>, vector<8x128xf32>
    %c385 = arith.constant 385 : index
    %c0_162 = arith.constant 0 : index
    %275 = tpu.strided_load %arg7[%c385, %c0_162] {strides = array<i32: 2, 1>} : memref<512x128xf32, #tpu.memory_space<vmem>>, vector<8x128xf32>
    %c400 = arith.constant 400 : index
    %c0_163 = arith.constant 0 : index
    %276 = tpu.strided_load %arg7[%c400, %c0_163] {strides = array<i32: 2, 1>} : memref<512x128xf32, #tpu.memory_space<vmem>>, vector<8x128xf32>
    %c401 = arith.constant 401 : index
    %c0_164 = arith.constant 0 : index
    %277 = tpu.strided_load %arg7[%c401, %c0_164] {strides = array<i32: 2, 1>} : memref<512x128xf32, #tpu.memory_space<vmem>>, vector<8x128xf32>
    %278 = arith.maximumf %274, %275 : vector<8x128xf32>
    %279 = arith.maximumf %276, %277 : vector<8x128xf32>
    %280 = arith.maximumf %278, %279 : vector<8x128xf32>
    %281 = vector.broadcast %46 : vector<1x128xf32> to vector<8x128xf32>
    %282 = arith.subf %280, %281 : vector<8x128xf32>
    %283 = vector.broadcast %55 : vector<1x128xf32> to vector<8x128xf32>
    %284 = arith.mulf %282, %283 : vector<8x128xf32>
    %cst_165 = arith.constant 0.000000e+00 : f32
    %285 = vector.broadcast %cst_165 : f32 to vector<8x128xf32>
    %286 = arith.maximumf %284, %285 : vector<8x128xf32>
    %287 = arith.truncf %286 : vector<8x128xf32> to vector<8x128xbf16>
    %288 = vector.extract_strided_slice %287 {offsets = [0, 0], sizes = [8, 32], strides = [1, 1]} : vector<8x128xbf16> to vector<8x32xbf16>
    %c258 = arith.constant 258 : index
    %c0_166 = arith.constant 0 : index
    %289 = vector.load %arg6[%c258, %c0_166] : memref<352x128xbf16, #tpu.memory_space<vmem>>, vector<8x32xbf16>
    tpu.vector_store %arg6[%c258, %c0_166], %288 {strides = array<i32>} : memref<352x128xbf16, #tpu.memory_space<vmem>>, vector<8x32xbf16>,
    %c257_167 = arith.constant 257 : index
    %c32_168 = arith.constant 32 : index
    %290 = vector.load %arg6[%c257_167, %c32_168] : memref<352x128xbf16, #tpu.memory_space<vmem>>, vector<8x32xbf16>
    tpu.vector_store %arg6[%c257_167, %c32_168], %288 {strides = array<i32>} : memref<352x128xbf16, #tpu.memory_space<vmem>>, vector<8x32xbf16>,
    %c256_169 = arith.constant 256 : index
    %c64_170 = arith.constant 64 : index
    %291 = vector.load %arg6[%c256_169, %c64_170] : memref<352x128xbf16, #tpu.memory_space<vmem>>, vector<8x32xbf16>
    tpu.vector_store %arg6[%c256_169, %c64_170], %288 {strides = array<i32>} : memref<352x128xbf16, #tpu.memory_space<vmem>>, vector<8x32xbf16>,
    %c416 = arith.constant 416 : index
    %c0_171 = arith.constant 0 : index
    %292 = tpu.strided_load %arg7[%c416, %c0_171] {strides = array<i32: 2, 1>} : memref<512x128xf32, #tpu.memory_space<vmem>>, vector<8x128xf32>
    %c417 = arith.constant 417 : index
    %c0_172 = arith.constant 0 : index
    %293 = tpu.strided_load %arg7[%c417, %c0_172] {strides = array<i32: 2, 1>} : memref<512x128xf32, #tpu.memory_space<vmem>>, vector<8x128xf32>
    %c432 = arith.constant 432 : index
    %c0_173 = arith.constant 0 : index
    %294 = tpu.strided_load %arg7[%c432, %c0_173] {strides = array<i32: 2, 1>} : memref<512x128xf32, #tpu.memory_space<vmem>>, vector<8x128xf32>
    %c433 = arith.constant 433 : index
    %c0_174 = arith.constant 0 : index
    %295 = tpu.strided_load %arg7[%c433, %c0_174] {strides = array<i32: 2, 1>} : memref<512x128xf32, #tpu.memory_space<vmem>>, vector<8x128xf32>
    %296 = arith.maximumf %292, %293 : vector<8x128xf32>
    %297 = arith.maximumf %294, %295 : vector<8x128xf32>
    %298 = arith.maximumf %296, %297 : vector<8x128xf32>
    %299 = vector.broadcast %46 : vector<1x128xf32> to vector<8x128xf32>
    %300 = arith.subf %298, %299 : vector<8x128xf32>
    %301 = vector.broadcast %55 : vector<1x128xf32> to vector<8x128xf32>
    %302 = arith.mulf %300, %301 : vector<8x128xf32>
    %cst_175 = arith.constant 0.000000e+00 : f32
    %303 = vector.broadcast %cst_175 : f32 to vector<8x128xf32>
    %304 = arith.maximumf %302, %303 : vector<8x128xf32>
    %305 = arith.truncf %304 : vector<8x128xf32> to vector<8x128xbf16>
    %306 = vector.extract_strided_slice %305 {offsets = [0, 0], sizes = [8, 32], strides = [1, 1]} : vector<8x128xbf16> to vector<8x32xbf16>
    %c274 = arith.constant 274 : index
    %c0_176 = arith.constant 0 : index
    %307 = vector.load %arg6[%c274, %c0_176] : memref<352x128xbf16, #tpu.memory_space<vmem>>, vector<8x32xbf16>
    tpu.vector_store %arg6[%c274, %c0_176], %306 {strides = array<i32>} : memref<352x128xbf16, #tpu.memory_space<vmem>>, vector<8x32xbf16>,
    %c273_177 = arith.constant 273 : index
    %c32_178 = arith.constant 32 : index
    %308 = vector.load %arg6[%c273_177, %c32_178] : memref<352x128xbf16, #tpu.memory_space<vmem>>, vector<8x32xbf16>
    tpu.vector_store %arg6[%c273_177, %c32_178], %306 {strides = array<i32>} : memref<352x128xbf16, #tpu.memory_space<vmem>>, vector<8x32xbf16>,
    %c272_179 = arith.constant 272 : index
    %c64_180 = arith.constant 64 : index
    %309 = vector.load %arg6[%c272_179, %c64_180] : memref<352x128xbf16, #tpu.memory_space<vmem>>, vector<8x32xbf16>
    tpu.vector_store %arg6[%c272_179, %c64_180], %306 {strides = array<i32>} : memref<352x128xbf16, #tpu.memory_space<vmem>>, vector<8x32xbf16>,
    %c448 = arith.constant 448 : index
    %c0_181 = arith.constant 0 : index
    %310 = tpu.strided_load %arg7[%c448, %c0_181] {strides = array<i32: 2, 1>} : memref<512x128xf32, #tpu.memory_space<vmem>>, vector<8x128xf32>
    %c449 = arith.constant 449 : index
    %c0_182 = arith.constant 0 : index
    %311 = tpu.strided_load %arg7[%c449, %c0_182] {strides = array<i32: 2, 1>} : memref<512x128xf32, #tpu.memory_space<vmem>>, vector<8x128xf32>
    %c464 = arith.constant 464 : index
    %c0_183 = arith.constant 0 : index
    %312 = tpu.strided_load %arg7[%c464, %c0_183] {strides = array<i32: 2, 1>} : memref<512x128xf32, #tpu.memory_space<vmem>>, vector<8x128xf32>
    %c465 = arith.constant 465 : index
    %c0_184 = arith.constant 0 : index
    %313 = tpu.strided_load %arg7[%c465, %c0_184] {strides = array<i32: 2, 1>} : memref<512x128xf32, #tpu.memory_space<vmem>>, vector<8x128xf32>
    %314 = arith.maximumf %310, %311 : vector<8x128xf32>
    %315 = arith.maximumf %312, %313 : vector<8x128xf32>
    %316 = arith.maximumf %314, %315 : vector<8x128xf32>
    %317 = vector.broadcast %46 : vector<1x128xf32> to vector<8x128xf32>
    %318 = arith.subf %316, %317 : vector<8x128xf32>
    %319 = vector.broadcast %55 : vector<1x128xf32> to vector<8x128xf32>
    %320 = arith.mulf %318, %319 : vector<8x128xf32>
    %cst_185 = arith.constant 0.000000e+00 : f32
    %321 = vector.broadcast %cst_185 : f32 to vector<8x128xf32>
    %322 = arith.maximumf %320, %321 : vector<8x128xf32>
    %323 = arith.truncf %322 : vector<8x128xf32> to vector<8x128xbf16>
    %324 = vector.extract_strided_slice %323 {offsets = [0, 0], sizes = [8, 32], strides = [1, 1]} : vector<8x128xbf16> to vector<8x32xbf16>
    %c290 = arith.constant 290 : index
    %c0_186 = arith.constant 0 : index
    %325 = vector.load %arg6[%c290, %c0_186] : memref<352x128xbf16, #tpu.memory_space<vmem>>, vector<8x32xbf16>
    tpu.vector_store %arg6[%c290, %c0_186], %324 {strides = array<i32>} : memref<352x128xbf16, #tpu.memory_space<vmem>>, vector<8x32xbf16>,
    %c289_187 = arith.constant 289 : index
    %c32_188 = arith.constant 32 : index
    %326 = vector.load %arg6[%c289_187, %c32_188] : memref<352x128xbf16, #tpu.memory_space<vmem>>, vector<8x32xbf16>
    tpu.vector_store %arg6[%c289_187, %c32_188], %324 {strides = array<i32>} : memref<352x128xbf16, #tpu.memory_space<vmem>>, vector<8x32xbf16>,
    %c288_189 = arith.constant 288 : index
    %c64_190 = arith.constant 64 : index
    %327 = vector.load %arg6[%c288_189, %c64_190] : memref<352x128xbf16, #tpu.memory_space<vmem>>, vector<8x32xbf16>
    tpu.vector_store %arg6[%c288_189, %c64_190], %324 {strides = array<i32>} : memref<352x128xbf16, #tpu.memory_space<vmem>>, vector<8x32xbf16>,
    %c480 = arith.constant 480 : index
    %c0_191 = arith.constant 0 : index
    %328 = tpu.strided_load %arg7[%c480, %c0_191] {strides = array<i32: 2, 1>} : memref<512x128xf32, #tpu.memory_space<vmem>>, vector<8x128xf32>
    %c481 = arith.constant 481 : index
    %c0_192 = arith.constant 0 : index
    %329 = tpu.strided_load %arg7[%c481, %c0_192] {strides = array<i32: 2, 1>} : memref<512x128xf32, #tpu.memory_space<vmem>>, vector<8x128xf32>
    %c496 = arith.constant 496 : index
    %c0_193 = arith.constant 0 : index
    %330 = tpu.strided_load %arg7[%c496, %c0_193] {strides = array<i32: 2, 1>} : memref<512x128xf32, #tpu.memory_space<vmem>>, vector<8x128xf32>
    %c497 = arith.constant 497 : index
    %c0_194 = arith.constant 0 : index
    %331 = tpu.strided_load %arg7[%c497, %c0_194] {strides = array<i32: 2, 1>} : memref<512x128xf32, #tpu.memory_space<vmem>>, vector<8x128xf32>
    %332 = arith.maximumf %328, %329 : vector<8x128xf32>
    %333 = arith.maximumf %330, %331 : vector<8x128xf32>
    %334 = arith.maximumf %332, %333 : vector<8x128xf32>
    %335 = vector.broadcast %46 : vector<1x128xf32> to vector<8x128xf32>
    %336 = arith.subf %334, %335 : vector<8x128xf32>
    %337 = vector.broadcast %55 : vector<1x128xf32> to vector<8x128xf32>
    %338 = arith.mulf %336, %337 : vector<8x128xf32>
    %cst_195 = arith.constant 0.000000e+00 : f32
    %339 = vector.broadcast %cst_195 : f32 to vector<8x128xf32>
    %340 = arith.maximumf %338, %339 : vector<8x128xf32>
    %341 = arith.truncf %340 : vector<8x128xf32> to vector<8x128xbf16>
    %342 = vector.extract_strided_slice %341 {offsets = [0, 0], sizes = [8, 32], strides = [1, 1]} : vector<8x128xbf16> to vector<8x32xbf16>
    %c306 = arith.constant 306 : index
    %c0_196 = arith.constant 0 : index
    %343 = vector.load %arg6[%c306, %c0_196] : memref<352x128xbf16, #tpu.memory_space<vmem>>, vector<8x32xbf16>
    tpu.vector_store %arg6[%c306, %c0_196], %342 {strides = array<i32>} : memref<352x128xbf16, #tpu.memory_space<vmem>>, vector<8x32xbf16>,
    %c305_197 = arith.constant 305 : index
    %c32_198 = arith.constant 32 : index
    %344 = vector.load %arg6[%c305_197, %c32_198] : memref<352x128xbf16, #tpu.memory_space<vmem>>, vector<8x32xbf16>
    tpu.vector_store %arg6[%c305_197, %c32_198], %342 {strides = array<i32>} : memref<352x128xbf16, #tpu.memory_space<vmem>>, vector<8x32xbf16>,
    %c304_199 = arith.constant 304 : index
    %c64_200 = arith.constant 64 : index
    %345 = vector.load %arg6[%c304_199, %c64_200] : memref<352x128xbf16, #tpu.memory_space<vmem>>, vector<8x32xbf16>
    tpu.vector_store %arg6[%c304_199, %c64_200], %342 {strides = array<i32>} : memref<352x128xbf16, #tpu.memory_space<vmem>>, vector<8x32xbf16>,
    %cst_201 = arith.constant 0.000000e+00 : f32
    %346 = vector.broadcast %cst_201 : f32 to vector<1x128xf32>
    %cst_202 = arith.constant 0.000000e+00 : f32
    %347 = vector.broadcast %cst_202 : f32 to vector<1x128xf32>
    %c0_203 = arith.constant 0 : index
    %c0_204 = arith.constant 0 : index
    %348 = vector.load %arg6[%c0_203, %c0_204] : memref<352x128xbf16, #tpu.memory_space<vmem>>, vector<80x128xbf16>
    %c0_205 = arith.constant 0 : index
    %c0_206 = arith.constant 0 : index
    %c0_207 = arith.constant 0 : index
    %c0_208 = arith.constant 0 : index
    %349 = vector.load %arg2[%c0_205, %c0_206, %c0_207, %c0_208] : memref<3x3x128x128xbf16, #tpu.memory_space<vmem>>, vector<1x1x128x128xbf16>
    %350 = vector.shape_cast %349 : vector<1x1x128x128xbf16> to vector<128x128xbf16>
    %cst_209 = arith.constant dense<0.000000e+00> : vector<80x128xf32>
    %351 = tpu.matmul %348, %350, %cst_209 {dimension_numbers = #tpu.dot_dimension_numbers<[1], [0], [0], [1], [0, 0, 1, 1], [], []>} : vector<80x128xbf16>, vector<128x128xbf16>, vector<80x128xf32> -> vector<80x128xf32>
    %c16_210 = arith.constant 16 : index
    %c0_211 = arith.constant 0 : index
    %352 = vector.load %arg6[%c16_210, %c0_211] : memref<352x128xbf16, #tpu.memory_space<vmem>>, vector<80x128xbf16>
    %c0_212 = arith.constant 0 : index
    %c1_213 = arith.constant 1 : index
    %c0_214 = arith.constant 0 : index
    %c0_215 = arith.constant 0 : index
    %353 = vector.load %arg2[%c0_212, %c1_213, %c0_214, %c0_215] : memref<3x3x128x128xbf16, #tpu.memory_space<vmem>>, vector<1x1x128x128xbf16>
    %354 = vector.shape_cast %353 : vector<1x1x128x128xbf16> to vector<128x128xbf16>
    %cst_216 = arith.constant dense<0.000000e+00> : vector<80x128xf32>
    %355 = tpu.matmul %352, %354, %cst_216 {dimension_numbers = #tpu.dot_dimension_numbers<[1], [0], [0], [1], [0, 0, 1, 1], [], []>} : vector<80x128xbf16>, vector<128x128xbf16>, vector<80x128xf32> -> vector<80x128xf32>
    %356 = arith.addf %351, %355 : vector<80x128xf32>
    %c32_217 = arith.constant 32 : index
    %c0_218 = arith.constant 0 : index
    %357 = vector.load %arg6[%c32_217, %c0_218] : memref<352x128xbf16, #tpu.memory_space<vmem>>, vector<80x128xbf16>
    %c0_219 = arith.constant 0 : index
    %c2 = arith.constant 2 : index
    %c0_220 = arith.constant 0 : index
    %c0_221 = arith.constant 0 : index
    %358 = vector.load %arg2[%c0_219, %c2, %c0_220, %c0_221] : memref<3x3x128x128xbf16, #tpu.memory_space<vmem>>, vector<1x1x128x128xbf16>
    %359 = vector.shape_cast %358 : vector<1x1x128x128xbf16> to vector<128x128xbf16>
    %cst_222 = arith.constant dense<0.000000e+00> : vector<80x128xf32>
    %360 = tpu.matmul %357, %359, %cst_222 {dimension_numbers = #tpu.dot_dimension_numbers<[1], [0], [0], [1], [0, 0, 1, 1], [], []>} : vector<80x128xbf16>, vector<128x128xbf16>, vector<80x128xf32> -> vector<80x128xf32>
    %361 = arith.addf %356, %360 : vector<80x128xf32>
    %362 = tpu.iota {dimensions = array<i32: 0>} : vector<80x1xi32>
    %c0_i32 = arith.constant 0 : i32
    %363 = vector.broadcast %c0_i32 : i32 to vector<80x1xi32>
    %364 = arith.addi %362, %363 : vector<80x1xi32>
    %c15_i32 = arith.constant 15 : i32
    %365 = vector.broadcast %c15_i32 : i32 to vector<80x1xi32>
    %366 = arith.andi %364, %365 : vector<80x1xi32>
    %c16_i32 = arith.constant 16 : i32
    %367 = vector.broadcast %c16_i32 : i32 to vector<80x1xi32>
    %368 = arith.cmpi sge, %364, %367 : vector<80x1xi32>
    %c144_i32 = arith.constant 144 : i32
    %369 = vector.broadcast %c144_i32 : i32 to vector<80x1xi32>
    %370 = arith.cmpi slt, %364, %369 : vector<80x1xi32>
    %371 = arith.andi %368, %370 : vector<80x1xi1>
    %c1_i32 = arith.constant 1 : i32
    %372 = vector.broadcast %c1_i32 : i32 to vector<80x1xi32>
    %373 = arith.cmpi sge, %366, %372 : vector<80x1xi32>
    %374 = arith.andi %371, %373 : vector<80x1xi1>
    %c8_i32 = arith.constant 8 : i32
    %375 = vector.broadcast %c8_i32 : i32 to vector<80x1xi32>
    %376 = arith.cmpi sle, %366, %375 : vector<80x1xi32>
    %377 = arith.andi %374, %376 : vector<80x1xi1>
    %cst_223 = arith.constant 0.000000e+00 : f32
    %378 = vector.shape_cast %377 : vector<80x1xi1> to vector<80x1xi1>
    %379 = vector.broadcast %378 : vector<80x1xi1> to vector<80x128xi1>
    %380 = vector.broadcast %cst_223 : f32 to vector<80x128xf32>
    %381 = arith.select %379, %361, %380 : vector<80x128xi1>, vector<80x128xf32>
    %cst_224 = arith.constant dense<0.000000e+00> : vector<128xf32>
    %382 = vector.multi_reduction <add>, %381, %cst_224 [0] : vector<80x128xf32> to vector<128xf32>
    %383 = vector.shape_cast %382 : vector<128xf32> to vector<1x128xf32>
    %384 = arith.addf %346, %383 : vector<1x128xf32>
    %385 = arith.mulf %381, %361 : vector<80x128xf32>
    %cst_225 = arith.constant dense<0.000000e+00> : vector<128xf32>
    %386 = vector.multi_reduction <add>, %385, %cst_225 [0] : vector<80x128xf32> to vector<128xf32>
    %387 = vector.shape_cast %386 : vector<128xf32> to vector<1x128xf32>
    %388 = arith.addf %347, %387 : vector<1x128xf32>
    %c0_226 = arith.constant 0 : index
    %c0_227 = arith.constant 0 : index
    %389 = vector.load %arg7[%c0_226, %c0_227] : memref<512x128xf32, #tpu.memory_space<vmem>>, vector<80x128xf32>
    tpu.vector_store %arg7[%c0_226, %c0_227], %361 {strides = array<i32>} : memref<512x128xf32, #tpu.memory_space<vmem>>, vector<80x128xf32>,
    %c80_228 = arith.constant 80 : index
    %c0_229 = arith.constant 0 : index
    %390 = vector.load %arg6[%c80_228, %c0_229] : memref<352x128xbf16, #tpu.memory_space<vmem>>, vector<80x128xbf16>
    %c0_230 = arith.constant 0 : index
    %c0_231 = arith.constant 0 : index
    %c0_232 = arith.constant 0 : index
    %c0_233 = arith.constant 0 : index
    %391 = vector.load %arg2[%c0_230, %c0_231, %c0_232, %c0_233] : memref<3x3x128x128xbf16, #tpu.memory_space<vmem>>, vector<1x1x128x128xbf16>
    %392 = vector.shape_cast %391 : vector<1x1x128x128xbf16> to vector<128x128xbf16>
    %cst_234 = arith.constant dense<0.000000e+00> : vector<80x128xf32>
    %393 = tpu.matmul %390, %392, %cst_234 {dimension_numbers = #tpu.dot_dimension_numbers<[1], [0], [0], [1], [0, 0, 1, 1], [], []>} : vector<80x128xbf16>, vector<128x128xbf16>, vector<80x128xf32> -> vector<80x128xf32>
    %c96_235 = arith.constant 96 : index
    %c0_236 = arith.constant 0 : index
    %394 = vector.load %arg6[%c96_235, %c0_236] : memref<352x128xbf16, #tpu.memory_space<vmem>>, vector<80x128xbf16>
    %c0_237 = arith.constant 0 : index
    %c1_238 = arith.constant 1 : index
    %c0_239 = arith.constant 0 : index
    %c0_240 = arith.constant 0 : index
    %395 = vector.load %arg2[%c0_237, %c1_238, %c0_239, %c0_240] : memref<3x3x128x128xbf16, #tpu.memory_space<vmem>>, vector<1x1x128x128xbf16>
    %396 = vector.shape_cast %395 : vector<1x1x128x128xbf16> to vector<128x128xbf16>
    %cst_241 = arith.constant dense<0.000000e+00> : vector<80x128xf32>
    %397 = tpu.matmul %394, %396, %cst_241 {dimension_numbers = #tpu.dot_dimension_numbers<[1], [0], [0], [1], [0, 0, 1, 1], [], []>} : vector<80x128xbf16>, vector<128x128xbf16>, vector<80x128xf32> -> vector<80x128xf32>
    %398 = arith.addf %393, %397 : vector<80x128xf32>
    %c112_242 = arith.constant 112 : index
    %c0_243 = arith.constant 0 : index
    %399 = vector.load %arg6[%c112_242, %c0_243] : memref<352x128xbf16, #tpu.memory_space<vmem>>, vector<80x128xbf16>
    %c0_244 = arith.constant 0 : index
    %c2_245 = arith.constant 2 : index
    %c0_246 = arith.constant 0 : index
    %c0_247 = arith.constant 0 : index
    %400 = vector.load %arg2[%c0_244, %c2_245, %c0_246, %c0_247] : memref<3x3x128x128xbf16, #tpu.memory_space<vmem>>, vector<1x1x128x128xbf16>
    %401 = vector.shape_cast %400 : vector<1x1x128x128xbf16> to vector<128x128xbf16>
    %cst_248 = arith.constant dense<0.000000e+00> : vector<80x128xf32>
    %402 = tpu.matmul %399, %401, %cst_248 {dimension_numbers = #tpu.dot_dimension_numbers<[1], [0], [0], [1], [0, 0, 1, 1], [], []>} : vector<80x128xbf16>, vector<128x128xbf16>, vector<80x128xf32> -> vector<80x128xf32>
    %403 = arith.addf %398, %402 : vector<80x128xf32>
    %404 = tpu.iota {dimensions = array<i32: 0>} : vector<80x1xi32>
    %c80_i32 = arith.constant 80 : i32
    %405 = vector.broadcast %c80_i32 : i32 to vector<80x1xi32>
    %406 = arith.addi %404, %405 : vector<80x1xi32>
    %c15_i32_249 = arith.constant 15 : i32
    %407 = vector.broadcast %c15_i32_249 : i32 to vector<80x1xi32>
    %408 = arith.andi %406, %407 : vector<80x1xi32>
    %c16_i32_250 = arith.constant 16 : i32
    %409 = vector.broadcast %c16_i32_250 : i32 to vector<80x1xi32>
    %410 = arith.cmpi sge, %406, %409 : vector<80x1xi32>
    %c144_i32_251 = arith.constant 144 : i32
    %411 = vector.broadcast %c144_i32_251 : i32 to vector<80x1xi32>
    %412 = arith.cmpi slt, %406, %411 : vector<80x1xi32>
    %413 = arith.andi %410, %412 : vector<80x1xi1>
    %c1_i32_252 = arith.constant 1 : i32
    %414 = vector.broadcast %c1_i32_252 : i32 to vector<80x1xi32>
    %415 = arith.cmpi sge, %408, %414 : vector<80x1xi32>
    %416 = arith.andi %413, %415 : vector<80x1xi1>
    %c8_i32_253 = arith.constant 8 : i32
    %417 = vector.broadcast %c8_i32_253 : i32 to vector<80x1xi32>
    %418 = arith.cmpi sle, %408, %417 : vector<80x1xi32>
    %419 = arith.andi %416, %418 : vector<80x1xi1>
    %cst_254 = arith.constant 0.000000e+00 : f32
    %420 = vector.shape_cast %419 : vector<80x1xi1> to vector<80x1xi1>
    %421 = vector.broadcast %420 : vector<80x1xi1> to vector<80x128xi1>
    %422 = vector.broadcast %cst_254 : f32 to vector<80x128xf32>
    %423 = arith.select %421, %403, %422 : vector<80x128xi1>, vector<80x128xf32>
    %cst_255 = arith.constant dense<0.000000e+00> : vector<128xf32>
    %424 = vector.multi_reduction <add>, %423, %cst_255 [0] : vector<80x128xf32> to vector<128xf32>
    %425 = vector.shape_cast %424 : vector<128xf32> to vector<1x128xf32>
    %426 = arith.addf %384, %425 : vector<1x128xf32>
    %427 = arith.mulf %423, %403 : vector<80x128xf32>
    %cst_256 = arith.constant dense<0.000000e+00> : vector<128xf32>
    %428 = vector.multi_reduction <add>, %427, %cst_256 [0] : vector<80x128xf32> to vector<128xf32>
    %429 = vector.shape_cast %428 : vector<128xf32> to vector<1x128xf32>
    %430 = arith.addf %388, %429 : vector<1x128xf32>
    %c80_257 = arith.constant 80 : index
    %c0_258 = arith.constant 0 : index
    %431 = vector.load %arg7[%c80_257, %c0_258] : memref<512x128xf32, #tpu.memory_space<vmem>>, vector<80x128xf32>
    tpu.vector_store %arg7[%c80_257, %c0_258], %403 {strides = array<i32>} : memref<512x128xf32, #tpu.memory_space<vmem>>, vector<80x128xf32>,
    %c160_259 = arith.constant 160 : index
    %c0_260 = arith.constant 0 : index
    %432 = vector.load %arg6[%c160_259, %c0_260] : memref<352x128xbf16, #tpu.memory_space<vmem>>, vector<80x128xbf16>
    %c0_261 = arith.constant 0 : index
    %c0_262 = arith.constant 0 : index
    %c0_263 = arith.constant 0 : index
    %c0_264 = arith.constant 0 : index
    %433 = vector.load %arg2[%c0_261, %c0_262, %c0_263, %c0_264] : memref<3x3x128x128xbf16, #tpu.memory_space<vmem>>, vector<1x1x128x128xbf16>
    %434 = vector.shape_cast %433 : vector<1x1x128x128xbf16> to vector<128x128xbf16>
    %cst_265 = arith.constant dense<0.000000e+00> : vector<80x128xf32>
    %435 = tpu.matmul %432, %434, %cst_265 {dimension_numbers = #tpu.dot_dimension_numbers<[1], [0], [0], [1], [0, 0, 1, 1], [], []>} : vector<80x128xbf16>, vector<128x128xbf16>, vector<80x128xf32> -> vector<80x128xf32>
    %c176_266 = arith.constant 176 : index
    %c0_267 = arith.constant 0 : index
    %436 = vector.load %arg6[%c176_266, %c0_267] : memref<352x128xbf16, #tpu.memory_space<vmem>>, vector<80x128xbf16>
    %c0_268 = arith.constant 0 : index
    %c1_269 = arith.constant 1 : index
    %c0_270 = arith.constant 0 : index
    %c0_271 = arith.constant 0 : index
    %437 = vector.load %arg2[%c0_268, %c1_269, %c0_270, %c0_271] : memref<3x3x128x128xbf16, #tpu.memory_space<vmem>>, vector<1x1x128x128xbf16>
    %438 = vector.shape_cast %437 : vector<1x1x128x128xbf16> to vector<128x128xbf16>
    %cst_272 = arith.constant dense<0.000000e+00> : vector<80x128xf32>
    %439 = tpu.matmul %436, %438, %cst_272 {dimension_numbers = #tpu.dot_dimension_numbers<[1], [0], [0], [1], [0, 0, 1, 1], [], []>} : vector<80x128xbf16>, vector<128x128xbf16>, vector<80x128xf32> -> vector<80x128xf32>
    %440 = arith.addf %435, %439 : vector<80x128xf32>
    %c192_273 = arith.constant 192 : index
    %c0_274 = arith.constant 0 : index
    %441 = vector.load %arg6[%c192_273, %c0_274] : memref<352x128xbf16, #tpu.memory_space<vmem>>, vector<80x128xbf16>
    %c0_275 = arith.constant 0 : index
    %c2_276 = arith.constant 2 : index
    %c0_277 = arith.constant 0 : index
    %c0_278 = arith.constant 0 : index
    %442 = vector.load %arg2[%c0_275, %c2_276, %c0_277, %c0_278] : memref<3x3x128x128xbf16, #tpu.memory_space<vmem>>, vector<1x1x128x128xbf16>
    %443 = vector.shape_cast %442 : vector<1x1x128x128xbf16> to vector<128x128xbf16>
    %cst_279 = arith.constant dense<0.000000e+00> : vector<80x128xf32>
    %444 = tpu.matmul %441, %443, %cst_279 {dimension_numbers = #tpu.dot_dimension_numbers<[1], [0], [0], [1], [0, 0, 1, 1], [], []>} : vector<80x128xbf16>, vector<128x128xbf16>, vector<80x128xf32> -> vector<80x128xf32>
    %445 = arith.addf %440, %444 : vector<80x128xf32>
    %446 = tpu.iota {dimensions = array<i32: 0>} : vector<80x1xi32>
    %c0_i32_280 = arith.constant 0 : i32
    %447 = vector.broadcast %c0_i32_280 : i32 to vector<80x1xi32>
    %448 = arith.addi %446, %447 : vector<80x1xi32>
    %c15_i32_281 = arith.constant 15 : i32
    %449 = vector.broadcast %c15_i32_281 : i32 to vector<80x1xi32>
    %450 = arith.andi %448, %449 : vector<80x1xi32>
    %c16_i32_282 = arith.constant 16 : i32
    %451 = vector.broadcast %c16_i32_282 : i32 to vector<80x1xi32>
    %452 = arith.cmpi sge, %448, %451 : vector<80x1xi32>
    %c144_i32_283 = arith.constant 144 : i32
    %453 = vector.broadcast %c144_i32_283 : i32 to vector<80x1xi32>
    %454 = arith.cmpi slt, %448, %453 : vector<80x1xi32>
    %455 = arith.andi %452, %454 : vector<80x1xi1>
    %c1_i32_284 = arith.constant 1 : i32
    %456 = vector.broadcast %c1_i32_284 : i32 to vector<80x1xi32>
    %457 = arith.cmpi sge, %450, %456 : vector<80x1xi32>
    %458 = arith.andi %455, %457 : vector<80x1xi1>
    %c8_i32_285 = arith.constant 8 : i32
    %459 = vector.broadcast %c8_i32_285 : i32 to vector<80x1xi32>
    %460 = arith.cmpi sle, %450, %459 : vector<80x1xi32>
    %461 = arith.andi %458, %460 : vector<80x1xi1>
    %cst_286 = arith.constant 0.000000e+00 : f32
    %462 = vector.shape_cast %461 : vector<80x1xi1> to vector<80x1xi1>
    %463 = vector.broadcast %462 : vector<80x1xi1> to vector<80x128xi1>
    %464 = vector.broadcast %cst_286 : f32 to vector<80x128xf32>
    %465 = arith.select %463, %445, %464 : vector<80x128xi1>, vector<80x128xf32>
    %cst_287 = arith.constant dense<0.000000e+00> : vector<128xf32>
    %466 = vector.multi_reduction <add>, %465, %cst_287 [0] : vector<80x128xf32> to vector<128xf32>
    %467 = vector.shape_cast %466 : vector<128xf32> to vector<1x128xf32>
    %468 = arith.addf %426, %467 : vector<1x128xf32>
    %469 = arith.mulf %465, %445 : vector<80x128xf32>
    %cst_288 = arith.constant dense<0.000000e+00> : vector<128xf32>
    %470 = vector.multi_reduction <add>, %469, %cst_288 [0] : vector<80x128xf32> to vector<128xf32>
    %471 = vector.shape_cast %470 : vector<128xf32> to vector<1x128xf32>
    %472 = arith.addf %430, %471 : vector<1x128xf32>
    %c160_289 = arith.constant 160 : index
    %c0_290 = arith.constant 0 : index
    %473 = vector.load %arg7[%c160_289, %c0_290] : memref<512x128xf32, #tpu.memory_space<vmem>>, vector<80x128xf32>
    tpu.vector_store %arg7[%c160_289, %c0_290], %445 {strides = array<i32>} : memref<512x128xf32, #tpu.memory_space<vmem>>, vector<80x128xf32>,
    %c240_291 = arith.constant 240 : index
    %c0_292 = arith.constant 0 : index
    %474 = vector.load %arg6[%c240_291, %c0_292] : memref<352x128xbf16, #tpu.memory_space<vmem>>, vector<80x128xbf16>
    %c0_293 = arith.constant 0 : index
    %c0_294 = arith.constant 0 : index
    %c0_295 = arith.constant 0 : index
    %c0_296 = arith.constant 0 : index
    %475 = vector.load %arg2[%c0_293, %c0_294, %c0_295, %c0_296] : memref<3x3x128x128xbf16, #tpu.memory_space<vmem>>, vector<1x1x128x128xbf16>
    %476 = vector.shape_cast %475 : vector<1x1x128x128xbf16> to vector<128x128xbf16>
    %cst_297 = arith.constant dense<0.000000e+00> : vector<80x128xf32>
    %477 = tpu.matmul %474, %476, %cst_297 {dimension_numbers = #tpu.dot_dimension_numbers<[1], [0], [0], [1], [0, 0, 1, 1], [], []>} : vector<80x128xbf16>, vector<128x128xbf16>, vector<80x128xf32> -> vector<80x128xf32>
    %c256_298 = arith.constant 256 : index
    %c0_299 = arith.constant 0 : index
    %478 = vector.load %arg6[%c256_298, %c0_299] : memref<352x128xbf16, #tpu.memory_space<vmem>>, vector<80x128xbf16>
    %c0_300 = arith.constant 0 : index
    %c1_301 = arith.constant 1 : index
    %c0_302 = arith.constant 0 : index
    %c0_303 = arith.constant 0 : index
    %479 = vector.load %arg2[%c0_300, %c1_301, %c0_302, %c0_303] : memref<3x3x128x128xbf16, #tpu.memory_space<vmem>>, vector<1x1x128x128xbf16>
    %480 = vector.shape_cast %479 : vector<1x1x128x128xbf16> to vector<128x128xbf16>
    %cst_304 = arith.constant dense<0.000000e+00> : vector<80x128xf32>
    %481 = tpu.matmul %478, %480, %cst_304 {dimension_numbers = #tpu.dot_dimension_numbers<[1], [0], [0], [1], [0, 0, 1, 1], [], []>} : vector<80x128xbf16>, vector<128x128xbf16>, vector<80x128xf32> -> vector<80x128xf32>
    %482 = arith.addf %477, %481 : vector<80x128xf32>
    %c272_305 = arith.constant 272 : index
    %c0_306 = arith.constant 0 : index
    %483 = vector.load %arg6[%c272_305, %c0_306] : memref<352x128xbf16, #tpu.memory_space<vmem>>, vector<80x128xbf16>
    %c0_307 = arith.constant 0 : index
    %c2_308 = arith.constant 2 : index
    %c0_309 = arith.constant 0 : index
    %c0_310 = arith.constant 0 : index
    %484 = vector.load %arg2[%c0_307, %c2_308, %c0_309, %c0_310] : memref<3x3x128x128xbf16, #tpu.memory_space<vmem>>, vector<1x1x128x128xbf16>
    %485 = vector.shape_cast %484 : vector<1x1x128x128xbf16> to vector<128x128xbf16>
    %cst_311 = arith.constant dense<0.000000e+00> : vector<80x128xf32>
    %486 = tpu.matmul %483, %485, %cst_311 {dimension_numbers = #tpu.dot_dimension_numbers<[1], [0], [0], [1], [0, 0, 1, 1], [], []>} : vector<80x128xbf16>, vector<128x128xbf16>, vector<80x128xf32> -> vector<80x128xf32>
    %487 = arith.addf %482, %486 : vector<80x128xf32>
    %488 = tpu.iota {dimensions = array<i32: 0>} : vector<80x1xi32>
    %c80_i32_312 = arith.constant 80 : i32
    %489 = vector.broadcast %c80_i32_312 : i32 to vector<80x1xi32>
    %490 = arith.addi %488, %489 : vector<80x1xi32>
    %c15_i32_313 = arith.constant 15 : i32
    %491 = vector.broadcast %c15_i32_313 : i32 to vector<80x1xi32>
    %492 = arith.andi %490, %491 : vector<80x1xi32>
    %c16_i32_314 = arith.constant 16 : i32
    %493 = vector.broadcast %c16_i32_314 : i32 to vector<80x1xi32>
    %494 = arith.cmpi sge, %490, %493 : vector<80x1xi32>
    %c144_i32_315 = arith.constant 144 : i32
    %495 = vector.broadcast %c144_i32_315 : i32 to vector<80x1xi32>
    %496 = arith.cmpi slt, %490, %495 : vector<80x1xi32>
    %497 = arith.andi %494, %496 : vector<80x1xi1>
    %c1_i32_316 = arith.constant 1 : i32
    %498 = vector.broadcast %c1_i32_316 : i32 to vector<80x1xi32>
    %499 = arith.cmpi sge, %492, %498 : vector<80x1xi32>
    %500 = arith.andi %497, %499 : vector<80x1xi1>
    %c8_i32_317 = arith.constant 8 : i32
    %501 = vector.broadcast %c8_i32_317 : i32 to vector<80x1xi32>
    %502 = arith.cmpi sle, %492, %501 : vector<80x1xi32>
    %503 = arith.andi %500, %502 : vector<80x1xi1>
    %cst_318 = arith.constant 0.000000e+00 : f32
    %504 = vector.shape_cast %503 : vector<80x1xi1> to vector<80x1xi1>
    %505 = vector.broadcast %504 : vector<80x1xi1> to vector<80x128xi1>
    %506 = vector.broadcast %cst_318 : f32 to vector<80x128xf32>
    %507 = arith.select %505, %487, %506 : vector<80x128xi1>, vector<80x128xf32>
    %cst_319 = arith.constant dense<0.000000e+00> : vector<128xf32>
    %508 = vector.multi_reduction <add>, %507, %cst_319 [0] : vector<80x128xf32> to vector<128xf32>
    %509 = vector.shape_cast %508 : vector<128xf32> to vector<1x128xf32>
    %510 = arith.addf %468, %509 : vector<1x128xf32>
    %511 = arith.mulf %507, %487 : vector<80x128xf32>
    %cst_320 = arith.constant dense<0.000000e+00> : vector<128xf32>
    %512 = vector.multi_reduction <add>, %511, %cst_320 [0] : vector<80x128xf32> to vector<128xf32>
    %513 = vector.shape_cast %512 : vector<128xf32> to vector<1x128xf32>
    %514 = arith.addf %472, %513 : vector<1x128xf32>
    %c240_321 = arith.constant 240 : index
    %c0_322 = arith.constant 0 : index
    %515 = vector.load %arg7[%c240_321, %c0_322] : memref<512x128xf32, #tpu.memory_space<vmem>>, vector<80x128xf32>
    tpu.vector_store %arg7[%c240_321, %c0_322], %487 {strides = array<i32>} : memref<512x128xf32, #tpu.memory_space<vmem>>, vector<80x128xf32>,
    %cst_323 = arith.constant 7.812500e-03 : f32
    %516 = vector.broadcast %cst_323 : f32 to vector<1x128xf32>
    %517 = arith.mulf %510, %516 : vector<1x128xf32>
    %cst_324 = arith.constant 7.812500e-03 : f32
    %518 = vector.broadcast %cst_324 : f32 to vector<1x128xf32>
    %519 = arith.mulf %514, %518 : vector<1x128xf32>
    %520 = arith.mulf %517, %517 : vector<1x128xf32>
    %521 = arith.subf %519, %520 : vector<1x128xf32>
    %cst_325 = arith.constant 0.000000e+00 : f32
    %522 = vector.broadcast %cst_325 : f32 to vector<1x128xf32>
    %523 = arith.maximumf %521, %522 : vector<1x128xf32>
    %cst_326 = arith.constant 9.99999974E-6 : f32
    %524 = vector.broadcast %cst_326 : f32 to vector<1x128xf32>
    %525 = arith.addf %523, %524 : vector<1x128xf32>
    %526 = math.rsqrt %525 : vector<1x128xf32>
    %cst_327 = arith.constant 0.000000e+00 : bf16
    %527 = vector.broadcast %cst_327 : bf16 to vector<224x128xbf16>
    %c0_328 = arith.constant 0 : index
    %c0_329 = arith.constant 0 : index
    %528 = vector.load %arg6[%c0_328, %c0_329] : memref<352x128xbf16, #tpu.memory_space<vmem>>, vector<224x128xbf16>
    tpu.vector_store %arg6[%c0_328, %c0_329], %527 {strides = array<i32>} : memref<352x128xbf16, #tpu.memory_space<vmem>>, vector<224x128xbf16>,
    %c17_330 = arith.constant 17 : index
    %c0_331 = arith.constant 0 : index
    %529 = tpu.strided_load %arg7[%c17_330, %c0_331] {strides = array<i32: 2, 1>} : memref<512x128xf32, #tpu.memory_space<vmem>>, vector<4x128xf32>
    %c18 = arith.constant 18 : index
    %c0_332 = arith.constant 0 : index
    %530 = tpu.strided_load %arg7[%c18, %c0_332] {strides = array<i32: 2, 1>} : memref<512x128xf32, #tpu.memory_space<vmem>>, vector<4x128xf32>
    %c33_333 = arith.constant 33 : index
    %c0_334 = arith.constant 0 : index
    %531 = tpu.strided_load %arg7[%c33_333, %c0_334] {strides = array<i32: 2, 1>} : memref<512x128xf32, #tpu.memory_space<vmem>>, vector<4x128xf32>
    %c34_335 = arith.constant 34 : index
    %c0_336 = arith.constant 0 : index
    %532 = tpu.strided_load %arg7[%c34_335, %c0_336] {strides = array<i32: 2, 1>} : memref<512x128xf32, #tpu.memory_space<vmem>>, vector<4x128xf32>
    %533 = arith.maximumf %529, %530 : vector<4x128xf32>
    %534 = arith.maximumf %531, %532 : vector<4x128xf32>
    %535 = arith.maximumf %533, %534 : vector<4x128xf32>
    %536 = vector.broadcast %517 : vector<1x128xf32> to vector<4x128xf32>
    %537 = arith.subf %535, %536 : vector<4x128xf32>
    %538 = vector.broadcast %526 : vector<1x128xf32> to vector<4x128xf32>
    %539 = arith.mulf %537, %538 : vector<4x128xf32>
    %cst_337 = arith.constant 0.000000e+00 : f32
    %540 = vector.broadcast %cst_337 : f32 to vector<4x128xf32>
    %541 = arith.maximumf %539, %540 : vector<4x128xf32>
    %542 = arith.truncf %541 : vector<4x128xf32> to vector<4x128xbf16>
    %543 = vector.extract_strided_slice %542 {offsets = [0, 0], sizes = [4, 32], strides = [1, 1]} : vector<4x128xbf16> to vector<4x32xbf16>
    %c34_338 = arith.constant 34 : index
    %c0_339 = arith.constant 0 : index
    %544 = vector.load %arg6[%c34_338, %c0_339] : memref<352x128xbf16, #tpu.memory_space<vmem>>, vector<4x32xbf16>
    tpu.vector_store %arg6[%c34_338, %c0_339], %543 {strides = array<i32>} : memref<352x128xbf16, #tpu.memory_space<vmem>>, vector<4x32xbf16>,
    %c33_340 = arith.constant 33 : index
    %c32_341 = arith.constant 32 : index
    %545 = vector.load %arg6[%c33_340, %c32_341] : memref<352x128xbf16, #tpu.memory_space<vmem>>, vector<4x32xbf16>
    tpu.vector_store %arg6[%c33_340, %c32_341], %543 {strides = array<i32>} : memref<352x128xbf16, #tpu.memory_space<vmem>>, vector<4x32xbf16>,
    %c32_342 = arith.constant 32 : index
    %c64_343 = arith.constant 64 : index
    %546 = vector.load %arg6[%c32_342, %c64_343] : memref<352x128xbf16, #tpu.memory_space<vmem>>, vector<4x32xbf16>
    tpu.vector_store %arg6[%c32_342, %c64_343], %543 {strides = array<i32>} : memref<352x128xbf16, #tpu.memory_space<vmem>>, vector<4x32xbf16>,
    %c49_344 = arith.constant 49 : index
    %c0_345 = arith.constant 0 : index
    %547 = tpu.strided_load %arg7[%c49_344, %c0_345] {strides = array<i32: 2, 1>} : memref<512x128xf32, #tpu.memory_space<vmem>>, vector<4x128xf32>
    %c50_346 = arith.constant 50 : index
    %c0_347 = arith.constant 0 : index
    %548 = tpu.strided_load %arg7[%c50_346, %c0_347] {strides = array<i32: 2, 1>} : memref<512x128xf32, #tpu.memory_space<vmem>>, vector<4x128xf32>
    %c65_348 = arith.constant 65 : index
    %c0_349 = arith.constant 0 : index
    %549 = tpu.strided_load %arg7[%c65_348, %c0_349] {strides = array<i32: 2, 1>} : memref<512x128xf32, #tpu.memory_space<vmem>>, vector<4x128xf32>
    %c66_350 = arith.constant 66 : index
    %c0_351 = arith.constant 0 : index
    %550 = tpu.strided_load %arg7[%c66_350, %c0_351] {strides = array<i32: 2, 1>} : memref<512x128xf32, #tpu.memory_space<vmem>>, vector<4x128xf32>
    %551 = arith.maximumf %547, %548 : vector<4x128xf32>
    %552 = arith.maximumf %549, %550 : vector<4x128xf32>
    %553 = arith.maximumf %551, %552 : vector<4x128xf32>
    %554 = vector.broadcast %517 : vector<1x128xf32> to vector<4x128xf32>
    %555 = arith.subf %553, %554 : vector<4x128xf32>
    %556 = vector.broadcast %526 : vector<1x128xf32> to vector<4x128xf32>
    %557 = arith.mulf %555, %556 : vector<4x128xf32>
    %cst_352 = arith.constant 0.000000e+00 : f32
    %558 = vector.broadcast %cst_352 : f32 to vector<4x128xf32>
    %559 = arith.maximumf %557, %558 : vector<4x128xf32>
    %560 = arith.truncf %559 : vector<4x128xf32> to vector<4x128xbf16>
    %561 = vector.extract_strided_slice %560 {offsets = [0, 0], sizes = [4, 32], strides = [1, 1]} : vector<4x128xbf16> to vector<4x32xbf16>
    %c50_353 = arith.constant 50 : index
    %c0_354 = arith.constant 0 : index
    %562 = vector.load %arg6[%c50_353, %c0_354] : memref<352x128xbf16, #tpu.memory_space<vmem>>, vector<4x32xbf16>
    tpu.vector_store %arg6[%c50_353, %c0_354], %561 {strides = array<i32>} : memref<352x128xbf16, #tpu.memory_space<vmem>>, vector<4x32xbf16>,
    %c49_355 = arith.constant 49 : index
    %c32_356 = arith.constant 32 : index
    %563 = vector.load %arg6[%c49_355, %c32_356] : memref<352x128xbf16, #tpu.memory_space<vmem>>, vector<4x32xbf16>
    tpu.vector_store %arg6[%c49_355, %c32_356], %561 {strides = array<i32>} : memref<352x128xbf16, #tpu.memory_space<vmem>>, vector<4x32xbf16>,
    %c48_357 = arith.constant 48 : index
    %c64_358 = arith.constant 64 : index
    %564 = vector.load %arg6[%c48_357, %c64_358] : memref<352x128xbf16, #tpu.memory_space<vmem>>, vector<4x32xbf16>
    tpu.vector_store %arg6[%c48_357, %c64_358], %561 {strides = array<i32>} : memref<352x128xbf16, #tpu.memory_space<vmem>>, vector<4x32xbf16>,
    %c81_359 = arith.constant 81 : index
    %c0_360 = arith.constant 0 : index
    %565 = tpu.strided_load %arg7[%c81_359, %c0_360] {strides = array<i32: 2, 1>} : memref<512x128xf32, #tpu.memory_space<vmem>>, vector<4x128xf32>
    %c82_361 = arith.constant 82 : index
    %c0_362 = arith.constant 0 : index
    %566 = tpu.strided_load %arg7[%c82_361, %c0_362] {strides = array<i32: 2, 1>} : memref<512x128xf32, #tpu.memory_space<vmem>>, vector<4x128xf32>
    %c97_363 = arith.constant 97 : index
    %c0_364 = arith.constant 0 : index
    %567 = tpu.strided_load %arg7[%c97_363, %c0_364] {strides = array<i32: 2, 1>} : memref<512x128xf32, #tpu.memory_space<vmem>>, vector<4x128xf32>
    %c98_365 = arith.constant 98 : index
    %c0_366 = arith.constant 0 : index
    %568 = tpu.strided_load %arg7[%c98_365, %c0_366] {strides = array<i32: 2, 1>} : memref<512x128xf32, #tpu.memory_space<vmem>>, vector<4x128xf32>
    %569 = arith.maximumf %565, %566 : vector<4x128xf32>
    %570 = arith.maximumf %567, %568 : vector<4x128xf32>
    %571 = arith.maximumf %569, %570 : vector<4x128xf32>
    %572 = vector.broadcast %517 : vector<1x128xf32> to vector<4x128xf32>
    %573 = arith.subf %571, %572 : vector<4x128xf32>
    %574 = vector.broadcast %526 : vector<1x128xf32> to vector<4x128xf32>
    %575 = arith.mulf %573, %574 : vector<4x128xf32>
    %cst_367 = arith.constant 0.000000e+00 : f32
    %576 = vector.broadcast %cst_367 : f32 to vector<4x128xf32>
    %577 = arith.maximumf %575, %576 : vector<4x128xf32>
    %578 = arith.truncf %577 : vector<4x128xf32> to vector<4x128xbf16>
    %579 = vector.extract_strided_slice %578 {offsets = [0, 0], sizes = [4, 32], strides = [1, 1]} : vector<4x128xbf16> to vector<4x32xbf16>
    %c66_368 = arith.constant 66 : index
    %c0_369 = arith.constant 0 : index
    %580 = vector.load %arg6[%c66_368, %c0_369] : memref<352x128xbf16, #tpu.memory_space<vmem>>, vector<4x32xbf16>
    tpu.vector_store %arg6[%c66_368, %c0_369], %579 {strides = array<i32>} : memref<352x128xbf16, #tpu.memory_space<vmem>>, vector<4x32xbf16>,
    %c65_370 = arith.constant 65 : index
    %c32_371 = arith.constant 32 : index
    %581 = vector.load %arg6[%c65_370, %c32_371] : memref<352x128xbf16, #tpu.memory_space<vmem>>, vector<4x32xbf16>
    tpu.vector_store %arg6[%c65_370, %c32_371], %579 {strides = array<i32>} : memref<352x128xbf16, #tpu.memory_space<vmem>>, vector<4x32xbf16>,
    %c64_372 = arith.constant 64 : index
    %c64_373 = arith.constant 64 : index
    %582 = vector.load %arg6[%c64_372, %c64_373] : memref<352x128xbf16, #tpu.memory_space<vmem>>, vector<4x32xbf16>
    tpu.vector_store %arg6[%c64_372, %c64_373], %579 {strides = array<i32>} : memref<352x128xbf16, #tpu.memory_space<vmem>>, vector<4x32xbf16>,
    %c113_374 = arith.constant 113 : index
    %c0_375 = arith.constant 0 : index
    %583 = tpu.strided_load %arg7[%c113_374, %c0_375] {strides = array<i32: 2, 1>} : memref<512x128xf32, #tpu.memory_space<vmem>>, vector<4x128xf32>
    %c114_376 = arith.constant 114 : index
    %c0_377 = arith.constant 0 : index
    %584 = tpu.strided_load %arg7[%c114_376, %c0_377] {strides = array<i32: 2, 1>} : memref<512x128xf32, #tpu.memory_space<vmem>>, vector<4x128xf32>
    %c129_378 = arith.constant 129 : index
    %c0_379 = arith.constant 0 : index
    %585 = tpu.strided_load %arg7[%c129_378, %c0_379] {strides = array<i32: 2, 1>} : memref<512x128xf32, #tpu.memory_space<vmem>>, vector<4x128xf32>
    %c130_380 = arith.constant 130 : index
    %c0_381 = arith.constant 0 : index
    %586 = tpu.strided_load %arg7[%c130_380, %c0_381] {strides = array<i32: 2, 1>} : memref<512x128xf32, #tpu.memory_space<vmem>>, vector<4x128xf32>
    %587 = arith.maximumf %583, %584 : vector<4x128xf32>
    %588 = arith.maximumf %585, %586 : vector<4x128xf32>
    %589 = arith.maximumf %587, %588 : vector<4x128xf32>
    %590 = vector.broadcast %517 : vector<1x128xf32> to vector<4x128xf32>
    %591 = arith.subf %589, %590 : vector<4x128xf32>
    %592 = vector.broadcast %526 : vector<1x128xf32> to vector<4x128xf32>
    %593 = arith.mulf %591, %592 : vector<4x128xf32>
    %cst_382 = arith.constant 0.000000e+00 : f32
    %594 = vector.broadcast %cst_382 : f32 to vector<4x128xf32>
    %595 = arith.maximumf %593, %594 : vector<4x128xf32>
    %596 = arith.truncf %595 : vector<4x128xf32> to vector<4x128xbf16>
    %597 = vector.extract_strided_slice %596 {offsets = [0, 0], sizes = [4, 32], strides = [1, 1]} : vector<4x128xbf16> to vector<4x32xbf16>
    %c82_383 = arith.constant 82 : index
    %c0_384 = arith.constant 0 : index
    %598 = vector.load %arg6[%c82_383, %c0_384] : memref<352x128xbf16, #tpu.memory_space<vmem>>, vector<4x32xbf16>
    tpu.vector_store %arg6[%c82_383, %c0_384], %597 {strides = array<i32>} : memref<352x128xbf16, #tpu.memory_space<vmem>>, vector<4x32xbf16>,
    %c81_385 = arith.constant 81 : index
    %c32_386 = arith.constant 32 : index
    %599 = vector.load %arg6[%c81_385, %c32_386] : memref<352x128xbf16, #tpu.memory_space<vmem>>, vector<4x32xbf16>
    tpu.vector_store %arg6[%c81_385, %c32_386], %597 {strides = array<i32>} : memref<352x128xbf16, #tpu.memory_space<vmem>>, vector<4x32xbf16>,
    %c80_387 = arith.constant 80 : index
    %c64_388 = arith.constant 64 : index
    %600 = vector.load %arg6[%c80_387, %c64_388] : memref<352x128xbf16, #tpu.memory_space<vmem>>, vector<4x32xbf16>
    tpu.vector_store %arg6[%c80_387, %c64_388], %597 {strides = array<i32>} : memref<352x128xbf16, #tpu.memory_space<vmem>>, vector<4x32xbf16>,
    %c177_389 = arith.constant 177 : index
    %c0_390 = arith.constant 0 : index
    %601 = tpu.strided_load %arg7[%c177_389, %c0_390] {strides = array<i32: 2, 1>} : memref<512x128xf32, #tpu.memory_space<vmem>>, vector<4x128xf32>
    %c178 = arith.constant 178 : index
    %c0_391 = arith.constant 0 : index
    %602 = tpu.strided_load %arg7[%c178, %c0_391] {strides = array<i32: 2, 1>} : memref<512x128xf32, #tpu.memory_space<vmem>>, vector<4x128xf32>
    %c193_392 = arith.constant 193 : index
    %c0_393 = arith.constant 0 : index
    %603 = tpu.strided_load %arg7[%c193_392, %c0_393] {strides = array<i32: 2, 1>} : memref<512x128xf32, #tpu.memory_space<vmem>>, vector<4x128xf32>
    %c194_394 = arith.constant 194 : index
    %c0_395 = arith.constant 0 : index
    %604 = tpu.strided_load %arg7[%c194_394, %c0_395] {strides = array<i32: 2, 1>} : memref<512x128xf32, #tpu.memory_space<vmem>>, vector<4x128xf32>
    %605 = arith.maximumf %601, %602 : vector<4x128xf32>
    %606 = arith.maximumf %603, %604 : vector<4x128xf32>
    %607 = arith.maximumf %605, %606 : vector<4x128xf32>
    %608 = vector.broadcast %517 : vector<1x128xf32> to vector<4x128xf32>
    %609 = arith.subf %607, %608 : vector<4x128xf32>
    %610 = vector.broadcast %526 : vector<1x128xf32> to vector<4x128xf32>
    %611 = arith.mulf %609, %610 : vector<4x128xf32>
    %cst_396 = arith.constant 0.000000e+00 : f32
    %612 = vector.broadcast %cst_396 : f32 to vector<4x128xf32>
    %613 = arith.maximumf %611, %612 : vector<4x128xf32>
    %614 = arith.truncf %613 : vector<4x128xf32> to vector<4x128xbf16>
    %615 = vector.extract_strided_slice %614 {offsets = [0, 0], sizes = [4, 32], strides = [1, 1]} : vector<4x128xbf16> to vector<4x32xbf16>
    %c130_397 = arith.constant 130 : index
    %c0_398 = arith.constant 0 : index
    %616 = vector.load %arg6[%c130_397, %c0_398] : memref<352x128xbf16, #tpu.memory_space<vmem>>, vector<4x32xbf16>
    tpu.vector_store %arg6[%c130_397, %c0_398], %615 {strides = array<i32>} : memref<352x128xbf16, #tpu.memory_space<vmem>>, vector<4x32xbf16>,
    %c129_399 = arith.constant 129 : index
    %c32_400 = arith.constant 32 : index
    %617 = vector.load %arg6[%c129_399, %c32_400] : memref<352x128xbf16, #tpu.memory_space<vmem>>, vector<4x32xbf16>
    tpu.vector_store %arg6[%c129_399, %c32_400], %615 {strides = array<i32>} : memref<352x128xbf16, #tpu.memory_space<vmem>>, vector<4x32xbf16>,
    %c128_401 = arith.constant 128 : index
    %c64_402 = arith.constant 64 : index
    %618 = vector.load %arg6[%c128_401, %c64_402] : memref<352x128xbf16, #tpu.memory_space<vmem>>, vector<4x32xbf16>
    tpu.vector_store %arg6[%c128_401, %c64_402], %615 {strides = array<i32>} : memref<352x128xbf16, #tpu.memory_space<vmem>>, vector<4x32xbf16>,
    %c209_403 = arith.constant 209 : index
    %c0_404 = arith.constant 0 : index
    %619 = tpu.strided_load %arg7[%c209_403, %c0_404] {strides = array<i32: 2, 1>} : memref<512x128xf32, #tpu.memory_space<vmem>>, vector<4x128xf32>
    %c210_405 = arith.constant 210 : index
    %c0_406 = arith.constant 0 : index
    %620 = tpu.strided_load %arg7[%c210_405, %c0_406] {strides = array<i32: 2, 1>} : memref<512x128xf32, #tpu.memory_space<vmem>>, vector<4x128xf32>
    %c225_407 = arith.constant 225 : index
    %c0_408 = arith.constant 0 : index
    %621 = tpu.strided_load %arg7[%c225_407, %c0_408] {strides = array<i32: 2, 1>} : memref<512x128xf32, #tpu.memory_space<vmem>>, vector<4x128xf32>
    %c226_409 = arith.constant 226 : index
    %c0_410 = arith.constant 0 : index
    %622 = tpu.strided_load %arg7[%c226_409, %c0_410] {strides = array<i32: 2, 1>} : memref<512x128xf32, #tpu.memory_space<vmem>>, vector<4x128xf32>
    %623 = arith.maximumf %619, %620 : vector<4x128xf32>
    %624 = arith.maximumf %621, %622 : vector<4x128xf32>
    %625 = arith.maximumf %623, %624 : vector<4x128xf32>
    %626 = vector.broadcast %517 : vector<1x128xf32> to vector<4x128xf32>
    %627 = arith.subf %625, %626 : vector<4x128xf32>
    %628 = vector.broadcast %526 : vector<1x128xf32> to vector<4x128xf32>
    %629 = arith.mulf %627, %628 : vector<4x128xf32>
    %cst_411 = arith.constant 0.000000e+00 : f32
    %630 = vector.broadcast %cst_411 : f32 to vector<4x128xf32>
    %631 = arith.maximumf %629, %630 : vector<4x128xf32>
    %632 = arith.truncf %631 : vector<4x128xf32> to vector<4x128xbf16>
    %633 = vector.extract_strided_slice %632 {offsets = [0, 0], sizes = [4, 32], strides = [1, 1]} : vector<4x128xbf16> to vector<4x32xbf16>
    %c146_412 = arith.constant 146 : index
    %c0_413 = arith.constant 0 : index
    %634 = vector.load %arg6[%c146_412, %c0_413] : memref<352x128xbf16, #tpu.memory_space<vmem>>, vector<4x32xbf16>
    tpu.vector_store %arg6[%c146_412, %c0_413], %633 {strides = array<i32>} : memref<352x128xbf16, #tpu.memory_space<vmem>>, vector<4x32xbf16>,
    %c145_414 = arith.constant 145 : index
    %c32_415 = arith.constant 32 : index
    %635 = vector.load %arg6[%c145_414, %c32_415] : memref<352x128xbf16, #tpu.memory_space<vmem>>, vector<4x32xbf16>
    tpu.vector_store %arg6[%c145_414, %c32_415], %633 {strides = array<i32>} : memref<352x128xbf16, #tpu.memory_space<vmem>>, vector<4x32xbf16>,
    %c144_416 = arith.constant 144 : index
    %c64_417 = arith.constant 64 : index
    %636 = vector.load %arg6[%c144_416, %c64_417] : memref<352x128xbf16, #tpu.memory_space<vmem>>, vector<4x32xbf16>
    tpu.vector_store %arg6[%c144_416, %c64_417], %633 {strides = array<i32>} : memref<352x128xbf16, #tpu.memory_space<vmem>>, vector<4x32xbf16>,
    %c241_418 = arith.constant 241 : index
    %c0_419 = arith.constant 0 : index
    %637 = tpu.strided_load %arg7[%c241_418, %c0_419] {strides = array<i32: 2, 1>} : memref<512x128xf32, #tpu.memory_space<vmem>>, vector<4x128xf32>
    %c242_420 = arith.constant 242 : index
    %c0_421 = arith.constant 0 : index
    %638 = tpu.strided_load %arg7[%c242_420, %c0_421] {strides = array<i32: 2, 1>} : memref<512x128xf32, #tpu.memory_space<vmem>>, vector<4x128xf32>
    %c257_422 = arith.constant 257 : index
    %c0_423 = arith.constant 0 : index
    %639 = tpu.strided_load %arg7[%c257_422, %c0_423] {strides = array<i32: 2, 1>} : memref<512x128xf32, #tpu.memory_space<vmem>>, vector<4x128xf32>
    %c258_424 = arith.constant 258 : index
    %c0_425 = arith.constant 0 : index
    %640 = tpu.strided_load %arg7[%c258_424, %c0_425] {strides = array<i32: 2, 1>} : memref<512x128xf32, #tpu.memory_space<vmem>>, vector<4x128xf32>
    %641 = arith.maximumf %637, %638 : vector<4x128xf32>
    %642 = arith.maximumf %639, %640 : vector<4x128xf32>
    %643 = arith.maximumf %641, %642 : vector<4x128xf32>
    %644 = vector.broadcast %517 : vector<1x128xf32> to vector<4x128xf32>
    %645 = arith.subf %643, %644 : vector<4x128xf32>
    %646 = vector.broadcast %526 : vector<1x128xf32> to vector<4x128xf32>
    %647 = arith.mulf %645, %646 : vector<4x128xf32>
    %cst_426 = arith.constant 0.000000e+00 : f32
    %648 = vector.broadcast %cst_426 : f32 to vector<4x128xf32>
    %649 = arith.maximumf %647, %648 : vector<4x128xf32>
    %650 = arith.truncf %649 : vector<4x128xf32> to vector<4x128xbf16>
    %651 = vector.extract_strided_slice %650 {offsets = [0, 0], sizes = [4, 32], strides = [1, 1]} : vector<4x128xbf16> to vector<4x32xbf16>
    %c162 = arith.constant 162 : index
    %c0_427 = arith.constant 0 : index
    %652 = vector.load %arg6[%c162, %c0_427] : memref<352x128xbf16, #tpu.memory_space<vmem>>, vector<4x32xbf16>
    tpu.vector_store %arg6[%c162, %c0_427], %651 {strides = array<i32>} : memref<352x128xbf16, #tpu.memory_space<vmem>>, vector<4x32xbf16>,
    %c161_428 = arith.constant 161 : index
    %c32_429 = arith.constant 32 : index
    %653 = vector.load %arg6[%c161_428, %c32_429] : memref<352x128xbf16, #tpu.memory_space<vmem>>, vector<4x32xbf16>
    tpu.vector_store %arg6[%c161_428, %c32_429], %651 {strides = array<i32>} : memref<352x128xbf16, #tpu.memory_space<vmem>>, vector<4x32xbf16>,
    %c160_430 = arith.constant 160 : index
    %c64_431 = arith.constant 64 : index
    %654 = vector.load %arg6[%c160_430, %c64_431] : memref<352x128xbf16, #tpu.memory_space<vmem>>, vector<4x32xbf16>
    tpu.vector_store %arg6[%c160_430, %c64_431], %651 {strides = array<i32>} : memref<352x128xbf16, #tpu.memory_space<vmem>>, vector<4x32xbf16>,
    %c273_432 = arith.constant 273 : index
    %c0_433 = arith.constant 0 : index
    %655 = tpu.strided_load %arg7[%c273_432, %c0_433] {strides = array<i32: 2, 1>} : memref<512x128xf32, #tpu.memory_space<vmem>>, vector<4x128xf32>
    %c274_434 = arith.constant 274 : index
    %c0_435 = arith.constant 0 : index
    %656 = tpu.strided_load %arg7[%c274_434, %c0_435] {strides = array<i32: 2, 1>} : memref<512x128xf32, #tpu.memory_space<vmem>>, vector<4x128xf32>
    %c289_436 = arith.constant 289 : index
    %c0_437 = arith.constant 0 : index
    %657 = tpu.strided_load %arg7[%c289_436, %c0_437] {strides = array<i32: 2, 1>} : memref<512x128xf32, #tpu.memory_space<vmem>>, vector<4x128xf32>
    %c290_438 = arith.constant 290 : index
    %c0_439 = arith.constant 0 : index
    %658 = tpu.strided_load %arg7[%c290_438, %c0_439] {strides = array<i32: 2, 1>} : memref<512x128xf32, #tpu.memory_space<vmem>>, vector<4x128xf32>
    %659 = arith.maximumf %655, %656 : vector<4x128xf32>
    %660 = arith.maximumf %657, %658 : vector<4x128xf32>
    %661 = arith.maximumf %659, %660 : vector<4x128xf32>
    %662 = vector.broadcast %517 : vector<1x128xf32> to vector<4x128xf32>
    %663 = arith.subf %661, %662 : vector<4x128xf32>
    %664 = vector.broadcast %526 : vector<1x128xf32> to vector<4x128xf32>
    %665 = arith.mulf %663, %664 : vector<4x128xf32>
    %cst_440 = arith.constant 0.000000e+00 : f32
    %666 = vector.broadcast %cst_440 : f32 to vector<4x128xf32>
    %667 = arith.maximumf %665, %666 : vector<4x128xf32>
    %668 = arith.truncf %667 : vector<4x128xf32> to vector<4x128xbf16>
    %669 = vector.extract_strided_slice %668 {offsets = [0, 0], sizes = [4, 32], strides = [1, 1]} : vector<4x128xbf16> to vector<4x32xbf16>
    %c178_441 = arith.constant 178 : index
    %c0_442 = arith.constant 0 : index
    %670 = vector.load %arg6[%c178_441, %c0_442] : memref<352x128xbf16, #tpu.memory_space<vmem>>, vector<4x32xbf16>
    tpu.vector_store %arg6[%c178_441, %c0_442], %669 {strides = array<i32>} : memref<352x128xbf16, #tpu.memory_space<vmem>>, vector<4x32xbf16>,
    %c177_443 = arith.constant 177 : index
    %c32_444 = arith.constant 32 : index
    %671 = vector.load %arg6[%c177_443, %c32_444] : memref<352x128xbf16, #tpu.memory_space<vmem>>, vector<4x32xbf16>
    tpu.vector_store %arg6[%c177_443, %c32_444], %669 {strides = array<i32>} : memref<352x128xbf16, #tpu.memory_space<vmem>>, vector<4x32xbf16>,
    %c176_445 = arith.constant 176 : index
    %c64_446 = arith.constant 64 : index
    %672 = vector.load %arg6[%c176_445, %c64_446] : memref<352x128xbf16, #tpu.memory_space<vmem>>, vector<4x32xbf16>
    tpu.vector_store %arg6[%c176_445, %c64_446], %669 {strides = array<i32>} : memref<352x128xbf16, #tpu.memory_space<vmem>>, vector<4x32xbf16>,
    %cst_447 = arith.constant 0.000000e+00 : f32
    %673 = vector.broadcast %cst_447 : f32 to vector<1x128xf32>
    %cst_448 = arith.constant 0.000000e+00 : f32
    %674 = vector.broadcast %cst_448 : f32 to vector<1x128xf32>
    %c0_449 = arith.constant 0 : index
    %c0_450 = arith.constant 0 : index
    %675 = vector.load %arg6[%c0_449, %c0_450] : memref<352x128xbf16, #tpu.memory_space<vmem>>, vector<96x128xbf16>
    %c1_451 = arith.constant 1 : index
    %c0_452 = arith.constant 0 : index
    %c0_453 = arith.constant 0 : index
    %c0_454 = arith.constant 0 : index
    %676 = vector.load %arg2[%c1_451, %c0_452, %c0_453, %c0_454] : memref<3x3x128x128xbf16, #tpu.memory_space<vmem>>, vector<1x1x128x128xbf16>
    %677 = vector.shape_cast %676 : vector<1x1x128x128xbf16> to vector<128x128xbf16>
    %cst_455 = arith.constant dense<0.000000e+00> : vector<96x128xf32>
    %678 = tpu.matmul %675, %677, %cst_455 {dimension_numbers = #tpu.dot_dimension_numbers<[1], [0], [0], [1], [0, 0, 1, 1], [], []>} : vector<96x128xbf16>, vector<128x128xbf16>, vector<96x128xf32> -> vector<96x128xf32>
    %c16_456 = arith.constant 16 : index
    %c0_457 = arith.constant 0 : index
    %679 = vector.load %arg6[%c16_456, %c0_457] : memref<352x128xbf16, #tpu.memory_space<vmem>>, vector<96x128xbf16>
    %c1_458 = arith.constant 1 : index
    %c1_459 = arith.constant 1 : index
    %c0_460 = arith.constant 0 : index
    %c0_461 = arith.constant 0 : index
    %680 = vector.load %arg2[%c1_458, %c1_459, %c0_460, %c0_461] : memref<3x3x128x128xbf16, #tpu.memory_space<vmem>>, vector<1x1x128x128xbf16>
    %681 = vector.shape_cast %680 : vector<1x1x128x128xbf16> to vector<128x128xbf16>
    %cst_462 = arith.constant dense<0.000000e+00> : vector<96x128xf32>
    %682 = tpu.matmul %679, %681, %cst_462 {dimension_numbers = #tpu.dot_dimension_numbers<[1], [0], [0], [1], [0, 0, 1, 1], [], []>} : vector<96x128xbf16>, vector<128x128xbf16>, vector<96x128xf32> -> vector<96x128xf32>
    %683 = arith.addf %678, %682 : vector<96x128xf32>
    %c32_463 = arith.constant 32 : index
    %c0_464 = arith.constant 0 : index
    %684 = vector.load %arg6[%c32_463, %c0_464] : memref<352x128xbf16, #tpu.memory_space<vmem>>, vector<96x128xbf16>
    %c1_465 = arith.constant 1 : index
    %c2_466 = arith.constant 2 : index
    %c0_467 = arith.constant 0 : index
    %c0_468 = arith.constant 0 : index
    %685 = vector.load %arg2[%c1_465, %c2_466, %c0_467, %c0_468] : memref<3x3x128x128xbf16, #tpu.memory_space<vmem>>, vector<1x1x128x128xbf16>
    %686 = vector.shape_cast %685 : vector<1x1x128x128xbf16> to vector<128x128xbf16>
    %cst_469 = arith.constant dense<0.000000e+00> : vector<96x128xf32>
    %687 = tpu.matmul %684, %686, %cst_469 {dimension_numbers = #tpu.dot_dimension_numbers<[1], [0], [0], [1], [0, 0, 1, 1], [], []>} : vector<96x128xbf16>, vector<128x128xbf16>, vector<96x128xf32> -> vector<96x128xf32>
    %688 = arith.addf %683, %687 : vector<96x128xf32>
    %689 = tpu.iota {dimensions = array<i32: 0>} : vector<96x1xi32>
    %c0_i32_470 = arith.constant 0 : i32
    %690 = vector.broadcast %c0_i32_470 : i32 to vector<96x1xi32>
    %691 = arith.addi %689, %690 : vector<96x1xi32>
    %c15_i32_471 = arith.constant 15 : i32
    %692 = vector.broadcast %c15_i32_471 : i32 to vector<96x1xi32>
    %693 = arith.andi %691, %692 : vector<96x1xi32>
    %c16_i32_472 = arith.constant 16 : i32
    %694 = vector.broadcast %c16_i32_472 : i32 to vector<96x1xi32>
    %695 = arith.cmpi sge, %691, %694 : vector<96x1xi32>
    %c80_i32_473 = arith.constant 80 : i32
    %696 = vector.broadcast %c80_i32_473 : i32 to vector<96x1xi32>
    %697 = arith.cmpi slt, %691, %696 : vector<96x1xi32>
    %698 = arith.andi %695, %697 : vector<96x1xi1>
    %c1_i32_474 = arith.constant 1 : i32
    %699 = vector.broadcast %c1_i32_474 : i32 to vector<96x1xi32>
    %700 = arith.cmpi sge, %693, %699 : vector<96x1xi32>
    %701 = arith.andi %698, %700 : vector<96x1xi1>
    %c4_i32 = arith.constant 4 : i32
    %702 = vector.broadcast %c4_i32 : i32 to vector<96x1xi32>
    %703 = arith.cmpi sle, %693, %702 : vector<96x1xi32>
    %704 = arith.andi %701, %703 : vector<96x1xi1>
    %cst_475 = arith.constant 0.000000e+00 : f32
    %705 = vector.shape_cast %704 : vector<96x1xi1> to vector<96x1xi1>
    %706 = vector.broadcast %705 : vector<96x1xi1> to vector<96x128xi1>
    %707 = vector.broadcast %cst_475 : f32 to vector<96x128xf32>
    %708 = arith.select %706, %688, %707 : vector<96x128xi1>, vector<96x128xf32>
    %cst_476 = arith.constant dense<0.000000e+00> : vector<128xf32>
    %709 = vector.multi_reduction <add>, %708, %cst_476 [0] : vector<96x128xf32> to vector<128xf32>
    %710 = vector.shape_cast %709 : vector<128xf32> to vector<1x128xf32>
    %711 = arith.addf %673, %710 : vector<1x128xf32>
    %712 = arith.mulf %708, %688 : vector<96x128xf32>
    %cst_477 = arith.constant dense<0.000000e+00> : vector<128xf32>
    %713 = vector.multi_reduction <add>, %712, %cst_477 [0] : vector<96x128xf32> to vector<128xf32>
    %714 = vector.shape_cast %713 : vector<128xf32> to vector<1x128xf32>
    %715 = arith.addf %674, %714 : vector<1x128xf32>
    %c0_478 = arith.constant 0 : index
    %c0_479 = arith.constant 0 : index
    %716 = vector.load %arg7[%c0_478, %c0_479] : memref<512x128xf32, #tpu.memory_space<vmem>>, vector<96x128xf32>
    tpu.vector_store %arg7[%c0_478, %c0_479], %688 {strides = array<i32>} : memref<512x128xf32, #tpu.memory_space<vmem>>, vector<96x128xf32>,
    %c96_480 = arith.constant 96 : index
    %c0_481 = arith.constant 0 : index
    %717 = vector.load %arg6[%c96_480, %c0_481] : memref<352x128xbf16, #tpu.memory_space<vmem>>, vector<96x128xbf16>
    %c1_482 = arith.constant 1 : index
    %c0_483 = arith.constant 0 : index
    %c0_484 = arith.constant 0 : index
    %c0_485 = arith.constant 0 : index
    %718 = vector.load %arg2[%c1_482, %c0_483, %c0_484, %c0_485] : memref<3x3x128x128xbf16, #tpu.memory_space<vmem>>, vector<1x1x128x128xbf16>
    %719 = vector.shape_cast %718 : vector<1x1x128x128xbf16> to vector<128x128xbf16>
    %cst_486 = arith.constant dense<0.000000e+00> : vector<96x128xf32>
    %720 = tpu.matmul %717, %719, %cst_486 {dimension_numbers = #tpu.dot_dimension_numbers<[1], [0], [0], [1], [0, 0, 1, 1], [], []>} : vector<96x128xbf16>, vector<128x128xbf16>, vector<96x128xf32> -> vector<96x128xf32>
    %c112_487 = arith.constant 112 : index
    %c0_488 = arith.constant 0 : index
    %721 = vector.load %arg6[%c112_487, %c0_488] : memref<352x128xbf16, #tpu.memory_space<vmem>>, vector<96x128xbf16>
    %c1_489 = arith.constant 1 : index
    %c1_490 = arith.constant 1 : index
    %c0_491 = arith.constant 0 : index
    %c0_492 = arith.constant 0 : index
    %722 = vector.load %arg2[%c1_489, %c1_490, %c0_491, %c0_492] : memref<3x3x128x128xbf16, #tpu.memory_space<vmem>>, vector<1x1x128x128xbf16>
    %723 = vector.shape_cast %722 : vector<1x1x128x128xbf16> to vector<128x128xbf16>
    %cst_493 = arith.constant dense<0.000000e+00> : vector<96x128xf32>
    %724 = tpu.matmul %721, %723, %cst_493 {dimension_numbers = #tpu.dot_dimension_numbers<[1], [0], [0], [1], [0, 0, 1, 1], [], []>} : vector<96x128xbf16>, vector<128x128xbf16>, vector<96x128xf32> -> vector<96x128xf32>
    %725 = arith.addf %720, %724 : vector<96x128xf32>
    %c128_494 = arith.constant 128 : index
    %c0_495 = arith.constant 0 : index
    %726 = vector.load %arg6[%c128_494, %c0_495] : memref<352x128xbf16, #tpu.memory_space<vmem>>, vector<96x128xbf16>
    %c1_496 = arith.constant 1 : index
    %c2_497 = arith.constant 2 : index
    %c0_498 = arith.constant 0 : index
    %c0_499 = arith.constant 0 : index
    %727 = vector.load %arg2[%c1_496, %c2_497, %c0_498, %c0_499] : memref<3x3x128x128xbf16, #tpu.memory_space<vmem>>, vector<1x1x128x128xbf16>
    %728 = vector.shape_cast %727 : vector<1x1x128x128xbf16> to vector<128x128xbf16>
    %cst_500 = arith.constant dense<0.000000e+00> : vector<96x128xf32>
    %729 = tpu.matmul %726, %728, %cst_500 {dimension_numbers = #tpu.dot_dimension_numbers<[1], [0], [0], [1], [0, 0, 1, 1], [], []>} : vector<96x128xbf16>, vector<128x128xbf16>, vector<96x128xf32> -> vector<96x128xf32>
    %730 = arith.addf %725, %729 : vector<96x128xf32>
    %731 = tpu.iota {dimensions = array<i32: 0>} : vector<96x1xi32>
    %c0_i32_501 = arith.constant 0 : i32
    %732 = vector.broadcast %c0_i32_501 : i32 to vector<96x1xi32>
    %733 = arith.addi %731, %732 : vector<96x1xi32>
    %c15_i32_502 = arith.constant 15 : i32
    %734 = vector.broadcast %c15_i32_502 : i32 to vector<96x1xi32>
    %735 = arith.andi %733, %734 : vector<96x1xi32>
    %c16_i32_503 = arith.constant 16 : i32
    %736 = vector.broadcast %c16_i32_503 : i32 to vector<96x1xi32>
    %737 = arith.cmpi sge, %733, %736 : vector<96x1xi32>
    %c80_i32_504 = arith.constant 80 : i32
    %738 = vector.broadcast %c80_i32_504 : i32 to vector<96x1xi32>
    %739 = arith.cmpi slt, %733, %738 : vector<96x1xi32>
    %740 = arith.andi %737, %739 : vector<96x1xi1>
    %c1_i32_505 = arith.constant 1 : i32
    %741 = vector.broadcast %c1_i32_505 : i32 to vector<96x1xi32>
    %742 = arith.cmpi sge, %735, %741 : vector<96x1xi32>
    %743 = arith.andi %740, %742 : vector<96x1xi1>
    %c4_i32_506 = arith.constant 4 : i32
    %744 = vector.broadcast %c4_i32_506 : i32 to vector<96x1xi32>
    %745 = arith.cmpi sle, %735, %744 : vector<96x1xi32>
    %746 = arith.andi %743, %745 : vector<96x1xi1>
    %cst_507 = arith.constant 0.000000e+00 : f32
    %747 = vector.shape_cast %746 : vector<96x1xi1> to vector<96x1xi1>
    %748 = vector.broadcast %747 : vector<96x1xi1> to vector<96x128xi1>
    %749 = vector.broadcast %cst_507 : f32 to vector<96x128xf32>
    %750 = arith.select %748, %730, %749 : vector<96x128xi1>, vector<96x128xf32>
    %cst_508 = arith.constant dense<0.000000e+00> : vector<128xf32>
    %751 = vector.multi_reduction <add>, %750, %cst_508 [0] : vector<96x128xf32> to vector<128xf32>
    %752 = vector.shape_cast %751 : vector<128xf32> to vector<1x128xf32>
    %753 = arith.addf %711, %752 : vector<1x128xf32>
    %754 = arith.mulf %750, %730 : vector<96x128xf32>
    %cst_509 = arith.constant dense<0.000000e+00> : vector<128xf32>
    %755 = vector.multi_reduction <add>, %754, %cst_509 [0] : vector<96x128xf32> to vector<128xf32>
    %756 = vector.shape_cast %755 : vector<128xf32> to vector<1x128xf32>
    %757 = arith.addf %715, %756 : vector<1x128xf32>
    %c96_510 = arith.constant 96 : index
    %c0_511 = arith.constant 0 : index
    %758 = vector.load %arg7[%c96_510, %c0_511] : memref<512x128xf32, #tpu.memory_space<vmem>>, vector<96x128xf32>
    tpu.vector_store %arg7[%c96_510, %c0_511], %730 {strides = array<i32>} : memref<512x128xf32, #tpu.memory_space<vmem>>, vector<96x128xf32>,
    %cst_512 = arith.constant 3.125000e-02 : f32
    %759 = vector.broadcast %cst_512 : f32 to vector<1x128xf32>
    %760 = arith.mulf %753, %759 : vector<1x128xf32>
    %cst_513 = arith.constant 3.125000e-02 : f32
    %761 = vector.broadcast %cst_513 : f32 to vector<1x128xf32>
    %762 = arith.mulf %757, %761 : vector<1x128xf32>
    %763 = arith.mulf %760, %760 : vector<1x128xf32>
    %764 = arith.subf %762, %763 : vector<1x128xf32>
    %cst_514 = arith.constant 0.000000e+00 : f32
    %765 = vector.broadcast %cst_514 : f32 to vector<1x128xf32>
    %766 = arith.maximumf %764, %765 : vector<1x128xf32>
    %cst_515 = arith.constant 9.99999974E-6 : f32
    %767 = vector.broadcast %cst_515 : f32 to vector<1x128xf32>
    %768 = arith.addf %766, %767 : vector<1x128xf32>
    %769 = math.rsqrt %768 : vector<1x128xf32>
    %cst_516 = arith.constant 0.000000e+00 : bf16
    %770 = vector.broadcast %cst_516 : bf16 to vector<160x128xbf16>
    %c0_517 = arith.constant 0 : index
    %c0_518 = arith.constant 0 : index
    %771 = vector.load %arg6[%c0_517, %c0_518] : memref<352x128xbf16, #tpu.memory_space<vmem>>, vector<160x128xbf16>
    tpu.vector_store %arg6[%c0_517, %c0_518], %770 {strides = array<i32>} : memref<352x128xbf16, #tpu.memory_space<vmem>>, vector<160x128xbf16>,
    %c17_519 = arith.constant 17 : index
    %c0_520 = arith.constant 0 : index
    %772 = tpu.strided_load %arg7[%c17_519, %c0_520] {strides = array<i32: 2, 1>} : memref<512x128xf32, #tpu.memory_space<vmem>>, vector<2x128xf32>
    %c18_521 = arith.constant 18 : index
    %c0_522 = arith.constant 0 : index
    %773 = tpu.strided_load %arg7[%c18_521, %c0_522] {strides = array<i32: 2, 1>} : memref<512x128xf32, #tpu.memory_space<vmem>>, vector<2x128xf32>
    %c33_523 = arith.constant 33 : index
    %c0_524 = arith.constant 0 : index
    %774 = tpu.strided_load %arg7[%c33_523, %c0_524] {strides = array<i32: 2, 1>} : memref<512x128xf32, #tpu.memory_space<vmem>>, vector<2x128xf32>
    %c34_525 = arith.constant 34 : index
    %c0_526 = arith.constant 0 : index
    %775 = tpu.strided_load %arg7[%c34_525, %c0_526] {strides = array<i32: 2, 1>} : memref<512x128xf32, #tpu.memory_space<vmem>>, vector<2x128xf32>
    %776 = arith.maximumf %772, %773 : vector<2x128xf32>
    %777 = arith.maximumf %774, %775 : vector<2x128xf32>
    %778 = arith.maximumf %776, %777 : vector<2x128xf32>
    %779 = vector.broadcast %760 : vector<1x128xf32> to vector<2x128xf32>
    %780 = arith.subf %778, %779 : vector<2x128xf32>
    %781 = vector.broadcast %769 : vector<1x128xf32> to vector<2x128xf32>
    %782 = arith.mulf %780, %781 : vector<2x128xf32>
    %cst_527 = arith.constant 0.000000e+00 : f32
    %783 = vector.broadcast %cst_527 : f32 to vector<2x128xf32>
    %784 = arith.maximumf %782, %783 : vector<2x128xf32>
    %785 = arith.truncf %784 : vector<2x128xf32> to vector<2x128xbf16>
    %786 = vector.extract_strided_slice %785 {offsets = [0, 0], sizes = [2, 32], strides = [1, 1]} : vector<2x128xbf16> to vector<2x32xbf16>
    %c34_528 = arith.constant 34 : index
    %c0_529 = arith.constant 0 : index
    %787 = vector.load %arg6[%c34_528, %c0_529] : memref<352x128xbf16, #tpu.memory_space<vmem>>, vector<2x32xbf16>
    tpu.vector_store %arg6[%c34_528, %c0_529], %786 {strides = array<i32>} : memref<352x128xbf16, #tpu.memory_space<vmem>>, vector<2x32xbf16>,
    %c33_530 = arith.constant 33 : index
    %c32_531 = arith.constant 32 : index
    %788 = vector.load %arg6[%c33_530, %c32_531] : memref<352x128xbf16, #tpu.memory_space<vmem>>, vector<2x32xbf16>
    tpu.vector_store %arg6[%c33_530, %c32_531], %786 {strides = array<i32>} : memref<352x128xbf16, #tpu.memory_space<vmem>>, vector<2x32xbf16>,
    %c32_532 = arith.constant 32 : index
    %c64_533 = arith.constant 64 : index
    %789 = vector.load %arg6[%c32_532, %c64_533] : memref<352x128xbf16, #tpu.memory_space<vmem>>, vector<2x32xbf16>
    tpu.vector_store %arg6[%c32_532, %c64_533], %786 {strides = array<i32>} : memref<352x128xbf16, #tpu.memory_space<vmem>>, vector<2x32xbf16>,
    %c49_534 = arith.constant 49 : index
    %c0_535 = arith.constant 0 : index
    %790 = tpu.strided_load %arg7[%c49_534, %c0_535] {strides = array<i32: 2, 1>} : memref<512x128xf32, #tpu.memory_space<vmem>>, vector<2x128xf32>
    %c50_536 = arith.constant 50 : index
    %c0_537 = arith.constant 0 : index
    %791 = tpu.strided_load %arg7[%c50_536, %c0_537] {strides = array<i32: 2, 1>} : memref<512x128xf32, #tpu.memory_space<vmem>>, vector<2x128xf32>
    %c65_538 = arith.constant 65 : index
    %c0_539 = arith.constant 0 : index
    %792 = tpu.strided_load %arg7[%c65_538, %c0_539] {strides = array<i32: 2, 1>} : memref<512x128xf32, #tpu.memory_space<vmem>>, vector<2x128xf32>
    %c66_540 = arith.constant 66 : index
    %c0_541 = arith.constant 0 : index
    %793 = tpu.strided_load %arg7[%c66_540, %c0_541] {strides = array<i32: 2, 1>} : memref<512x128xf32, #tpu.memory_space<vmem>>, vector<2x128xf32>
    %794 = arith.maximumf %790, %791 : vector<2x128xf32>
    %795 = arith.maximumf %792, %793 : vector<2x128xf32>
    %796 = arith.maximumf %794, %795 : vector<2x128xf32>
    %797 = vector.broadcast %760 : vector<1x128xf32> to vector<2x128xf32>
    %798 = arith.subf %796, %797 : vector<2x128xf32>
    %799 = vector.broadcast %769 : vector<1x128xf32> to vector<2x128xf32>
    %800 = arith.mulf %798, %799 : vector<2x128xf32>
    %cst_542 = arith.constant 0.000000e+00 : f32
    %801 = vector.broadcast %cst_542 : f32 to vector<2x128xf32>
    %802 = arith.maximumf %800, %801 : vector<2x128xf32>
    %803 = arith.truncf %802 : vector<2x128xf32> to vector<2x128xbf16>
    %804 = vector.extract_strided_slice %803 {offsets = [0, 0], sizes = [2, 32], strides = [1, 1]} : vector<2x128xbf16> to vector<2x32xbf16>
    %c50_543 = arith.constant 50 : index
    %c0_544 = arith.constant 0 : index
    %805 = vector.load %arg6[%c50_543, %c0_544] : memref<352x128xbf16, #tpu.memory_space<vmem>>, vector<2x32xbf16>
    tpu.vector_store %arg6[%c50_543, %c0_544], %804 {strides = array<i32>} : memref<352x128xbf16, #tpu.memory_space<vmem>>, vector<2x32xbf16>,
    %c49_545 = arith.constant 49 : index
    %c32_546 = arith.constant 32 : index
    %806 = vector.load %arg6[%c49_545, %c32_546] : memref<352x128xbf16, #tpu.memory_space<vmem>>, vector<2x32xbf16>
    tpu.vector_store %arg6[%c49_545, %c32_546], %804 {strides = array<i32>} : memref<352x128xbf16, #tpu.memory_space<vmem>>, vector<2x32xbf16>,
    %c48_547 = arith.constant 48 : index
    %c64_548 = arith.constant 64 : index
    %807 = vector.load %arg6[%c48_547, %c64_548] : memref<352x128xbf16, #tpu.memory_space<vmem>>, vector<2x32xbf16>
    tpu.vector_store %arg6[%c48_547, %c64_548], %804 {strides = array<i32>} : memref<352x128xbf16, #tpu.memory_space<vmem>>, vector<2x32xbf16>,
    %c113_549 = arith.constant 113 : index
    %c0_550 = arith.constant 0 : index
    %808 = tpu.strided_load %arg7[%c113_549, %c0_550] {strides = array<i32: 2, 1>} : memref<512x128xf32, #tpu.memory_space<vmem>>, vector<2x128xf32>
    %c114_551 = arith.constant 114 : index
    %c0_552 = arith.constant 0 : index
    %809 = tpu.strided_load %arg7[%c114_551, %c0_552] {strides = array<i32: 2, 1>} : memref<512x128xf32, #tpu.memory_space<vmem>>, vector<2x128xf32>
    %c129_553 = arith.constant 129 : index
    %c0_554 = arith.constant 0 : index
    %810 = tpu.strided_load %arg7[%c129_553, %c0_554] {strides = array<i32: 2, 1>} : memref<512x128xf32, #tpu.memory_space<vmem>>, vector<2x128xf32>
    %c130_555 = arith.constant 130 : index
    %c0_556 = arith.constant 0 : index
    %811 = tpu.strided_load %arg7[%c130_555, %c0_556] {strides = array<i32: 2, 1>} : memref<512x128xf32, #tpu.memory_space<vmem>>, vector<2x128xf32>
    %812 = arith.maximumf %808, %809 : vector<2x128xf32>
    %813 = arith.maximumf %810, %811 : vector<2x128xf32>
    %814 = arith.maximumf %812, %813 : vector<2x128xf32>
    %815 = vector.broadcast %760 : vector<1x128xf32> to vector<2x128xf32>
    %816 = arith.subf %814, %815 : vector<2x128xf32>
    %817 = vector.broadcast %769 : vector<1x128xf32> to vector<2x128xf32>
    %818 = arith.mulf %816, %817 : vector<2x128xf32>
    %cst_557 = arith.constant 0.000000e+00 : f32
    %819 = vector.broadcast %cst_557 : f32 to vector<2x128xf32>
    %820 = arith.maximumf %818, %819 : vector<2x128xf32>
    %821 = arith.truncf %820 : vector<2x128xf32> to vector<2x128xbf16>
    %822 = vector.extract_strided_slice %821 {offsets = [0, 0], sizes = [2, 32], strides = [1, 1]} : vector<2x128xbf16> to vector<2x32xbf16>
    %c98_558 = arith.constant 98 : index
    %c0_559 = arith.constant 0 : index
    %823 = vector.load %arg6[%c98_558, %c0_559] : memref<352x128xbf16, #tpu.memory_space<vmem>>, vector<2x32xbf16>
    tpu.vector_store %arg6[%c98_558, %c0_559], %822 {strides = array<i32>} : memref<352x128xbf16, #tpu.memory_space<vmem>>, vector<2x32xbf16>,
    %c97_560 = arith.constant 97 : index
    %c32_561 = arith.constant 32 : index
    %824 = vector.load %arg6[%c97_560, %c32_561] : memref<352x128xbf16, #tpu.memory_space<vmem>>, vector<2x32xbf16>
    tpu.vector_store %arg6[%c97_560, %c32_561], %822 {strides = array<i32>} : memref<352x128xbf16, #tpu.memory_space<vmem>>, vector<2x32xbf16>,
    %c96_562 = arith.constant 96 : index
    %c64_563 = arith.constant 64 : index
    %825 = vector.load %arg6[%c96_562, %c64_563] : memref<352x128xbf16, #tpu.memory_space<vmem>>, vector<2x32xbf16>
    tpu.vector_store %arg6[%c96_562, %c64_563], %822 {strides = array<i32>} : memref<352x128xbf16, #tpu.memory_space<vmem>>, vector<2x32xbf16>,
    %c145_564 = arith.constant 145 : index
    %c0_565 = arith.constant 0 : index
    %826 = tpu.strided_load %arg7[%c145_564, %c0_565] {strides = array<i32: 2, 1>} : memref<512x128xf32, #tpu.memory_space<vmem>>, vector<2x128xf32>
    %c146_566 = arith.constant 146 : index
    %c0_567 = arith.constant 0 : index
    %827 = tpu.strided_load %arg7[%c146_566, %c0_567] {strides = array<i32: 2, 1>} : memref<512x128xf32, #tpu.memory_space<vmem>>, vector<2x128xf32>
    %c161_568 = arith.constant 161 : index
    %c0_569 = arith.constant 0 : index
    %828 = tpu.strided_load %arg7[%c161_568, %c0_569] {strides = array<i32: 2, 1>} : memref<512x128xf32, #tpu.memory_space<vmem>>, vector<2x128xf32>
    %c162_570 = arith.constant 162 : index
    %c0_571 = arith.constant 0 : index
    %829 = tpu.strided_load %arg7[%c162_570, %c0_571] {strides = array<i32: 2, 1>} : memref<512x128xf32, #tpu.memory_space<vmem>>, vector<2x128xf32>
    %830 = arith.maximumf %826, %827 : vector<2x128xf32>
    %831 = arith.maximumf %828, %829 : vector<2x128xf32>
    %832 = arith.maximumf %830, %831 : vector<2x128xf32>
    %833 = vector.broadcast %760 : vector<1x128xf32> to vector<2x128xf32>
    %834 = arith.subf %832, %833 : vector<2x128xf32>
    %835 = vector.broadcast %769 : vector<1x128xf32> to vector<2x128xf32>
    %836 = arith.mulf %834, %835 : vector<2x128xf32>
    %cst_572 = arith.constant 0.000000e+00 : f32
    %837 = vector.broadcast %cst_572 : f32 to vector<2x128xf32>
    %838 = arith.maximumf %836, %837 : vector<2x128xf32>
    %839 = arith.truncf %838 : vector<2x128xf32> to vector<2x128xbf16>
    %840 = vector.extract_strided_slice %839 {offsets = [0, 0], sizes = [2, 32], strides = [1, 1]} : vector<2x128xbf16> to vector<2x32xbf16>
    %c114_573 = arith.constant 114 : index
    %c0_574 = arith.constant 0 : index
    %841 = vector.load %arg6[%c114_573, %c0_574] : memref<352x128xbf16, #tpu.memory_space<vmem>>, vector<2x32xbf16>
    tpu.vector_store %arg6[%c114_573, %c0_574], %840 {strides = array<i32>} : memref<352x128xbf16, #tpu.memory_space<vmem>>, vector<2x32xbf16>,
    %c113_575 = arith.constant 113 : index
    %c32_576 = arith.constant 32 : index
    %842 = vector.load %arg6[%c113_575, %c32_576] : memref<352x128xbf16, #tpu.memory_space<vmem>>, vector<2x32xbf16>
    tpu.vector_store %arg6[%c113_575, %c32_576], %840 {strides = array<i32>} : memref<352x128xbf16, #tpu.memory_space<vmem>>, vector<2x32xbf16>,
    %c112_577 = arith.constant 112 : index
    %c64_578 = arith.constant 64 : index
    %843 = vector.load %arg6[%c112_577, %c64_578] : memref<352x128xbf16, #tpu.memory_space<vmem>>, vector<2x32xbf16>
    tpu.vector_store %arg6[%c112_577, %c64_578], %840 {strides = array<i32>} : memref<352x128xbf16, #tpu.memory_space<vmem>>, vector<2x32xbf16>,
    %cst_579 = arith.constant 0.000000e+00 : f32
    %844 = vector.broadcast %cst_579 : f32 to vector<1x128xf32>
    %cst_580 = arith.constant 0.000000e+00 : f32
    %845 = vector.broadcast %cst_580 : f32 to vector<1x128xf32>
    %c0_581 = arith.constant 0 : index
    %c0_582 = arith.constant 0 : index
    %846 = vector.load %arg6[%c0_581, %c0_582] : memref<352x128xbf16, #tpu.memory_space<vmem>>, vector<64x128xbf16>
    %c2_583 = arith.constant 2 : index
    %c0_584 = arith.constant 0 : index
    %c0_585 = arith.constant 0 : index
    %c0_586 = arith.constant 0 : index
    %847 = vector.load %arg2[%c2_583, %c0_584, %c0_585, %c0_586] : memref<3x3x128x128xbf16, #tpu.memory_space<vmem>>, vector<1x1x128x128xbf16>
    %848 = vector.shape_cast %847 : vector<1x1x128x128xbf16> to vector<128x128xbf16>
    %cst_587 = arith.constant dense<0.000000e+00> : vector<64x128xf32>
    %849 = tpu.matmul %846, %848, %cst_587 {dimension_numbers = #tpu.dot_dimension_numbers<[1], [0], [0], [1], [0, 0, 1, 1], [], []>} : vector<64x128xbf16>, vector<128x128xbf16>, vector<64x128xf32> -> vector<64x128xf32>
    %c16_588 = arith.constant 16 : index
    %c0_589 = arith.constant 0 : index
    %850 = vector.load %arg6[%c16_588, %c0_589] : memref<352x128xbf16, #tpu.memory_space<vmem>>, vector<64x128xbf16>
    %c2_590 = arith.constant 2 : index
    %c1_591 = arith.constant 1 : index
    %c0_592 = arith.constant 0 : index
    %c0_593 = arith.constant 0 : index
    %851 = vector.load %arg2[%c2_590, %c1_591, %c0_592, %c0_593] : memref<3x3x128x128xbf16, #tpu.memory_space<vmem>>, vector<1x1x128x128xbf16>
    %852 = vector.shape_cast %851 : vector<1x1x128x128xbf16> to vector<128x128xbf16>
    %cst_594 = arith.constant dense<0.000000e+00> : vector<64x128xf32>
    %853 = tpu.matmul %850, %852, %cst_594 {dimension_numbers = #tpu.dot_dimension_numbers<[1], [0], [0], [1], [0, 0, 1, 1], [], []>} : vector<64x128xbf16>, vector<128x128xbf16>, vector<64x128xf32> -> vector<64x128xf32>
    %854 = arith.addf %849, %853 : vector<64x128xf32>
    %c32_595 = arith.constant 32 : index
    %c0_596 = arith.constant 0 : index
    %855 = vector.load %arg6[%c32_595, %c0_596] : memref<352x128xbf16, #tpu.memory_space<vmem>>, vector<64x128xbf16>
    %c2_597 = arith.constant 2 : index
    %c2_598 = arith.constant 2 : index
    %c0_599 = arith.constant 0 : index
    %c0_600 = arith.constant 0 : index
    %856 = vector.load %arg2[%c2_597, %c2_598, %c0_599, %c0_600] : memref<3x3x128x128xbf16, #tpu.memory_space<vmem>>, vector<1x1x128x128xbf16>
    %857 = vector.shape_cast %856 : vector<1x1x128x128xbf16> to vector<128x128xbf16>
    %cst_601 = arith.constant dense<0.000000e+00> : vector<64x128xf32>
    %858 = tpu.matmul %855, %857, %cst_601 {dimension_numbers = #tpu.dot_dimension_numbers<[1], [0], [0], [1], [0, 0, 1, 1], [], []>} : vector<64x128xbf16>, vector<128x128xbf16>, vector<64x128xf32> -> vector<64x128xf32>
    %859 = arith.addf %854, %858 : vector<64x128xf32>
    %860 = tpu.iota {dimensions = array<i32: 0>} : vector<64x1xi32>
    %c0_i32_602 = arith.constant 0 : i32
    %861 = vector.broadcast %c0_i32_602 : i32 to vector<64x1xi32>
    %862 = arith.addi %860, %861 : vector<64x1xi32>
    %c15_i32_603 = arith.constant 15 : i32
    %863 = vector.broadcast %c15_i32_603 : i32 to vector<64x1xi32>
    %864 = arith.andi %862, %863 : vector<64x1xi32>
    %c16_i32_604 = arith.constant 16 : i32
    %865 = vector.broadcast %c16_i32_604 : i32 to vector<64x1xi32>
    %866 = arith.cmpi sge, %862, %865 : vector<64x1xi32>
    %c48_i32 = arith.constant 48 : i32
    %867 = vector.broadcast %c48_i32 : i32 to vector<64x1xi32>
    %868 = arith.cmpi slt, %862, %867 : vector<64x1xi32>
    %869 = arith.andi %866, %868 : vector<64x1xi1>
    %c1_i32_605 = arith.constant 1 : i32
    %870 = vector.broadcast %c1_i32_605 : i32 to vector<64x1xi32>
    %871 = arith.cmpi sge, %864, %870 : vector<64x1xi32>
    %872 = arith.andi %869, %871 : vector<64x1xi1>
    %c2_i32 = arith.constant 2 : i32
    %873 = vector.broadcast %c2_i32 : i32 to vector<64x1xi32>
    %874 = arith.cmpi sle, %864, %873 : vector<64x1xi32>
    %875 = arith.andi %872, %874 : vector<64x1xi1>
    %cst_606 = arith.constant 0.000000e+00 : f32
    %876 = vector.shape_cast %875 : vector<64x1xi1> to vector<64x1xi1>
    %877 = vector.broadcast %876 : vector<64x1xi1> to vector<64x128xi1>
    %878 = vector.broadcast %cst_606 : f32 to vector<64x128xf32>
    %879 = arith.select %877, %859, %878 : vector<64x128xi1>, vector<64x128xf32>
    %cst_607 = arith.constant dense<0.000000e+00> : vector<128xf32>
    %880 = vector.multi_reduction <add>, %879, %cst_607 [0] : vector<64x128xf32> to vector<128xf32>
    %881 = vector.shape_cast %880 : vector<128xf32> to vector<1x128xf32>
    %882 = arith.addf %844, %881 : vector<1x128xf32>
    %883 = arith.mulf %879, %859 : vector<64x128xf32>
    %cst_608 = arith.constant dense<0.000000e+00> : vector<128xf32>
    %884 = vector.multi_reduction <add>, %883, %cst_608 [0] : vector<64x128xf32> to vector<128xf32>
    %885 = vector.shape_cast %884 : vector<128xf32> to vector<1x128xf32>
    %886 = arith.addf %845, %885 : vector<1x128xf32>
    %c0_609 = arith.constant 0 : index
    %c0_610 = arith.constant 0 : index
    %887 = vector.load %arg7[%c0_609, %c0_610] : memref<512x128xf32, #tpu.memory_space<vmem>>, vector<64x128xf32>
    tpu.vector_store %arg7[%c0_609, %c0_610], %859 {strides = array<i32>} : memref<512x128xf32, #tpu.memory_space<vmem>>, vector<64x128xf32>,
    %c64_611 = arith.constant 64 : index
    %c0_612 = arith.constant 0 : index
    %888 = vector.load %arg6[%c64_611, %c0_612] : memref<352x128xbf16, #tpu.memory_space<vmem>>, vector<64x128xbf16>
    %c2_613 = arith.constant 2 : index
    %c0_614 = arith.constant 0 : index
    %c0_615 = arith.constant 0 : index
    %c0_616 = arith.constant 0 : index
    %889 = vector.load %arg2[%c2_613, %c0_614, %c0_615, %c0_616] : memref<3x3x128x128xbf16, #tpu.memory_space<vmem>>, vector<1x1x128x128xbf16>
    %890 = vector.shape_cast %889 : vector<1x1x128x128xbf16> to vector<128x128xbf16>
    %cst_617 = arith.constant dense<0.000000e+00> : vector<64x128xf32>
    %891 = tpu.matmul %888, %890, %cst_617 {dimension_numbers = #tpu.dot_dimension_numbers<[1], [0], [0], [1], [0, 0, 1, 1], [], []>} : vector<64x128xbf16>, vector<128x128xbf16>, vector<64x128xf32> -> vector<64x128xf32>
    %c80_618 = arith.constant 80 : index
    %c0_619 = arith.constant 0 : index
    %892 = vector.load %arg6[%c80_618, %c0_619] : memref<352x128xbf16, #tpu.memory_space<vmem>>, vector<64x128xbf16>
    %c2_620 = arith.constant 2 : index
    %c1_621 = arith.constant 1 : index
    %c0_622 = arith.constant 0 : index
    %c0_623 = arith.constant 0 : index
    %893 = vector.load %arg2[%c2_620, %c1_621, %c0_622, %c0_623] : memref<3x3x128x128xbf16, #tpu.memory_space<vmem>>, vector<1x1x128x128xbf16>
    %894 = vector.shape_cast %893 : vector<1x1x128x128xbf16> to vector<128x128xbf16>
    %cst_624 = arith.constant dense<0.000000e+00> : vector<64x128xf32>
    %895 = tpu.matmul %892, %894, %cst_624 {dimension_numbers = #tpu.dot_dimension_numbers<[1], [0], [0], [1], [0, 0, 1, 1], [], []>} : vector<64x128xbf16>, vector<128x128xbf16>, vector<64x128xf32> -> vector<64x128xf32>
    %896 = arith.addf %891, %895 : vector<64x128xf32>
    %c96_625 = arith.constant 96 : index
    %c0_626 = arith.constant 0 : index
    %897 = vector.load %arg6[%c96_625, %c0_626] : memref<352x128xbf16, #tpu.memory_space<vmem>>, vector<64x128xbf16>
    %c2_627 = arith.constant 2 : index
    %c2_628 = arith.constant 2 : index
    %c0_629 = arith.constant 0 : index
    %c0_630 = arith.constant 0 : index
    %898 = vector.load %arg2[%c2_627, %c2_628, %c0_629, %c0_630] : memref<3x3x128x128xbf16, #tpu.memory_space<vmem>>, vector<1x1x128x128xbf16>
    %899 = vector.shape_cast %898 : vector<1x1x128x128xbf16> to vector<128x128xbf16>
    %cst_631 = arith.constant dense<0.000000e+00> : vector<64x128xf32>
    %900 = tpu.matmul %897, %899, %cst_631 {dimension_numbers = #tpu.dot_dimension_numbers<[1], [0], [0], [1], [0, 0, 1, 1], [], []>} : vector<64x128xbf16>, vector<128x128xbf16>, vector<64x128xf32> -> vector<64x128xf32>
    %901 = arith.addf %896, %900 : vector<64x128xf32>
    %902 = tpu.iota {dimensions = array<i32: 0>} : vector<64x1xi32>
    %c0_i32_632 = arith.constant 0 : i32
    %903 = vector.broadcast %c0_i32_632 : i32 to vector<64x1xi32>
    %904 = arith.addi %902, %903 : vector<64x1xi32>
    %c15_i32_633 = arith.constant 15 : i32
    %905 = vector.broadcast %c15_i32_633 : i32 to vector<64x1xi32>
    %906 = arith.andi %904, %905 : vector<64x1xi32>
    %c16_i32_634 = arith.constant 16 : i32
    %907 = vector.broadcast %c16_i32_634 : i32 to vector<64x1xi32>
    %908 = arith.cmpi sge, %904, %907 : vector<64x1xi32>
    %c48_i32_635 = arith.constant 48 : i32
    %909 = vector.broadcast %c48_i32_635 : i32 to vector<64x1xi32>
    %910 = arith.cmpi slt, %904, %909 : vector<64x1xi32>
    %911 = arith.andi %908, %910 : vector<64x1xi1>
    %c1_i32_636 = arith.constant 1 : i32
    %912 = vector.broadcast %c1_i32_636 : i32 to vector<64x1xi32>
    %913 = arith.cmpi sge, %906, %912 : vector<64x1xi32>
    %914 = arith.andi %911, %913 : vector<64x1xi1>
    %c2_i32_637 = arith.constant 2 : i32
    %915 = vector.broadcast %c2_i32_637 : i32 to vector<64x1xi32>
    %916 = arith.cmpi sle, %906, %915 : vector<64x1xi32>
    %917 = arith.andi %914, %916 : vector<64x1xi1>
    %cst_638 = arith.constant 0.000000e+00 : f32
    %918 = vector.shape_cast %917 : vector<64x1xi1> to vector<64x1xi1>
    %919 = vector.broadcast %918 : vector<64x1xi1> to vector<64x128xi1>
    %920 = vector.broadcast %cst_638 : f32 to vector<64x128xf32>
    %921 = arith.select %919, %901, %920 : vector<64x128xi1>, vector<64x128xf32>
    %cst_639 = arith.constant dense<0.000000e+00> : vector<128xf32>
    %922 = vector.multi_reduction <add>, %921, %cst_639 [0] : vector<64x128xf32> to vector<128xf32>
    %923 = vector.shape_cast %922 : vector<128xf32> to vector<1x128xf32>
    %924 = arith.addf %882, %923 : vector<1x128xf32>
    %925 = arith.mulf %921, %901 : vector<64x128xf32>
    %cst_640 = arith.constant dense<0.000000e+00> : vector<128xf32>
    %926 = vector.multi_reduction <add>, %925, %cst_640 [0] : vector<64x128xf32> to vector<128xf32>
    %927 = vector.shape_cast %926 : vector<128xf32> to vector<1x128xf32>
    %928 = arith.addf %886, %927 : vector<1x128xf32>
    %c64_641 = arith.constant 64 : index
    %c0_642 = arith.constant 0 : index
    %929 = vector.load %arg7[%c64_641, %c0_642] : memref<512x128xf32, #tpu.memory_space<vmem>>, vector<64x128xf32>
    tpu.vector_store %arg7[%c64_641, %c0_642], %901 {strides = array<i32>} : memref<512x128xf32, #tpu.memory_space<vmem>>, vector<64x128xf32>,
    %cst_643 = arith.constant 1.250000e-01 : f32
    %930 = vector.broadcast %cst_643 : f32 to vector<1x128xf32>
    %931 = arith.mulf %924, %930 : vector<1x128xf32>
    %cst_644 = arith.constant 1.250000e-01 : f32
    %932 = vector.broadcast %cst_644 : f32 to vector<1x128xf32>
    %933 = arith.mulf %928, %932 : vector<1x128xf32>
    %934 = arith.mulf %931, %931 : vector<1x128xf32>
    %935 = arith.subf %933, %934 : vector<1x128xf32>
    %cst_645 = arith.constant 0.000000e+00 : f32
    %936 = vector.broadcast %cst_645 : f32 to vector<1x128xf32>
    %937 = arith.maximumf %935, %936 : vector<1x128xf32>
    %cst_646 = arith.constant 9.99999974E-6 : f32
    %938 = vector.broadcast %cst_646 : f32 to vector<1x128xf32>
    %939 = arith.addf %937, %938 : vector<1x128xf32>
    %940 = math.rsqrt %939 : vector<1x128xf32>
    %c17_647 = arith.constant 17 : index
    %c0_648 = arith.constant 0 : index
    %941 = vector.load %arg7[%c17_647, %c0_648] : memref<512x128xf32, #tpu.memory_space<vmem>>, vector<1x128xf32>
    %c18_649 = arith.constant 18 : index
    %c0_650 = arith.constant 0 : index
    %942 = vector.load %arg7[%c18_649, %c0_650] : memref<512x128xf32, #tpu.memory_space<vmem>>, vector<1x128xf32>
    %c33_651 = arith.constant 33 : index
    %c0_652 = arith.constant 0 : index
    %943 = vector.load %arg7[%c33_651, %c0_652] : memref<512x128xf32, #tpu.memory_space<vmem>>, vector<1x128xf32>
    %c34_653 = arith.constant 34 : index
    %c0_654 = arith.constant 0 : index
    %944 = vector.load %arg7[%c34_653, %c0_654] : memref<512x128xf32, #tpu.memory_space<vmem>>, vector<1x128xf32>
    %945 = arith.maximumf %941, %942 : vector<1x128xf32>
    %946 = arith.maximumf %943, %944 : vector<1x128xf32>
    %947 = arith.maximumf %945, %946 : vector<1x128xf32>
    %948 = arith.subf %947, %931 : vector<1x128xf32>
    %949 = arith.mulf %948, %940 : vector<1x128xf32>
    %cst_655 = arith.constant 0.000000e+00 : f32
    %950 = vector.broadcast %cst_655 : f32 to vector<1x128xf32>
    %951 = arith.maximumf %949, %950 : vector<1x128xf32>
    %c0_656 = arith.constant 0 : index
    %c0_657 = arith.constant 0 : index
    %952 = vector.load %arg8[%c0_656, %c0_657] : memref<8x128xf32, #tpu.memory_space<vmem>>, vector<1x128xf32>
    tpu.vector_store %arg8[%c0_656, %c0_657], %951 {strides = array<i32>} : memref<8x128xf32, #tpu.memory_space<vmem>>, vector<1x128xf32>,
    %c81_658 = arith.constant 81 : index
    %c0_659 = arith.constant 0 : index
    %953 = vector.load %arg7[%c81_658, %c0_659] : memref<512x128xf32, #tpu.memory_space<vmem>>, vector<1x128xf32>
    %c82_660 = arith.constant 82 : index
    %c0_661 = arith.constant 0 : index
    %954 = vector.load %arg7[%c82_660, %c0_661] : memref<512x128xf32, #tpu.memory_space<vmem>>, vector<1x128xf32>
    %c97_662 = arith.constant 97 : index
    %c0_663 = arith.constant 0 : index
    %955 = vector.load %arg7[%c97_662, %c0_663] : memref<512x128xf32, #tpu.memory_space<vmem>>, vector<1x128xf32>
    %c98_664 = arith.constant 98 : index
    %c0_665 = arith.constant 0 : index
    %956 = vector.load %arg7[%c98_664, %c0_665] : memref<512x128xf32, #tpu.memory_space<vmem>>, vector<1x128xf32>
    %957 = arith.maximumf %953, %954 : vector<1x128xf32>
    %958 = arith.maximumf %955, %956 : vector<1x128xf32>
    %959 = arith.maximumf %957, %958 : vector<1x128xf32>
    %960 = arith.subf %959, %931 : vector<1x128xf32>
    %961 = arith.mulf %960, %940 : vector<1x128xf32>
    %cst_666 = arith.constant 0.000000e+00 : f32
    %962 = vector.broadcast %cst_666 : f32 to vector<1x128xf32>
    %963 = arith.maximumf %961, %962 : vector<1x128xf32>
    %c1_667 = arith.constant 1 : index
    %c0_668 = arith.constant 0 : index
    %964 = vector.load %arg8[%c1_667, %c0_668] : memref<8x128xf32, #tpu.memory_space<vmem>>, vector<1x128xf32>
    tpu.vector_store %arg8[%c1_667, %c0_668], %963 {strides = array<i32>} : memref<8x128xf32, #tpu.memory_space<vmem>>, vector<1x128xf32>,
    %c0_669 = arith.constant 0 : index
    %c0_670 = arith.constant 0 : index
    %965 = vector.load %arg8[%c0_669, %c0_670] : memref<8x128xf32, #tpu.memory_space<vmem>>, vector<8x128xf32>
    %966 = arith.truncf %965 : vector<8x128xf32> to vector<8x128xbf16>
    %c0_671 = arith.constant 0 : index
    %c0_672 = arith.constant 0 : index
    %967 = vector.load %arg3[%c0_671, %c0_672] : memref<128x128xbf16, #tpu.memory_space<vmem>>, vector<128x128xbf16>
    %cst_673 = arith.constant dense<0.000000e+00> : vector<8x128xf32>
    %968 = tpu.matmul %966, %967, %cst_673 {dimension_numbers = #tpu.dot_dimension_numbers<[1], [0], [0], [1], [0, 0, 1, 1], [], []>} : vector<8x128xbf16>, vector<128x128xbf16>, vector<8x128xf32> -> vector<8x128xf32>
    %c0_674 = arith.constant 0 : index
    %c0_675 = arith.constant 0 : index
    %969 = vector.load %arg4[%c0_674, %c0_675] : memref<1x128xf32, #tpu.memory_space<vmem>>, vector<1x128xf32>
    %970 = vector.broadcast %969 : vector<1x128xf32> to vector<8x128xf32>
    %971 = arith.addf %968, %970 : vector<8x128xf32>
    %c0_676 = arith.constant 0 : index
    %c0_677 = arith.constant 0 : index
    %972 = vector.load %arg5[%c0_676, %c0_677] : memref<8x128xf32, #tpu.memory_space<vmem>>, vector<8x128xf32>
    tpu.vector_store %arg5[%c0_676, %c0_677], %971 {strides = array<i32>} : memref<8x128xf32, #tpu.memory_space<vmem>>, vector<8x128xf32>,
    return
  }
}

</mosaic_0001>

<bundles_post_ra>
// kernel: vggn_forward.1
= control target key start
LH: loop header
LB: loop body
LE: loop exit
PB: predicated region body
PF: predicated region fallthrough
CT: control target
= control target key end

     0   :  { %vm12201_vm0 = vmmov 0   ;;  %s9764_s24 = smov 64   ;;  %s9765_s29 = smov 32   ;;  %vm1106_vm1 = vcmask 257025   ;;  %vm1108_vm2 = vcmask 253952   ;;  %vm1124_vm3 = vcmask 519424   ;;  %s12195_s1 = inlined_call_operand.vmem [shape: bf16[128,128], index: 1, kind: input, shape index: {}]   ;;  %s12196_s0 = inlined_call_operand.vmem [shape: bf16[512,128], index: 0, kind: input, shape index: {}]   ;;  %s12197_s2 = inlined_call_operand.vmem [shape: bf16[3,3,128,128], index: 2, kind: input, shape index: {}]   ;;  %s12198_s3 = inlined_call_operand.vmem [shape: bf16[128,128], index: 3, kind: input, shape index: {}]   ;;  %s12199_s4 = inlined_call_operand.vmem [shape: f32[1,128], index: 4, kind: input, shape index: {}]   ;;  %s12200_s5 = inlined_call_operand.vmem [shape: f32[8,128], index: 5, kind: output, shape index: {}]  }
   0x1   :  { %v9434_v0 = vld [vmem:[%s12195_s1 + $0x38] sm:$0xff]   ;;  %v9435_v1 = vld [vmem:[%s12195_s1 + $0x30] sm:$0xff]   ;;  %v9436_v2 = vld [vmem:[%s12195_s1 + $0x28] sm:$0xff]   ;;  %vm1125_vm4 = vsmask.f32 7938  ;;  %vm1130_vm5 = vcmask 516352  }
   0x2   :  { %8537 = vmatprep.subr.bf16.mxu0 %v9434_v0  ;;  %8569 = vmatprep.subr.bf16.mxu1 %v9434_v0  ;;  %v9808_v3 = vld [vmem:[%s12195_s1 + $0x20] sm:$0xff]   ;;  %v9821_v6 = vld [vmem:[%s12195_s1 + $0x18] sm:$0xff]   ;;  %v9830_v7 = vld [vmem:[%s12195_s1 + $0x10] sm:$0xff]   ;;  %vm1139_vm7 = vcmask 781824   ;;  %vm1131_vm8 = vsmask.f32 256 }
   0x3   :  { %8538 = vmatpush3.bf16.msra.mxu0 %v9434_v0  ;;  %8570 = vmatpush3.bf16.msra.mxu1 %v9434_v0  ;;  %v9442_v4 = vld [vmem:[%s12196_s0] sm:$0xff]   ;;  %v9839_v8 = vld [vmem:[%s12195_s1 + $0x8] sm:$0xff]   ;;  %v9446_v12 = vld [vmem:[%s12196_s0 + $0x10] sm:$0xff]  }
   0x4   :  { %8539 = vmatprep.subr.bf16.mxu0 %v9435_v1  ;;  %8571 = vmatprep.subr.bf16.mxu1 %v9435_v1  ;;  %v9443_v5 = vld [vmem:[%s12196_s0 + $0x40] sm:$0xff]   ;;  %v9444_v10 = vld [vmem:[%s12196_s0 + $0x8] sm:$0xff]   ;;  %v9447_v13 = vld [vmem:[%s12196_s0 + $0x50] sm:$0xff]  }
   0x5   :  { %8553 = vmatprep.mubr.bf16.mxu0 %v9442_v4  ;;  %8585 = vmatprep.mubr.bf16.mxu1 %v9443_v5  ;;  %v9848_v9 = vld [vmem:[%s12195_s1] sm:$0xff]   ;;  %v9445_v11 = vld [vmem:[%s12196_s0 + $0x48] sm:$0xff]   ;;  %v9448_v14 = vld [vmem:[%s12196_s0 + $0x18] sm:$0xff]  }
   0x6   :  { %v9449_v15 = vld [vmem:[%s12196_s0 + $0x58] sm:$0xff]   ;;  %v9450_v16 = vld [vmem:[%s12196_s0 + $0x20] sm:$0xff]   ;;  %v9452_v18 = vld [vmem:[%s12196_s0 + $0x28] sm:$0xff]  }
   0x7   :  { %8540 = vmatpush3.bf16.msra.mxu0 %v9435_v1  ;;  %8572 = vmatpush3.bf16.msra.mxu1 %v9435_v1  ;;  %v9451_v17 = vld [vmem:[%s12196_s0 + $0x60] sm:$0xff]   ;;  %v9453_v19 = vld [vmem:[%s12196_s0 + $0x68] sm:$0xff]   ;;  %v9454_v20 = vld [vmem:[%s12196_s0 + $0x30] sm:$0xff]  }
   0x8   :  { %8541 = vmatprep.subr.bf16.mxu0 %v9436_v2  ;;  %8573 = vmatprep.subr.bf16.mxu1 %v9436_v2  ;;  %v9455_v21 = vld [vmem:[%s12196_s0 + $0x70] sm:$0xff]   ;;  %v9456_v22 = vld [vmem:[%s12196_s0 + $0x38] sm:$0xff]   ;;  %v9458_v24 = vld [vmem:[%s12196_s0 + $0x80] sm:$0xff]  }
   0x9   :  { %v9457_v23 = vld [vmem:[%s12196_s0 + $0x78] sm:$0xff]   ;;  %v9459_v25 = vld [vmem:[%s12196_s0 + $0xc0] sm:$0xff]   ;;  %v9460_v26 = vld [vmem:[%s12196_s0 + $0x88] sm:$0xff]  }
   0xa   :  { %v9461_v27 = vld [vmem:[%s12196_s0 + $0xc8] sm:$0xff]   ;;  %v9462_v28 = vld [vmem:[%s12196_s0 + $0x90] sm:$0xff]   ;;  %v9464_v30 = vld [vmem:[%s12196_s0 + $0x98] sm:$0xff]  }
   0xb   :  { %8542 = vmatpush3.bf16.msra.mxu0 %v9436_v2  ;;  %8574 = vmatpush3.bf16.msra.mxu1 %v9436_v2  ;;  %v9463_v29 = vld [vmem:[%s12196_s0 + $0xd0] sm:$0xff]   ;;  %v9465_v31 = vld [vmem:[%s12196_s0 + $0xd8] sm:$0xff]   ;;  %v9466_v32 = vld [vmem:[%s12196_s0 + $0xa0] sm:$0xff]  }
   0xc   :  { %8543 = vmatprep.subr.bf16.mxu0 %v9808_v3  ;;  %8575 = vmatprep.subr.bf16.mxu1 %v9808_v3  ;;  %v9467_v33 = vld [vmem:[%s12196_s0 + $0xe0] sm:$0xff]   ;;  %v9468_v34 = vld [vmem:[%s12196_s0 + $0xa8] sm:$0xff]   ;;  %v9470_v36 = vld [vmem:[%s12196_s0 + $0xb0] sm:$0xff]  }
   0xd   :  { %v9469_v35 = vld [vmem:[%s12196_s0 + $0xe8] sm:$0xff]   ;;  %v9471_v37 = vld [vmem:[%s12196_s0 + $0xf0] sm:$0xff]   ;;  %v9472_v38 = vld [vmem:[%s12196_s0 + $0xb8] sm:$0xff]  }
   0xe   :  { %v9473_v39 = vld [vmem:[%s12196_s0 + $0xf8] sm:$0xff]   ;;  %vm10524_vm6 = vmand %vm1124_vm3, %vm1125_vm4 }
   0xf   :  { %8544 = vmatpush3.bf16.msra.mxu0 %v9808_v3  ;;  %8576 = vmatpush3.bf16.msra.mxu1 %v9808_v3  ;;  %vm10532_vm9 = vmand %vm1130_vm5, %vm1131_vm8 }
  0x10   :  { %8545 = vmatprep.subr.bf16.mxu0 %v9821_v6  ;;  %8577 = vmatprep.subr.bf16.mxu1 %v9821_v6 }
  0x13   :  { %8546 = vmatpush3.bf16.msra.mxu0 %v9821_v6  ;;  %8578 = vmatpush3.bf16.msra.mxu1 %v9821_v6 }
  0x14   :  { %8547 = vmatprep.subr.bf16.mxu0 %v9830_v7  ;;  %8579 = vmatprep.subr.bf16.mxu1 %v9830_v7 }
  0x17   :  { %8548 = vmatpush3.bf16.msra.mxu0 %v9830_v7  ;;  %8580 = vmatpush3.bf16.msra.mxu1 %v9830_v7 }
  0x18   :  { %8549 = vmatprep.subr.bf16.mxu0 %v9839_v8  ;;  %8581 = vmatprep.subr.bf16.mxu1 %v9839_v8 }
  0x1b   :  { %8550 = vmatpush3.bf16.msra.mxu0 %v9839_v8  ;;  %8582 = vmatpush3.bf16.msra.mxu1 %v9839_v8 }
  0x1c   :  { %8551 = vmatprep.subr.bf16.mxu0 %v9848_v9  ;;  %8583 = vmatprep.subr.bf16.mxu1 %v9848_v9 }
  0x1f   :  { %8552 = vmatpush3.bf16.msra.mxu0 %v9848_v9  ;;  %8584 = vmatpush3.bf16.msra.mxu1 %v9848_v9 }
  0x20   :  { %8601 = vmatprep.subr.bf16.mxu0 %v9434_v0  ;;  %8633 = vmatprep.subr.bf16.mxu1 %v9434_v0 }
  0x22   :  { %8554 = vmatmul.mubr.bf16.vlgmr.msra.gmra.mxu0 %v9444_v10  ;;  %8586 = vmatmul.mubr.bf16.vlgmr.msra.gmra.mxu1 %v9445_v11 }
  0x23   :  { %8602 = vmatpush3.bf16.msra.mxu0 %v9434_v0  ;;  %8634 = vmatpush3.bf16.msra.mxu1 %v9434_v0 }
  0x24   :  { %8603 = vmatprep.subr.bf16.mxu0 %v9435_v1  ;;  %8635 = vmatprep.subr.bf16.mxu1 %v9435_v1 }
  0x25   :  { %8557 = vmatprep.mubr.bf16.mxu0 %v9446_v12  ;;  %8589 = vmatprep.mubr.bf16.mxu1 %v9447_v13 }
  0x27   :  { %8604 = vmatpush3.bf16.msra.mxu0 %v9435_v1  ;;  %8636 = vmatpush3.bf16.msra.mxu1 %v9435_v1 }
  0x28   :  { %8605 = vmatprep.subr.bf16.mxu0 %v9436_v2  ;;  %8637 = vmatprep.subr.bf16.mxu1 %v9436_v2 }
  0x2a   :  { %8558 = vmatmul.mubr.bf16.gmra.mxu0 %v9448_v14  ;;  %8590 = vmatmul.mubr.bf16.gmra.mxu1 %v9449_v15 }
  0x2b   :  { %8606 = vmatpush3.bf16.msra.mxu0 %v9436_v2  ;;  %8638 = vmatpush3.bf16.msra.mxu1 %v9436_v2 }
  0x2c   :  { %8607 = vmatprep.subr.bf16.mxu0 %v9808_v3  ;;  %8639 = vmatprep.subr.bf16.mxu1 %v9808_v3 }
  0x2d   :  { %8561 = vmatprep.mubr.bf16.mxu0 %v9450_v16  ;;  %8593 = vmatprep.mubr.bf16.mxu1 %v9451_v17 }
  0x2f   :  { %8608 = vmatpush3.bf16.msra.mxu0 %v9808_v3  ;;  %8640 = vmatpush3.bf16.msra.mxu1 %v9808_v3 }
  0x30   :  { %8609 = vmatprep.subr.bf16.mxu0 %v9821_v6  ;;  %8641 = vmatprep.subr.bf16.mxu1 %v9821_v6 }
  0x32   :  { %8562 = vmatmul.mubr.bf16.gmra.mxu0 %v9452_v18  ;;  %8594 = vmatmul.mubr.bf16.gmra.mxu1 %v9453_v19 }
  0x33   :  { %8610 = vmatpush3.bf16.msra.mxu0 %v9821_v6  ;;  %8642 = vmatpush3.bf16.msra.mxu1 %v9821_v6 }
  0x34   :  { %8611 = vmatprep.subr.bf16.mxu0 %v9830_v7  ;;  %8643 = vmatprep.subr.bf16.mxu1 %v9830_v7 }
  0x35   :  { %8565 = vmatprep.mubr.bf16.mxu0 %v9454_v20  ;;  %8597 = vmatprep.mubr.bf16.mxu1 %v9455_v21 }
  0x37   :  { %8612 = vmatpush3.bf16.msra.mxu0 %v9830_v7  ;;  %8644 = vmatpush3.bf16.msra.mxu1 %v9830_v7 }
  0x38   :  { %8613 = vmatprep.subr.bf16.mxu0 %v9839_v8  ;;  %8645 = vmatprep.subr.bf16.mxu1 %v9839_v8 }
  0x3a   :  { %8566 = vmatmul.mubr.bf16.gmra.mxu0 %v9456_v22  ;;  %8598 = vmatmul.mubr.bf16.gmra.mxu1 %v9457_v23 }
  0x3b   :  { %8614 = vmatpush3.bf16.msra.mxu0 %v9839_v8  ;;  %8646 = vmatpush3.bf16.msra.mxu1 %v9839_v8 }
  0x3c   :  { %8615 = vmatprep.subr.bf16.mxu0 %v9848_v9  ;;  %8647 = vmatprep.subr.bf16.mxu1 %v9848_v9 }
  0x3d   :  { %8617 = vmatprep.mubr.bf16.mxu0 %v9458_v24  ;;  %8649 = vmatprep.mubr.bf16.mxu1 %v9459_v25 }
  0x3f   :  { %8616 = vmatpush3.bf16.msra.mxu0 %v9848_v9  ;;  %8648 = vmatpush3.bf16.msra.mxu1 %v9848_v9 }
  0x42   :  { %8618 = vmatmul.mubr.bf16.vlgmr.msra.gmra.mxu0 %v9460_v26  ;;  %8650 = vmatmul.mubr.bf16.vlgmr.msra.gmra.mxu1 %v9461_v27 }
  0x43   :  { %8621 = vmatprep.mubr.bf16.mxu0 %v9462_v28  ;;  %8653 = vmatprep.mubr.bf16.mxu1 %v9463_v29 }
  0x4a   :  { %8622 = vmatmul.mubr.bf16.gmra.mxu0 %v9464_v30  ;;  %8654 = vmatmul.mubr.bf16.gmra.mxu1 %v9465_v31 }
  0x4b   :  { %8625 = vmatprep.mubr.bf16.mxu0 %v9466_v32  ;;  %8657 = vmatprep.mubr.bf16.mxu1 %v9467_v33 }
  0x52   :  { %8626 = vmatmul.mubr.bf16.gmra.mxu0 %v9468_v34  ;;  %8658 = vmatmul.mubr.bf16.gmra.mxu1 %v9469_v35 }
  0x53   :  { %8629 = vmatprep.mubr.bf16.mxu0 %v9470_v36  ;;  %8661 = vmatprep.mubr.bf16.mxu1 %v9471_v37 }
  0x5a   :  { %8630 = vmatmul.mubr.bf16.gmra.mxu0 %v9472_v38  ;;  %8662 = vmatmul.mubr.bf16.gmra.mxu1 %v9473_v39 }
  0xe2   :  { %v8555_v40 = vpop.f32.mrf.mxu0  ;;  %v8587_v41 = vpop.f32.mrf.mxu1 }
  0xe3   :  { %309 = vst [vmem:[#allocation3 + $0x10] sm:$0xff] %v8555_v40  ;;  %546 = vst [vmem:[#allocation3 + $0x90] sm:$0xff] %v8587_v41  ;;  %v271_v56 = vmul.f32 %v8555_v40, %v8555_v40  ;;  %v508_v57 = vmul.f32 %v8587_v41, %v8587_v41 }
  0xe4   :  { %v184_v42 = vpop.f32.mrf.mxu0  ;;  %v421_v43 = vpop.f32.mrf.mxu1 }
  0xe5   :  { %307 = vst [vmem:[#allocation3] sm:$0xff] %v184_v42  ;;  %544 = vst [vmem:[#allocation3 + $0x80] sm:$0xff] %v421_v43  ;;  %v269_v46 = vmul.f32 %v184_v42, %v184_v42  ;;  %v506_v47 = vmul.f32 %v421_v43, %v421_v43 }
  0xe6   :  { %v8556_v44 = vpop.f32.mrf.mxu0  ;;  %v8588_v45 = vpop.f32.mrf.mxu1 }
  0xe7   :  { %310 = vst [vmem:[#allocation3 + $0x18] sm:$0xff] %v8556_v44  ;;  %547 = vst [vmem:[#allocation3 + $0x98] sm:$0xff] %v8588_v45  ;;  %v272_v0 = vmul.f32 %v8556_v44, %v8556_v44  ;;  %v509_v1 = vmul.f32 %v8588_v45, %v8588_v45 }
  0xe8   :  { %v187_v48 = vpop.f32.mrf.mxu0  ;;  %v424_v49 = vpop.f32.mrf.mxu1 }
  0xe9   :  { %v247_v50 = vadd.f32 %v187_v48, %v184_v42  ;;  %v270_v51 = vmul.f32 %v187_v48, %v187_v48  ;;  %308 = vst [vmem:[#allocation3 + $0x8] sm:$0xff] %v187_v48  ;;  %v484_v52 = vadd.f32 %v424_v49, %v421_v43  ;;  %v507_v53 = vmul.f32 %v424_v49, %v424_v49 }
  0xea   :  { %545 = vst [vmem:[#allocation3 + $0x88] sm:$0xff] %v424_v49  ;;  %v8559_v54 = vpop.f32.mrf.mxu0  ;;  %v8591_v55 = vpop.f32.mrf.mxu1 }
  0xeb   :  { %v285_v58 = vadd.f32 %v270_v51, %v269_v46  ;;  %v522_v59 = vadd.f32 %v507_v53, %v506_v47  ;;  %313 = vst [vmem:[#allocation3 + $0x30] sm:$0xff] %v8559_v54  ;;  %550 = vst [vmem:[#allocation3 + $0xb0] sm:$0xff] %v8591_v55  ;;  %v248_v61 = vadd.f32 %v8555_v40, %v247_v50 }
  0xec   :  { %v200_v60 = vpop.f32.mrf.mxu0  ;;  %v437_v62 = vpop.f32.mrf.mxu1  ;;  %v485_v63 = vadd.f32 %v8587_v41, %v484_v52  ;;  %v275_v24 = vmul.f32 %v8559_v54, %v8559_v54  ;;  %v512_v25 = vmul.f32 %v8591_v55, %v8591_v55 }
  0xed   :  { %v286_v2 = vadd.f32 %v285_v58, %v271_v56  ;;  %311 = vst [vmem:[#allocation3 + $0x20] sm:$0xff] %v200_v60  ;;  %v523_v3 = vadd.f32 %v522_v59, %v508_v57  ;;  %548 = vst [vmem:[#allocation3 + $0xa0] sm:$0xff] %v437_v62  ;;  %v249_v4 = vadd.f32 %v8556_v44, %v248_v61 }
  0xee   :  { %v486_v5 = vadd.f32 %v8588_v45, %v485_v63  ;;  %v8560_v6 = vpop.f32.mrf.mxu0  ;;  %v8592_v7 = vpop.f32.mrf.mxu1  ;;  %v273_v8 = vmul.f32 %v200_v60, %v200_v60  ;;  %v510_v10 = vmul.f32 %v437_v62, %v437_v62 }
  0xef   :  { %v287_v9 = vadd.f32 %v286_v2, %v272_v0  ;;  %v524_v11 = vadd.f32 %v523_v3, %v509_v1  ;;  %314 = vst [vmem:[#allocation3 + $0x38] sm:$0xff] %v8560_v6  ;;  %551 = vst [vmem:[#allocation3 + $0xb8] sm:$0xff] %v8592_v7  ;;  %v250_v12 = vadd.f32 %v249_v4, %v200_v60 }
  0xf0   :  { %v487_v13 = vadd.f32 %v486_v5, %v437_v62  ;;  %v203_v14 = vpop.f32.mrf.mxu0  ;;  %v440_v15 = vpop.f32.mrf.mxu1  ;;  %v276_v32 = vmul.f32 %v8560_v6, %v8560_v6  ;;  %v513_v33 = vmul.f32 %v8592_v7, %v8592_v7 }
  0xf1   :  { %v288_v16 = vadd.f32 %v287_v9, %v273_v8  ;;  %v525_v17 = vadd.f32 %v524_v11, %v510_v10  ;;  %v274_v18 = vmul.f32 %v203_v14, %v203_v14  ;;  %312 = vst [vmem:[#allocation3 + $0x28] sm:$0xff] %v203_v14  ;;  %v511_v19 = vmul.f32 %v440_v15, %v440_v15 }
  0xf2   :  { %549 = vst [vmem:[#allocation3 + $0xa8] sm:$0xff] %v440_v15  ;;  %v251_v20 = vadd.f32 %v250_v12, %v203_v14  ;;  %v488_v21 = vadd.f32 %v487_v13, %v440_v15  ;;  %v8563_v22 = vpop.f32.mrf.mxu0  ;;  %v8595_v23 = vpop.f32.mrf.mxu1 }
  0xf3   :  { %v289_v26 = vadd.f32 %v288_v16, %v274_v18  ;;  %v526_v27 = vadd.f32 %v525_v17, %v511_v19  ;;  %317 = vst [vmem:[#allocation3 + $0x50] sm:$0xff] %v8563_v22  ;;  %554 = vst [vmem:[#allocation3 + $0xd0] sm:$0xff] %v8595_v23  ;;  %v279_v59 = vmul.f32 %v8563_v22, %v8563_v22 }
  0xf4   :  { %v216_v28 = vpop.f32.mrf.mxu0  ;;  %v252_v29 = vadd.f32 %v8559_v54, %v251_v20  ;;  %v453_v30 = vpop.f32.mrf.mxu1  ;;  %v489_v31 = vadd.f32 %v8591_v55, %v488_v21  ;;  %v516_v0 = vmul.f32 %v8595_v23, %v8595_v23 }
  0xf5   :  { %v290_v34 = vadd.f32 %v289_v26, %v275_v24  ;;  %315 = vst [vmem:[#allocation3 + $0x40] sm:$0xff] %v216_v28  ;;  %v527_v35 = vadd.f32 %v526_v27, %v512_v25  ;;  %552 = vst [vmem:[#allocation3 + $0xc0] sm:$0xff] %v453_v30  ;;  %v277_v40 = vmul.f32 %v216_v28, %v216_v28 }
  0xf6   :  { %v253_v36 = vadd.f32 %v8560_v6, %v252_v29  ;;  %v490_v37 = vadd.f32 %v8592_v7, %v489_v31  ;;  %v8564_v38 = vpop.f32.mrf.mxu0  ;;  %v8596_v39 = vpop.f32.mrf.mxu1  ;;  %v514_v45 = vmul.f32 %v453_v30, %v453_v30 }
  0xf7   :  { %v291_v41 = vadd.f32 %v290_v34, %v276_v32  ;;  %v528_v42 = vadd.f32 %v527_v35, %v513_v33  ;;  %318 = vst [vmem:[#allocation3 + $0x58] sm:$0xff] %v8564_v38  ;;  %555 = vst [vmem:[#allocation3 + $0xd8] sm:$0xff] %v8596_v39  ;;  %v280_v5 = vmul.f32 %v8564_v38, %v8564_v38 }
  0xf8   :  { %v254_v43 = vadd.f32 %v253_v36, %v216_v28  ;;  %v491_v44 = vadd.f32 %v490_v37, %v453_v30  ;;  %v219_v46 = vpop.f32.mrf.mxu0  ;;  %v456_v47 = vpop.f32.mrf.mxu1  ;;  %v517_v10 = vmul.f32 %v8596_v39, %v8596_v39 }
  0xf9   :  { %v292_v48 = vadd.f32 %v291_v41, %v277_v40  ;;  %v278_v49 = vmul.f32 %v219_v46, %v219_v46  ;;  %316 = vst [vmem:[#allocation3 + $0x48] sm:$0xff] %v219_v46  ;;  %553 = vst [vmem:[#allocation3 + $0xc8] sm:$0xff] %v456_v47  ;;  %v529_v50 = vadd.f32 %v528_v42, %v514_v45 }
  0xfa   :  { %v515_v51 = vmul.f32 %v456_v47, %v456_v47  ;;  %v9966_v52 = vpop.f32.mrf.mxu0  ;;  %v9968_v53 = vpop.f32.mrf.mxu1  ;;  %v255_v54 = vadd.f32 %v254_v43, %v219_v46  ;;  %v492_v56 = vadd.f32 %v491_v44, %v456_v47 }
  0xfb   :  { %321 = vst [vmem:[#allocation3 + $0x70] sm:$0xff] %v9966_v52  ;;  %558 = vst [vmem:[#allocation3 + $0xf0] sm:$0xff] %v9968_v53  ;;  %v293_v55 = vadd.f32 %v292_v48, %v278_v49  ;;  %v283_v42 = vmul.f32 %v9966_v52, %v9966_v52 }
  0xfc   :  { %v232_v57 = vpop.f32.mrf.mxu0  ;;  %v469_v58 = vpop.f32.mrf.mxu1  ;;  %v530_v60 = vadd.f32 %v529_v50, %v515_v51  ;;  %v256_v63 = vadd.f32 %v8563_v22, %v255_v54  ;;  %v493_v2 = vadd.f32 %v8595_v23, %v492_v56  ;;  %v520_v54 = vmul.f32 %v9968_v53, %v9968_v53 }
  0xfd   :  { %319 = vst [vmem:[#allocation3 + $0x60] sm:$0xff] %v232_v57  ;;  %556 = vst [vmem:[#allocation3 + $0xe0] sm:$0xff] %v469_v58  ;;  %v294_v1 = vadd.f32 %v293_v55, %v279_v59  ;;  %v281_v15 = vmul.f32 %v232_v57, %v232_v57  ;;  %v518_v22 = vmul.f32 %v469_v58, %v469_v58 }
  0xfe   :  { %v9972_v61 = vpop.f32.mrf.mxu0  ;;  %v9974_v62 = vpop.f32.mrf.mxu1  ;;  %v531_v6 = vadd.f32 %v530_v60, %v516_v0  ;;  %v257_v9 = vadd.f32 %v8564_v38, %v256_v63  ;;  %v494_v12 = vadd.f32 %v8596_v39, %v493_v2 }
  0xff   :  { %322 = vst [vmem:[#allocation3 + $0x78] sm:$0xff] %v9972_v61  ;;  %559 = vst [vmem:[#allocation3 + $0xf8] sm:$0xff] %v9974_v62  ;;  %v295_v11 = vadd.f32 %v294_v1, %v280_v5 }
 0x100   :  { %v235_v3 = vpop.f32.mrf.mxu0  ;;  %v472_v4 = vpop.f32.mrf.mxu1  ;;  %v532_v16 = vadd.f32 %v531_v6, %v517_v10  ;;  %v258_v19 = vadd.f32 %v257_v9, %v232_v57  ;;  %v495_v21 = vadd.f32 %v494_v12, %v469_v58 }
 0x101   :  { %320 = vst [vmem:[#allocation3 + $0x68] sm:$0xff] %v235_v3  ;;  %557 = vst [vmem:[#allocation3 + $0xe8] sm:$0xff] %v472_v4  ;;  %v296_v20 = vadd.f32 %v295_v11, %v281_v15  ;;  %v282_v25 = vmul.f32 %v235_v3, %v235_v3  ;;  %v519_v30 = vmul.f32 %v472_v4, %v472_v4 }
 0x102   :  { %v8619_v7 = vpop.f32.mrf.mxu0  ;;  %v8651_v8 = vpop.f32.mrf.mxu1  ;;  %v533_v29 = vadd.f32 %v532_v16, %v518_v22  ;;  %v259_v35 = vadd.f32 %v258_v19, %v235_v3  ;;  %v496_v38 = vadd.f32 %v495_v21, %v472_v4 }
 0x103   :  { %783 = vst [vmem:[#allocation3 + $0x110] sm:$0xff] %v8619_v7  ;;  %1020 = vst [vmem:[#allocation3 + $0x190] sm:$0xff] %v8651_v8  ;;  %v745_v39 = vmul.f32 %v8619_v7, %v8619_v7  ;;  %v297_v43 = vadd.f32 %v296_v20, %v282_v25  ;;  %v982_v56 = vmul.f32 %v8651_v8, %v8651_v8 }
 0x104   :  { %v658_v13 = vpop.f32.mrf.mxu0  ;;  %v895_v14 = vpop.f32.mrf.mxu1  ;;  %v534_v46 = vadd.f32 %v533_v29, %v519_v30  ;;  %v260_v55 = vadd.f32 %v9966_v52, %v259_v35  ;;  %v497_v58 = vadd.f32 %v9968_v53, %v496_v38  ;;  %v284_v53 = vmul.f32 %v9972_v61, %v9972_v61 }
 0x105   :  { %781 = vst [vmem:[#allocation3 + $0x100] sm:$0xff] %v658_v13  ;;  %1018 = vst [vmem:[#allocation3 + $0x180] sm:$0xff] %v895_v14  ;;  %v743_v26 = vmul.f32 %v658_v13, %v658_v13  ;;  %v980_v36 = vmul.f32 %v895_v14, %v895_v14  ;;  %v298_v2 = vadd.f32 %v297_v43, %v283_v42 }
 0x106   :  { %v8620_v17 = vpop.f32.mrf.mxu0  ;;  %v8652_v18 = vpop.f32.mrf.mxu1  ;;  %v535_v6 = vadd.f32 %v534_v46, %v520_v54  ;;  %v261_v10 = vadd.f32 %v9972_v61, %v260_v55 }
 0x107   :  { %784 = vst [vmem:[#allocation3 + $0x118] sm:$0xff] %v8620_v17  ;;  %1021 = vst [vmem:[#allocation3 + $0x198] sm:$0xff] %v8652_v18  ;;  %v746_v47 = vmul.f32 %v8620_v17, %v8620_v17  ;;  %v983_v3 = vmul.f32 %v8652_v18, %v8652_v18  ;;  %v299_v19 = vadd.f32 %v298_v2, %v284_v53 }
 0x108   :  { %v661_v23 = vpop.f32.mrf.mxu0  ;;  %v898_v24 = vpop.f32.mrf.mxu1 }
 0x109   :  { %v721_v27 = vadd.f32 %v661_v23, %v658_v13  ;;  %v744_v28 = vmul.f32 %v661_v23, %v661_v23  ;;  %782 = vst [vmem:[#allocation3 + $0x108] sm:$0xff] %v661_v23  ;;  %1019 = vst [vmem:[#allocation3 + $0x188] sm:$0xff] %v898_v24  ;;  %v958_v31 = vadd.f32 %v898_v24, %v895_v14 }
 0x10a   :  { %v981_v32 = vmul.f32 %v898_v24, %v898_v24  ;;  %v9978_v33 = vpop.f32.mrf.mxu0  ;;  %v9980_v34 = vpop.f32.mrf.mxu1  ;;  %v521_v13 = vmul.f32 %v9974_v62, %v9974_v62  ;;  %v498_v14 = vadd.f32 %v9974_v62, %v497_v58  ;;  %v262_v62 = vrot.slane %v261_v10, 4 }
 0x10b   :  { %v759_v37 = vadd.f32 %v744_v28, %v743_v26  ;;  %787 = vst [vmem:[#allocation3 + $0x130] sm:$0xff] %v9978_v33  ;;  %1024 = vst [vmem:[#allocation3 + $0x1b0] sm:$0xff] %v9980_v34  ;;  %v722_v45 = vadd.f32 %v8619_v7, %v721_v27  ;;  %v959_v49 = vadd.f32 %v8651_v8, %v958_v31 }
 0x10c   :  { %v674_v40 = vpop.f32.mrf.mxu0  ;;  %v911_v41 = vpop.f32.mrf.mxu1  ;;  %v996_v44 = vadd.f32 %v981_v32, %v980_v36  ;;  %v536_v61 = vadd.f32 %v535_v6, %v521_v13  ;;  %v749_v23 = vmul.f32 %v9978_v33, %v9978_v33  ;;  %v986_v28 = vmul.f32 %v9980_v34, %v9980_v34 }
 0x10d   :  { %785 = vst [vmem:[#allocation3 + $0x120] sm:$0xff] %v674_v40  ;;  %1022 = vst [vmem:[#allocation3 + $0x1a0] sm:$0xff] %v911_v41  ;;  %v760_v48 = vadd.f32 %v759_v37, %v745_v39  ;;  %v723_v57 = vadd.f32 %v8620_v17, %v722_v45  ;;  %v747_v59 = vmul.f32 %v674_v40, %v674_v40  ;;  %v499_v31 = vrot.slane %v498_v14, 4 }
 0x10e   :  { %v8624_v50 = vpop.f32.mrf.mxu0  ;;  %v8656_v51 = vpop.f32.mrf.mxu1  ;;  %v960_v63 = vadd.f32 %v8652_v18, %v959_v49  ;;  %v997_v5 = vadd.f32 %v996_v44, %v982_v56  ;;  %v984_v11 = vmul.f32 %v911_v41, %v911_v41  ;;  %v300_v39 = vrot.slane %v299_v19, 4 }
 0x10f   :  { %788 = vst [vmem:[#allocation3 + $0x138] sm:$0xff] %v8624_v50  ;;  %1025 = vst [vmem:[#allocation3 + $0x1b8] sm:$0xff] %v8656_v51  ;;  %v761_v60 = vadd.f32 %v760_v48, %v746_v47  ;;  %v724_v4 = vadd.f32 %v723_v57, %v674_v40  ;;  %v750_v32 = vmul.f32 %v8624_v50, %v8624_v50 }
 0x110   :  { %v677_v0 = vpop.f32.mrf.mxu0  ;;  %v914_v1 = vpop.f32.mrf.mxu1  ;;  %v961_v52 = vadd.f32 %v960_v63, %v911_v41  ;;  %v998_v12 = vadd.f32 %v997_v5, %v983_v3  ;;  %v987_v40 = vmul.f32 %v8656_v51, %v8656_v51  ;;  %v263_v58 = vadd.f32 %v262_v62, %v261_v10 }
 0x111   :  { %786 = vst [vmem:[#allocation3 + $0x128] sm:$0xff] %v677_v0  ;;  %1023 = vst [vmem:[#allocation3 + $0x1a8] sm:$0xff] %v914_v1  ;;  %v762_v7 = vadd.f32 %v761_v60, %v747_v59  ;;  %v725_v15 = vadd.f32 %v724_v4, %v677_v0  ;;  %v748_v16 = vmul.f32 %v677_v0, %v677_v0 }
 0x112   :  { %v9990_v8 = vpop.f32.mrf.mxu0  ;;  %v9992_v9 = vpop.f32.mrf.mxu1  ;;  %v999_v20 = vadd.f32 %v998_v12, %v984_v11  ;;  %v962_v21 = vadd.f32 %v961_v52, %v914_v1  ;;  %v985_v22 = vmul.f32 %v914_v1, %v914_v1  ;;  %v500_v63 = vadd.f32 %v499_v31, %v498_v14 }
 0x113   :  { %791 = vst [vmem:[#allocation3 + $0x150] sm:$0xff] %v9990_v8  ;;  %1028 = vst [vmem:[#allocation3 + $0x1d0] sm:$0xff] %v9992_v9  ;;  %v763_v24 = vadd.f32 %v762_v7, %v748_v16  ;;  %v726_v25 = vadd.f32 %v9978_v33, %v725_v15  ;;  %v753_v0 = vmul.f32 %v9990_v8, %v9990_v8  ;;  %v264_v15 = vrot.slane %v263_v58, 2 }
 0x114   :  { %v690_v17 = vpop.f32.mrf.mxu0  ;;  %v927_v18 = vpop.f32.mrf.mxu1  ;;  %v1000_v29 = vadd.f32 %v999_v20, %v985_v22  ;;  %v963_v30 = vadd.f32 %v9980_v34, %v962_v21  ;;  %v301_v5 = vadd.f32 %v300_v39, %v299_v19  ;;  %v990_v6 = vmul.f32 %v9992_v9, %v9992_v9 }
 0x115   :  { %789 = vst [vmem:[#allocation3 + $0x140] sm:$0xff] %v690_v17  ;;  %1026 = vst [vmem:[#allocation3 + $0x1c0] sm:$0xff] %v927_v18  ;;  %v727_v35 = vadd.f32 %v8624_v50, %v726_v25  ;;  %v764_v36 = vadd.f32 %v763_v24, %v749_v23  ;;  %v751_v43 = vmul.f32 %v690_v17, %v690_v17  ;;  %v537_v50 = vrot.slane %v536_v61, 4 }
 0x116   :  { %v8628_v26 = vpop.f32.mrf.mxu0  ;;  %v8660_v27 = vpop.f32.mrf.mxu1  ;;  %v964_v33 = vadd.f32 %v8656_v51, %v963_v30  ;;  %v1001_v41 = vadd.f32 %v1000_v29, %v986_v28  ;;  %v988_v48 = vmul.f32 %v927_v18, %v927_v18  ;;  %v302_v62 = vrot.slane %v301_v5, 2 }
 0x117   :  { %792 = vst [vmem:[#allocation3 + $0x158] sm:$0xff] %v8628_v26  ;;  %1029 = vst [vmem:[#allocation3 + $0x1d8] sm:$0xff] %v8660_v27  ;;  %v728_v42 = vadd.f32 %v727_v35, %v690_v17  ;;  %v765_v44 = vadd.f32 %v764_v36, %v750_v32  ;;  %v538_v53 = vadd.f32 %v537_v50, %v536_v61  ;;  %v501_v61 = vrot.slane %v500_v63, 2 }
 0x118   :  { %v693_v37 = vpop.f32.mrf.mxu0  ;;  %v930_v38 = vpop.f32.mrf.mxu1  ;;  %v965_v47 = vadd.f32 %v964_v33, %v927_v18  ;;  %v1002_v49 = vadd.f32 %v1001_v41, %v987_v40  ;;  %v754_v10 = vmul.f32 %v8628_v26, %v8628_v26  ;;  %v991_v16 = vmul.f32 %v8660_v27, %v8660_v27 }
 0x119   :  { %790 = vst [vmem:[#allocation3 + $0x148] sm:$0xff] %v693_v37  ;;  %1027 = vst [vmem:[#allocation3 + $0x1c8] sm:$0xff] %v930_v38  ;;  %v752_v45 = vmul.f32 %v693_v37, %v693_v37  ;;  %v989_v54 = vmul.f32 %v930_v38, %v930_v38  ;;  %v766_v55 = vadd.f32 %v765_v44, %v751_v43  ;;  %v539_v30 = vrot.slane %v538_v53, 2 }
 0x11a   :  { %v8631_v46 = vpop.f32.mrf.mxu0  ;;  %v8663_v34 = vpop.f32.mrf.mxu1  ;;  %v729_v56 = vadd.f32 %v728_v42, %v693_v37  ;;  %v1003_v59 = vadd.f32 %v1002_v49, %v988_v48  ;;  %v966_v60 = vadd.f32 %v965_v47, %v930_v38  ;;  %v10014_v35 = vadd.f32 %v264_v15, %v263_v58  ;;  %v9475_v15 = vld [vmem:[%s12197_s2 + $0x78] sm:$0xff]  }
 0x11b   :  { %795 = vst [vmem:[#allocation3 + $0x170] sm:$0xff] %v8631_v46  ;;  %1032 = vst [vmem:[#allocation3 + $0x1f0] sm:$0xff] %v8663_v34  ;;  %v767_v1 = vadd.f32 %v766_v55, %v752_v45  ;;  %v757_v31 = vmul.f32 %v8631_v46, %v8631_v46  ;;  %v994_v36 = vmul.f32 %v8663_v34, %v8663_v34 }
 0x11c   :  { %v706_v57 = vpop.f32.mrf.mxu0  ;;  %v943_v51 = vpop.f32.mrf.mxu1  ;;  %v730_v2 = vadd.f32 %v9990_v8, %v729_v56  ;;  %v1004_v7 = vadd.f32 %v1003_v59, %v989_v54  ;;  %v967_v52 = vadd.f32 %v9992_v9, %v966_v60  ;;  %v10016_v39 = vadd.f32 %v501_v61, %v500_v63  ;;  %v9477_v61 = vld [vmem:[%s12197_s2 + $0x70] sm:$0xff]  }
 0x11d   :  { %793 = vst [vmem:[#allocation3 + $0x160] sm:$0xff] %v706_v57  ;;  %1030 = vst [vmem:[#allocation3 + $0x1e0] sm:$0xff] %v943_v51  ;;  %v768_v12 = vadd.f32 %v767_v1, %v753_v0  ;;  %v755_v19 = vmul.f32 %v706_v57, %v706_v57  ;;  %v992_v9 = vmul.f32 %v943_v51, %v943_v51  ;;  %v266_v50 = vrot.slane %v10014_v35, 1 }
 0x11e   :  { %v8632_v3 = vpop.f32.mrf.mxu0  ;;  %v8664_v4 = vpop.f32.mrf.mxu1  ;;  %v731_v11 = vadd.f32 %v8628_v26, %v730_v2  ;;  %v968_v8 = vadd.f32 %v8660_v27, %v967_v52  ;;  %v1005_v17 = vadd.f32 %v1004_v7, %v990_v6  ;;  %v10018_v42 = vadd.f32 %v302_v62, %v301_v5 }
 0x11f   :  { %796 = vst [vmem:[#allocation3 + $0x178] sm:$0xff] %v8632_v3  ;;  %1033 = vst [vmem:[#allocation3 + $0x1f8] sm:$0xff] %v8664_v4  ;;  %v769_v20 = vadd.f32 %v768_v12, %v754_v10  ;;  %v758_v40 = vmul.f32 %v8632_v3, %v8632_v3  ;;  %v995_v43 = vmul.f32 %v8664_v4, %v8664_v4 }
 0x120   :  { %v709_v13 = vpop.f32.mrf.mxu0  ;;  %v946_v14 = vpop.f32.mrf.mxu1  ;;  %v732_v18 = vadd.f32 %v731_v11, %v706_v57  ;;  %v969_v22 = vadd.f32 %v968_v8, %v943_v51  ;;  %v1006_v23 = vadd.f32 %v1005_v17, %v991_v16  ;;  %v10020_v47 = vadd.f32 %v539_v30, %v538_v53  ;;  %v9476_v16 = vld [vmem:[%s12197_s2 + $0x30] sm:$0xff]  }
 0x121   :  { %794 = vst [vmem:[#allocation3 + $0x168] sm:$0xff] %v709_v13  ;;  %1031 = vst [vmem:[#allocation3 + $0x1e8] sm:$0xff] %v946_v14  ;;  %v756_v21 = vmul.f32 %v709_v13, %v709_v13  ;;  %v993_v24 = vmul.f32 %v946_v14, %v946_v14  ;;  %v770_v25 = vadd.f32 %v769_v20, %v755_v19  ;;  %v9761_v57 = vmov 0  }
 0x122   :  { %v733_v26 = vadd.f32 %v732_v18, %v709_v13  ;;  %v1007_v28 = vadd.f32 %v1006_v23, %v992_v9  ;;  %v970_v29 = vadd.f32 %v969_v22, %v946_v14  ;;  %1041 = vst [vmem:[#allocation2] sm:$0xf] %v9761_v57  ;;  %1042 = vst [vmem:[#allocation2 + $0x4] sm:$0xf] %v9761_v57  ;;  %v304_v51 = vrot.slane %v10018_v42, 1 }
 0x123   :  { %v771_v32 = vadd.f32 %v770_v25, %v756_v21  ;;  %1043 = vst [vmem:[#allocation2 + $0x8] sm:$0xf] %v9761_v57  ;;  %1044 = vst [vmem:[#allocation2 + $0xc] sm:$0xf] %v9761_v57  ;;  %v541_v60 = vrot.slane %v10020_v47, 1  ;;  %v267_v5 = vadd.f32 %v266_v50, %v10014_v35  ;;  %v9478_v25 = vld [vmem:[%s12197_s2 + $0x28] sm:$0xff]  }
 0x124   :  { %v734_v27 = vadd.f32 %v8631_v46, %v733_v26  ;;  %v971_v37 = vadd.f32 %v8663_v34, %v970_v29  ;;  %v1008_v38 = vadd.f32 %v1007_v28, %v993_v24  ;;  %v503_v34 = vrot.slane %v10016_v39, 1  ;;  %1045 = vst [vmem:[#allocation2 + $0x10] sm:$0xf] %v9761_v57  ;;  %1046 = vst [vmem:[#allocation2 + $0x14] sm:$0xf] %v9761_v57 }
 0x125   :  { %v772_v41 = vadd.f32 %v771_v32, %v757_v31  ;;  %1047 = vst [vmem:[#allocation2 + $0x18] sm:$0xf] %v9761_v57  ;;  %1048 = vst [vmem:[#allocation2 + $0x1c] sm:$0xf] %v9761_v57  ;;  %v305_v11 = vadd.f32 %v304_v51, %v10018_v42  ;;  %v542_v12 = vadd.f32 %v541_v60, %v10020_v47  ;;  %v9479_v31 = vld [vmem:[%s12197_s2 + $0x68] sm:$0xff]   ;;  %v9485_v42 = vld [vmem:[%s12197_s2 + $0x50] sm:$0xff]  }
 0x126   :  { %v735_v33 = vadd.f32 %v8632_v3, %v734_v27  ;;  %v972_v44 = vadd.f32 %v8664_v4, %v971_v37  ;;  %v1009_v45 = vadd.f32 %v1008_v38, %v994_v36  ;;  %1049 = vst [vmem:[#allocation2 + $0x20] sm:$0xf] %v9761_v57  ;;  %1050 = vst [vmem:[#allocation2 + $0x24] sm:$0xf] %v9761_v57  ;;  %v9762_v3 = vmov 0.0   ;;  %v9474_v4 = vld [vmem:[%s12197_s2 + $0x38] sm:$0xff]  }
 0x127   :  { %v773_v46 = vadd.f32 %v772_v41, %v758_v40  ;;  %1051 = vst [vmem:[#allocation2 + $0x28] sm:$0xf] %v9761_v57  ;;  %1052 = vst [vmem:[#allocation2 + $0x2c] sm:$0xf] %v9761_v57  ;;  %8701 = vmatprep.subr.bf16.mxu1 %v9762_v3  ;;  %8665 = vmatprep.subr.bf16.mxu0 %v9762_v3  ;;  %v504_v6 = vadd.f32 %v503_v34, %v10016_v39  ;;  %v9480_v27 = vld [vmem:[%s12197_s2 + $0x20] sm:$0xff]   ;;  %v9482_v37 = vld [vmem:[%s12197_s2 + $0x18] sm:$0xff]  }
 0x128   :  { %v736_v48 = vrot.slane %v735_v33, 4  ;;  %v973_v49 = vrot.slane %v972_v44, 4  ;;  %v1010_v54 = vadd.f32 %v1009_v45, %v995_v43  ;;  %1053 = vst [vmem:[#allocation2 + $0x30] sm:$0xf] %v9761_v57  ;;  %1054 = vst [vmem:[#allocation2 + $0x34] sm:$0xf] %v9761_v57  ;;  %8702 = vmatpush3.bf16.msra.mxu1 %v9474_v4  ;;  %8666 = vmatpush3.bf16.msra.mxu0 %v9475_v15 }
 0x129   :  { %v774_v56 = vrot.slane %v773_v46, 4  ;;  %1055 = vst [vmem:[#allocation2 + $0x38] sm:$0xf] %v9761_v57  ;;  %1056 = vst [vmem:[#allocation2 + $0x3c] sm:$0xf] %v9761_v57  ;;  %8703 = vmatprep.subr.bf16.mxu1 %v9762_v3  ;;  %v505_v18 = vadd.f32 %v504_v6, %v267_v5  ;;  %8667 = vmatprep.subr.bf16.mxu0 %v9762_v3  ;;  %v543_v22 = vadd.f32 %v542_v12, %v305_v11  ;;  %v9481_v36 = vld [vmem:[%s12197_s2 + $0x60] sm:$0xff]  }
 0x12a   :  { %v10024_v55 = vadd.f32 %v736_v48, %v735_v33  ;;  %1057 = vst [vmem:[#allocation2 + $0x40] sm:$0xf] %v9761_v57  ;;  %1058 = vst [vmem:[#allocation2 + $0x44] sm:$0xf] %v9761_v57  ;;  %v974_v58 = vadd.f32 %v973_v49, %v972_v44  ;;  %v1011_v59 = vrot.slane %v1010_v54, 4  ;;  %v9483_v39 = vld [vmem:[%s12197_s2 + $0x58] sm:$0xff]   ;;  %8717 = vmatprep.mubr.msk.bf16.mxu1 %vm12201_vm0, %v9762_v3  ;;  %8681 = vmatprep.mubr.msk.bf16.mxu0 %vm12201_vm0, %v9762_v3 }
 0x12b   :  { %1059 = vst [vmem:[#allocation2 + $0x48] sm:$0xf] %v9761_v57  ;;  %1060 = vst [vmem:[#allocation2 + $0x4c] sm:$0xf] %v9761_v57  ;;  %v775_v0 = vadd.f32 %v774_v56, %v773_v46  ;;  %v9484_v33 = vld [vmem:[%s12197_s2 + $0x10] sm:$0xff]   ;;  %v9486_v43 = vld [vmem:[%s12197_s2 + $0x8] sm:$0xff]  }
 0x12c   :  { %1061 = vst [vmem:[#allocation2 + $0x50] sm:$0xf] %v9761_v57  ;;  %1062 = vst [vmem:[#allocation2 + $0x54] sm:$0xf] %v9761_v57  ;;  %v738_v63 = vrot.slane %v10024_v55, 2  ;;  %v975_v1 = vrot.slane %v974_v58, 2  ;;  %v1012_v2 = vadd.f32 %v1011_v59, %v1010_v54  ;;  %8704 = vmatpush3.bf16.msra.mxu1 %v9476_v16  ;;  %8668 = vmatpush3.bf16.msra.mxu0 %v9477_v61 }
 0x12d   :  { %1063 = vst [vmem:[#allocation2 + $0x58] sm:$0xf] %v9761_v57  ;;  %1064 = vst [vmem:[#allocation2 + $0x5c] sm:$0xf] %v9761_v57  ;;  %v776_v52 = vrot.slane %v775_v0, 2  ;;  %8705 = vmatprep.subr.bf16.mxu1 %v9762_v3  ;;  %8669 = vmatprep.subr.bf16.mxu0 %v9762_v3  ;;  %v9487_v5 = vld [vmem:[%s12197_s2 + $0x48] sm:$0xff]  }
 0x12e   :  { %1065 = vst [vmem:[#allocation2 + $0x60] sm:$0xf] %v9761_v57  ;;  %1066 = vst [vmem:[#allocation2 + $0x64] sm:$0xf] %v9761_v57  ;;  %v739_v7 = vadd.f32 %v738_v63, %v10024_v55  ;;  %v976_v53 = vadd.f32 %v975_v1, %v974_v58  ;;  %v1013_v10 = vrot.slane %v1012_v2, 2  ;;  %v9488_v6 = vld [vmem:[%s12197_s2] sm:$0xff]  }
 0x12f   :  { %1067 = vst [vmem:[#allocation2 + $0x68] sm:$0xf] %v9761_v57  ;;  %1068 = vst [vmem:[#allocation2 + $0x6c] sm:$0xf] %v9761_v57  ;;  %v777_v14 = vadd.f32 %v776_v52, %v775_v0  ;;  %v1085_v44 = vld [vmem:[#allocation3] ss:$2 sm:$0xff] }
 0x130   :  { %1069 = vst [vmem:[#allocation2 + $0x70] sm:$0xf] %v9761_v57  ;;  %1070 = vst [vmem:[#allocation2 + $0x74] sm:$0xf] %v9761_v57  ;;  %v740_v13 = vrot.slane %v739_v7, 1  ;;  %v977_v8 = vrot.slane %v976_v53, 1  ;;  %v1014_v17 = vadd.f32 %v1013_v10, %v1012_v2  ;;  %8706 = vmatpush3.bf16.msra.mxu1 %v9478_v25  ;;  %8670 = vmatpush3.bf16.msra.mxu0 %v9479_v31 }
 0x131   :  { %1071 = vst [vmem:[#allocation2 + $0x78] sm:$0xf] %v9761_v57  ;;  %1072 = vst [vmem:[#allocation2 + $0x7c] sm:$0xf] %v9761_v57  ;;  %v778_v20 = vrot.slane %v777_v14, 1  ;;  %8707 = vmatprep.subr.bf16.mxu1 %v9762_v3  ;;  %8671 = vmatprep.subr.bf16.mxu0 %v9762_v3  ;;  %v9490_v52 = vld [vmem:[#allocation2] sm:$0xff]  }
 0x132   :  { %1073 = vst [vmem:[#allocation2 + $0x80] sm:$0xf] %v9761_v57  ;;  %1074 = vst [vmem:[#allocation2 + $0x84] sm:$0xf] %v9761_v57  ;;  %v741_v19 = vadd.f32 %v740_v13, %v739_v7  ;;  %v1015_v21 = vrot.slane %v1014_v17, 1  ;;  %v978_v24 = vadd.f32 %v977_v8, %v976_v53  ;;  %v9489_v16 = vld [vmem:[%s12197_s2 + $0x40] sm:$0xff]  }
 0x133   :  { %1075 = vst [vmem:[#allocation2 + $0x88] sm:$0xf] %v9761_v57  ;;  %1076 = vst [vmem:[#allocation2 + $0x8c] sm:$0xf] %v9761_v57  ;;  %v779_v23 = vadd.f32 %v778_v20, %v777_v14  ;;  %v1087_v45 = vld [vmem:[#allocation3 + $0x1] ss:$2 sm:$0xff] }
 0x134   :  { %1077 = vst [vmem:[#allocation2 + $0x90] sm:$0xf] %v9761_v57  ;;  %1078 = vst [vmem:[#allocation2 + $0x94] sm:$0xf] %v9761_v57  ;;  %v742_v9 = vadd.f32 %v741_v19, %v505_v18  ;;  %v1016_v28 = vadd.f32 %v1015_v21, %v1014_v17  ;;  %8708 = vmatpush3.bf16.msra.mxu1 %v9480_v27  ;;  %8672 = vmatpush3.bf16.msra.mxu0 %v9481_v36  ;;  %v1142_v47 = vld [vmem:[#allocation3 + $0x20] ss:$2 sm:$0xff] }
 0x135   :  { %1079 = vst [vmem:[#allocation2 + $0x98] sm:$0xf] %v9761_v57  ;;  %1080 = vst [vmem:[#allocation2 + $0x9c] sm:$0xf] %v9761_v57  ;;  %v780_v26 = vadd.f32 %v779_v23, %v543_v22  ;;  %8709 = vmatprep.subr.bf16.mxu1 %v9762_v3  ;;  %8673 = vmatprep.subr.bf16.mxu0 %v9762_v3  ;;  %v1144_v48 = vld [vmem:[#allocation3 + $0x21] ss:$2 sm:$0xff]  ;;  %v1092_v0 = vmax.f32 %v1085_v44, %v1087_v45 }
 0x136   :  { %1081 = vst [vmem:[#allocation2 + $0xa0] sm:$0xf] %v9761_v57  ;;  %1082 = vst [vmem:[#allocation2 + $0xa4] sm:$0xf] %v9761_v57  ;;  %v979_v62 = vadd.f32 %v978_v24, %v742_v9  ;;  %v1190_v46 = vld [vmem:[#allocation3 + $0x40] ss:$2 sm:$0xff]  ;;  %v1149_v1 = vmax.f32 %v1142_v47, %v1144_v48 }
 0x137   :  { %1083 = vst [vmem:[#allocation2 + $0xa8] sm:$0xf] %v9761_v57  ;;  %1084 = vst [vmem:[#allocation2 + $0xac] sm:$0xf] %v9761_v57  ;;  %v1017_v29 = vadd.f32 %v1016_v28, %v780_v26  ;;  %v1192_v49 = vld [vmem:[#allocation3 + $0x41] ss:$2 sm:$0xff] }
 0x138   :  { %21 = vst [vmem:[#allocation4] sm:$0xff] %v9762_v3  ;;  %v10104_v30 = vmul.f32 0.001953125, %v979_v62  ;;  %8710 = vmatpush3.bf16.msra.mxu1 %v9482_v37  ;;  %8674 = vmatpush3.bf16.msra.mxu0 %v9483_v39  ;;  %v1238_v54 = vld [vmem:[#allocation3 + $0x60] ss:$2 sm:$0xff]  ;;  %v1240_v50 = vld [vmem:[#allocation3 + $0x61] ss:$2 sm:$0xff]  ;;  %v1197_v2 = vmax.f32 %v1190_v46, %v1192_v49 }
 0x139   :  { %v1035_v32 = vmul.f32 0.001953125, %v1017_v29  ;;  %8711 = vmatprep.subr.bf16.mxu1 %v9762_v3  ;;  %8675 = vmatprep.subr.bf16.mxu0 %v9762_v3  ;;  %v1089_v34 = vld [vmem:[#allocation3 + $0x10] ss:$2 sm:$0xff]  ;;  %v1091_v55 = vld [vmem:[#allocation3 + $0x11] ss:$2 sm:$0xff]  ;;  %v1245_v4 = vmax.f32 %v1238_v54, %v1240_v50 }
 0x13a   :  { %v1036_v35 = vmul.f32 %v10104_v30, %v10104_v30  ;;  %v1146_v56 = vld [vmem:[#allocation3 + $0x30] ss:$2 sm:$0xff]  ;;  %v1148_v51 = vld [vmem:[#allocation3 + $0x31] ss:$2 sm:$0xff]  ;;  %v1093_v7 = vmax.f32 %v1089_v34, %v1091_v55  ;;  %v1286_v12 = vld [vmem:[#allocation3 + $0x80] ss:$2 sm:$0xff] }
 0x13b   :  { %v1194_v58 = vld [vmem:[#allocation3 + $0x50] ss:$2 sm:$0xff]  ;;  %v1196_v59 = vld [vmem:[#allocation3 + $0x51] ss:$2 sm:$0xff]  ;;  %v1150_v53 = vmax.f32 %v1146_v56, %v1148_v51  ;;  %v1288_v13 = vld [vmem:[#allocation3 + $0x81] ss:$2 sm:$0xff] }
 0x13c   :  { %v1037_v38 = vsub.f32 %v1035_v32, %v1036_v35  ;;  %8712 = vmatpush3.bf16.msra.mxu1 %v9484_v33  ;;  %v1242_v60 = vld [vmem:[#allocation3 + $0x70] ss:$2 sm:$0xff]  ;;  %v1244_v63 = vld [vmem:[#allocation3 + $0x71] ss:$2 sm:$0xff]  ;;  %8676 = vmatpush3.bf16.msra.mxu0 %v9485_v42  ;;  %v1198_v10 = vmax.f32 %v1194_v58, %v1196_v59  ;;  %v1334_v14 = vld [vmem:[#allocation3 + $0xa0] ss:$2 sm:$0xff]  ;;  %v1094_v8 = vmax.f32 %v1092_v0, %v1093_v7 }
 0x13d   :  { %8713 = vmatprep.subr.bf16.mxu1 %v9762_v3  ;;  %8677 = vmatprep.subr.bf16.mxu0 %v9762_v3  ;;  %v1246_v11 = vmax.f32 %v1242_v60, %v1244_v63  ;;  %v1336_v15 = vld [vmem:[#allocation3 + $0xa1] ss:$2 sm:$0xff]  ;;  %4375 = vst [vmem:[#allocation2] sm:$0xf] %v9761_v57  ;;  %4376 = vst [vmem:[#allocation2 + $0x4] sm:$0xf] %v9761_v57  ;;  %v1151_v17 = vmax.f32 %v1149_v1, %v1150_v53 }
 0x13e   :  { %v1038_v40 = vmax.f32 %v1037_v38, 0.0  ;;  %v1199_v18 = vmax.f32 %v1197_v2, %v1198_v10  ;;  %v1290_v20 = vld [vmem:[#allocation3 + $0x90] ss:$2 sm:$0xff]  ;;  %v1292_v21 = vld [vmem:[#allocation3 + $0x91] ss:$2 sm:$0xff]  ;;  %v1095_v61 = vsub.f32 %v1094_v8, %v10104_v30  ;;  %v1293_v35 = vmax.f32 %v1286_v12, %v1288_v13 }
 0x13f   :  { %v1247_v19 = vmax.f32 %v1245_v4, %v1246_v11  ;;  %v1338_v22 = vld [vmem:[#allocation3 + $0xb0] ss:$2 sm:$0xff]  ;;  %v1340_v9 = vld [vmem:[#allocation3 + $0xb1] ss:$2 sm:$0xff]  ;;  %v1382_v23 = vld [vmem:[#allocation3 + $0xc0] ss:$2 sm:$0xff]  ;;  %v1152_v62 = vsub.f32 %v1151_v17, %v10104_v30  ;;  %v1341_v36 = vmax.f32 %v1334_v14, %v1336_v15  ;;  %v1294_v42 = vmax.f32 %v1290_v20, %v1292_v21 }
 0x140   :  { %v1039_v41 = vadd.f32 1e-05, %v1038_v40  ;;  %8714 = vmatpush3.bf16.msra.mxu1 %v9486_v43  ;;  %8678 = vmatpush3.bf16.msra.mxu0 %v9487_v5  ;;  %v1384_v24 = vld [vmem:[#allocation3 + $0xc1] ss:$2 sm:$0xff]  ;;  %v1430_v25 = vld [vmem:[#allocation3 + $0xe0] ss:$2 sm:$0xff]  ;;  %v1200_v28 = vsub.f32 %v1199_v18, %v10104_v30  ;;  %v1342_v43 = vmax.f32 %v1338_v22, %v1340_v9 }
 0x141   :  { %8715 = vmatprep.subr.bf16.mxu1 %v9762_v3  ;;  %8679 = vmatprep.subr.bf16.mxu0 %v9762_v3  ;;  %v1432_v26 = vld [vmem:[#allocation3 + $0xe1] ss:$2 sm:$0xff]  ;;  %v1248_v29 = vsub.f32 %v1247_v19, %v10104_v30  ;;  %v1386_v31 = vld [vmem:[#allocation3 + $0xd0] ss:$2 sm:$0xff]  ;;  %v1388_v27 = vld [vmem:[#allocation3 + $0xd1] ss:$2 sm:$0xff]  ;;  %v1389_v44 = vmax.f32 %v1382_v23, %v1384_v24  ;;  %v1295_v51 = vmax.f32 %v1293_v35, %v1294_v42 }
 0x142   :  { %9749 = vrsqrt.f32 %v1039_v41  ;;  %v1434_v37 = vld [vmem:[#allocation3 + $0xf0] ss:$2 sm:$0xff]  ;;  %v1436_v38 = vld [vmem:[#allocation3 + $0xf1] ss:$2 sm:$0xff]  ;;  %v10171_v45 = vld [vmem:[#allocation3 + $0x100] ss:$2 sm:$0xff]  ;;  %v1437_v54 = vmax.f32 %v1430_v25, %v1432_v26  ;;  %v1343_v58 = vmax.f32 %v1341_v36, %v1342_v43  ;;  %v1390_v59 = vmax.f32 %v1386_v31, %v1388_v27 }
 0x143   :  { %v10173_v47 = vld [vmem:[#allocation3 + $0x101] ss:$2 sm:$0xff]  ;;  %v1482_v50 = vld [vmem:[#allocation3 + $0x110] ss:$2 sm:$0xff]  ;;  %v1484_v34 = vld [vmem:[#allocation3 + $0x111] ss:$2 sm:$0xff]  ;;  %v1438_v1 = vmax.f32 %v1434_v37, %v1436_v38  ;;  %v1296_v7 = vsub.f32 %v1295_v51, %v10104_v30 }
 0x144   :  { %8716 = vmatpush3.bf16.msra.mxu1 %v9488_v6  ;;  %8680 = vmatpush3.bf16.msra.mxu0 %v9489_v16  ;;  %v10175_v55 = vld [vmem:[#allocation3 + $0x120] ss:$2 sm:$0xff]  ;;  %v1528_v60 = vld [vmem:[#allocation3 + $0x121] ss:$2 sm:$0xff]  ;;  %v1530_v2 = vld [vmem:[#allocation3 + $0x130] ss:$2 sm:$0xff]  ;;  %v10187_v53 = vmax.f32 %v1389_v44, %v1390_v59  ;;  %v1485_v14 = vmax.f32 %v10171_v45, %v10173_v47  ;;  %v1486_v21 = vmax.f32 %v1482_v50, %v1484_v34 }
 0x145   :  { %8773 = vmatprep.subr.bf16.mxu1 %v9762_v3  ;;  %8737 = vmatprep.subr.bf16.mxu0 %v9762_v3  ;;  %v1532_v4 = vld [vmem:[#allocation3 + $0x131] ss:$2 sm:$0xff]  ;;  %v10181_v5 = vld [vmem:[#allocation3 + $0x140] ss:$2 sm:$0xff]  ;;  %v10189_v10 = vld [vmem:[#allocation3 + $0x150] ss:$2 sm:$0xff]  ;;  %v10195_v13 = vmax.f32 %v1437_v54, %v1438_v1  ;;  %v1533_v22 = vmax.f32 %v10175_v55, %v1528_v60 }
 0x146   :  { %v1576_v15 = vld [vmem:[#allocation3 + $0x141] ss:$2 sm:$0xff]  ;;  %v10199_v16 = vld [vmem:[#allocation3 + $0x180] ss:$2 sm:$0xff]  ;;  %v1580_v9 = vld [vmem:[#allocation3 + $0x151] ss:$2 sm:$0xff]  ;;  %v1534_v36 = vmax.f32 %v1530_v2, %v1532_v4  ;;  %v10227_v47 = vmax.f32 %v1485_v14, %v1486_v21 }
 0x147   :  { %8718 = vmatmul.mubr.bf16.vlgmr.msra.gmra.mxu1 %v9490_v52  ;;  %v1344_v52 = vsub.f32 %v1343_v58, %v10104_v30  ;;  %v10201_v8 = vld [vmem:[#allocation3 + $0x181] ss:$2 sm:$0xff]  ;;  %v10203_v17 = vld [vmem:[#allocation3 + $0x1a0] ss:$2 sm:$0xff]  ;;  %v1674_v24 = vld [vmem:[#allocation3 + $0x190] ss:$2 sm:$0xff]  ;;  %v1581_v37 = vmax.f32 %v10181_v5, %v1576_v15 }
 0x148   :  { %8721 = vmatprep.mubr.msk.bf16.mxu1 %vm12201_vm0, %v9762_v3  ;;  %v10205_v18 = vld [vmem:[#allocation3 + $0x1a1] ss:$2 sm:$0xff]  ;;  %v10214_v23 = vld [vmem:[#allocation3 + $0x160] ss:$2 sm:$0xff]  ;;  %v1724_v31 = vld [vmem:[#allocation3 + $0x1b1] ss:$2 sm:$0xff]  ;;  %v10232_v50 = vmax.f32 %v1533_v22, %v1534_v36  ;;  %v1677_v34 = vmax.f32 %v10199_v16, %v10201_v8  ;;  %v1392_v22 = vsub.f32 %v10187_v53, %v10104_v30  ;;  %v1488_v53 = vsub.f32 %v10227_v47, %v10104_v30 }
 0x149   :  { %v1624_v38 = vld [vmem:[#allocation3 + $0x161] ss:$2 sm:$0xff]  ;;  %v1814_v42 = vld [vmem:[#allocation3 + $0x1e0] ss:$2 sm:$0xff]  ;;  %v9491_v43 = vld [vmem:[#allocation2 + $0x8] sm:$0xff]   ;;  %v1725_v55 = vmax.f32 %v10203_v17, %v10205_v18 }
 0x14a   :  { %v1816_v54 = vld [vmem:[#allocation3 + $0x1e1] ss:$2 sm:$0xff]  ;;  %4377 = vst [vmem:[#allocation2 + $0x8] sm:$0xf] %v9761_v57  ;;  %4378 = vst [vmem:[#allocation2 + $0xc] sm:$0xf] %v9761_v57  ;;  %8682 = vmatmul.mubr.bf16.vlgmr.msra.gmra.mxu0 %v9491_v43  ;;  %v1629_v60 = vmax.f32 %v10214_v23, %v1624_v38 }
 0x14b   :  { %v9493_v51 = vld [vmem:[%s12197_s2 + $0x78] sm:$0xff]   ;;  %v1818_v2 = vld [vmem:[#allocation3 + $0x1f0] ss:$2 sm:$0xff]  ;;  %v1820_v4 = vld [vmem:[#allocation3 + $0x1f1] ss:$2 sm:$0xff]  ;;  %v1821_v8 = vmax.f32 %v1814_v42, %v1816_v54  ;;  %8685 = vmatprep.mubr.msk.bf16.mxu0 %vm12201_vm0, %v9762_v3 }
 0x14c   :  { %8774 = vmatpush3.bf16.msra.mxu1 %v9493_v51  ;;  %v9496_v51 = vld [vmem:[%s12197_s2 + $0x68] sm:$0xff]  }
 0x14d   :  { %8775 = vmatprep.subr.bf16.mxu1 %v9762_v3 }
 0x14f   :  { %v10162_v32 = vpop.eup %9749  ;;  %8722 = vmatmul.mubr.bf16.gmra.mxu1 %v9491_v43 }
 0x150   :  { %v1096_v39 = vmul.f32 %v10162_v32, %v1095_v61  ;;  %v1153_v40 = vmul.f32 %v10162_v32, %v1152_v62  ;;  %v1201_v33 = vmul.f32 %v10162_v32, %v1200_v28  ;;  %v1249_v41 = vmul.f32 %v10162_v32, %v1248_v29  ;;  %v1676_v61 = vld [vmem:[#allocation3 + $0x191] ss:$2 sm:$0xff]  ;;  %v1722_v29 = vld [vmem:[#allocation3 + $0x1b0] ss:$2 sm:$0xff]  ;;  %8725 = vmatprep.mubr.msk.bf16.mxu1 %vm12201_vm0, %v9762_v3 }
 0x151   :  { %v10208_v19 = vmul.f32 %v10162_v32, %v1296_v7  ;;  %v10211_v20 = vmul.f32 %v10162_v32, %v1344_v52  ;;  %v1678_v1 = vmax.f32 %v1674_v24, %v1676_v61 }
 0x152   :  { %v1097_v48 = vmax.f32 %v1096_v39, 0.0  ;;  %v1154_v46 = vmax.f32 %v1153_v40, 0.0  ;;  %v1202_v49 = vmax.f32 %v1201_v33, 0.0  ;;  %v1250_v56 = vmax.f32 %v1249_v41, 0.0  ;;  %v1626_v39 = vld [vmem:[#allocation3 + $0x170] ss:$2 sm:$0xff] }
 0x153   :  { %v1628_v40 = vld [vmem:[#allocation3 + $0x171] ss:$2 sm:$0xff]  ;;  %v10224_v33 = vld [vmem:[#allocation3 + $0x1c0] ss:$2 sm:$0xff]  ;;  %v1768_v41 = vld [vmem:[#allocation3 + $0x1c1] ss:$2 sm:$0xff]  ;;  %v1679_v17 = vmax.f32 %v1677_v34, %v1678_v1 }
 0x154   :  { %v10177_v63 = vpack.c.bf16 %v1097_v48, %v1097_v48  ;;  %v10179_v0 = vpack.c.bf16 %v1154_v46, %v1154_v46  ;;  %v10183_v6 = vpack.c.bf16 %v1202_v49, %v1202_v49  ;;  %v10221_v35 = vpack.c.bf16 %v1250_v56, %v1250_v56  ;;  %v1770_v46 = vld [vmem:[#allocation3 + $0x1d0] ss:$2 sm:$0xff]  ;;  %v1772_v49 = vld [vmem:[#allocation3 + $0x1d1] ss:$2 sm:$0xff]  ;;  %v9492_v56 = vld [vmem:[%s12197_s2 + $0xb8] sm:$0xff]  }
 0x155   :  { %v1582_v48 = vmax.f32 %v10189_v10, %v1580_v9  ;;  %v1298_v58 = vmax.f32 %v10208_v19, 0.0  ;;  %v1346_v59 = vmax.f32 %v10211_v20, 0.0  ;;  %v1726_v10 = vmax.f32 %v1722_v29, %v1724_v31  ;;  %8738 = vmatpush3.bf16.msra.mxu0 %v9492_v56 }
 0x156   :  { %1136 = vrot.lane.b32.xlu1 %v10177_v63, %s9764_s24  ;;  %v1166_v11 = vshrl.u32 %v10179_v0, 16  ;;  %v1111_v12 = vshrl.u32 %v10177_v63, 16  ;;  %v1169_v26 = vshll.u32 %v10179_v0, 16  ;;  %v1114_v28 = vshll.u32 %v10177_v63, 16  ;;  %8739 = vmatprep.subr.bf16.mxu0 %v9762_v3 }
 0x157   :  { %v1214_v27 = vshrl.u32 %v10183_v6, 16  ;;  %v1262_v7 = vshrl.u32 %v10221_v35, 16  ;;  %v1583_v52 = vmax.f32 %v1581_v37, %v1582_v48  ;;  %v1630_v15 = vmax.f32 %v1626_v39, %v1628_v40 }
 0x158   :  { %v10216_v25 = vrot.slane %v1166_v11, 7  ;;  %v1113_v62 = vrot.slane %v1111_v12, 7  ;;  %v9494_v11 = vld [vmem:[%s12197_s2 + $0x70] sm:$0xff]   ;;  %v1773_v16 = vmax.f32 %v10224_v33, %v1768_v41  ;;  %v1727_v18 = vmax.f32 %v1725_v55, %v1726_v10 }
 0x159   :  { %v1216_v5 = vrot.slane %v1214_v27, 7  ;;  %v9495_v12 = vld [vmem:[%s12197_s2 + $0xb0] sm:$0xff]   ;;  %v1774_v19 = vmax.f32 %v1770_v46, %v1772_v49  ;;  %v1822_v20 = vmax.f32 %v1818_v2, %v1820_v4  ;;  %v10264_v21 = vpack.c.bf16 %v1298_v58, %v1298_v58  ;;  %8776 = vmatpush3.bf16.msra.mxu1 %v9494_v11  ;;  %v9497_v58 = vld [vmem:[%s12197_s2 + $0xa8] sm:$0xff]   ;;  %v9498_v2 = vld [vmem:[%s12197_s2 + $0x60] sm:$0xff]  }
 0x15a   :  { %v1171_v44 = vor.u32 %v1169_v26, %v10216_v25  ;;  %v1116_v45 = vor.u32 %v1114_v28, %v1113_v62  ;;  %v1117_v14 = vrot.slane %v1113_v62, 4  ;;  %v1631_v9 = vmax.f32 %v1629_v60, %v1630_v15  ;;  %v10273_v62 = vld [vmem:[#allocation2 + $0x8] sm:$0xff]   ;;  %8740 = vmatpush3.bf16.msra.mxu0 %v9495_v12  ;;  %8777 = vmatprep.subr.bf16.mxu1 %v9762_v3 }
 0x15b   :  { %v1220_v23 = vrot.slane %v1216_v5, 4  ;;  %v1172_v24 = vrot.slane %v10216_v25, 4  ;;  %v10269_v61 = vrot.slane %v1262_v7, 7  ;;  %v10271_v26 = vpack.c.bf16 %v1346_v59, %v1346_v59  ;;  %6042 = vst [vmem:[#allocation2 + $0x8] sm:$0xf] %v9761_v57  ;;  %8741 = vmatprep.subr.bf16.mxu0 %v9762_v3  ;;  %v9499_v7 = vld [vmem:[%s12197_s2 + $0xa0] sm:$0xff]  }
 0x15c   :  { %1173 = vrot.lane.b32.xlu1 %v1171_v44, %s9765_s29  ;;  %1118 = vrot.lane.b32.xlu0 %v1116_v45, %s9765_s29  ;;  %v1393_v28 = vmul.f32 %v10162_v32, %v1392_v22  ;;  %v1440_v29 = vsub.f32 %v10195_v13, %v10104_v30  ;;  %v1775_v31 = vmax.f32 %v1773_v16, %v1774_v19  ;;  %v1265_v13 = vshll.u32 %v10221_v35, 16 }
 0x15d   :  { %v1823_v27 = vmax.f32 %v1821_v8, %v1822_v20  ;;  %6043 = vst [vmem:[#allocation2 + $0xc] sm:$0xf] %v9761_v57  ;;  %v1536_v25 = vsub.f32 %v10232_v50, %v10104_v30  ;;  %v1584_v36 = vsub.f32 %v1583_v52, %v10104_v30  ;;  %v1632_v37 = vsub.f32 %v1631_v9, %v10104_v30 }
 0x15e   :  { %v1217_v38 = vshll.u32 %v10183_v6, 16  ;;  %v1680_v39 = vsub.f32 %v1679_v17, %v10104_v30  ;;  %v1728_v40 = vsub.f32 %v1727_v18, %v10104_v30  ;;  %v1310_v33 = vshrl.u32 %v10264_v21, 16  ;;  %8778 = vmatpush3.bf16.msra.mxu1 %v9496_v51  ;;  %8742 = vmatpush3.bf16.msra.mxu0 %v9497_v58 }
 0x15f   :  { %v1358_v41 = vshrl.u32 %v10271_v26, 16  ;;  %v1441_v42 = vmul.f32 %v10162_v32, %v1440_v29  ;;  %v1776_v43 = vsub.f32 %v1775_v31, %v10104_v30  ;;  %v1267_v44 = vor.u32 %v1265_v13, %v10269_v61  ;;  %8779 = vmatprep.subr.bf16.mxu1 %v9762_v3  ;;  %8743 = vmatprep.subr.bf16.mxu0 %v9762_v3 }
 0x160   :  { %1185 = vrot.lane.b32.xlu1 %v10179_v0, %s9764_s24  ;;  %1120 = vrot.lane.b32.xlu0 %v1117_v14, %s9765_s29  ;;  %v1219_v45 = vor.u32 %v1217_v38, %v1216_v5  ;;  %v1394_v47 = vmax.f32 %v1393_v28, 0.0  ;;  %v1489_v48 = vmul.f32 %v10162_v32, %v1488_v53  ;;  %v1537_v46 = vmul.f32 %v10162_v32, %v1536_v25 }
 0x161   :  { %v1585_v49 = vmul.f32 %v10162_v32, %v1584_v36  ;;  %v1633_v54 = vmul.f32 %v10162_v32, %v1632_v37  ;;  %v1824_v50 = vsub.f32 %v1823_v27, %v10104_v30  ;;  %v1681_v34 = vmul.f32 %v10162_v32, %v1680_v39 }
 0x162   :  { %v1729_v55 = vmul.f32 %v10162_v32, %v1728_v40  ;;  %v1777_v56 = vmul.f32 %v10162_v32, %v1776_v43  ;;  %v1312_v30 = vrot.slane %v1310_v33, 7  ;;  %v10317_v59 = vrot.slane %v1358_v41, 7  ;;  %8780 = vmatpush3.bf16.msra.mxu1 %v9498_v2  ;;  %8744 = vmatpush3.bf16.msra.mxu0 %v9499_v7 }
 0x163   :  { %v1442_v60 = vmax.f32 %v1441_v42, 0.0  ;;  %v1825_v1 = vmul.f32 %v10162_v32, %v1824_v50  ;;  %v10323_v4 = vpack.c.bf16 %v1394_v47, %v1394_v47  ;;  %v1490_v5 = vmax.f32 %v1489_v48, 0.0  ;;  %8781 = vmatprep.subr.bf16.mxu1 %v9762_v3  ;;  %8745 = vmatprep.subr.bf16.mxu0 %v9762_v3 }
 0x164   :  { %1223 = vrot.lane.b32.xlu1 %v1220_v23, %s9765_s29  ;;  %1175 = vrot.lane.b32.xlu0 %v1172_v24, %s9765_s29  ;;  %v1361_v52 = vshll.u32 %v10271_v26, 16  ;;  %v1538_v10 = vmax.f32 %v1537_v46, 0.0  ;;  %v1586_v11 = vmax.f32 %v1585_v49, 0.0  ;;  %v1634_v12 = vmax.f32 %v1633_v54, 0.0  ;;  %v9500_v24 = vld [vmem:[%s12197_s2 + $0x58] sm:$0xff]  }
 0x165   :  { %v1313_v32 = vshll.u32 %v10264_v21, 16  ;;  %v1682_v14 = vmax.f32 %v1681_v34, 0.0  ;;  %v1730_v15 = vmax.f32 %v1729_v55, 0.0  ;;  %v1778_v16 = vmax.f32 %v1777_v56, 0.0  ;;  %v9503_v55 = vld [vmem:[%s12197_s2 + $0x48] sm:$0xff]   ;;  %v9504_v56 = vld [vmem:[%s12197_s2 + $0x90] sm:$0xff]  }
 0x166   :  { %v1268_v8 = vrot.slane %v10269_v61, 4  ;;  %v10337_v17 = vpack.c.bf16 %v1442_v60, %v1442_v60  ;;  %v1826_v18 = vmax.f32 %v1825_v1, 0.0  ;;  %v1159_v19 = vrot.slane %v10179_v0, 7  ;;  %8782 = vmatpush3.bf16.msra.mxu1 %v9500_v24  ;;  %v10410_v60 = vld [vmem:[#allocation4] sm:$0xff] }
 0x167   :  { %v1316_v20 = vrot.slane %v1312_v30, 4  ;;  %v1363_v22 = vor.u32 %v1361_v52, %v10317_v59  ;;  %v1315_v9 = vor.u32 %v1313_v32, %v1312_v30  ;;  %v10341_v23 = vpack.c.bf16 %v1490_v5, %v1490_v5  ;;  %8783 = vmatprep.subr.bf16.mxu1 %v9762_v3  ;;  %v9501_v3 = vld [vmem:[%s12197_s2 + $0x98] sm:$0xff]  }
 0x168   :  { %1269 = vrot.lane.b32.xlu1 %v1267_v44, %s9765_s29  ;;  %1221 = vrot.lane.b32.xlu0 %v1219_v45, %s9765_s29  ;;  %v10346_v28 = vpack.c.bf16 %v1538_v10, %v1538_v10  ;;  %v10348_v61 = vpack.c.bf16 %v1586_v11, %v1586_v11  ;;  %v10350_v29 = vpack.c.bf16 %v1634_v12, %v1634_v12  ;;  %v1102_v0 = vrot.slane %v10177_v63, 7  ;;  %v9502_v45 = vld [vmem:[%s12197_s2 + $0x50] sm:$0xff]  }
 0x169   :  { %1163 = vst.msk [vmem:[#allocation2 + $0x18] sm:$0xe] %vm1106_vm1, %v1159_v19  ;;  %v1406_v31 = vshrl.u32 %v10323_v4, 16  ;;  %v10359_v27 = vpack.c.bf16 %v1682_v14, %v1682_v14  ;;  %v10361_v53 = vpack.c.bf16 %v1730_v15, %v1730_v15  ;;  %v10363_v25 = vpack.c.bf16 %v1778_v16, %v1778_v16  ;;  %8746 = vmatpush3.bf16.msra.mxu0 %v9501_v3  ;;  %v9505_v15 = vld [vmem:[%s12197_s2 + $0x40] sm:$0xff]   ;;  %v9506_v16 = vld [vmem:[%s12197_s2 + $0x88] sm:$0xff]  }
 0x16a   :  { %v10365_v36 = vpack.c.bf16 %v1826_v18, %v1826_v18  ;;  %1107 = vst.msk [vmem:[#allocation2 + $0x10] sm:$0xe] %vm1106_vm1, %v1102_v0  ;;  %v1103_v63 = vrot.slane %v1102_v0, 4  ;;  %v1207_v37 = vrot.slane %v10183_v6, 7  ;;  %v1160_v13 = vrot.slane %v1159_v19, 4  ;;  %8784 = vmatpush3.bf16.msra.mxu1 %v9502_v45  ;;  %8747 = vmatprep.subr.bf16.mxu0 %v10410_v60 }
 0x16b   :  { %v1255_v38 = vrot.slane %v10221_v35, 7  ;;  %v1303_v39 = vrot.slane %v10264_v21, 7  ;;  %v1351_v40 = vrot.slane %v10271_v26, 7  ;;  %v1399_v33 = vrot.slane %v10323_v4, 7  ;;  %8785 = vmatprep.subr.bf16.mxu1 %v10410_v60 }
 0x16c   :  { %1281 = vrot.lane.b32.xlu1 %v10221_v35, %s9764_s24  ;;  %1233 = vrot.lane.b32.xlu0 %v10183_v6, %s9764_s24  ;;  %1109 = vst.msk [vmem:[#allocation2 + $0x14] sm:$0x1] %vm1108_vm2, %v1103_v63  ;;  %v1208_v41 = vrot.slane %v1207_v37, 4  ;;  %1164 = vst.msk [vmem:[#allocation2 + $0x1c] sm:$0x1] %vm1108_vm2, %v1160_v13  ;;  %v1447_v6 = vrot.slane %v10337_v17, 7 }
 0x16d   :  { %1211 = vst.msk [vmem:[#allocation2 + $0x20] sm:$0xe] %vm1106_vm1, %v1207_v37  ;;  %v1495_v35 = vrot.slane %v10341_v23, 7  ;;  %v1543_v42 = vrot.slane %v10346_v28, 7  ;;  %1259 = vst.msk [vmem:[#allocation2 + $0x28] sm:$0xe] %vm1106_vm1, %v1255_v38  ;;  %8748 = vmatpush3.bf16.msra.mxu0 %v9504_v56 }
 0x16e   :  { %v1304_v43 = vrot.slane %v1303_v39, 4  ;;  %1307 = vst.msk [vmem:[#allocation2 + $0x30] sm:$0xe] %vm1106_vm1, %v1303_v39  ;;  %v1256_v44 = vrot.slane %v1255_v38, 4  ;;  %1355 = vst.msk [vmem:[#allocation2 + $0x38] sm:$0xe] %vm1106_vm1, %v1351_v40  ;;  %8786 = vmatpush3.bf16.msra.mxu1 %v9503_v55  ;;  %8749 = vmatprep.subr.bf16.mxu0 %v10410_v60 }
 0x16f   :  { %v1400_v47 = vrot.slane %v1399_v33, 4  ;;  %1403 = vst.msk [vmem:[#allocation2 + $0x40] sm:$0xe] %vm1106_vm1, %v1399_v33  ;;  %v1352_v48 = vrot.slane %v1351_v40, 4  ;;  %v1454_v46 = vshrl.u32 %v10337_v17, 16  ;;  %v1496_v49 = vrot.slane %v1495_v35, 4  ;;  %8787 = vmatprep.subr.bf16.mxu1 %v10410_v60 }
 0x170   :  { %1319 = vrot.lane.b32.xlu1 %v1316_v20, %s9765_s29  ;;  %1271 = vrot.lane.b32.xlu0 %v1268_v8, %s9765_s29  ;;  %1212 = vst.msk [vmem:[#allocation2 + $0x24] sm:$0x1] %vm1108_vm2, %v1208_v41  ;;  %v1448_v54 = vrot.slane %v1447_v6, 4  ;;  %v1591_v50 = vrot.slane %v10348_v61, 7  ;;  %v1408_v34 = vrot.slane %v1406_v31, 7  ;;  %v1544_v51 = vrot.slane %v1543_v42, 4 }
 0x171   :  { %1451 = vst.msk [vmem:[#allocation2 + $0x48] sm:$0xe] %vm1106_vm1, %v1447_v6  ;;  %1499 = vst.msk [vmem:[#allocation2 + $0x60] sm:$0xe] %vm1106_vm1, %v1495_v35  ;;  %v1639_v58 = vrot.slane %v10350_v29, 7  ;;  %v1687_v30 = vrot.slane %v10359_v27, 7  ;;  %8750 = vmatpush3.bf16.msra.mxu0 %v9506_v16 }
 0x172   :  { %1547 = vst.msk [vmem:[#allocation2 + $0x68] sm:$0xe] %vm1106_vm1, %v1543_v42  ;;  %v1592_v1 = vrot.slane %v1591_v50, 4  ;;  %1595 = vst.msk [vmem:[#allocation2 + $0x70] sm:$0xe] %vm1106_vm1, %v1591_v50  ;;  %v1735_v2 = vrot.slane %v10361_v53, 7  ;;  %8788 = vmatpush3.bf16.msra.mxu1 %v9505_v15  ;;  %8751 = vmatprep.subr.bf16.mxu0 %v10410_v60 }
 0x173   :  { %1308 = vst.msk [vmem:[#allocation2 + $0x34] sm:$0x1] %vm1108_vm2, %v1304_v43  ;;  %1260 = vst.msk [vmem:[#allocation2 + $0x2c] sm:$0x1] %vm1108_vm2, %v1256_v44  ;;  %v1783_v5 = vrot.slane %v10363_v25, 7  ;;  %v1831_v7 = vrot.slane %v10365_v36, 7  ;;  %8845 = vmatprep.subr.bf16.mxu1 %v10410_v60 }
 0x174   :  { %1365 = vrot.lane.b32.xlu1 %v1363_v22, %s9765_s29  ;;  %1317 = vrot.lane.b32.xlu0 %v1315_v9, %s9765_s29  ;;  %1404 = vst.msk [vmem:[#allocation2 + $0x44] sm:$0x1] %vm1108_vm2, %v1400_v47  ;;  %1356 = vst.msk [vmem:[#allocation2 + $0x3c] sm:$0x1] %vm1108_vm2, %v1352_v48  ;;  %v1688_v52 = vrot.slane %v1687_v30, 4  ;;  %v1640_v10 = vrot.slane %v1639_v58, 4 }
 0x175   :  { %1500 = vst.msk [vmem:[#allocation2 + $0x64] sm:$0x1] %vm1108_vm2, %v1496_v49  ;;  %1452 = vst.msk [vmem:[#allocation2 + $0x4c] sm:$0x1] %vm1108_vm2, %v1448_v54  ;;  %v1784_v11 = vrot.slane %v1783_v5, 4  ;;  %v1736_v12 = vrot.slane %v1735_v2, 4 }
 0x176   :  { %1548 = vst.msk [vmem:[#allocation2 + $0x6c] sm:$0x1] %vm1108_vm2, %v1544_v51  ;;  %1596 = vst.msk [vmem:[#allocation2 + $0x74] sm:$0x1] %vm1108_vm2, %v1592_v1  ;;  %v1364_v32 = vrot.slane %v10317_v59, 4  ;;  %v1456_v14 = vrot.slane %v1454_v46, 7 }
 0x177   :  { %1643 = vst.msk [vmem:[#allocation2 + $0x78] sm:$0xe] %vm1106_vm1, %v1639_v58  ;;  %1691 = vst.msk [vmem:[#allocation2 + $0x80] sm:$0xe] %vm1106_vm1, %v1687_v30  ;;  %v1457_v59 = vshll.u32 %v10337_v17, 16  ;;  %v1409_v8 = vshll.u32 %v10323_v4, 16 }
 0x178   :  { %1377 = vrot.lane.b32.xlu1 %v10271_v26, %s9764_s24  ;;  %1329 = vrot.lane.b32.xlu0 %v10264_v21, %s9764_s24  ;;  %1739 = vst.msk [vmem:[#allocation2 + $0x88] sm:$0xe] %vm1106_vm1, %v1735_v2  ;;  %1787 = vst.msk [vmem:[#allocation2 + $0x90] sm:$0xe] %vm1106_vm1, %v1783_v5  ;;  %v1832_v26 = vrot.slane %v1831_v7, 4  ;;  %v1412_v21 = vrot.slane %v1408_v34, 4 }
 0x179   :  { %1835 = vst.msk [vmem:[#allocation2 + $0x98] sm:$0xe] %vm1106_vm1, %v1831_v7  ;;  %v1502_v18 = vshrl.u32 %v10341_v23, 16  ;;  %v1459_v19 = vor.u32 %v1457_v59, %v1456_v14  ;;  %v1411_v20 = vor.u32 %v1409_v8, %v1408_v34  ;;  %v9507_v22 = vld [vmem:[%s12197_s2 + $0x80] sm:$0xff]   ;;  %v1550_v24 = vshrl.u32 %v10346_v28, 16  ;;  %v10511_v5 = vld [vmem:[#allocation2 + $0x50] sm:$0xff]  }
 0x17a   :  { %1692 = vst.msk [vmem:[#allocation2 + $0x84] sm:$0x1] %vm1108_vm2, %v1688_v52  ;;  %1644 = vst.msk [vmem:[#allocation2 + $0x7c] sm:$0x1] %vm1108_vm2, %v1640_v10  ;;  %8752 = vmatpush3.bf16.msra.mxu0 %v9507_v22  ;;  %v1598_v0 = vshrl.u32 %v10348_v61, 16  ;;  %v1460_v63 = vrot.slane %v1456_v14, 4 }
 0x17b   :  { %1788 = vst.msk [vmem:[#allocation2 + $0x94] sm:$0x1] %vm1108_vm2, %v1784_v11  ;;  %1740 = vst.msk [vmem:[#allocation2 + $0x8c] sm:$0x1] %vm1108_vm2, %v1736_v12  ;;  %v1504_v9 = vrot.slane %v1502_v18, 7  ;;  %8809 = vmatprep.subr.bf16.mxu0 %v10410_v60  ;;  %v1552_v37 = vrot.slane %v1550_v24, 7 }
 0x17c   :  { %1836 = vst.msk [vmem:[#allocation2 + $0x9c] sm:$0x1] %vm1108_vm2, %v1832_v26  ;;  %1415 = vrot.lane.b32.xlu1 %v1412_v21, %s9765_s29  ;;  %1367 = vrot.lane.b32.xlu0 %v1364_v32, %s9765_s29  ;;  %v1553_v13 = vshll.u32 %v10346_v28, 16  ;;  %v1505_v38 = vshll.u32 %v10341_v23, 16  ;;  %v1600_v39 = vrot.slane %v1598_v0, 7  ;;  %v1646_v40 = vshrl.u32 %v10350_v29, 16 }
 0x17d   :  { %v1508_v31 = vrot.slane %v1504_v9, 4  ;;  %v1556_v6 = vrot.slane %v1552_v37, 4  ;;  %v1694_v42 = vshrl.u32 %v10359_v27, 16  ;;  %v1601_v43 = vshll.u32 %v10348_v61, 16  ;;  %v10513_v7 = vld [vmem:[#allocation2 + $0x50] sm:$0xff]   ;;  %v10518_v52 = vld [vmem:[#allocation2 + $0x58] sm:$0xff]  }
 0x17e   :  { %v1507_v33 = vor.u32 %v1505_v38, %v1504_v9  ;;  %v1604_v41 = vrot.slane %v1600_v39, 4  ;;  %v1648_v35 = vrot.slane %v1646_v40, 7  ;;  %v1742_v3 = vshrl.u32 %v10361_v53, 16  ;;  %v10520_v10 = vld [vmem:[#allocation2 + $0x58] sm:$0xff]   ;;  %v1127_v21 = vld [vmem:[#allocation2 + $0x10] sm:$0xf] }
 0x17f   :  { %v1696_v44 = vrot.slane %v1694_v42, 7  ;;  %v1790_v45 = vshrl.u32 %v10363_v25, 16  ;;  %v1603_v48 = vor.u32 %v1601_v43, %v1600_v39  ;;  %v1697_v46 = vshll.u32 %v10359_v27, 16  ;;  %4397 = vst [vmem:[#allocation2 + $0x58] sm:$0xf] %v9761_v57  ;;  %v9534_v15 = vld [vmem:[%s12197_s2 + $0x18] sm:$0xff]  }
 0x180   :  { %1461 = vrot.lane.b32.xlu1 %v1459_v19, %s9765_s29  ;;  %1413 = vrot.lane.b32.xlu0 %v1411_v20, %s9765_s29  ;;  %v1744_v54 = vrot.slane %v1742_v3, 7  ;;  %v1838_v34 = vshrl.u32 %v10365_v36, 16  ;;  %4398 = vst [vmem:[#allocation2 + $0x5c] sm:$0xf] %v9761_v57  ;;  %v1179_v11 = vld [vmem:[#allocation2 + $0x18] sm:$0xf] }
 0x181   :  { %v1700_v49 = vrot.slane %v1696_v44, 4  ;;  %v1792_v50 = vrot.slane %v1790_v45, 7  ;;  %v1699_v56 = vor.u32 %v1697_v46, %v1696_v44  ;;  %v1133_v16 = vld [vmem:[#allocation2 + $0x14] sm:$0x1]  ;;  %v1230_v19 = vld [vmem:[#allocation2 + $0x24] sm:$0x1] }
 0x182   :  { %v1748_v58 = vrot.slane %v1744_v54, 4  ;;  %v1840_v30 = vrot.slane %v1838_v34, 7  ;;  %v1182_v22 = vld [vmem:[#allocation2 + $0x1c] sm:$0x1]  ;;  %v1326_v45 = vld [vmem:[#allocation2 + $0x34] sm:$0x1] }
 0x183   :  { %v1796_v51 = vrot.slane %v1792_v50, 4 }
 0x184   :  { %1473 = vrot.lane.b32.xlu1 %v10337_v17, %s9764_s24  ;;  %1425 = vrot.lane.b32.xlu0 %v10323_v4, %s9764_s24  ;;  %v1555_v17 = vor.u32 %v1553_v13, %v1552_v37  ;;  %v1649_v4 = vshll.u32 %v10350_v29, 16  ;;  %v1275_v37 = vld [vmem:[#allocation2 + $0x28] sm:$0xf]  ;;  %v1227_v13 = vld [vmem:[#allocation2 + $0x20] sm:$0xf] }
 0x186   :  { %v1651_v47 = vor.u32 %v1649_v4, %v1648_v35 }
 0x188   :  { %1511 = vrot.lane.b32.xlu1 %v1508_v31, %s9765_s29  ;;  %1463 = vrot.lane.b32.xlu0 %v1460_v63, %s9765_s29 }
 0x18c   :  { %1557 = vrot.lane.b32.xlu1 %v1555_v17, %s9765_s29  ;;  %1509 = vrot.lane.b32.xlu0 %v1507_v33, %s9765_s29 }
 0x190   :  { %1569 = vrot.lane.b32.xlu1 %v10346_v28, %s9764_s24  ;;  %1521 = vrot.lane.b32.xlu0 %v10341_v23, %s9764_s24  ;;  %v1652_v28 = vrot.slane %v1648_v35, 4  ;;  %v1745_v23 = vshll.u32 %v10361_v53, 16 }
 0x192   :  { %v1747_v55 = vor.u32 %v1745_v23, %v1744_v54  ;;  %v1323_v54 = vld [vmem:[#allocation2 + $0x30] sm:$0xf] }
 0x194   :  { %1607 = vrot.lane.b32.xlu1 %v1604_v41, %s9765_s29  ;;  %1559 = vrot.lane.b32.xlu0 %v1556_v6, %s9765_s29 }
 0x198   :  { %1653 = vrot.lane.b32.xlu1 %v1651_v47, %s9765_s29  ;;  %1605 = vrot.lane.b32.xlu0 %v1603_v48, %s9765_s29  ;;  %v1278_v47 = vld [vmem:[#allocation2 + $0x2c] sm:$0x1] }
 0x19c   :  { %1665 = vrot.lane.b32.xlu1 %v10350_v29, %s9764_s24  ;;  %1617 = vrot.lane.b32.xlu0 %v10348_v61, %s9764_s24  ;;  %v1841_v61 = vshll.u32 %v10365_v36, 16  ;;  %v1793_v29 = vshll.u32 %v10363_v25, 16 }
 0x19e   :  { %v1843_v1 = vor.u32 %v1841_v61, %v1840_v30  ;;  %v1795_v2 = vor.u32 %v1793_v29, %v1792_v50 }
 0x1a0   :  { %1703 = vrot.lane.b32.xlu1 %v1700_v49, %s9765_s29  ;;  %1655 = vrot.lane.b32.xlu0 %v1652_v28, %s9765_s29  ;;  %v1371_v49 = vld [vmem:[#allocation2 + $0x38] sm:$0xf] }
 0x1a4   :  { %1749 = vrot.lane.b32.xlu1 %v1747_v55, %s9765_s29  ;;  %1701 = vrot.lane.b32.xlu0 %v1699_v56, %s9765_s29 }
 0x1a8   :  { %1761 = vrot.lane.b32.xlu1 %v10361_v53, %s9764_s24  ;;  %1713 = vrot.lane.b32.xlu0 %v10359_v27, %s9764_s24  ;;  %v1844_v27 = vrot.slane %v1840_v30, 4  ;;  %v10509_v53 = vld [vmem:[#allocation2 + $0x50] sm:$0xff]  }
 0x1a9   :  { %4395 = vst [vmem:[#allocation2 + $0x50] sm:$0xf] %v9761_v57  ;;  %4396 = vst [vmem:[#allocation2 + $0x54] sm:$0xf] %v9761_v57 }
 0x1ac   :  { %1799 = vrot.lane.b32.xlu1 %v1796_v51, %s9765_s29  ;;  %1751 = vrot.lane.b32.xlu0 %v1748_v58, %s9765_s29 }
 0x1b0   :  { %1845 = vrot.lane.b32.xlu1 %v1843_v1, %s9765_s29  ;;  %1797 = vrot.lane.b32.xlu0 %v1795_v2, %s9765_s29 }
 0x1b4   :  { %1857 = vrot.lane.b32.xlu1 %v10365_v36, %s9764_s24  ;;  %1809 = vrot.lane.b32.xlu0 %v10363_v25, %s9764_s24  ;;  %v9528_v25 = vld [vmem:[%s12197_s2 + $0x70] sm:$0xff]  }
 0x1b8   :  { %1847 = vrot.lane.b32.xlu0 %v1844_v27, %s9765_s29 }
 0x1c8   :  { %v1137_v36 = vpop.permute.xlu1 %1136 }
 0x1ce   :  { %v1174_v12 = vpop.permute.xlu1 %1173  ;;  %v1119_v26 = vpop.permute.xlu0 %1118 }
 0x1cf   :  { %v1180_v32 = vsel %vm10524_vm6, %v1174_v12, %v1179_v11  ;;  %v1128_v14 = vsel %vm10524_vm6, %v1119_v26, %v1127_v21  ;;  %v1422_v26 = vld [vmem:[#allocation2 + $0x44] sm:$0x1] }
 0x1d0   :  { %1181 = vst [vmem:[#allocation2 + $0x18] sm:$0xf] %v1180_v32  ;;  %1129 = vst [vmem:[#allocation2 + $0x10] sm:$0xf] %v1128_v14  ;;  %v1374_v14 = vld [vmem:[#allocation2 + $0x3c] sm:$0x1] }
 0x1d1   :  { %1140 = vst.msk [vmem:[#allocation2 + $0x10] sm:$0xf] %vm1139_vm7, %v1137_v36 }
 0x1d2   :  { %v1186_v59 = vpop.permute.xlu1 %1185  ;;  %v1121_v8 = vpop.permute.xlu0 %1120 }
 0x1d3   :  { %1188 = vst.msk [vmem:[#allocation2 + $0x18] sm:$0xf] %vm1139_vm7, %v1186_v59  ;;  %v1134_v18 = vsel %vm10532_vm9, %v1121_v8, %v1133_v16 }
 0x1d4   :  { %1135 = vst [vmem:[#allocation2 + $0x14] sm:$0x1] %v1134_v18  ;;  %v1467_v18 = vld [vmem:[#allocation2 + $0x48] sm:$0xf] }
 0x1d6   :  { %v1224_v20 = vpop.permute.xlu1 %1223  ;;  %v1176_v9 = vpop.permute.xlu0 %1175 }
 0x1d7   :  { %v1231_v24 = vsel %vm10532_vm9, %v1224_v20, %v1230_v19  ;;  %v1183_v0 = vsel %vm10532_vm9, %v1176_v9, %v1182_v22  ;;  %v1419_v19 = vld [vmem:[#allocation2 + $0x40] sm:$0xf] }
 0x1d8   :  { %v1865_v31 = vld [vmem:[#allocation2 + $0x10] sm:$0xf]  ;;  %1232 = vst [vmem:[#allocation2 + $0x24] sm:$0x1] %v1231_v24  ;;  %1184 = vst [vmem:[#allocation2 + $0x1c] sm:$0x1] %v1183_v0 }
 0x1d9   :  { %v10544_v63 = vld [vmem:[#allocation2 + $0x10] sm:$0xf] }
 0x1da   :  { %4379 = vst [vmem:[#allocation2 + $0x10] sm:$0xf] %v9761_v57  ;;  %v1867_v38 = vld [vmem:[#allocation2 + $0x18] sm:$0xf]  ;;  %v1270_v40 = vpop.permute.xlu1 %1269  ;;  %v1222_v17 = vpop.permute.xlu0 %1221 }
 0x1db   :  { %v10547_v39 = vld [vmem:[#allocation2 + $0x18] sm:$0xf]  ;;  %v1276_v33 = vsel %vm10524_vm6, %v1270_v40, %v1275_v37  ;;  %v1228_v4 = vsel %vm10524_vm6, %v1222_v17, %v1227_v13  ;;  %v1866_v41 = vld [vmem:[#allocation2 + $0x14] sm:$0xf] }
 0x1dc   :  { %4381 = vst [vmem:[#allocation2 + $0x18] sm:$0xf] %v9761_v57  ;;  %v10554_v6 = vld [vmem:[#allocation2 + $0x14] sm:$0xf]  ;;  %1277 = vst [vmem:[#allocation2 + $0x28] sm:$0xf] %v1276_v33  ;;  %v7520_v35 = vcombine.low %v1865_v31, %v1866_v41 }
 0x1dd   :  { %1229 = vst [vmem:[#allocation2 + $0x20] sm:$0xf] %v1228_v4  ;;  %4380 = vst [vmem:[#allocation2 + $0x14] sm:$0xf] %v9761_v57  ;;  %v9509_v37 = vld [vmem:[%s12197_s2 + $0xb8] sm:$0xff]   ;;  %v10625_v4 = vld [vmem:[#allocation4] sm:$0xff] }
 0x1de   :  { %v1282_v42 = vpop.permute.xlu1 %1281  ;;  %v1234_v43 = vpop.permute.xlu0 %1233  ;;  %8686 = vmatmul.mubr.bf16.gmra.mxu0 %v7520_v35  ;;  %8726 = vmatmul.mubr.bf16.gmra.mxu1 %v7520_v35 }
 0x1df   :  { %1284 = vst.msk [vmem:[#allocation2 + $0x28] sm:$0xf] %vm1139_vm7, %v1282_v42  ;;  %1236 = vst.msk [vmem:[#allocation2 + $0x20] sm:$0xf] %vm1139_vm7, %v1234_v43  ;;  %8689 = vmatprep.mubr.msk.bf16.mxu0 %vm12201_vm0, %v10410_v60  ;;  %8729 = vmatprep.mubr.msk.bf16.mxu1 %vm12201_vm0, %v10410_v60  ;;  %v1868_v44 = vld [vmem:[#allocation2 + $0x1c] sm:$0xf] }
 0x1e0   :  { %v10563_v3 = vld [vmem:[#allocation2 + $0x1c] sm:$0xf]  ;;  %v7521_v50 = vcombine.low %v1867_v38, %v1868_v44  ;;  %v10585_v2 = vld [vmem:[#allocation2 + $0x24] sm:$0xf]  ;;  %v1470_v43 = vld [vmem:[#allocation2 + $0x4c] sm:$0x1] }
 0x1e1   :  { %4382 = vst [vmem:[#allocation2 + $0x1c] sm:$0xf] %v9761_v57  ;;  %v1518_v42 = vld [vmem:[#allocation2 + $0x64] sm:$0x1]  ;;  %v9510_v44 = vld [vmem:[%s12197_s2 + $0xb0] sm:$0xff]  }
 0x1e2   :  { %v1320_v48 = vpop.permute.xlu1 %1319  ;;  %v1272_v28 = vpop.permute.xlu0 %1271 }
 0x1e3   :  { %v1327_v23 = vsel %vm10532_vm9, %v1320_v48, %v1326_v45  ;;  %v1279_v46 = vsel %vm10532_vm9, %v1272_v28, %v1278_v47  ;;  %v9508_v45 = vld [vmem:[%s12197_s2 + $0x38] sm:$0xff]  }
 0x1e4   :  { %1328 = vst [vmem:[#allocation2 + $0x34] sm:$0x1] %v1327_v23  ;;  %1280 = vst [vmem:[#allocation2 + $0x2c] sm:$0x1] %v1279_v46  ;;  %v9512_v46 = vld [vmem:[%s12197_s2 + $0xa8] sm:$0xff]  }
 0x1e6   :  { %v1887_v34 = vld [vmem:[#allocation2 + $0x28] sm:$0xf]  ;;  %v1366_v51 = vpop.permute.xlu1 %1365  ;;  %v1318_v58 = vpop.permute.xlu0 %1317  ;;  %8690 = vmatmul.mubr.bf16.gmra.mxu0 %v7521_v50  ;;  %8730 = vmatmul.mubr.bf16.gmra.mxu1 %v7521_v50  ;;  %v1869_v30 = vld [vmem:[#allocation2 + $0x20] sm:$0xff]  }
 0x1e7   :  { %v10570_v55 = vld [vmem:[#allocation2 + $0x28] sm:$0xf]  ;;  %v10575_v61 = vld [vmem:[#allocation2 + $0x20] sm:$0xf]  ;;  %v1372_v29 = vsel %vm10524_vm6, %v1366_v51, %v1371_v49  ;;  %v1324_v1 = vsel %vm10524_vm6, %v1318_v58, %v1323_v54  ;;  %8693 = vmatprep.mubr.msk.bf16.mxu0 %vm12201_vm0, %v10410_v60  ;;  %8733 = vmatprep.mubr.msk.bf16.mxu1 %vm12201_vm0, %v10410_v60  ;;  %4384 = vst [vmem:[#allocation2 + $0x24] sm:$0xf] %v9761_v57 }
 0x1e8   :  { %v10572_v56 = vld [vmem:[#allocation2 + $0x28] sm:$0xf]  ;;  %4383 = vst [vmem:[#allocation2 + $0x20] sm:$0xf] %v9761_v57  ;;  %1373 = vst [vmem:[#allocation2 + $0x38] sm:$0xf] %v1372_v29  ;;  %v7557_v54 = vcombine.low %v10544_v63, %v10554_v6 }
 0x1e9   :  { %4385 = vst [vmem:[#allocation2 + $0x28] sm:$0xf] %v9761_v57  ;;  %1325 = vst [vmem:[#allocation2 + $0x30] sm:$0xf] %v1324_v1  ;;  %v1563_v49 = vld [vmem:[#allocation2 + $0x68] sm:$0xf] }
 0x1ea   :  { %v1378_v27 = vpop.permute.xlu1 %1377  ;;  %v1330_v36 = vpop.permute.xlu0 %1329 }
 0x1eb   :  { %1380 = vst.msk [vmem:[#allocation2 + $0x38] sm:$0xf] %vm1139_vm7, %v1378_v27  ;;  %1332 = vst.msk [vmem:[#allocation2 + $0x30] sm:$0xf] %vm1139_vm7, %v1330_v36  ;;  %v1888_v11 = vld [vmem:[#allocation2 + $0x2c] sm:$0xf] }
 0x1ec   :  { %v10591_v12 = vld [vmem:[#allocation2 + $0x2c] sm:$0xf]  ;;  %v10604_v20 = vld [vmem:[#allocation2 + $0x34] sm:$0xf]  ;;  %v7523_v40 = vcombine.low %v1887_v34, %v1888_v11  ;;  %v9514_v11 = vld [vmem:[%s12197_s2 + $0xa0] sm:$0xff]  }
 0x1ed   :  { %v10593_v21 = vld [vmem:[#allocation2 + $0x2c] sm:$0xf]  ;;  %v9511_v36 = vld [vmem:[%s12197_s2 + $0x30] sm:$0xff]  }
 0x1ee   :  { %4386 = vst [vmem:[#allocation2 + $0x2c] sm:$0xf] %v9761_v57  ;;  %v1416_v32 = vpop.permute.xlu1 %1415  ;;  %v1368_v16 = vpop.permute.xlu0 %1367  ;;  %8694 = vmatmul.mubr.bf16.gmra.mxu0 %v1869_v30  ;;  %8734 = vmatmul.mubr.bf16.gmra.mxu1 %v1869_v30  ;;  %v1515_v30 = vld [vmem:[#allocation2 + $0x60] sm:$0xf] }
 0x1ef   :  { %v1423_v59 = vsel %vm10532_vm9, %v1416_v32, %v1422_v26  ;;  %v1375_v8 = vsel %vm10532_vm9, %v1368_v16, %v1374_v14  ;;  %8697 = vmatprep.mubr.msk.bf16.mxu0 %vm12201_vm0, %v10410_v60  ;;  %8789 = vmatprep.mubr.msk.bf16.mxu1 %vm12201_vm0, %v10410_v60  ;;  %v9513_v26 = vld [vmem:[%s12197_s2 + $0x28] sm:$0xff]  }
 0x1f0   :  { %1424 = vst [vmem:[#allocation2 + $0x44] sm:$0x1] %v1423_v59  ;;  %1376 = vst [vmem:[#allocation2 + $0x3c] sm:$0x1] %v1375_v8  ;;  %v7558_v8 = vcombine.low %v10547_v39, %v10563_v3  ;;  %v9515_v3 = vld [vmem:[%s12197_s2 + $0x20] sm:$0xff]  }
 0x1f2   :  { %v2549_v22 = vld [vmem:[#allocation2 + $0x38] sm:$0xf]  ;;  %v10608_v24 = vld [vmem:[#allocation2 + $0x30] sm:$0xf]  ;;  %v1462_v0 = vpop.permute.xlu1 %1461  ;;  %v1414_v31 = vpop.permute.xlu0 %1413 }
 0x1f3   :  { %v10606_v9 = vld [vmem:[#allocation2 + $0x38] sm:$0xf]  ;;  %v10614_v60 = vld [vmem:[#allocation2 + $0x30] sm:$0xff]   ;;  %v1468_v13 = vsel %vm10524_vm6, %v1462_v0, %v1467_v18  ;;  %v1420_v38 = vsel %vm10524_vm6, %v1414_v31, %v1419_v19 }
 0x1f4   :  { %4389 = vst [vmem:[#allocation2 + $0x38] sm:$0xf] %v9761_v57  ;;  %4387 = vst [vmem:[#allocation2 + $0x30] sm:$0xf] %v9761_v57  ;;  %v1614_v18 = vld [vmem:[#allocation2 + $0x74] sm:$0x1] }
 0x1f5   :  { %1469 = vst [vmem:[#allocation2 + $0x48] sm:$0xf] %v1468_v13  ;;  %1421 = vst [vmem:[#allocation2 + $0x40] sm:$0xf] %v1420_v38  ;;  %v9516_v31 = vld [vmem:[%s12197_s2 + $0x98] sm:$0xff]  }
 0x1f6   :  { %4388 = vst [vmem:[#allocation2 + $0x34] sm:$0xf] %v9761_v57  ;;  %v1474_v17 = vpop.permute.xlu1 %1473  ;;  %v1426_v33 = vpop.permute.xlu0 %1425  ;;  %8698 = vmatmul.mubr.bf16.gmra.mxu0 %v7523_v40  ;;  %8790 = vmatmul.mubr.bf16.vlgmr.msra.gmra.mxu1 %v10614_v60  ;;  %v1659_v13 = vld [vmem:[#allocation2 + $0x78] sm:$0xf]  ;;  %v1611_v38 = vld [vmem:[#allocation2 + $0x70] sm:$0xf] }
 0x1f7   :  { %1476 = vst.msk [vmem:[#allocation2 + $0x48] sm:$0xf] %vm1139_vm7, %v1474_v17  ;;  %1428 = vst.msk [vmem:[#allocation2 + $0x40] sm:$0xf] %vm1139_vm7, %v1426_v33  ;;  %8753 = vmatprep.mubr.msk.bf16.mxu0 %vm12201_vm0, %v10625_v4  ;;  %8793 = vmatprep.mubr.msk.bf16.mxu1 %vm12201_vm0, %v10625_v4  ;;  %v2550_v41 = vld [vmem:[#allocation2 + $0x3c] sm:$0xf] }
 0x1f8   :  { %v10631_v35 = vld [vmem:[#allocation2 + $0x3c] sm:$0xf]  ;;  %8846 = vmatpush3.bf16.msra.mxu1 %v9509_v37  ;;  %v10650_v50 = vcombine.low %v2549_v22, %v2550_v41  ;;  %v1566_v22 = vld [vmem:[#allocation2 + $0x6c] sm:$0x1]  ;;  %v9518_v17 = vld [vmem:[%s12197_s2 + $0x90] sm:$0xff]  }
 0x1f9   :  { %4390 = vst [vmem:[#allocation2 + $0x3c] sm:$0xf] %v9761_v57  ;;  %8847 = vmatprep.subr.bf16.mxu1 %v10625_v4  ;;  %v9517_v40 = vld [vmem:[%s12197_s2 + $0x18] sm:$0xff]  }
 0x1fa   :  { %v1512_v47 = vpop.permute.xlu1 %1511  ;;  %v1464_v48 = vpop.permute.xlu0 %1463 }
 0x1fb   :  { %v1519_v28 = vsel %vm10532_vm9, %v1512_v47, %v1518_v42  ;;  %v1471_v23 = vsel %vm10532_vm9, %v1464_v48, %v1470_v43  ;;  %v7559_v47 = vcombine.low %v10575_v61, %v10585_v2 }
 0x1fc   :  { %1520 = vst [vmem:[#allocation2 + $0x64] sm:$0x1] %v1519_v28  ;;  %1472 = vst [vmem:[#allocation2 + $0x4c] sm:$0x1] %v1471_v23  ;;  %8848 = vmatpush3.bf16.msra.mxu1 %v9510_v44 }
 0x1fd   :  { %8849 = vmatprep.subr.bf16.mxu1 %v10625_v4 }
 0x1fe   :  { %v10653_v34 = vld [vmem:[#allocation2 + $0x48] sm:$0xf]  ;;  %v1558_v58 = vpop.permute.xlu1 %1557  ;;  %v1510_v29 = vpop.permute.xlu0 %1509  ;;  %8754 = vmatmul.mubr.bf16.vlgmr.msra.gmra.mxu0 %v7557_v54  ;;  %8794 = vmatmul.mubr.bf16.gmra.mxu1 %v10650_v50  ;;  %v10659_v1 = vld [vmem:[#allocation2 + $0x40] sm:$0xff]  }
 0x1ff   :  { %v10655_v51 = vld [vmem:[#allocation2 + $0x48] sm:$0xf]  ;;  %v10661_v63 = vld [vmem:[#allocation2 + $0x40] sm:$0xff]   ;;  %v1564_v6 = vsel %vm10524_vm6, %v1558_v58, %v1563_v49  ;;  %v1516_v27 = vsel %vm10524_vm6, %v1510_v29, %v1515_v30  ;;  %8810 = vmatpush3.bf16.msra.mxu0 %v9508_v45  ;;  %8757 = vmatprep.mubr.msk.bf16.mxu0 %vm12201_vm0, %v10625_v4  ;;  %v9521_v49 = vld [vmem:[%s12197_s2 + $0x10] sm:$0xff]  }
 0x200   :  { %4393 = vst [vmem:[#allocation2 + $0x48] sm:$0xf] %v9761_v57  ;;  %4391 = vst [vmem:[#allocation2 + $0x40] sm:$0xf] %v9761_v57  ;;  %8811 = vmatprep.subr.bf16.mxu0 %v10625_v4  ;;  %8797 = vmatprep.mubr.msk.bf16.mxu1 %vm12201_vm0, %v10625_v4  ;;  %v1662_v58 = vld [vmem:[#allocation2 + $0x7c] sm:$0x1] }
 0x201   :  { %1565 = vst [vmem:[#allocation2 + $0x68] sm:$0xf] %v1564_v6  ;;  %1517 = vst [vmem:[#allocation2 + $0x60] sm:$0xf] %v1516_v27  ;;  %8850 = vmatpush3.bf16.msra.mxu1 %v9512_v46  ;;  %v9520_v46 = vld [vmem:[%s12197_s2 + $0x88] sm:$0xff]  }
 0x202   :  { %4392 = vst [vmem:[#allocation2 + $0x44] sm:$0xf] %v9761_v57  ;;  %v1570_v32 = vpop.permute.xlu1 %1569  ;;  %v1522_v14 = vpop.permute.xlu0 %1521  ;;  %8851 = vmatprep.subr.bf16.mxu1 %v10625_v4 }
 0x203   :  { %1572 = vst.msk [vmem:[#allocation2 + $0x68] sm:$0xf] %vm1139_vm7, %v1570_v32  ;;  %1524 = vst.msk [vmem:[#allocation2 + $0x60] sm:$0xf] %vm1139_vm7, %v1522_v14  ;;  %8812 = vmatpush3.bf16.msra.mxu0 %v9511_v36  ;;  %v2554_v16 = vld [vmem:[#allocation2 + $0x4c] sm:$0xf]  ;;  %v7560_v32 = vcombine.low %v10570_v55, %v10591_v12 }
 0x204   :  { %v10686_v59 = vld [vmem:[#allocation2 + $0x4c] sm:$0xf]  ;;  %8813 = vmatprep.subr.bf16.mxu0 %v10625_v4  ;;  %v10729_v48 = vcombine.low %v10653_v34, %v2554_v16  ;;  %v1710_v34 = vld [vmem:[#allocation2 + $0x84] sm:$0x1]  ;;  %v1755_v16 = vld [vmem:[#allocation2 + $0x88] sm:$0xf] }
 0x205   :  { %4394 = vst [vmem:[#allocation2 + $0x4c] sm:$0xf] %v9761_v57  ;;  %8852 = vmatpush3.bf16.msra.mxu1 %v9514_v11  ;;  %v9522_v11 = vld [vmem:[%s12197_s2 + $0x80] sm:$0xff]   ;;  %v9523_v14 = vld [vmem:[%s12197_s2 + $0x8] sm:$0xff]  }
 0x206   :  { %v1608_v19 = vpop.permute.xlu1 %1607  ;;  %v1560_v0 = vpop.permute.xlu0 %1559  ;;  %8758 = vmatmul.mubr.bf16.gmra.mxu0 %v7558_v8  ;;  %8798 = vmatmul.mubr.bf16.gmra.mxu1 %v10659_v1 }
 0x207   :  { %v1615_v37 = vsel %vm10532_vm9, %v1608_v19, %v1614_v18  ;;  %v1567_v39 = vsel %vm10532_vm9, %v1560_v0, %v1566_v22  ;;  %8814 = vmatpush3.bf16.msra.mxu0 %v9513_v26  ;;  %8761 = vmatprep.mubr.msk.bf16.mxu0 %vm12201_vm0, %v10625_v4  ;;  %v2145_v2 = vpop.f32.mrf.mxu1  ;;  %v1707_v19 = vld [vmem:[#allocation2 + $0x80] sm:$0xf] }
 0x208   :  { %1616 = vst [vmem:[#allocation2 + $0x74] sm:$0x1] %v1615_v37  ;;  %1568 = vst [vmem:[#allocation2 + $0x6c] sm:$0x1] %v1567_v39  ;;  %8801 = vmatprep.mubr.msk.bf16.mxu1 %vm12201_vm0, %v10625_v4  ;;  %8815 = vmatprep.subr.bf16.mxu0 %v10625_v4 }
 0x209   :  { %8853 = vmatprep.subr.bf16.mxu1 %v10625_v4  ;;  %v8719_v30 = vpop.f32.mrf.mxu1 }
 0x20a   :  { %v1654_v33 = vpop.permute.xlu1 %1653  ;;  %v1606_v41 = vpop.permute.xlu0 %1605  ;;  %8854 = vmatpush3.bf16.msra.mxu1 %v9516_v31  ;;  %v10715_v42 = vld [vmem:[#allocation2 + $0x60] sm:$0xff]  }
 0x20b   :  { %v10717_v43 = vld [vmem:[#allocation2 + $0x60] sm:$0xff]   ;;  %v1660_v44 = vsel %vm10524_vm6, %v1654_v33, %v1659_v13  ;;  %v1612_v45 = vsel %vm10524_vm6, %v1606_v41, %v1611_v38  ;;  %8816 = vmatpush3.bf16.msra.mxu0 %v9515_v3  ;;  %8855 = vmatprep.subr.bf16.mxu1 %v10625_v4  ;;  %v2148_v26 = vpop.f32.mrf.mxu1  ;;  %v2018_v37 = vpop.f32.mrf.mxu0  ;;  %v7561_v3 = vcombine.low %v10608_v24, %v10604_v20  ;;  %v9526_v38 = vld [vmem:[%s12197_s2 + $0x38] sm:$0xff]   ;;  %v1806_v41 = vld [vmem:[#allocation2 + $0x94] sm:$0x1] }
 0x20c   :  { %4399 = vst [vmem:[#allocation2 + $0x60] sm:$0xf] %v9761_v57  ;;  %4400 = vst [vmem:[#allocation2 + $0x64] sm:$0xf] %v9761_v57  ;;  %8817 = vmatprep.subr.bf16.mxu0 %v10625_v4  ;;  %v7624_v13 = vcombine.low %v10606_v9, %v10631_v35 }
 0x20d   :  { %1661 = vst [vmem:[#allocation2 + $0x78] sm:$0xf] %v1660_v44  ;;  %1613 = vst [vmem:[#allocation2 + $0x70] sm:$0xf] %v1612_v45  ;;  %v8720_v8 = vpop.f32.mrf.mxu1  ;;  %v1758_v45 = vld [vmem:[#allocation2 + $0x8c] sm:$0x1] }
 0x20e   :  { %v1666_v28 = vpop.permute.xlu1 %1665  ;;  %v1618_v23 = vpop.permute.xlu0 %1617  ;;  %8762 = vmatmul.mubr.bf16.gmra.mxu0 %v7559_v47  ;;  %8802 = vmatmul.mubr.bf16.gmra.mxu1 %v10729_v48  ;;  %v7626_v8 = vcombine.low %v10655_v51, %v10686_v59  ;;  %v9536_v51 = vld [vmem:[%s12197_s2 + $0x10] sm:$0xff]   ;;  %v9538_v59 = vld [vmem:[%s12197_s2 + $0x8] sm:$0xff]  }
 0x20f   :  { %1668 = vst.msk [vmem:[#allocation2 + $0x78] sm:$0xf] %vm1139_vm7, %v1666_v28  ;;  %1620 = vst.msk [vmem:[#allocation2 + $0x70] sm:$0xf] %vm1139_vm7, %v1618_v23  ;;  %8818 = vmatpush3.bf16.msra.mxu0 %v9517_v40  ;;  %8856 = vmatpush3.bf16.msra.mxu1 %v9518_v17  ;;  %v10741_v61 = vld [vmem:[#allocation2 + $0x68] sm:$0xff]   ;;  %v10783_v39 = vpop.f32.mrf.mxu1  ;;  %v10792_v40 = vadd.f32 %v2145_v2, %v2018_v37  ;;  %v8683_v17 = vpop.f32.mrf.mxu0  ;;  %v9527_v28 = vld [vmem:[%s12197_s2 + $0x30] sm:$0xff]  }
 0x210   :  { %8765 = vmatprep.mubr.msk.bf16.mxu0 %vm12201_vm0, %v10625_v4  ;;  %8805 = vmatprep.mubr.msk.bf16.mxu1 %vm12201_vm0, %v10625_v4  ;;  %v10747_v54 = vld [vmem:[#allocation2 + $0x68] sm:$0xff]   ;;  %v9563_v17 = vld [vmem:[%s12197_s2 + $0x80] sm:$0xff]  }
 0x211   :  { %8857 = vmatprep.subr.bf16.mxu1 %v10625_v4  ;;  %8819 = vmatprep.subr.bf16.mxu0 %v10625_v4  ;;  %4401 = vst [vmem:[#allocation2 + $0x68] sm:$0xf] %v9761_v57  ;;  %4402 = vst [vmem:[#allocation2 + $0x6c] sm:$0xf] %v9761_v57  ;;  %v8723_v33 = vpop.f32.mrf.mxu1  ;;  %v2021_v24 = vpop.f32.mrf.mxu0  ;;  %v9557_v37 = vld [vmem:[%s12197_s2 + $0x48] sm:$0xff]  }
 0x212   :  { %v1704_v29 = vpop.permute.xlu1 %1703  ;;  %v1656_v6 = vpop.permute.xlu0 %1655  ;;  %v10808_v23 = vadd.f32 %v2148_v26, %v2021_v24  ;;  %v9568_v24 = vld [vmem:[%s12197_s2 + $0x30] sm:$0xff]  }
 0x213   :  { %v1711_v27 = vsel %vm10532_vm9, %v1704_v29, %v1710_v34  ;;  %v1663_v36 = vsel %vm10532_vm9, %v1656_v6, %v1662_v58  ;;  %8858 = vmatpush3.bf16.msra.mxu1 %v9520_v46  ;;  %8820 = vmatpush3.bf16.msra.mxu0 %v9521_v49  ;;  %v10803_v35 = vpop.f32.mrf.mxu1  ;;  %v1851_v46 = vld [vmem:[#allocation2 + $0x98] sm:$0xf]  ;;  %v8684_v49 = vpop.f32.mrf.mxu0  ;;  %v1803_v58 = vld [vmem:[#allocation2 + $0x90] sm:$0xf] }
 0x214   :  { %1712 = vst [vmem:[#allocation2 + $0x84] sm:$0x1] %v1711_v27  ;;  %1664 = vst [vmem:[#allocation2 + $0x7c] sm:$0x1] %v1663_v36  ;;  %8859 = vmatprep.subr.bf16.mxu1 %v10625_v4  ;;  %8821 = vmatprep.subr.bf16.mxu0 %v10625_v4  ;;  %v9525_v27 = vld [vmem:[%s12197_s2 + $0x78] sm:$0xff]   ;;  %v7599_v36 = vcombine.low %v10572_v56, %v10593_v21  ;;  %v9531_v56 = vld [vmem:[%s12197_s2 + $0x20] sm:$0xff]  }
 0x215   :  { %v8724_v2 = vpop.f32.mrf.mxu1  ;;  %v1854_v21 = vld [vmem:[#allocation2 + $0x9c] sm:$0x1] }
 0x216   :  { %v1750_v18 = vpop.permute.xlu1 %1749  ;;  %v1702_v22 = vpop.permute.xlu0 %1701  ;;  %8766 = vmatmul.mubr.bf16.gmra.mxu0 %v7560_v32  ;;  %8806 = vmatmul.mubr.bf16.gmra.mxu1 %v10509_v53  ;;  %v9524_v53 = vld [vmem:[%s12197_s2] sm:$0xff]   ;;  %v9577_v49 = vld [vmem:[%s12197_s2 + $0x98] sm:$0xff]  }
 0x217   :  { %v1756_v0 = vsel %vm10524_vm6, %v1750_v18, %v1755_v16  ;;  %v1708_v55 = vsel %vm10524_vm6, %v1702_v22, %v1707_v19  ;;  %8860 = vmatpush3.bf16.msra.mxu1 %v9522_v11  ;;  %8769 = vmatprep.mubr.msk.bf16.mxu0 %vm12201_vm0, %v10625_v4  ;;  %v9529_v11 = vld [vmem:[%s12197_s2 + $0x28] sm:$0xff]   ;;  %v9533_v18 = vld [vmem:[%s12197_s2 + $0x60] sm:$0xff]   ;;  %v9539_v19 = vld [vmem:[%s12197_s2 + $0x50] sm:$0xff]  }
 0x218   :  { %1757 = vst [vmem:[#allocation2 + $0x88] sm:$0xf] %v1756_v0  ;;  %1709 = vst [vmem:[#allocation2 + $0x80] sm:$0xf] %v1708_v55  ;;  %8822 = vmatpush3.bf16.msra.mxu0 %v9523_v14  ;;  %8861 = vmatprep.mubr.msk.bf16.mxu1 %vm12201_vm0, %v10625_v4  ;;  %v9530_v16 = vld [vmem:[%s12197_s2 + $0x68] sm:$0xff]   ;;  %v9542_v22 = vld [vmem:[%s12197_s2 + $0x40] sm:$0xff]  }
 0x219   :  { %8823 = vmatprep.subr.bf16.mxu0 %v10625_v4  ;;  %8917 = vmatprep.subr.bf16.mxu1 %v10625_v4  ;;  %v9543_v0 = vld [vmem:[%s12197_s2 + $0xb8] sm:$0xff]   ;;  %v9550_v55 = vld [vmem:[%s12197_s2 + $0x60] sm:$0xff]  }
 0x21a   :  { %v1762_v12 = vpop.permute.xlu1 %1761  ;;  %v1714_v31 = vpop.permute.xlu0 %1713  ;;  %v9576_v2 = vld [vmem:[%s12197_s2 + $0x20] sm:$0xff]  }
 0x21b   :  { %1764 = vst.msk [vmem:[#allocation2 + $0x88] sm:$0xf] %vm1139_vm7, %v1762_v12  ;;  %1716 = vst.msk [vmem:[#allocation2 + $0x80] sm:$0xf] %vm1139_vm7, %v1714_v31  ;;  %v9552_v12 = vld [vmem:[%s12197_s2 + $0xa0] sm:$0xff]   ;;  %v9555_v31 = vld [vmem:[%s12197_s2 + $0x50] sm:$0xff]  }
 0x21c   :  { %8824 = vmatpush3.bf16.msra.mxu0 %v9524_v53  ;;  %v9553_v53 = vld [vmem:[%s12197_s2 + $0x58] sm:$0xff]  }
 0x21d   :  { %8881 = vmatprep.subr.bf16.mxu0 %v10625_v4  ;;  %v9561_v33 = vld [vmem:[#allocation2 + $0x78] sm:$0xff]  }
 0x21e   :  { %v1800_v44 = vpop.permute.xlu1 %1799  ;;  %v1752_v47 = vpop.permute.xlu0 %1751  ;;  %8770 = vmatmul.mubr.bf16.gmra.mxu0 %v7561_v3  ;;  %8862 = vmatmul.mubr.bf16.vlgmr.msra.gmra.mxu1 %v7624_v13  ;;  %v9558_v3 = vld [vmem:[%s12197_s2 + $0x90] sm:$0xff]  }
 0x21f   :  { %v1807_v20 = vsel %vm10532_vm9, %v1800_v44, %v1806_v41  ;;  %v1759_v9 = vsel %vm10532_vm9, %v1752_v47, %v1758_v45  ;;  %8825 = vmatprep.mubr.msk.bf16.mxu0 %vm12201_vm0, %v10625_v4  ;;  %8865 = vmatprep.mubr.msk.bf16.mxu1 %vm12201_vm0, %v10625_v4  ;;  %v9556_v13 = vld [vmem:[#allocation2 + $0x70] sm:$0xff]   ;;  %v9566_v44 = vld [vmem:[%s12197_s2 + $0xb8] sm:$0xff]  }
 0x220   :  { %1808 = vst [vmem:[#allocation2 + $0x94] sm:$0x1] %v1807_v20  ;;  %1760 = vst [vmem:[#allocation2 + $0x8c] sm:$0x1] %v1759_v9  ;;  %8918 = vmatpush3.bf16.msra.mxu1 %v9526_v38  ;;  %v9560_v38 = vld [vmem:[%s12197_s2 + $0x88] sm:$0xff]   ;;  %v9567_v45 = vld [vmem:[%s12197_s2 + $0xb0] sm:$0xff]  }
 0x221   :  { %8919 = vmatprep.subr.bf16.mxu1 %v10625_v4  ;;  %v9565_v47 = vld [vmem:[%s12197_s2 + $0x38] sm:$0xff]   ;;  %v9571_v9 = vld [vmem:[%s12197_s2 + $0xa8] sm:$0xff]  }
 0x222   :  { %v1846_v34 = vpop.permute.xlu1 %1845  ;;  %v1798_v30 = vpop.permute.xlu0 %1797  ;;  %v10993_v41 = vld [vmem:[#allocation2 + $0x80] sm:$0xff]  }
 0x223   :  { %v1852_v29 = vsel %vm10524_vm6, %v1846_v34, %v1851_v46  ;;  %v1804_v6 = vsel %vm10524_vm6, %v1798_v30, %v1803_v58  ;;  %v9579_v34 = vld [vmem:[%s12197_s2 + $0x90] sm:$0xff]  }
 0x224   :  { %1853 = vst [vmem:[#allocation2 + $0x98] sm:$0xf] %v1852_v29  ;;  %1805 = vst [vmem:[#allocation2 + $0x90] sm:$0xf] %v1804_v6  ;;  %8920 = vmatpush3.bf16.msra.mxu1 %v9527_v28  ;;  %v9572_v28 = vld [vmem:[%s12197_s2 + $0x28] sm:$0xff]   ;;  %v9574_v58 = vld [vmem:[#allocation2 + $0x70] sm:$0xff]  }
 0x225   :  { %8921 = vmatprep.subr.bf16.mxu1 %v10625_v4  ;;  %v9582_v29 = vld [vmem:[%s12197_s2 + $0x88] sm:$0xff]   ;;  %v9583_v6 = vld [vmem:[%s12197_s2 + $0x10] sm:$0xff]  }
 0x226   :  { %v1858_v26 = vpop.permute.xlu1 %1857  ;;  %v1810_v32 = vpop.permute.xlu0 %1809  ;;  %8826 = vmatmul.mubr.bf16.vlgmr.msra.gmra.mxu0 %v7599_v36  ;;  %8866 = vmatmul.mubr.bf16.gmra.mxu1 %v10661_v63  ;;  %v9584_v36 = vld [vmem:[%s12197_s2 + $0x80] sm:$0xff]  }
 0x227   :  { %1860 = vst.msk [vmem:[#allocation2 + $0x98] sm:$0xf] %vm1139_vm7, %v1858_v26  ;;  %1812 = vst.msk [vmem:[#allocation2 + $0x90] sm:$0xf] %vm1139_vm7, %v1810_v32  ;;  %8882 = vmatpush3.bf16.msra.mxu0 %v9525_v27  ;;  %8829 = vmatprep.mubr.msk.bf16.mxu0 %vm12201_vm0, %v10625_v4  ;;  %v11011_v20 = vld [vmem:[#allocation2 + $0x88] sm:$0xff]   ;;  %v9581_v27 = vld [vmem:[#allocation2 + $0xa0] sm:$0xff]  }
 0x228   :  { %8883 = vmatprep.subr.bf16.mxu0 %v10625_v4  ;;  %8869 = vmatprep.mubr.msk.bf16.mxu1 %vm12201_vm0, %v10625_v4  ;;  %v9585_v26 = vld [vmem:[%s12197_s2 + $0x8] sm:$0xff]   ;;  %v9588_v32 = vld [vmem:[%s12197_s2] sm:$0xff]  }
 0x229   :  { %8922 = vmatpush3.bf16.msra.mxu1 %v9529_v11  ;;  %v9580_v11 = vld [vmem:[#allocation2 + $0x78] sm:$0xff]  }
 0x22a   :  { %v1848_v63 = vpop.permute.xlu0 %1847  ;;  %8923 = vmatprep.subr.bf16.mxu1 %v10625_v4 }
 0x22b   :  { %v1855_v14 = vsel %vm10532_vm9, %v1848_v63, %v1854_v21  ;;  %8884 = vmatpush3.bf16.msra.mxu0 %v9528_v25  ;;  %v9586_v25 = vld [vmem:[#allocation2 + $0x80] sm:$0xff]   ;;  %v9589_v21 = vld [vmem:[#allocation2 + $0x78] sm:$0xff]  }
 0x22c   :  { %1856 = vst [vmem:[#allocation2 + $0x9c] sm:$0x1] %v1855_v14  ;;  %8885 = vmatprep.subr.bf16.mxu0 %v10625_v4 }
 0x22d   :  { %8924 = vmatpush3.bf16.msra.mxu1 %v9531_v56  ;;  %v9587_v56 = vld [vmem:[#allocation2 + $0x88] sm:$0xff]  }
 0x22e   :  { %8830 = vmatmul.mubr.bf16.gmra.mxu0 %v10614_v60  ;;  %8870 = vmatmul.mubr.bf16.gmra.mxu1 %v7626_v8  ;;  %v9535_v60 = vld [vmem:[%s12197_s2 + $0x58] sm:$0xff]   ;;  %v11034_v46 = vld [vmem:[#allocation2 + $0x90] sm:$0xff]  }
 0x22f   :  { %8886 = vmatpush3.bf16.msra.mxu0 %v9530_v16  ;;  %8833 = vmatprep.mubr.msk.bf16.mxu0 %vm12201_vm0, %v10625_v4  ;;  %v9590_v63 = vld [vmem:[#allocation2 + $0x90] sm:$0xff]  }
 0x230   :  { %8873 = vmatprep.mubr.msk.bf16.mxu1 %vm12201_vm0, %v10625_v4  ;;  %8887 = vmatprep.subr.bf16.mxu0 %v10625_v4 }
 0x231   :  { %8925 = vmatprep.subr.bf16.mxu1 %v10625_v4 }
 0x232   :  { %8926 = vmatpush3.bf16.msra.mxu1 %v9534_v15 }
 0x233   :  { %8888 = vmatpush3.bf16.msra.mxu0 %v9533_v18  ;;  %8927 = vmatprep.subr.bf16.mxu1 %v10625_v4  ;;  %v11058_v30 = vld [vmem:[#allocation2 + $0x98] sm:$0xff]  }
 0x234   :  { %8889 = vmatprep.subr.bf16.mxu0 %v10625_v4 }
 0x236   :  { %8834 = vmatmul.mubr.bf16.gmra.mxu0 %v10650_v50  ;;  %8874 = vmatmul.mubr.bf16.gmra.mxu1 %v10511_v5  ;;  %v9540_v5 = vld [vmem:[%s12197_s2] sm:$0xff]   ;;  %v9541_v50 = vld [vmem:[%s12197_s2 + $0x48] sm:$0xff]  }
 0x237   :  { %8890 = vmatpush3.bf16.msra.mxu0 %v9535_v60  ;;  %8928 = vmatpush3.bf16.msra.mxu1 %v9536_v51 }
 0x238   :  { %8837 = vmatprep.mubr.msk.bf16.mxu0 %vm12201_vm0, %v10625_v4  ;;  %8877 = vmatprep.mubr.msk.bf16.mxu1 %vm12201_vm0, %v10625_v4 }
 0x239   :  { %8929 = vmatprep.subr.bf16.mxu1 %v10625_v4  ;;  %8891 = vmatprep.subr.bf16.mxu0 %v10625_v4 }
 0x23b   :  { %8930 = vmatpush3.bf16.msra.mxu1 %v9538_v59  ;;  %8892 = vmatpush3.bf16.msra.mxu0 %v9539_v19  ;;  %v9591_v19 = vld [vmem:[#allocation2 + $0x98] sm:$0xff]  }
 0x23c   :  { %8931 = vmatprep.subr.bf16.mxu1 %v10625_v4  ;;  %8893 = vmatprep.subr.bf16.mxu0 %v10625_v4 }
 0x23e   :  { %8838 = vmatmul.mubr.bf16.gmra.mxu0 %v10659_v1  ;;  %8878 = vmatmul.mubr.bf16.gmra.mxu1 %v10518_v52  ;;  %v9544_v52 = vld [vmem:[%s12197_s2 + $0x78] sm:$0xff]   ;;  %v9545_v1 = vld [vmem:[%s12197_s2 + $0x70] sm:$0xff]  }
 0x23f   :  { %8932 = vmatpush3.bf16.msra.mxu1 %v9540_v5  ;;  %8841 = vmatprep.mubr.msk.bf16.mxu0 %vm12201_vm0, %v10625_v4 }
 0x240   :  { %8894 = vmatpush3.bf16.msra.mxu0 %v9541_v50  ;;  %8933 = vmatprep.mubr.msk.bf16.mxu1 %vm12201_vm0, %v10625_v4 }
 0x241   :  { %8895 = vmatprep.subr.bf16.mxu0 %v10625_v4  ;;  %8989 = vmatprep.subr.bf16.mxu1 %v10625_v4 }
 0x244   :  { %8896 = vmatpush3.bf16.msra.mxu0 %v9542_v22 }
 0x245   :  { %8953 = vmatprep.subr.bf16.mxu0 %v10625_v4 }
 0x246   :  { %8842 = vmatmul.mubr.bf16.gmra.mxu0 %v10729_v48  ;;  %8934 = vmatmul.mubr.bf16.vlgmr.msra.gmra.mxu1 %v10513_v7  ;;  %v9548_v7 = vld [vmem:[%s12197_s2 + $0x68] sm:$0xff]   ;;  %v9546_v48 = vld [vmem:[%s12197_s2 + $0xb0] sm:$0xff]  }
 0x247   :  { %8897 = vmatprep.mubr.msk.bf16.mxu0 %vm12201_vm0, %v10625_v4  ;;  %8937 = vmatprep.mubr.msk.bf16.mxu1 %vm12201_vm0, %v10625_v4 }
 0x248   :  { %8990 = vmatpush3.bf16.msra.mxu1 %v9544_v52 }
 0x249   :  { %8991 = vmatprep.subr.bf16.mxu1 %v10625_v4 }
 0x24c   :  { %8992 = vmatpush3.bf16.msra.mxu1 %v9545_v1 }
 0x24d   :  { %8993 = vmatprep.subr.bf16.mxu1 %v10625_v4 }
 0x24e   :  { %8898 = vmatmul.mubr.bf16.vlgmr.msra.gmra.mxu0 %v10520_v10  ;;  %8938 = vmatmul.mubr.bf16.gmra.mxu1 %v10520_v10  ;;  %v9549_v10 = vld [vmem:[%s12197_s2 + $0xa8] sm:$0xff]  }
 0x24f   :  { %8954 = vmatpush3.bf16.msra.mxu0 %v9543_v0  ;;  %8901 = vmatprep.mubr.msk.bf16.mxu0 %vm12201_vm0, %v10625_v4 }
 0x250   :  { %8955 = vmatprep.subr.bf16.mxu0 %v10625_v4  ;;  %8941 = vmatprep.mubr.msk.bf16.mxu1 %vm12201_vm0, %v10625_v4 }
 0x251   :  { %8994 = vmatpush3.bf16.msra.mxu1 %v9548_v7  ;;  %v9592_v7 = vld [vmem:[#allocation2 + $0xa0] sm:$0xff]  }
 0x252   :  { %8995 = vmatprep.subr.bf16.mxu1 %v10625_v4 }
 0x253   :  { %8956 = vmatpush3.bf16.msra.mxu0 %v9546_v48 }
 0x254   :  { %8957 = vmatprep.subr.bf16.mxu0 %v10625_v4 }
 0x255   :  { %8996 = vmatpush3.bf16.msra.mxu1 %v9550_v55 }
 0x256   :  { %8902 = vmatmul.mubr.bf16.gmra.mxu0 %v10715_v42  ;;  %8942 = vmatmul.mubr.bf16.gmra.mxu1 %v10715_v42  ;;  %v9554_v42 = vld [vmem:[%s12197_s2 + $0x98] sm:$0xff]  }
 0x257   :  { %8958 = vmatpush3.bf16.msra.mxu0 %v9549_v10  ;;  %8905 = vmatprep.mubr.msk.bf16.mxu0 %vm12201_vm0, %v10625_v4 }
 0x258   :  { %8945 = vmatprep.mubr.msk.bf16.mxu1 %vm12201_vm0, %v10625_v4  ;;  %8959 = vmatprep.subr.bf16.mxu0 %v10625_v4 }
 0x259   :  { %8997 = vmatprep.subr.bf16.mxu1 %v10625_v4 }
 0x25a   :  { %8998 = vmatpush3.bf16.msra.mxu1 %v9553_v53 }
 0x25b   :  { %8960 = vmatpush3.bf16.msra.mxu0 %v9552_v12  ;;  %8999 = vmatprep.subr.bf16.mxu1 %v10625_v4  ;;  %v9759_v12 = vld [vmem:[#allocation4] sm:$0xff] }
 0x25c   :  { %8961 = vmatprep.subr.bf16.mxu0 %v10625_v4 }
 0x25e   :  { %8906 = vmatmul.mubr.bf16.gmra.mxu0 %v10741_v61  ;;  %8946 = vmatmul.mubr.bf16.gmra.mxu1 %v10741_v61  ;;  %v9559_v61 = vld [vmem:[%s12197_s2 + $0x40] sm:$0xff]  }
 0x25f   :  { %8962 = vmatpush3.bf16.msra.mxu0 %v9554_v42  ;;  %9000 = vmatpush3.bf16.msra.mxu1 %v9555_v31 }
 0x260   :  { %8909 = vmatprep.mubr.msk.bf16.mxu0 %vm12201_vm0, %v10625_v4  ;;  %8949 = vmatprep.mubr.msk.bf16.mxu1 %vm12201_vm0, %v10625_v4 }
 0x261   :  { %9001 = vmatprep.subr.bf16.mxu1 %v10625_v4  ;;  %8963 = vmatprep.subr.bf16.mxu0 %v10625_v4 }
 0x263   :  { %9002 = vmatpush3.bf16.msra.mxu1 %v9557_v37  ;;  %8964 = vmatpush3.bf16.msra.mxu0 %v9558_v3  ;;  %v9593_v3 = vld [vmem:[#allocation2 + $0xa8] sm:$0xff]  }
 0x264   :  { %9003 = vmatprep.subr.bf16.mxu1 %v10625_v4  ;;  %8965 = vmatprep.subr.bf16.mxu0 %v10625_v4 }
 0x266   :  { %8910 = vmatmul.mubr.bf16.gmra.mxu0 %v9556_v13  ;;  %8950 = vmatmul.mubr.bf16.gmra.mxu1 %v9556_v13 }
 0x267   :  { %9004 = vmatpush3.bf16.msra.mxu1 %v9559_v61  ;;  %8913 = vmatprep.mubr.msk.bf16.mxu0 %vm12201_vm0, %v10625_v4 }
 0x268   :  { %8966 = vmatpush3.bf16.msra.mxu0 %v9560_v38  ;;  %9005 = vmatprep.mubr.msk.bf16.mxu1 %vm12201_vm0, %v10625_v4 }
 0x269   :  { %8967 = vmatprep.subr.bf16.mxu0 %v10625_v4  ;;  %9061 = vmatprep.subr.bf16.mxu1 %v10625_v4 }
 0x26c   :  { %8968 = vmatpush3.bf16.msra.mxu0 %v9563_v17 }
 0x26d   :  { %9025 = vmatprep.subr.bf16.mxu0 %v10625_v4 }
 0x26e   :  { %8914 = vmatmul.mubr.bf16.gmra.mxu0 %v9561_v33  ;;  %9006 = vmatmul.mubr.bf16.vlgmr.msra.gmra.mxu1 %v10993_v41  ;;  %v2372_v33 = vlaneseq }
 0x26f   :  { %8969 = vmatprep.mubr.msk.bf16.mxu0 %vm12201_vm0, %v10625_v4  ;;  %9009 = vmatprep.mubr.msk.bf16.mxu1 %vm12201_vm0, %v10625_v4 }
 0x270   :  { %9062 = vmatpush3.bf16.msra.mxu1 %v9566_v44 }
 0x271   :  { %9063 = vmatprep.subr.bf16.mxu1 %v10625_v4 }
 0x274   :  { %9064 = vmatpush3.bf16.msra.mxu1 %v9567_v45 }
 0x275   :  { %9065 = vmatprep.subr.bf16.mxu1 %v10625_v4 }
 0x276   :  { %8970 = vmatmul.mubr.bf16.vlgmr.msra.gmra.mxu0 %v10717_v43  ;;  %9010 = vmatmul.mubr.bf16.gmra.mxu1 %v11011_v20  ;;  %v9573_v43 = vld [vmem:[%s12197_s2 + $0xa0] sm:$0xff]  }
 0x277   :  { %9026 = vmatpush3.bf16.msra.mxu0 %v9565_v47  ;;  %8973 = vmatprep.mubr.msk.bf16.mxu0 %vm12201_vm0, %v10625_v4 }
 0x278   :  { %9027 = vmatprep.subr.bf16.mxu0 %v10625_v4  ;;  %9013 = vmatprep.mubr.msk.bf16.mxu1 %vm12201_vm0, %v10625_v4 }
 0x279   :  { %9066 = vmatpush3.bf16.msra.mxu1 %v9571_v9 }
 0x27a   :  { %9067 = vmatprep.subr.bf16.mxu1 %v10625_v4 }
 0x27b   :  { %9028 = vmatpush3.bf16.msra.mxu0 %v9568_v24 }
 0x27c   :  { %9029 = vmatprep.subr.bf16.mxu0 %v10625_v4 }
 0x27d   :  { %9068 = vmatpush3.bf16.msra.mxu1 %v9573_v43 }
 0x27e   :  { %8974 = vmatmul.mubr.bf16.gmra.mxu0 %v10747_v54  ;;  %9014 = vmatmul.mubr.bf16.gmra.mxu1 %v11034_v46  ;;  %v9578_v54 = vld [vmem:[%s12197_s2 + $0x18] sm:$0xff]  }
 0x27f   :  { %9030 = vmatpush3.bf16.msra.mxu0 %v9572_v28  ;;  %8977 = vmatprep.mubr.msk.bf16.mxu0 %vm12201_vm0, %v10625_v4 }
 0x280   :  { %9017 = vmatprep.mubr.msk.bf16.mxu1 %vm12201_vm0, %v10625_v4  ;;  %9031 = vmatprep.subr.bf16.mxu0 %v10625_v4 }
 0x281   :  { %9069 = vmatprep.subr.bf16.mxu1 %v10625_v4 }
 0x282   :  { %9070 = vmatpush3.bf16.msra.mxu1 %v9577_v49 }
 0x283   :  { %9032 = vmatpush3.bf16.msra.mxu0 %v9576_v2  ;;  %9071 = vmatprep.subr.bf16.mxu1 %v10625_v4 }
 0x284   :  { %9033 = vmatprep.subr.bf16.mxu0 %v10625_v4 }
 0x286   :  { %8978 = vmatmul.mubr.bf16.gmra.mxu0 %v9574_v58  ;;  %9018 = vmatmul.mubr.bf16.gmra.mxu1 %v11058_v30 }
 0x287   :  { %9034 = vmatpush3.bf16.msra.mxu0 %v9578_v54  ;;  %9072 = vmatpush3.bf16.msra.mxu1 %v9579_v34 }
 0x288   :  { %8981 = vmatprep.mubr.msk.bf16.mxu0 %vm12201_vm0, %v10625_v4  ;;  %9021 = vmatprep.mubr.msk.bf16.mxu1 %vm12201_vm0, %v10625_v4 }
 0x289   :  { %9073 = vmatprep.subr.bf16.mxu1 %v10625_v4  ;;  %9035 = vmatprep.subr.bf16.mxu0 %v10625_v4 }
 0x28b   :  { %9074 = vmatpush3.bf16.msra.mxu1 %v9582_v29  ;;  %9036 = vmatpush3.bf16.msra.mxu0 %v9583_v6 }
 0x28c   :  { %9075 = vmatprep.subr.bf16.mxu1 %v10625_v4  ;;  %9037 = vmatprep.subr.bf16.mxu0 %v10625_v4 }
 0x28e   :  { %8982 = vmatmul.mubr.bf16.gmra.mxu0 %v9580_v11  ;;  %9022 = vmatmul.mubr.bf16.gmra.mxu1 %v9581_v27 }
 0x28f   :  { %9076 = vmatpush3.bf16.msra.mxu1 %v9584_v36  ;;  %8985 = vmatprep.mubr.msk.bf16.mxu0 %vm12201_vm0, %v10625_v4 }
 0x290   :  { %9038 = vmatpush3.bf16.msra.mxu0 %v9585_v26  ;;  %9077 = vmatprep.mubr.msk.bf16.mxu1 %vm12201_vm0, %v10625_v4 }
 0x291   :  { %9039 = vmatprep.subr.bf16.mxu0 %v10625_v4 }
 0x294   :  { %9040 = vmatpush3.bf16.msra.mxu0 %v9588_v32 }
 0x296   :  { %8986 = vmatmul.mubr.bf16.gmra.mxu0 %v9586_v25  ;;  %9078 = vmatmul.mubr.bf16.vlgmr.msra.gmra.mxu1 %v9587_v56 }
 0x297   :  { %9041 = vmatprep.mubr.msk.bf16.mxu0 %vm12201_vm0, %v10625_v4  ;;  %9081 = vmatprep.mubr.msk.bf16.mxu1 %vm12201_vm0, %v10625_v4 }
 0x29e   :  { %v11094_v14 = vpop.f32.mrf.mxu0  ;;  %v11096_v16 = vpop.f32.mrf.mxu1  ;;  %9042 = vmatmul.mubr.bf16.vlgmr.msra.gmra.mxu0 %v9589_v21  ;;  %9082 = vmatmul.mubr.bf16.gmra.mxu1 %v9590_v63 }
 0x29f   :  { %9045 = vmatprep.mubr.msk.bf16.mxu0 %vm12201_vm0, %v10625_v4  ;;  %9085 = vmatprep.mubr.msk.bf16.mxu1 %vm12201_vm0, %v10625_v4  ;;  %v2154_v11 = vadd.f32 %v10783_v39, %v11094_v14 }
 0x2a0   :  { %v8687_v8 = vpop.f32.mrf.mxu0  ;;  %v8727_v15 = vpop.f32.mrf.mxu1 }
 0x2a2   :  { %v11102_v18 = vpop.f32.mrf.mxu0  ;;  %v11104_v60 = vpop.f32.mrf.mxu1 }
 0x2a4   :  { %v8688_v51 = vpop.f32.mrf.mxu0  ;;  %v8728_v59 = vpop.f32.mrf.mxu1 }
 0x2a5   :  { %v2157_v51 = vadd.f32 %v10803_v35, %v11102_v18 }
 0x2a6   :  { %v11106_v5 = vpop.f32.mrf.mxu0  ;;  %v11108_v50 = vpop.f32.mrf.mxu1  ;;  %9046 = vmatmul.mubr.bf16.gmra.mxu0 %v10993_v41  ;;  %9086 = vmatmul.mubr.bf16.gmra.mxu1 %v9591_v19 }
 0x2a7   :  { %9049 = vmatprep.mubr.msk.bf16.mxu0 %vm12201_vm0, %v10625_v4  ;;  %9089 = vmatprep.mubr.msk.bf16.mxu1 %vm12201_vm0, %v10625_v4 }
 0x2a8   :  { %v8691_v22 = vpop.f32.mrf.mxu0  ;;  %v8731_v52 = vpop.f32.mrf.mxu1 }
 0x2aa   :  { %v11115_v1 = vpop.f32.mrf.mxu0  ;;  %v11117_v0 = vpop.f32.mrf.mxu1 }
 0x2ac   :  { %v8692_v48 = vpop.f32.mrf.mxu0  ;;  %v8732_v55 = vpop.f32.mrf.mxu1 }
 0x2ae   :  { %v11119_v10 = vpop.f32.mrf.mxu0  ;;  %v11121_v53 = vpop.f32.mrf.mxu1  ;;  %9050 = vmatmul.mubr.bf16.gmra.mxu0 %v11011_v20  ;;  %9090 = vmatmul.mubr.bf16.gmra.mxu1 %v9592_v7  ;;  %v11140_v20 = vshrl.u32 %v2372_v33, 7 }
 0x2af   :  { %9053 = vmatprep.mubr.msk.bf16.mxu0 %vm12201_vm0, %v9759_v12  ;;  %9093 = vmatprep.mubr.msk.bf16.mxu1 %vm12201_vm0, %v9759_v12 }
 0x2b0   :  { %v8695_v4 = vpop.f32.mrf.mxu0  ;;  %v8735_v42 = vpop.f32.mrf.mxu1  ;;  %v11155_v6 = vadd.s32 24, %v11140_v20  ;;  %v11161_v32 = vadd.s32 32, %v11140_v20  ;;  %v11181_v7 = vadd.s32 40, %v11140_v20 }
 0x2b2   :  { %v11126_v31 = vpop.f32.mrf.mxu0  ;;  %v11128_v37 = vpop.f32.mrf.mxu1  ;;  %v2386_v21 = vand.u32 15, %v11155_v6  ;;  %v11172_v14 = vand.u32 15, %v11161_v32  ;;  %v2388_v33 = vand.u32 15, %v11181_v7 }
 0x2b4   :  { %v8696_v61 = vpop.f32.mrf.mxu0  ;;  %v8736_v13 = vpop.f32.mrf.mxu1  ;;  %vm11174_vm11 = vcmp.le.s32.totalorder %v2386_v21, 8  ;;  %vm2427_vm12 = vcmp.ge.s32.totalorder %v11172_v14, 1  ;;  %vm11201_vm13 = vcmp.le.s32.totalorder %v2388_v33, 8 }
 0x2b6   :  { %v11130_v38 = vpop.f32.mrf.mxu0  ;;  %v11132_v17 = vpop.f32.mrf.mxu1  ;;  %9054 = vmatmul.mubr.bf16.gmra.mxu0 %v11034_v46  ;;  %9094 = vmatmul.mubr.bf16.gmra.mxu1 %v9593_v3  ;;  %v11146_v46 = vadd.s32 16, %v11140_v20 }
 0x2b7   :  { %9057 = vmatprep.mubr.msk.bf16.mxu0 %vm12201_vm0, %v9759_v12  ;;  %v2162_v12 = vadd.f32 %v11096_v16, %v11106_v5  ;;  %v2165_v5 = vadd.f32 %v11104_v60, %v11115_v1 }
 0x2b8   :  { %v8699_v41 = vpop.f32.mrf.mxu0  ;;  %v8791_v44 = vpop.f32.mrf.mxu1  ;;  %v11152_v29 = vand.u32 15, %v11146_v46 }
 0x2b9   :  { %v11192_v41 = vadd.s32 48, %v11140_v20 }
 0x2ba   :  { %v11136_v45 = vpop.f32.mrf.mxu0  ;;  %v11138_v47 = vpop.f32.mrf.mxu1  ;;  %vm2425_vm10 = vcmp.ge.s32.totalorder %v11152_v29, 1 }
 0x2bc   :  { %v8700_v9 = vpop.f32.mrf.mxu0  ;;  %v8792_v24 = vpop.f32.mrf.mxu1 }
 0x2be   :  { %v2323_v43 = vpop.f32.mrf.mxu0  ;;  %v11142_v28 = vpop.f32.mrf.mxu1  ;;  %9058 = vmatmul.mubr.bf16.gmra.mxu0 %v11058_v30 }
 0x2bf   :  { %v2362_v49 = vadd.f32 %v2323_v43, %v10792_v40  ;;  %9113 = vmatprep.mubr.bf16.mxu0 %v10273_v62 }
 0x2c0   :  { %v8755_v2 = vpop.f32.mrf.mxu0  ;;  %v8795_v54 = vpop.f32.mrf.mxu1 }
 0x2c1   :  { %v2509_v26 = vmul.f32 0.0, %v2362_v49  ;;  %v11199_v49 = vadd.s32 56, %v11140_v20 }
 0x2c2   :  { %v2326_v34 = vpop.f32.mrf.mxu0  ;;  %v11149_v58 = vpop.f32.mrf.mxu1 }
 0x2c3   :  { %v2363_v27 = vadd.f32 %v2326_v34, %v10808_v23  ;;  %v2390_v21 = vand.u32 15, %v11199_v49 }
 0x2c4   :  { %v8756_v36 = vpop.f32.mrf.mxu0  ;;  %v8796_v30 = vpop.f32.mrf.mxu1 }
 0x2c5   :  { %v2510_v40 = vmul.f32 0.0, %v2363_v27  ;;  %v2389_v30 = vand.u32 15, %v11192_v41  ;;  %vm11228_vm15 = vcmp.le.s32.totalorder %v2390_v21, 8 }
 0x2c6   :  { %v2331_v25 = vpop.f32.mrf.mxu0  ;;  %v11164_v56 = vpop.f32.mrf.mxu1 }
 0x2c7   :  { %v2519_v63 = vadd.f32 %v2510_v40, %v2509_v26  ;;  %v2364_v8 = vadd.f32 %v2331_v25, %v2154_v11  ;;  %v2170_v40 = vadd.f32 %v11108_v50, %v11119_v10  ;;  %vm11215_vm14 = vcmp.ge.s32.totalorder %v2389_v30, 1 }
 0x2c8   :  { %v8759_v23 = vpop.f32.mrf.mxu0  ;;  %v8799_v15 = vpop.f32.mrf.mxu1 }
 0x2c9   :  { %v2485_v39 = vsel %vm2425_vm10, %v2364_v8, 0.0  ;;  %2537 = vst [vmem:[#allocation3 + $0x10] sm:$0xff] %v2364_v8 }
 0x2ca   :  { %v2511_v59 = vmul.f32 %v2485_v39, %v2364_v8  ;;  %v2334_v19 = vpop.f32.mrf.mxu0  ;;  %v11178_v52 = vpop.f32.mrf.mxu1 }
 0x2cb   :  { %v2365_v48 = vadd.f32 %v2334_v19, %v2157_v51 }
 0x2cc   :  { %v2520_v35 = vadd.f32 %v2519_v63, %v2511_v59  ;;  %v8760_v18 = vpop.f32.mrf.mxu0  ;;  %v8800_v55 = vpop.f32.mrf.mxu1 }
 0x2cd   :  { %v2486_v4 = vsel %vm11174_vm11, %v2365_v48, 0.0  ;;  %2538 = vst [vmem:[#allocation3 + $0x18] sm:$0xff] %v2365_v48  ;;  %v9595_v18 = vld [vmem:[%s12197_s2 + $0x138] sm:$0xff]  }
 0x2ce   :  { %v2495_v42 = vadd.f32 %v2486_v4, %v2485_v39  ;;  %v2512_v3 = vmul.f32 %v2486_v4, %v2365_v48  ;;  %v2339_v61 = vpop.f32.mrf.mxu0  ;;  %v11188_v13 = vpop.f32.mrf.mxu1  ;;  %v11222_v39 = vadd.s32 64, %v11140_v20  ;;  %v2173_v48 = vadd.f32 %v11117_v0, %v11126_v31  ;;  %9097 = vmatprep.subr.bf16.mxu0 %v9595_v18 }
 0x2cf   :  { %v2366_v44 = vadd.f32 %v2339_v61, %v2162_v12  ;;  %v2382_v61 = vadd.s32 72, %v11140_v20  ;;  %9098 = vmatpush3.bf16.msra.mxu0 %v9595_v18 }
 0x2d0   :  { %v2521_v9 = vadd.f32 %v2520_v35, %v2512_v3  ;;  %v8763_v24 = vpop.f32.mrf.mxu0  ;;  %v8803_v16 = vpop.f32.mrf.mxu1  ;;  %v2391_v3 = vand.u32 15, %v11222_v39 }
 0x2d1   :  { %v2487_v43 = vsel %vm2427_vm12, %v2366_v44, 0.0  ;;  %2539 = vst [vmem:[#allocation3 + $0x20] sm:$0xff] %v2366_v44 }
 0x2d2   :  { %v2496_v2 = vadd.f32 %v2495_v42, %v2487_v43  ;;  %v2513_v54 = vmul.f32 %v2487_v43, %v2366_v44  ;;  %v2342_v34 = vpop.f32.mrf.mxu0  ;;  %v11205_v36 = vpop.f32.mrf.mxu1  ;;  %vm11242_vm1 = vcmp.ge.s32.totalorder %v2391_v3, 1 }
 0x2d3   :  { %v2367_v11 = vadd.f32 %v2342_v34, %v2165_v5  ;;  %v2392_v34 = vand.u32 15, %v2382_v61 }
 0x2d4   :  { %v2522_v60 = vadd.f32 %v2521_v9, %v2513_v54  ;;  %v8764_v1 = vpop.f32.mrf.mxu0  ;;  %v8804_v26 = vpop.f32.mrf.mxu1  ;;  %v2178_v9 = vadd.f32 %v11121_v53, %v11130_v38  ;;  %v2374_v53 = vadd.s32 8, %v11140_v20  ;;  %v2181_v38 = vadd.f32 %v11128_v37, %v11136_v45 }
 0x2d5   :  { %v2488_v25 = vsel %vm11201_vm13, %v2367_v11, 0.0  ;;  %2540 = vst [vmem:[#allocation3 + $0x28] sm:$0xff] %v2367_v11  ;;  %vm11251_vm2 = vcmp.le.s32.totalorder %v2392_v34, 8 }
 0x2d6   :  { %v2497_v63 = vadd.f32 %v2496_v2, %v2488_v25  ;;  %v2514_v8 = vmul.f32 %v2488_v25, %v2367_v11  ;;  %v2347_v23 = vpop.f32.mrf.mxu0  ;;  %v11219_v51 = vpop.f32.mrf.mxu1 }
 0x2d7   :  { %v2368_v50 = vadd.f32 %v2347_v23, %v2170_v40 }
 0x2d8   :  { %v2523_v10 = vadd.f32 %v2522_v60, %v2514_v8  ;;  %v8767_v59 = vpop.f32.mrf.mxu0  ;;  %v8807_v19 = vpop.f32.mrf.mxu1  ;;  %v9599_v8 = vld [vmem:[%s12197_s2 + $0xe0] sm:$0xff]  }
 0x2d9   :  { %v2489_v35 = vsel %vm11215_vm14, %v2368_v50, 0.0  ;;  %2541 = vst [vmem:[#allocation3 + $0x30] sm:$0xff] %v2368_v50 }
 0x2da   :  { %v2498_v55 = vadd.f32 %v2497_v63, %v2489_v35  ;;  %v2515_v12 = vmul.f32 %v2489_v35, %v2368_v50  ;;  %v2350_v4 = vpop.f32.mrf.mxu0  ;;  %v11232_v42 = vpop.f32.mrf.mxu1  ;;  %v3054_v50 = vadd.s32 80, %v11140_v20  ;;  %v3055_v35 = vadd.s32 80, %v2374_v53 }
 0x2db   :  { %v2369_v33 = vadd.f32 %v2350_v4, %v2173_v48 }
 0x2dc   :  { %v2524_v44 = vadd.f32 %v2523_v10, %v2515_v12  ;;  %v8768_v0 = vpop.f32.mrf.mxu0  ;;  %v8808_v31 = vpop.f32.mrf.mxu1  ;;  %v3064_v4 = vand.u32 15, %v3054_v50 }
 0x2dd   :  { %v2490_v24 = vsel %vm11228_vm15, %v2369_v33, 0.0  ;;  %2542 = vst [vmem:[#allocation3 + $0x38] sm:$0xff] %v2369_v33 }
 0x2de   :  { %v2499_v16 = vadd.f32 %v2498_v55, %v2490_v24  ;;  %v2516_v5 = vmul.f32 %v2490_v24, %v2369_v33  ;;  %v2355_v43 = vpop.f32.mrf.mxu0  ;;  %v3005_v54 = vpop.f32.mrf.mxu1  ;;  %vm11264_vm3 = vcmp.ge.s32.totalorder %v3064_v4, 1 }
 0x2df   :  { %v2370_v11 = vadd.f32 %v2355_v43, %v2178_v9  ;;  %v3065_v9 = vand.u32 15, %v3055_v35 }
 0x2e0   :  { %v2525_v60 = vadd.f32 %v2524_v44, %v2516_v5  ;;  %v8771_v1 = vpop.f32.mrf.mxu0  ;;  %v8863_v26 = vpop.f32.mrf.mxu1  ;;  %v3056_v44 = vadd.s32 80, %v11146_v46 }
 0x2e1   :  { %v2491_v40 = vsel %vm11242_vm1, %v2370_v11, 0.0  ;;  %2543 = vst [vmem:[#allocation3 + $0x40] sm:$0xff] %v2370_v11  ;;  %vm11270_vm4 = vcmp.le.s32.totalorder %v3065_v9, 8 }
 0x2e2   :  { %v2500_v25 = vadd.f32 %v2499_v16, %v2491_v40  ;;  %v2517_v21 = vmul.f32 %v2491_v40, %v2370_v11  ;;  %v2358_v63 = vpop.f32.mrf.mxu0  ;;  %v3008_v23 = vpop.f32.mrf.mxu1  ;;  %v3066_v11 = vand.u32 15, %v3056_v44 }
 0x2e3   :  { %v2371_v10 = vadd.f32 %v2358_v63, %v2181_v38 }
 0x2e4   :  { %v2526_v59 = vadd.f32 %v2525_v60, %v2517_v21  ;;  %v8772_v19 = vpop.f32.mrf.mxu0  ;;  %v8864_v48 = vpop.f32.mrf.mxu1  ;;  %vm11279_vm5 = vcmp.ge.s32.totalorder %v3066_v11, 1  ;;  %v3060_v11 = vadd.s32 80, %v11192_v41 }
 0x2e5   :  { %v2492_v37 = vsel %vm11251_vm2, %v2371_v10, 0.0  ;;  %2544 = vst [vmem:[#allocation3 + $0x48] sm:$0xff] %v2371_v10 }
 0x2e6   :  { %v11258_v45 = vadd.f32 %v2500_v25, %v2492_v37  ;;  %v2518_v55 = vmul.f32 %v2492_v37, %v2371_v10  ;;  %v2828_v12 = vpop.f32.mrf.mxu0  ;;  %v3013_v61 = vpop.f32.mrf.mxu1 }
 0x2e7   :  { %v2829_v33 = vadd.f32 %v2828_v12, %v11132_v17  ;;  %v3057_v17 = vadd.s32 80, %v11155_v6 }
 0x2e8   :  { %v11262_v20 = vadd.f32 %v2526_v59, %v2518_v55  ;;  %v8827_v0 = vpop.f32.mrf.mxu0  ;;  %v8867_v31 = vpop.f32.mrf.mxu1 }
 0x2e9   :  { %v3044_v24 = vadd.f32 %v3005_v54, %v2829_v33  ;;  %v3067_v25 = vand.u32 15, %v3057_v17 }
 0x2ea   :  { %v2831_v5 = vpop.f32.mrf.mxu0  ;;  %v3016_v43 = vpop.f32.mrf.mxu1 }
 0x2eb   :  { %3216 = vst [vmem:[#allocation3 + $0x50] sm:$0xff] %v3044_v24  ;;  %v2832_v34 = vadd.f32 %v2831_v5, %v11138_v47  ;;  %v3164_v54 = vsel %vm11264_vm3, %v3044_v24, 0.0  ;;  %vm11287_vm6 = vcmp.le.s32.totalorder %v3067_v25, 8 }
 0x2ec   :  { %v8828_v60 = vpop.f32.mrf.mxu0  ;;  %v8868_v1 = vpop.f32.mrf.mxu1  ;;  %v3190_v21 = vmul.f32 %v3164_v54, %v3044_v24 }
 0x2ed   :  { %v3045_v26 = vadd.f32 %v3008_v23, %v2832_v34  ;;  %v3058_v23 = vadd.s32 80, %v11161_v32  ;;  %v3059_v32 = vadd.s32 80, %v11181_v7 }
 0x2ee   :  { %v2836_v53 = vpop.f32.mrf.mxu0  ;;  %v3021_v38 = vpop.f32.mrf.mxu1 }
 0x2ef   :  { %v3165_v40 = vsel %vm11270_vm4, %v3045_v26, 0.0  ;;  %3217 = vst [vmem:[#allocation3 + $0x58] sm:$0xff] %v3045_v26  ;;  %v2837_v47 = vadd.f32 %v2836_v53, %v11142_v28  ;;  %v3068_v31 = vand.u32 15, %v3058_v23 }
 0x2f0   :  { %v3174_v63 = vadd.f32 %v3165_v40, %v3164_v54  ;;  %v3191_v50 = vmul.f32 %v3165_v40, %v3045_v26  ;;  %v8831_v10 = vpop.f32.mrf.mxu0  ;;  %v8871_v59 = vpop.f32.mrf.mxu1 }
 0x2f1   :  { %v3046_v19 = vadd.f32 %v3013_v61, %v2837_v47  ;;  %vm11296_vm7 = vcmp.ge.s32.totalorder %v3068_v31, 1 }
 0x2f2   :  { %v3200_v48 = vadd.f32 %v3191_v50, %v3190_v21  ;;  %v2839_v35 = vpop.f32.mrf.mxu0  ;;  %v3024_v37 = vpop.f32.mrf.mxu1  ;;  %v3070_v21 = vand.u32 15, %v3060_v11 }
 0x2f3   :  { %v3166_v55 = vsel %vm11279_vm5, %v3046_v19, 0.0  ;;  %3218 = vst [vmem:[#allocation3 + $0x60] sm:$0xff] %v3046_v19  ;;  %v2840_v28 = vadd.f32 %v2839_v35, %v11149_v58 }
 0x2f4   :  { %v3175_v4 = vadd.f32 %v3174_v63, %v3166_v55  ;;  %v3192_v33 = vmul.f32 %v3166_v55, %v3046_v19  ;;  %v8832_v44 = vpop.f32.mrf.mxu0  ;;  %v8872_v0 = vpop.f32.mrf.mxu1  ;;  %vm11311_vm9 = vcmp.ge.s32.totalorder %v3070_v21, 1 }
 0x2f5   :  { %v3047_v61 = vadd.f32 %v3016_v43, %v2840_v28  ;;  %v3069_v43 = vand.u32 15, %v3059_v32 }
 0x2f6   :  { %v3201_v9 = vadd.f32 %v3200_v48, %v3192_v33  ;;  %v2844_v24 = vpop.f32.mrf.mxu0  ;;  %v3029_v5 = vpop.f32.mrf.mxu1  ;;  %v2502_v33 = vrot.slane %v11258_v45, 4 }
 0x2f7   :  { %v3167_v34 = vsel %vm11287_vm6, %v3047_v61, 0.0  ;;  %3219 = vst [vmem:[#allocation3 + $0x68] sm:$0xff] %v3047_v61  ;;  %v2845_v58 = vadd.f32 %v2844_v24, %v11164_v56  ;;  %vm11303_vm8 = vcmp.le.s32.totalorder %v3069_v43, 8 }
 0x2f8   :  { %v3176_v17 = vadd.f32 %v3175_v4, %v3167_v34  ;;  %v3193_v60 = vmul.f32 %v3167_v34, %v3047_v61  ;;  %v8835_v54 = vpop.f32.mrf.mxu0  ;;  %v8875_v7 = vpop.f32.mrf.mxu1 }
 0x2f9   :  { %v3048_v26 = vadd.f32 %v3021_v38, %v2845_v58  ;;  %v3061_v38 = vadd.s32 80, %v11199_v49  ;;  %v2503_v58 = vadd.f32 %v2502_v33, %v11258_v45 }
 0x2fa   :  { %v3202_v53 = vadd.f32 %v3201_v9, %v3193_v60  ;;  %v2847_v40 = vpop.f32.mrf.mxu0  ;;  %v3032_v47 = vpop.f32.mrf.mxu1 }
 0x2fb   :  { %v3168_v25 = vsel %vm11296_vm7, %v3048_v26, 0.0  ;;  %3220 = vst [vmem:[#allocation3 + $0x70] sm:$0xff] %v3048_v26  ;;  %v2848_v56 = vadd.f32 %v2847_v40, %v11178_v52 }
 0x2fc   :  { %v3177_v63 = vadd.f32 %v3176_v17, %v3168_v25  ;;  %v3194_v50 = vmul.f32 %v3168_v25, %v3048_v26  ;;  %v8836_v59 = vpop.f32.mrf.mxu0  ;;  %v8876_v23 = vpop.f32.mrf.mxu1  ;;  %v2504_v25 = vrot.slane %v2503_v58, 2 }
 0x2fd   :  { %v3049_v19 = vadd.f32 %v3024_v37, %v2848_v56  ;;  %v3071_v37 = vand.u32 15, %v3061_v38 }
 0x2fe   :  { %v3203_v48 = vadd.f32 %v3202_v53, %v3194_v50  ;;  %v2852_v35 = vpop.f32.mrf.mxu0  ;;  %v3037_v55 = vpop.f32.mrf.mxu1  ;;  %v2528_v50 = vrot.slane %v11262_v20, 4 }
 0x2ff   :  { %v3169_v28 = vsel %vm11303_vm8, %v3049_v19, 0.0  ;;  %3221 = vst [vmem:[#allocation3 + $0x78] sm:$0xff] %v3049_v19  ;;  %v2853_v52 = vadd.f32 %v2852_v35, %v11188_v13  ;;  %vm11320_vm0 = vcmp.le.s32.totalorder %v3071_v37, 8 }
 0x300   :  { %v3178_v44 = vadd.f32 %v3177_v63, %v3169_v28  ;;  %v3195_v0 = vmul.f32 %v3169_v28, %v3049_v19  ;;  %v8839_v31 = vpop.f32.mrf.mxu0  ;;  %v8879_v49 = vpop.f32.mrf.mxu1  ;;  %v2505_v28 = vadd.f32 %v2504_v25, %v2503_v58 }
 0x301   :  { %v3050_v32 = vadd.f32 %v3029_v5, %v2853_v52 }
 0x302   :  { %v3204_v61 = vadd.f32 %v3203_v48, %v3195_v0  ;;  %v2855_v9 = vpop.f32.mrf.mxu0  ;;  %v3040_v24 = vpop.f32.mrf.mxu1 }
 0x303   :  { %v3170_v34 = vsel %vm11311_vm9, %v3050_v32, 0.0  ;;  %3222 = vst [vmem:[#allocation3 + $0x80] sm:$0xff] %v3050_v32  ;;  %v2856_v13 = vadd.f32 %v2855_v9, %v11205_v36  ;;  %v2506_v9 = vrot.slane %v2505_v28, 1 }
 0x304   :  { %v3179_v11 = vadd.f32 %v3178_v44, %v3170_v34  ;;  %v3196_v17 = vmul.f32 %v3170_v34, %v3050_v32  ;;  %v8840_v54 = vpop.f32.mrf.mxu0  ;;  %v8880_v7 = vpop.f32.mrf.mxu1 }
 0x305   :  { %v3051_v5 = vadd.f32 %v3032_v47, %v2856_v13 }
 0x306   :  { %v3205_v43 = vadd.f32 %v3204_v61, %v3196_v17  ;;  %v2860_v26 = vpop.f32.mrf.mxu0  ;;  %v3509_v53 = vpop.f32.mrf.mxu1 }
 0x307   :  { %v3171_v40 = vsel %vm11320_vm0, %v3051_v5, 0.0  ;;  %3223 = vst [vmem:[#allocation3 + $0x88] sm:$0xff] %v3051_v5  ;;  %v2861_v36 = vadd.f32 %v2860_v26, %v11219_v51  ;;  %v2529_v51 = vadd.f32 %v2528_v50, %v11262_v20 }
 0x308   :  { %v3180_v45 = vadd.f32 %v3179_v11, %v3171_v40  ;;  %v3197_v56 = vmul.f32 %v3171_v40, %v3051_v5  ;;  %v8843_v21 = vpop.f32.mrf.mxu0  ;;  %v8935_v63 = vpop.f32.mrf.mxu1 }
 0x309   :  { %v3052_v59 = vadd.f32 %v3037_v55, %v2861_v36  ;;  %v2530_v17 = vrot.slane %v2529_v51, 2 }
 0x30a   :  { %v3183_v23 = vrot.slane %v3180_v45, 4  ;;  %v3206_v38 = vadd.f32 %v3205_v43, %v3197_v56  ;;  %v2863_v47 = vpop.f32.mrf.mxu0  ;;  %v3512_v19 = vpop.f32.mrf.mxu1  ;;  %v2507_v43 = vadd.f32 %v2506_v9, %v2505_v28 }
 0x30b   :  { %v3198_v48 = vmul.f32 0.0, %v3052_v59  ;;  %v2864_v35 = vadd.f32 %v2863_v47, %v11232_v42  ;;  %v2531_v36 = vadd.f32 %v2530_v17, %v2529_v51 }
 0x30c   :  { %v3184_v52 = vadd.f32 %v3183_v23, %v3180_v45  ;;  %v8844_v33 = vpop.f32.mrf.mxu0  ;;  %v8936_v44 = vpop.f32.mrf.mxu1 }
 0x30d   :  { %v3207_v0 = vadd.f32 %v3206_v38, %v3198_v48  ;;  %v3053_v31 = vadd.f32 %v3040_v24, %v2864_v35  ;;  %v2532_v59 = vrot.slane %v2531_v36, 1 }
 0x30e   :  { %v3185_v49 = vrot.slane %v3184_v52, 2  ;;  %v3382_v37 = vpop.f32.mrf.mxu0  ;;  %v11330_v32 = vpop.f32.mrf.mxu1 }
 0x30f   :  { %v3199_v55 = vmul.f32 0.0, %v3053_v31  ;;  %v3510_v61 = vadd.f32 %v3509_v53, %v3382_v37  ;;  %v2533_v28 = vadd.f32 %v2532_v59, %v2531_v36 }
 0x310   :  { %v3186_v34 = vadd.f32 %v3185_v49, %v3184_v52  ;;  %v8899_v13 = vpop.f32.mrf.mxu0  ;;  %v8939_v11 = vpop.f32.mrf.mxu1 }
 0x311   :  { %v3208_v42 = vadd.f32 %v3207_v0, %v3199_v55 }
 0x312   :  { %v3187_v58 = vrot.slane %v3186_v34, 1  ;;  %v3385_v54 = vpop.f32.mrf.mxu0  ;;  %v11332_v7 = vpop.f32.mrf.mxu1 }
 0x313   :  { %v3209_v5 = vrot.slane %v3208_v42, 4  ;;  %v3513_v20 = vadd.f32 %v3512_v19, %v3385_v54 }
 0x314   :  { %v3188_v24 = vadd.f32 %v3187_v58, %v3186_v34  ;;  %v8900_v26 = vpop.f32.mrf.mxu0  ;;  %v8940_v40 = vpop.f32.mrf.mxu1 }
 0x315   :  { %v3210_v25 = vadd.f32 %v3209_v5, %v3208_v42 }
 0x316   :  { %v3390_v45 = vpop.f32.mrf.mxu0  ;;  %v11334_v53 = vpop.f32.mrf.mxu1  ;;  %v11336_v56 = vadd.f32 %v3188_v24, %v2507_v43 }
 0x317   :  { %v3211_v21 = vrot.slane %v3210_v25, 2 }
 0x318   :  { %v8903_v63 = vpop.f32.mrf.mxu0  ;;  %v8943_v50 = vpop.f32.mrf.mxu1 }
 0x319   :  { %v3212_v23 = vadd.f32 %v3211_v21, %v3210_v25 }
 0x31a   :  { %v3393_v38 = vpop.f32.mrf.mxu0  ;;  %v11338_v47 = vpop.f32.mrf.mxu1 }
 0x31b   :  { %v3213_v19 = vrot.slane %v3212_v23, 1 }
 0x31c   :  { %v8904_v48 = vpop.f32.mrf.mxu0  ;;  %v8944_v35 = vpop.f32.mrf.mxu1 }
 0x31d   :  { %v3214_v52 = vadd.f32 %v3213_v19, %v3212_v23 }
 0x31e   :  { %v3398_v33 = vpop.f32.mrf.mxu0  ;;  %v11340_v44 = vpop.f32.mrf.mxu1 }
 0x31f   :  { %v11342_v51 = vadd.f32 %v3214_v52, %v2533_v28 }
 0x320   :  { %v8907_v0 = vpop.f32.mrf.mxu0  ;;  %v8947_v31 = vpop.f32.mrf.mxu1 }
 0x322   :  { %v3401_v49 = vpop.f32.mrf.mxu0  ;;  %v11344_v37 = vpop.f32.mrf.mxu1 }
 0x324   :  { %v8908_v55 = vpop.f32.mrf.mxu0  ;;  %v8948_v9 = vpop.f32.mrf.mxu1 }
 0x325   :  { %v3518_v55 = vadd.f32 %v11330_v32, %v3390_v45  ;;  %v3526_v32 = vadd.f32 %v11334_v53, %v3398_v33 }
 0x326   :  { %v3406_v34 = vpop.f32.mrf.mxu0  ;;  %v11346_v13 = vpop.f32.mrf.mxu1 }
 0x327   :  { %v3534_v33 = vadd.f32 %v11340_v44, %v3406_v34 }
 0x328   :  { %v8911_v11 = vpop.f32.mrf.mxu0  ;;  %v8951_v17 = vpop.f32.mrf.mxu1 }
 0x32a   :  { %v11348_v42 = vpop.f32.mrf.mxu0  ;;  %v11350_v58 = vpop.f32.mrf.mxu1 }
 0x32b   :  { %v3537_v22 = vadd.f32 %v11344_v37, %v11348_v42 }
 0x32c   :  { %v8912_v54 = vpop.f32.mrf.mxu0  ;;  %v8952_v5 = vpop.f32.mrf.mxu1 }
 0x32e   :  { %v11352_v43 = vpop.f32.mrf.mxu0  ;;  %v11354_v24 = vpop.f32.mrf.mxu1 }
 0x32f   :  { %v3542_v27 = vadd.f32 %v11346_v13, %v11352_v43  ;;  %v9594_v13 = vld [vmem:[%s12197_s2 + $0xf8] sm:$0xff]  }
 0x330   :  { %v8915_v26 = vpop.f32.mrf.mxu0  ;;  %v9007_v40 = vpop.f32.mrf.mxu1  ;;  %9125 = vmatprep.subr.bf16.mxu1 %v9594_v13 }
 0x331   :  { %9126 = vmatpush3.bf16.msra.mxu1 %v9594_v13 }
 0x332   :  { %v11356_v36 = vpop.f32.mrf.mxu0  ;;  %v11358_v25 = vpop.f32.mrf.mxu1 }
 0x333   :  { %v3545_v43 = vadd.f32 %v11350_v58, %v11356_v36 }
 0x334   :  { %v8916_v21 = vpop.f32.mrf.mxu0  ;;  %v9008_v63 = vpop.f32.mrf.mxu1 }
 0x335   :  { %v3521_v63 = vadd.f32 %v11332_v7, %v3393_v38 }
 0x336   :  { %v3686_v50 = vpop.f32.mrf.mxu0  ;;  %v11360_v59 = vpop.f32.mrf.mxu1 }
 0x337   :  { %v3725_v48 = vadd.f32 %v3686_v50, %v3510_v61 }
 0x338   :  { %v8971_v23 = vpop.f32.mrf.mxu0  ;;  %v9011_v19 = vpop.f32.mrf.mxu1 }
 0x339   :  { %v3761_v9 = vmul.f32 0.0, %v3725_v48 }
 0x33a   :  { %v3689_v35 = vpop.f32.mrf.mxu0  ;;  %v11362_v28 = vpop.f32.mrf.mxu1 }
 0x33b   :  { %v3726_v52 = vadd.f32 %v3689_v35, %v3513_v20 }
 0x33c   :  { %v8972_v0 = vpop.f32.mrf.mxu0  ;;  %v9012_v31 = vpop.f32.mrf.mxu1 }
 0x33d   :  { %v3762_v11 = vmul.f32 0.0, %v3726_v52  ;;  %v3529_v31 = vadd.f32 %v11338_v47, %v3401_v49 }
 0x33e   :  { %v3694_v17 = vpop.f32.mrf.mxu0  ;;  %v11365_v54 = vpop.f32.mrf.mxu1 }
 0x33f   :  { %v3771_v5 = vadd.f32 %v3762_v11, %v3761_v9  ;;  %v3727_v26 = vadd.f32 %v3694_v17, %v3518_v55 }
 0x340   :  { %v8975_v40 = vpop.f32.mrf.mxu0  ;;  %v9015_v21 = vpop.f32.mrf.mxu1 }
 0x341   :  { %3789 = vst [vmem:[#allocation3 + $0xb0] sm:$0xff] %v3727_v26  ;;  %v11378_v55 = vsel %vm2425_vm10, %v3727_v26, 0.0 }
 0x342   :  { %v3697_v61 = vpop.f32.mrf.mxu0  ;;  %v11368_v50 = vpop.f32.mrf.mxu1  ;;  %v3763_v47 = vmul.f32 %v11378_v55, %v3727_v26 }
 0x343   :  { %v3728_v20 = vadd.f32 %v3697_v61, %v3521_v63 }
 0x344   :  { %v8976_v23 = vpop.f32.mrf.mxu0  ;;  %v9016_v19 = vpop.f32.mrf.mxu1  ;;  %v3772_v34 = vadd.f32 %v3771_v5, %v3763_v47 }
 0x345   :  { %3790 = vst [vmem:[#allocation3 + $0xb8] sm:$0xff] %v3728_v20  ;;  %v11383_v17 = vsel %vm11174_vm11, %v3728_v20, 0.0  ;;  %vm4433_vm11 = vcmask 518400  }
 0x346   :  { %v3702_v45 = vpop.f32.mrf.mxu0  ;;  %v11371_v48 = vpop.f32.mrf.mxu1  ;;  %v3764_v61 = vmul.f32 %v11383_v17, %v3728_v20 }
 0x347   :  { %v3729_v35 = vadd.f32 %v3702_v45, %v3526_v32 }
 0x348   :  { %v8979_v52 = vpop.f32.mrf.mxu0  ;;  %v9019_v0 = vpop.f32.mrf.mxu1 }
 0x349   :  { %3791 = vst [vmem:[#allocation3 + $0xc0] sm:$0xff] %v3729_v35  ;;  %v11390_v21 = vsel %vm2427_vm12, %v3729_v35, 0.0  ;;  %v3773_v0 = vadd.f32 %v3772_v34, %v3764_v61 }
 0x34a   :  { %v3705_v7 = vpop.f32.mrf.mxu0  ;;  %v11374_v38 = vpop.f32.mrf.mxu1  ;;  %v3765_v26 = vmul.f32 %v11390_v21, %v3729_v35 }
 0x34b   :  { %v3730_v9 = vadd.f32 %v3705_v7, %v3529_v31 }
 0x34c   :  { %v8980_v11 = vpop.f32.mrf.mxu0  ;;  %v9020_v53 = vpop.f32.mrf.mxu1  ;;  %v3774_v35 = vadd.f32 %v3773_v0, %v3765_v26 }
 0x34d   :  { %3792 = vst [vmem:[#allocation3 + $0xc8] sm:$0xff] %v3730_v9  ;;  %v11397_v44 = vsel %vm11201_vm13, %v3730_v9, 0.0  ;;  %vm4434_vm13 = vsmask.f32 2306 }
 0x34e   :  { %v3710_v49 = vpop.f32.mrf.mxu0  ;;  %v11386_v40 = vpop.f32.mrf.mxu1  ;;  %v3766_v31 = vmul.f32 %v11397_v44, %v3730_v9 }
 0x34f   :  { %v3731_v63 = vadd.f32 %v3710_v49, %v3534_v33 }
 0x350   :  { %v8983_v23 = vpop.f32.mrf.mxu0  ;;  %v9023_v19 = vpop.f32.mrf.mxu1  ;;  %v3775_v47 = vadd.f32 %v3774_v35, %v3766_v31  ;;  %v9598_v31 = vld [vmem:[%s12197_s2 + $0xe8] sm:$0xff]  }
 0x351   :  { %3793 = vst [vmem:[#allocation3 + $0xd0] sm:$0xff] %v3731_v63  ;;  %v11404_v52 = vsel %vm11215_vm14, %v3731_v63, 0.0  ;;  %v9596_v23 = vld [vmem:[%s12197_s2 + $0xf0] sm:$0xff]  }
 0x352   :  { %v3713_v32 = vpop.f32.mrf.mxu0  ;;  %v11400_v45 = vpop.f32.mrf.mxu1  ;;  %v3767_v7 = vmul.f32 %v11404_v52, %v3731_v63  ;;  %v9597_v19 = vld [vmem:[%s12197_s2 + $0x130] sm:$0xff]   ;;  %9127 = vmatprep.subr.bf16.mxu1 %v9596_v23 }
 0x353   :  { %v3732_v20 = vadd.f32 %v3713_v32, %v3537_v22  ;;  %9099 = vmatprep.subr.bf16.mxu0 %v9597_v19  ;;  %9128 = vmatpush3.bf16.msra.mxu1 %v9596_v23 }
 0x354   :  { %v8984_v37 = vpop.f32.mrf.mxu0  ;;  %v9024_v42 = vpop.f32.mrf.mxu1  ;;  %v3776_v22 = vadd.f32 %v3775_v47, %v3767_v7  ;;  %9100 = vmatpush3.bf16.msra.mxu0 %v9597_v19  ;;  %9129 = vmatprep.subr.bf16.mxu1 %v9598_v31 }
 0x355   :  { %v11411_v5 = vsel %vm11228_vm15, %v3732_v20, 0.0  ;;  %3794 = vst [vmem:[#allocation3 + $0xd8] sm:$0xff] %v3732_v20  ;;  %v9600_v37 = vld [vmem:[%s12197_s2 + $0x128] sm:$0xff]   ;;  %vm11639_vm15 = vmand %vm4433_vm11, %vm4434_vm13  ;;  %vm6089_vm11 = vsmask.f32 1282 }
 0x356   :  { %v3718_v11 = vpop.f32.mrf.mxu0  ;;  %v4257_v53 = vpop.f32.mrf.mxu1  ;;  %v3768_v49 = vmul.f32 %v11411_v5, %v3732_v20  ;;  %9101 = vmatprep.subr.bf16.mxu0 %v9600_v37 }
 0x357   :  { %v3733_v33 = vadd.f32 %v3718_v11, %v3542_v27  ;;  %9130 = vmatpush3.bf16.msra.mxu1 %v9598_v31 }
 0x358   :  { %v8987_v9 = vpop.f32.mrf.mxu0  ;;  %v9079_v61 = vpop.f32.mrf.mxu1  ;;  %v3777_v36 = vadd.f32 %v3776_v22, %v3768_v49  ;;  %9102 = vmatpush3.bf16.msra.mxu0 %v9600_v37  ;;  %9131 = vmatprep.subr.bf16.mxu1 %v9599_v8 }
 0x359   :  { %v11425_v63 = vsel %vm11242_vm1, %v3733_v33, 0.0  ;;  %3795 = vst [vmem:[#allocation3 + $0xe0] sm:$0xff] %v3733_v33  ;;  %v9602_v61 = vld [vmem:[%s12197_s2 + $0x120] sm:$0xff]  }
 0x35a   :  { %v3769_v34 = vmul.f32 %v11425_v63, %v3733_v33  ;;  %v3721_v26 = vpop.f32.mrf.mxu0  ;;  %v4260_v32 = vpop.f32.mrf.mxu1  ;;  %9103 = vmatprep.subr.bf16.mxu0 %v9602_v61 }
 0x35b   :  { %v3734_v58 = vadd.f32 %v3721_v26, %v3545_v43  ;;  %v9601_v26 = vld [vmem:[%s12197_s2 + $0xd8] sm:$0xff]   ;;  %9132 = vmatpush3.bf16.msra.mxu1 %v9599_v8 }
 0x35c   :  { %v8988_v20 = vpop.f32.mrf.mxu0  ;;  %v9080_v0 = vpop.f32.mrf.mxu1  ;;  %v3778_v27 = vadd.f32 %v3777_v36, %v3769_v34  ;;  %v3747_v36 = vadd.f32 %v11383_v17, %v11378_v55  ;;  %9104 = vmatpush3.bf16.msra.mxu0 %v9602_v61  ;;  %9133 = vmatprep.subr.bf16.mxu1 %v9601_v26 }
 0x35d   :  { %v11442_v42 = vsel %vm11251_vm2, %v3734_v58, 0.0  ;;  %3796 = vst [vmem:[#allocation3 + $0xe8] sm:$0xff] %v3734_v58  ;;  %vm4442_vm2 = vcmask 779776  }
 0x35e   :  { %v3770_v35 = vmul.f32 %v11442_v42, %v3734_v58  ;;  %v4080_v7 = vpop.f32.mrf.mxu0  ;;  %v4265_v11 = vpop.f32.mrf.mxu1  ;;  %v3748_v37 = vadd.f32 %v3747_v36, %v11390_v21 }
 0x35f   :  { %v4081_v33 = vadd.f32 %v4080_v7, %v11354_v24  ;;  %9134 = vmatpush3.bf16.msra.mxu1 %v9601_v26 }
 0x360   :  { %v3779_v47 = vadd.f32 %v3778_v27, %v3770_v35  ;;  %v9043_v49 = vpop.f32.mrf.mxu0  ;;  %v9083_v9 = vpop.f32.mrf.mxu1  ;;  %v3749_v17 = vadd.f32 %v3748_v37, %v11397_v44 }
 0x361   :  { %v11452_v13 = vadd.f32 %v4257_v53, %v4081_v33  ;;  %v9604_v53 = vld [vmem:[%s12197_s2 + $0x118] sm:$0xff]  }
 0x362   :  { %v3780_v18 = vrot.slane %v3779_v47, 4  ;;  %v4083_v43 = vpop.f32.mrf.mxu0  ;;  %v4268_v24 = vpop.f32.mrf.mxu1  ;;  %9105 = vmatprep.subr.bf16.mxu0 %v9604_v53  ;;  %v3750_v21 = vadd.f32 %v3749_v17, %v11404_v52 }
 0x363   :  { %4358 = vst [vmem:[#allocation3 + $0xf0] sm:$0xff] %v11452_v13  ;;  %v4084_v23 = vadd.f32 %v4083_v43, %v11358_v25  ;;  %9106 = vmatpush3.bf16.msra.mxu0 %v9604_v53 }
 0x364   :  { %v3781_v19 = vadd.f32 %v3780_v18, %v3779_v47  ;;  %v9044_v22 = vpop.f32.mrf.mxu0  ;;  %v9084_v34 = vpop.f32.mrf.mxu1  ;;  %v3751_v44 = vadd.f32 %v3750_v21, %v11411_v5 }
 0x365   :  { %v4297_v58 = vadd.f32 %v4260_v32, %v4084_v23  ;;  %v9603_v32 = vld [vmem:[%s12197_s2 + $0xd0] sm:$0xff]  }
 0x366   :  { %v3782_v25 = vrot.slane %v3781_v19, 2  ;;  %v4088_v20 = vpop.f32.mrf.mxu0  ;;  %v4273_v0 = vpop.f32.mrf.mxu1  ;;  %9135 = vmatprep.subr.bf16.mxu1 %v9603_v32  ;;  %v3752_v52 = vadd.f32 %v3751_v44, %v11425_v63 }
 0x367   :  { %4359 = vst [vmem:[#allocation3 + $0xf8] sm:$0xff] %v4297_v58  ;;  %v4089_v31 = vadd.f32 %v4088_v20, %v11360_v59  ;;  %9136 = vmatpush3.bf16.msra.mxu1 %v9603_v32  ;;  %v4307_v22 = vsel %vm11270_vm4, %v4297_v58, 0.0 }
 0x368   :  { %v3783_v27 = vadd.f32 %v3782_v25, %v3781_v19  ;;  %v9047_v35 = vpop.f32.mrf.mxu0  ;;  %v9087_v7 = vpop.f32.mrf.mxu1  ;;  %v3753_v5 = vadd.f32 %v3752_v52, %v11442_v42  ;;  %v4333_v25 = vmul.f32 %v4307_v22, %v4297_v58 }
 0x369   :  { %v4298_v55 = vadd.f32 %v4265_v11, %v4089_v31  ;;  %v9605_v11 = vld [vmem:[%s12197_s2 + $0xc8] sm:$0xff]  }
 0x36a   :  { %v3784_v33 = vrot.slane %v3783_v27, 1  ;;  %v4091_v47 = vpop.f32.mrf.mxu0  ;;  %v4276_v49 = vpop.f32.mrf.mxu1  ;;  %9137 = vmatprep.subr.bf16.mxu1 %v9605_v11 }
 0x36b   :  { %4360 = vst [vmem:[#allocation3 + $0x100] sm:$0xff] %v4298_v55  ;;  %v4092_v59 = vadd.f32 %v4091_v47, %v11362_v28  ;;  %v4308_v53 = vsel %vm11279_vm5, %v4298_v55, 0.0  ;;  %9138 = vmatpush3.bf16.msra.mxu1 %v9605_v11  ;;  %vm5294_vm5 = vcmp.le.s32.totalorder %v11172_v14, 4 }
 0x36c   :  { %v3785_v9 = vadd.f32 %v3784_v33, %v3783_v27  ;;  %v9048_v8 = vpop.f32.mrf.mxu0  ;;  %v9088_v61 = vpop.f32.mrf.mxu1  ;;  %v4334_v16 = vmul.f32 %v4308_v53, %v4298_v55  ;;  %v3754_v27 = vrot.slane %v3753_v5, 4 }
 0x36d   :  { %v4299_v18 = vadd.f32 %v4268_v24, %v4092_v59 }
 0x36e   :  { %v11477_v43 = vadd.f32 %v3785_v9, %v11342_v51  ;;  %v4096_v23 = vpop.f32.mrf.mxu0  ;;  %v4281_v28 = vpop.f32.mrf.mxu1  ;;  %v4306_v51 = vsel %vm11264_vm3, %v11452_v13, 0.0  ;;  %v3755_v21 = vadd.f32 %v3754_v27, %v3753_v5  ;;  %vm5292_vm3 = vcmp.le.s32.totalorder %v11152_v29, 4 }
 0x36f   :  { %4361 = vst [vmem:[#allocation3 + $0x108] sm:$0xff] %v4299_v18  ;;  %v4097_v19 = vadd.f32 %v4096_v23, %v11365_v54  ;;  %v4316_v63 = vadd.f32 %v4307_v22, %v4306_v51  ;;  %v4309_v20 = vsel %vm11287_vm6, %v4299_v18, 0.0  ;;  %v4332_v31 = vmul.f32 %v4306_v51, %v11452_v13  ;;  %vm11853_vm4 = vmand %vm2425_vm10, %vm5292_vm3 }
 0x370   :  { %v9051_v34 = vpop.f32.mrf.mxu0  ;;  %v9091_v26 = vpop.f32.mrf.mxu1  ;;  %vm11875_vm6 = vmand %vm2427_vm12, %vm5294_vm5  ;;  %vm6699_vm3 = vcmp.le.s32.totalorder %v11152_v29, 2  ;;  %vm6701_vm5 = vcmp.le.s32.totalorder %v11172_v14, 2 }
 0x371   :  { %v4300_v24 = vadd.f32 %v4273_v0, %v4097_v19  ;;  %v4317_v6 = vadd.f32 %v4316_v63, %v4308_v53  ;;  %v4342_v32 = vadd.f32 %v4333_v25, %v4332_v31  ;;  %v3756_v26 = vrot.slane %v3755_v21, 2 }
 0x372   :  { %v4099_v54 = vpop.f32.mrf.mxu0  ;;  %v4284_v36 = vpop.f32.mrf.mxu1 }
 0x373   :  { %4362 = vst [vmem:[#allocation3 + $0x110] sm:$0xff] %v4300_v24  ;;  %v4100_v46 = vadd.f32 %v4099_v54, %v11368_v50  ;;  %v4310_v35 = vsel %vm11296_vm7, %v4300_v24, 0.0  ;;  %v4335_v50 = vmul.f32 %v4309_v20, %v4299_v18  ;;  %v4318_v12 = vadd.f32 %v4317_v6, %v4309_v20 }
 0x374   :  { %v9052_v0 = vpop.f32.mrf.mxu0  ;;  %v9092_v42 = vpop.f32.mrf.mxu1  ;;  %v4343_v55 = vadd.f32 %v4342_v32, %v4334_v16  ;;  %v3757_v20 = vadd.f32 %v3756_v26, %v3755_v21  ;;  %v4518_v26 = vld [vmem:[#allocation3 + $0x72] ss:$2 sm:$0xf]  ;;  %vm11899_vm7 = vcmp.le.s32.totalorder %v2389_v30, 4 }
 0x375   :  { %v4301_v37 = vadd.f32 %v4276_v49, %v4100_v46  ;;  %v4336_v49 = vmul.f32 %v4310_v35, %v4300_v24  ;;  %v4319_v9 = vadd.f32 %v4318_v12, %v4310_v35 }
 0x376   :  { %v4104_v58 = vpop.f32.mrf.mxu0  ;;  %v4289_v7 = vpop.f32.mrf.mxu1  ;;  %v4344_v61 = vadd.f32 %v4343_v55, %v4335_v50  ;;  %v3758_v27 = vrot.slane %v3757_v20, 1 }
 0x377   :  { %4363 = vst [vmem:[#allocation3 + $0x118] sm:$0xff] %v4301_v37  ;;  %v4105_v17 = vadd.f32 %v4104_v58, %v11371_v48  ;;  %v4311_v33 = vsel %vm11303_vm8, %v4301_v37, 0.0  ;;  %vm5308_vm8 = vmand %vm11215_vm14, %vm11899_vm7  ;;  %vm6076_vm14 = vcmask 254977  }
 0x378   :  { %v9055_v47 = vpop.f32.mrf.mxu0  ;;  %v9095_v13 = vpop.f32.mrf.mxu1  ;;  %v4337_v11 = vmul.f32 %v4311_v33, %v4301_v37  ;;  %v4320_v44 = vadd.f32 %v4319_v9, %v4311_v33  ;;  %v4345_v19 = vadd.f32 %v4344_v61, %v4336_v49 }
 0x379   :  { %v4302_v59 = vadd.f32 %v4281_v28, %v4105_v17 }
 0x37a   :  { %v4107_v1 = vpop.f32.mrf.mxu0  ;;  %v4292_v8 = vpop.f32.mrf.mxu1  ;;  %v4346_v24 = vadd.f32 %v4345_v19, %v4337_v11  ;;  %v4485_v19 = vld [vmem:[#allocation3 + $0x62] ss:$2 sm:$0xf] }
 0x37b   :  { %v4312_v18 = vsel %vm11311_vm9, %v4302_v59, 0.0  ;;  %4364 = vst [vmem:[#allocation3 + $0x120] sm:$0xff] %v4302_v59  ;;  %v4108_v48 = vadd.f32 %v4107_v1, %v11374_v38  ;;  %vm11919_vm9 = vcmp.le.s32.totalorder %v2391_v3, 4 }
 0x37c   :  { %v9056_v10 = vpop.f32.mrf.mxu0  ;;  %v9096_v23 = vpop.f32.mrf.mxu1  ;;  %v4338_v52 = vmul.f32 %v4312_v18, %v4302_v59  ;;  %v4321_v34 = vadd.f32 %v4320_v44, %v4312_v18  ;;  %v4405_v18 = vld [vmem:[#allocation3 + $0x12] ss:$2 sm:$0xf]  ;;  %v4449_v44 = vld [vmem:[#allocation3 + $0x42] ss:$2 sm:$0xf] }
 0x37d   :  { %v4303_v22 = vadd.f32 %v4284_v36, %v4108_v48  ;;  %v4408_v48 = vld [vmem:[#allocation3 + $0x22] ss:$2 sm:$0xf]  ;;  %v4403_v10 = vld [vmem:[#allocation3 + $0x11] ss:$2 sm:$0xf] }
 0x37e   :  { %v4112_v28 = vpop.f32.mrf.mxu0  ;;  %v4347_v38 = vadd.f32 %v4346_v24, %v4338_v52  ;;  %v4406_v23 = vld [vmem:[#allocation3 + $0x21] ss:$2 sm:$0xf]  ;;  %v4521_v52 = vld [vmem:[#allocation3 + $0x82] ss:$2 sm:$0xf] }
 0x37f   :  { %v4313_v5 = vsel %vm11320_vm0, %v4303_v22, 0.0  ;;  %4365 = vst [vmem:[#allocation3 + $0x128] sm:$0xff] %v4303_v22  ;;  %v4113_v4 = vadd.f32 %v4112_v28, %v11386_v40  ;;  %v4444_v28 = vld [vmem:[#allocation3 + $0x31] ss:$2 sm:$0xf]  ;;  %vm4421_vm0 = vcmask 256001  }
 0x380   :  { %v4322_v51 = vadd.f32 %v4321_v34, %v4313_v5  ;;  %v4339_v53 = vmul.f32 %v4313_v5, %v4303_v22  ;;  %v9059_v54 = vpop.f32.mrf.mxu0  ;;  %v4482_v22 = vld [vmem:[#allocation3 + $0x52] ss:$2 sm:$0xf]  ;;  %v4483_v34 = vld [vmem:[#allocation3 + $0x61] ss:$2 sm:$0xf] }
 0x381   :  { %v4304_v25 = vadd.f32 %v4289_v7, %v4113_v4  ;;  %v3759_v7 = vadd.f32 %v3758_v27, %v3757_v20  ;;  %v4519_v24 = vld [vmem:[#allocation3 + $0x81] ss:$2 sm:$0xf]  ;;  %v4554_v5 = vld [vmem:[#allocation3 + $0xb2] ss:$2 sm:$0xf]  ;;  %v4409_v20 = vmax.f32 %v4403_v10, %v4405_v18 }
 0x382   :  { %v4325_v46 = vrot.slane %v4322_v51, 4  ;;  %v4115_v63 = vpop.f32.mrf.mxu0  ;;  %v4348_v36 = vadd.f32 %v4347_v38, %v4339_v53  ;;  %v4557_v4 = vld [vmem:[#allocation3 + $0xc2] ss:$2 sm:$0xf] }
 0x383   :  { %v4340_v0 = vmul.f32 0.0, %v4304_v25  ;;  %4366 = vst [vmem:[#allocation3 + $0x130] sm:$0xff] %v4304_v25  ;;  %v4116_v42 = vadd.f32 %v4115_v63, %v11400_v45  ;;  %v3760_v33 = vadd.f32 %v3759_v7, %v11336_v56  ;;  %v4446_v56 = vld [vmem:[#allocation3 + $0x32] ss:$2 sm:$0xf] }
 0x384   :  { %v4326_v31 = vadd.f32 %v4325_v46, %v4322_v51  ;;  %v9060_v16 = vpop.f32.mrf.mxu0  ;;  %v4593_v51 = vld [vmem:[#allocation3 + $0xe2] ss:$2 sm:$0xf]  ;;  %v4555_v53 = vld [vmem:[#allocation3 + $0xc1] ss:$2 sm:$0xf] }
 0x385   :  { %v4305_v60 = vadd.f32 %v4292_v8, %v4116_v42  ;;  %v4349_v6 = vadd.f32 %v4348_v36, %v4340_v0  ;;  %v4626_v54 = vld [vmem:[#allocation3 + $0xf2] ss:$2 sm:$0xf]  ;;  %v4629_v38 = vld [vmem:[#allocation3 + $0x102] ss:$2 sm:$0xf]  ;;  %v4410_v0 = vmax.f32 %v4406_v23, %v4408_v48  ;;  %v4559_v7 = vmax.f32 %v4555_v53, %v4557_v4 }
 0x386   :  { %v4327_v37 = vrot.slane %v4326_v31, 2  ;;  %v4590_v25 = vld [vmem:[#allocation3 + $0xd2] ss:$2 sm:$0xf] }
 0x387   :  { %v4341_v40 = vmul.f32 0.0, %v4305_v60  ;;  %4367 = vst [vmem:[#allocation3 + $0x138] sm:$0xff] %v4305_v60  ;;  %v4591_v46 = vld [vmem:[#allocation3 + $0xe1] ss:$2 sm:$0xf]  ;;  %v4487_v60 = vmax.f32 %v4483_v34, %v4485_v19 }
 0x388   :  { %v4328_v35 = vadd.f32 %v4327_v37, %v4326_v31  ;;  %v4665_v63 = vld [vmem:[#allocation3 + $0x122] ss:$2 sm:$0xf]  ;;  %v4480_v36 = vld [vmem:[#allocation3 + $0x51] ss:$2 sm:$0xf]  ;;  %v4450_v37 = vmax.f32 %v4444_v28, %v4446_v56 }
 0x389   :  { %v4350_v58 = vadd.f32 %v4349_v6, %v4341_v40  ;;  %v4516_v42 = vld [vmem:[#allocation3 + $0x71] ss:$2 sm:$0xf]  ;;  %v4627_v31 = vld [vmem:[#allocation3 + $0x101] ss:$2 sm:$0xf]  ;;  %v4523_v6 = vmax.f32 %v4519_v24, %v4521_v52 }
 0x38a   :  { %v4329_v32 = vrot.slane %v4328_v35, 1  ;;  %v4662_v16 = vld [vmem:[#allocation3 + $0x112] ss:$2 sm:$0xf] }
 0x38b   :  { %v4351_v50 = vrot.slane %v4350_v58, 4  ;;  %v4663_v40 = vld [vmem:[#allocation3 + $0x121] ss:$2 sm:$0xf] }
 0x38c   :  { %v4330_v17 = vadd.f32 %v4329_v32, %v4328_v35  ;;  %v9606_v35 = vld [vmem:[%s12197_s2 + $0x110] sm:$0xff]   ;;  %v4552_v32 = vld [vmem:[#allocation3 + $0xb1] ss:$2 sm:$0xf] }
 0x38d   :  { %v4352_v12 = vadd.f32 %v4351_v50, %v4350_v58  ;;  %v9607_v58 = vld [vmem:[%s12197_s2 + $0xc0] sm:$0xff]   ;;  %v4631_v50 = vmax.f32 %v4627_v31, %v4629_v38  ;;  %9107 = vmatprep.subr.bf16.mxu0 %v9606_v35  ;;  %v9609_v31 = vld [vmem:[%s12197_s2 + $0x138] sm:$0xff]  }
 0x38e   :  { %v4331_v13 = vadd.f32 %v4330_v17, %v3760_v33  ;;  %v4588_v17 = vld [vmem:[#allocation3 + $0xd1] ss:$2 sm:$0xf]  ;;  %v4667_v33 = vmax.f32 %v4663_v40, %v4665_v63  ;;  %9139 = vmatprep.subr.bf16.mxu1 %v9607_v58  ;;  %9108 = vmatpush3.bf16.msra.mxu0 %v9606_v35 }
 0x38f   :  { %v4353_v47 = vrot.slane %v4352_v12, 2  ;;  %9140 = vmatpush3.bf16.msra.mxu1 %v9607_v58 }
 0x390   :  { %v11506_v49 = vmul.f32 0.0078125, %v4331_v13  ;;  %v4522_v13 = vmax.f32 %v4516_v42, %v4518_v26  ;;  %v9608_v42 = vld [vmem:[#allocation2] sm:$0xff]   ;;  %9181 = vmatprep.subr.bf16.mxu1 %v9609_v31 }
 0x391   :  { %v4354_v45 = vadd.f32 %v4353_v47, %v4352_v12  ;;  %v4595_v12 = vmax.f32 %v4591_v46, %v4593_v51  ;;  %v4486_v47 = vmax.f32 %v4480_v36, %v4482_v22  ;;  %6040 = vst [vmem:[#allocation2] sm:$0xf] %v9761_v57  ;;  %6041 = vst [vmem:[#allocation2 + $0x4] sm:$0xf] %v9761_v57  ;;  %9141 = vmatprep.mubr.bf16.mxu1 %v9608_v42 }
 0x392   :  { %v4370_v1 = vmul.f32 %v11506_v49, %v11506_v49  ;;  %v4524_v18 = vmax.f32 %v4522_v13, %v4523_v6  ;;  %9142 = vmatmul.mubr.bf16.vlgmr.msra.gmra.mxu1 %v10273_v62 }
 0x393   :  { %v4355_v55 = vrot.slane %v4354_v45, 1  ;;  %9182 = vmatpush3.bf16.msra.mxu1 %v9609_v31 }
 0x394   :  { %v4525_v22 = vsub.f32 %v4524_v18, %v11506_v49 }
 0x395   :  { %v4356_v59 = vadd.f32 %v4355_v55, %v4354_v45  ;;  %v4558_v45 = vmax.f32 %v4552_v32, %v4554_v5  ;;  %v4624_v55 = vld [vmem:[#allocation3 + $0xf1] ss:$2 sm:$0xf] }
 0x397   :  { %v4357_v21 = vadd.f32 %v4356_v59, %v11477_v43  ;;  %v4447_v43 = vld [vmem:[#allocation3 + $0x41] ss:$2 sm:$0xf]  ;;  %v4660_v59 = vld [vmem:[#allocation3 + $0x111] ss:$2 sm:$0xf]  ;;  %v4560_v48 = vmax.f32 %v4558_v45, %v4559_v7 }
 0x398   :  { %v4451_v27 = vmax.f32 %v4447_v43, %v4449_v44  ;;  %v9612_v7 = vld [vmem:[%s12197_s2 + $0x100] sm:$0xff]  }
 0x399   :  { %v4369_v9 = vmul.f32 0.0078125, %v4357_v21  ;;  %v4630_v21 = vmax.f32 %v4624_v55, %v4626_v54  ;;  %v4561_v28 = vsub.f32 %v4560_v48, %v11506_v49 }
 0x39b   :  { %v4371_v8 = vsub.f32 %v4369_v9, %v4370_v1  ;;  %v4594_v9 = vmax.f32 %v4588_v17, %v4590_v25  ;;  %v4666_v1 = vmax.f32 %v4660_v59, %v4662_v16  ;;  %v4632_v56 = vmax.f32 %v4630_v21, %v4631_v50 }
 0x39d   :  { %v4372_v61 = vmax.f32 %v4371_v8, 0.0  ;;  %v4411_v8 = vmax.f32 %v4409_v20, %v4410_v0  ;;  %v4596_v44 = vmax.f32 %v4594_v9, %v4595_v12  ;;  %v4668_v10 = vmax.f32 %v4666_v1, %v4667_v33 }
 0x39e   :  { %v4633_v43 = vsub.f32 %v4632_v56, %v11506_v49 }
 0x39f   :  { %v4373_v11 = vadd.f32 1e-05, %v4372_v61  ;;  %v4488_v61 = vmax.f32 %v4486_v47, %v4487_v60  ;;  %v4412_v23 = vsub.f32 %v4411_v8, %v11506_v49  ;;  %v4597_v26 = vsub.f32 %v4596_v44, %v11506_v49  ;;  %v11552_v8 = vld [vmem:[%s12197_s2 + $0x178] sm:$0xff]  }
 0x3a0   :  { %v4669_v24 = vsub.f32 %v4668_v10, %v11506_v49 }
 0x3a1   :  { %9751 = vrsqrt.f32 %v4373_v11  ;;  %v4452_v11 = vmax.f32 %v4450_v37, %v4451_v27  ;;  %v4489_v19 = vsub.f32 %v4488_v61, %v11506_v49  ;;  %v9610_v37 = vld [vmem:[%s12197_s2 + $0x108] sm:$0xff]  }
 0x3a2   :  { %9109 = vmatprep.subr.bf16.mxu0 %v9610_v37 }
 0x3a3   :  { %v4453_v52 = vsub.f32 %v4452_v11, %v11506_v49  ;;  %9110 = vmatpush3.bf16.msra.mxu0 %v9610_v37  ;;  %v9625_v37 = vld [vmem:[%s12197_s2 + $0x108] sm:$0xff]  }
 0x3a4   :  { %9111 = vmatprep.subr.bf16.mxu0 %v9612_v7 }
 0x3a7   :  { %9112 = vmatpush3.bf16.msra.mxu0 %v9612_v7  ;;  %v11631_v7 = vld [vmem:[#allocation2 + $0x30] sm:$0xff]  }
 0x3a8   :  { %9153 = vmatprep.subr.bf16.mxu0 %v11552_v8 }
 0x3ae   :  { %v9752_v34 = vpop.eup %9751 }
 0x3af   :  { %v4413_v5 = vmul.f32 %v9752_v34, %v4412_v23  ;;  %v4490_v4 = vmul.f32 %v9752_v34, %v4489_v19  ;;  %v4454_v51 = vmul.f32 %v9752_v34, %v4453_v52  ;;  %v4526_v53 = vmul.f32 %v9752_v34, %v4525_v22 }
 0x3b0   :  { %v4562_v54 = vmul.f32 %v9752_v34, %v4561_v28  ;;  %v4634_v38 = vmul.f32 %v9752_v34, %v4633_v43  ;;  %v4598_v25 = vmul.f32 %v9752_v34, %v4597_v26  ;;  %v4670_v46 = vmul.f32 %v9752_v34, %v4669_v24  ;;  %v9611_v28 = vld [vmem:[%s12197_s2 + $0x130] sm:$0xff]  }
 0x3b1   :  { %v4414_v63 = vmax.f32 %v4413_v5, 0.0  ;;  %v4491_v20 = vmax.f32 %v4490_v4, 0.0  ;;  %v4455_v0 = vmax.f32 %v4454_v51, 0.0  ;;  %v4527_v36 = vmax.f32 %v4526_v53, 0.0  ;;  %9183 = vmatprep.subr.bf16.mxu1 %v9611_v28  ;;  %v9613_v5 = vld [vmem:[%s12197_s2 + $0x128] sm:$0xff]  }
 0x3b2   :  { %v4563_v16 = vmax.f32 %v4562_v54, 0.0  ;;  %v4635_v60 = vmax.f32 %v4634_v38, 0.0  ;;  %v4599_v49 = vmax.f32 %v4598_v25, 0.0  ;;  %v4671_v32 = vmax.f32 %v4670_v46, 0.0  ;;  %9184 = vmatpush3.bf16.msra.mxu1 %v9611_v28  ;;  %v9616_v38 = vld [vmem:[%s12197_s2 + $0x120] sm:$0xff]  }
 0x3b3   :  { %v8140_v27 = vpack.c.bf16 %v4414_v63, %v4414_v63  ;;  %v8142_v6 = vpack.c.bf16 %v4491_v20, %v4491_v20  ;;  %v8141_v40 = vpack.c.bf16 %v4455_v0, %v4455_v0  ;;  %v11533_v35 = vpack.c.bf16 %v4527_v36, %v4527_v36  ;;  %9185 = vmatprep.subr.bf16.mxu1 %v9613_v5  ;;  %v9618_v36 = vld [vmem:[%s12197_s2 + $0x118] sm:$0xff]  }
 0x3b4   :  { %v11535_v58 = vpack.c.bf16 %v4563_v16, %v4563_v16  ;;  %v11541_v33 = vpack.c.bf16 %v4635_v60, %v4635_v60  ;;  %v11543_v55 = vpack.c.bf16 %v4599_v49, %v4599_v49  ;;  %v11554_v18 = vpack.c.bf16 %v4671_v32, %v4671_v32  ;;  %v9622_v60 = vld [vmem:[%s12197_s2 + $0x110] sm:$0xff]   ;;  %v11627_v32 = vld [vmem:[#allocation2 + $0x38] sm:$0xff]  }
 0x3b5   :  { %4439 = vrot.lane.b32.xlu1 %v8140_v27, %s9764_s24  ;;  %v4419_v50 = vrot.slane %v8140_v27, 7  ;;  %v4496_v17 = vrot.slane %v8142_v6, 7  ;;  %v4500_v12 = vshrl.u32 %v8142_v6, 16  ;;  %v4424_v47 = vshrl.u32 %v8140_v27, 16 }
 0x3b6   :  { %v4460_v13 = vrot.slane %v8141_v40, 7  ;;  %v4464_v45 = vshrl.u32 %v8141_v40, 16  ;;  %v4503_v21 = vshll.u32 %v8142_v6, 16  ;;  %v4532_v9 = vrot.slane %v11533_v35, 7  ;;  %9186 = vmatpush3.bf16.msra.mxu1 %v9613_v5  ;;  %v9621_v5 = vld [vmem:[%s12197_s2 + $0x168] sm:$0xff]  }
 0x3b7   :  { %v4502_v59 = vrot.slane %v4500_v12, 7  ;;  %v4568_v1 = vrot.slane %v11535_v58, 7  ;;  %4498 = vst.msk [vmem:[#allocation2 + $0x20] sm:$0x6] %vm4421_vm0, %v4496_v17  ;;  %4422 = vst.msk [vmem:[#allocation2 + $0x10] sm:$0x6] %vm4421_vm0, %v4419_v50  ;;  %9187 = vmatprep.subr.bf16.mxu1 %v9616_v38 }
 0x3b8   :  { %v4426_v61 = vrot.slane %v4424_v47, 7  ;;  %v4427_v11 = vshll.u32 %v8140_v27, 16  ;;  %4462 = vst.msk [vmem:[#allocation2 + $0x18] sm:$0x6] %vm4421_vm0, %v4460_v13  ;;  %v4640_v56 = vrot.slane %v11541_v33, 7  ;;  %v4466_v10 = vrot.slane %v4464_v45, 7 }
 0x3b9   :  { %v4505_v48 = vor.u32 %v4503_v21, %v4502_v59  ;;  %4534 = vst.msk [vmem:[#allocation2 + $0x28] sm:$0x6] %vm4421_vm0, %v4532_v9  ;;  %4570 = vst.msk [vmem:[#allocation2 + $0x40] sm:$0x6] %vm4421_vm0, %v4568_v1  ;;  %v4604_v23 = vrot.slane %v11543_v55, 7  ;;  %v4467_v19 = vshll.u32 %v8141_v40, 16 }
 0x3ba   :  { %v4429_v44 = vor.u32 %v4427_v11, %v4426_v61  ;;  %4642 = vst.msk [vmem:[#allocation2 + $0x50] sm:$0x6] %vm4421_vm0, %v4640_v56  ;;  %v4676_v52 = vrot.slane %v11554_v18, 7  ;;  %v4536_v34 = vshrl.u32 %v11533_v35, 16  ;;  %v4644_v43 = vshrl.u32 %v11541_v33, 16  ;;  %9188 = vmatpush3.bf16.msra.mxu1 %v9616_v38  ;;  %v11633_v50 = vld [vmem:[#allocation2 + $0x30] sm:$0xff]  }
 0x3bb   :  { %4506 = vrot.lane.b32.xlu1 %v4505_v48, %s9765_s29  ;;  %4606 = vst.msk [vmem:[#allocation2 + $0x48] sm:$0x6] %vm4421_vm0, %v4604_v23  ;;  %v4469_v22 = vor.u32 %v4467_v19, %v4466_v10  ;;  %v4572_v24 = vshrl.u32 %v11535_v58, 16  ;;  %v4539_v4 = vshll.u32 %v11533_v35, 16  ;;  %v4608_v62 = vshrl.u32 %v11543_v55, 16  ;;  %9189 = vmatprep.subr.bf16.mxu1 %v9618_v36  ;;  %v11635_v17 = vld [vmem:[#allocation2 + $0x30] sm:$0xff]  }
 0x3bc   :  { %4430 = vrot.lane.b32.xlu0 %v4429_v44, %s9765_s29  ;;  %4678 = vst.msk [vmem:[#allocation2 + $0x58] sm:$0x6] %vm4421_vm0, %v4676_v52  ;;  %v4538_v26 = vrot.slane %v4536_v34, 7  ;;  %v4646_v51 = vrot.slane %v4644_v43, 7  ;;  %v4647_v25 = vshll.u32 %v11541_v33, 16  ;;  %v4575_v46 = vshll.u32 %v11535_v58, 16  ;;  %vm5310_vm0 = vmand %vm11242_vm1, %vm11919_vm9 }
 0x3bd   :  { %v4574_v54 = vrot.slane %v4572_v24, 7  ;;  %v4610_v0 = vrot.slane %v4608_v62, 7  ;;  %v4611_v42 = vshll.u32 %v11543_v55, 16  ;;  %v4680_v16 = vshrl.u32 %v11554_v18, 16  ;;  %6052 = vst [vmem:[#allocation2 + $0x30] sm:$0xf] %v9761_v57 }
 0x3be   :  { %v4541_v53 = vor.u32 %v4539_v4, %v4538_v26  ;;  %v4649_v63 = vor.u32 %v4647_v25, %v4646_v51  ;;  %9190 = vmatpush3.bf16.msra.mxu1 %v9618_v36  ;;  %v4683_v27 = vshll.u32 %v11554_v18, 16  ;;  %6053 = vst [vmem:[#allocation2 + $0x34] sm:$0xf] %v9761_v57  ;;  %v4509_v47 = vld [vmem:[#allocation2 + $0x20] sm:$0x7]  ;;  %v9617_v56 = vld [vmem:[%s12197_s2 + $0x170] sm:$0xff]  }
 0x3bf   :  { %4512 = vrot.lane.b32.xlu1 %v8142_v6, %s9764_s24  ;;  %v4577_v20 = vor.u32 %v4575_v46, %v4574_v54  ;;  %v4613_v31 = vor.u32 %v4611_v42, %v4610_v0  ;;  %v4682_v49 = vrot.slane %v4680_v16, 7  ;;  %9191 = vmatprep.subr.bf16.mxu1 %v9622_v60  ;;  %v4436_v59 = vld [vmem:[#allocation2 + $0x10] sm:$0x7]  ;;  %v4473_v1 = vld [vmem:[#allocation2 + $0x18] sm:$0x7]  ;;  %v9623_v62 = vld [vmem:[%s12197_s2 + $0x160] sm:$0xff]  }
 0x3c0   :  { %4470 = vrot.lane.b32.xlu0 %v4469_v22, %s9765_s29  ;;  %v4545_v23 = vld [vmem:[#allocation2 + $0x28] sm:$0x7]  ;;  %v4581_v24 = vld [vmem:[#allocation2 + $0x40] sm:$0x7]  ;;  %vm6088_vm1 = vcmask 517376  }
 0x3c1   :  { %v4685_v6 = vor.u32 %v4683_v27, %v4682_v49  ;;  %v4653_v43 = vld [vmem:[#allocation2 + $0x50] sm:$0x7]  ;;  %vm12024_vm13 = vmand %vm6088_vm1, %vm6089_vm11 }
 0x3c2   :  { %9192 = vmatpush3.bf16.msra.mxu1 %v9622_v60  ;;  %v4617_v25 = vld [vmem:[#allocation2 + $0x48] sm:$0x7] }
 0x3c3   :  { %4548 = vrot.lane.b32.xlu1 %v11533_v35, %s9764_s24  ;;  %9193 = vmatprep.subr.bf16.mxu1 %v9625_v37  ;;  %v11622_v35 = vld [vmem:[%s12197_s2 + $0x178] sm:$0xff]  }
 0x3c4   :  { %4476 = vrot.lane.b32.xlu0 %v8141_v40, %s9764_s24  ;;  %v9629_v40 = vld [vmem:[%s12197_s2 + $0x100] sm:$0xff]   ;;  %v4689_v49 = vld [vmem:[#allocation2 + $0x58] sm:$0x7] }
 0x3c6   :  { %9194 = vmatpush3.bf16.msra.mxu1 %v9625_v37 }
 0x3c7   :  { %4584 = vrot.lane.b32.xlu1 %v11535_v58, %s9764_s24  ;;  %9195 = vmatprep.subr.bf16.mxu1 %v9629_v40  ;;  %v11625_v58 = vld [vmem:[#allocation2 + $0x38] sm:$0xff]  }
 0x3c8   :  { %4542 = vrot.lane.b32.xlu0 %v4541_v53, %s9765_s29  ;;  %6054 = vst [vmem:[#allocation2 + $0x38] sm:$0xf] %v9761_v57  ;;  %6055 = vst [vmem:[#allocation2 + $0x3c] sm:$0xf] %v9761_v57 }
 0x3ca   :  { %9196 = vmatpush3.bf16.msra.mxu1 %v9629_v40  ;;  %v9634_v40 = vld [vmem:[%s12197_s2 + $0x148] sm:$0xff]  }
 0x3cb   :  { %4650 = vrot.lane.b32.xlu1 %v4649_v63, %s9765_s29  ;;  %9237 = vmatprep.subr.bf16.mxu1 %v11622_v35  ;;  %v9626_v63 = vld [vmem:[%s12197_s2 + $0x158] sm:$0xff]  }
 0x3cc   :  { %4578 = vrot.lane.b32.xlu0 %v4577_v20, %s9765_s29 }
 0x3cf   :  { %4656 = vrot.lane.b32.xlu1 %v11541_v33, %s9764_s24 }
 0x3d0   :  { %4614 = vrot.lane.b32.xlu0 %v4613_v31, %s9765_s29  ;;  %v9630_v31 = vld [vmem:[%s12197_s2 + $0x150] sm:$0xff]  }
 0x3d3   :  { %4692 = vrot.lane.b32.xlu1 %v11554_v18, %s9764_s24 }
 0x3d4   :  { %4620 = vrot.lane.b32.xlu0 %v11543_v55, %s9764_s24 }
 0x3d8   :  { %4686 = vrot.lane.b32.xlu0 %v4685_v6, %s9765_s29 }
 0x427   :  { %v4440_v12 = vpop.permute.xlu1 %4439 }
 0x42d   :  { %v4507_v13 = vpop.permute.xlu1 %4506 }
 0x42e   :  { %v4510_v45 = vsel %vm11639_vm15, %v4507_v13, %v4509_v47  ;;  %v4431_v55 = vpop.permute.xlu0 %4430  ;;  %v9637_v47 = vld [vmem:[%s12197_s2 + $0x140] sm:$0xff]   ;;  %v9638_v13 = vld [vmem:[%s12197_s2 + $0x168] sm:$0xff]  }
 0x42f   :  { %4511 = vst [vmem:[#allocation2 + $0x20] sm:$0x7] %v4510_v45  ;;  %v4437_v21 = vsel %vm11639_vm15, %v4431_v55, %v4436_v59  ;;  %v9643_v45 = vld [vmem:[%s12197_s2 + $0x160] sm:$0xff]   ;;  %v9644_v59 = vld [vmem:[%s12197_s2 + $0xf0] sm:$0xff]  }
 0x430   :  { %4438 = vst [vmem:[#allocation2 + $0x10] sm:$0x7] %v4437_v21  ;;  %v9645_v21 = vld [vmem:[%s12197_s2 + $0x158] sm:$0xff]  }
 0x431   :  { %4443 = vst.msk [vmem:[#allocation2 + $0x10] sm:$0x3] %vm4442_vm2, %v4440_v12  ;;  %v4513_v9 = vpop.permute.xlu1 %4512 }
 0x432   :  { %4515 = vst.msk [vmem:[#allocation2 + $0x20] sm:$0x3] %vm4442_vm2, %v4513_v9  ;;  %v4471_v61 = vpop.permute.xlu0 %4470  ;;  %v9646_v9 = vld [vmem:[#allocation2 + $0x60] sm:$0xff]  }
 0x433   :  { %v4474_v11 = vsel %vm11639_vm15, %v4471_v61, %v4473_v1  ;;  %v9648_v1 = vld [vmem:[%s12197_s2 + $0xe8] sm:$0xff]   ;;  %v9650_v61 = vld [vmem:[%s12197_s2 + $0x150] sm:$0xff]  }
 0x434   :  { %4475 = vst [vmem:[#allocation2 + $0x18] sm:$0x7] %v4474_v11  ;;  %v9651_v11 = vld [vmem:[%s12197_s2 + $0xe0] sm:$0xff]  }
 0x435   :  { %v4549_v18 = vpop.permute.xlu1 %4548 }
 0x436   :  { %v4477_v48 = vpop.permute.xlu0 %4476 }
 0x437   :  { %4479 = vst.msk [vmem:[#allocation2 + $0x18] sm:$0x3] %vm4442_vm2, %v4477_v48  ;;  %v9655_v48 = vld [vmem:[%s12197_s2 + $0xd8] sm:$0xff]  }
 0x438   :  { %v9615_v44 = vld [vmem:[#allocation2 + $0x10] sm:$0xff]  }
 0x439   :  { %v4585_v10 = vpop.permute.xlu1 %4584  ;;  %v11655_v19 = vld [vmem:[#allocation2 + $0x10] sm:$0xff]   ;;  %9114 = vmatmul.mubr.bf16.vlgmr.msra.gmra.mxu0 %v9615_v44  ;;  %9145 = vmatprep.mubr.bf16.mxu1 %v9615_v44  ;;  %v9620_v22 = vld [vmem:[#allocation2 + $0x20] sm:$0xff]  }
 0x43a   :  { %v4543_v52 = vpop.permute.xlu0 %4542  ;;  %6044 = vst [vmem:[#allocation2 + $0x10] sm:$0xf] %v9761_v57  ;;  %6045 = vst [vmem:[#allocation2 + $0x14] sm:$0xf] %v9761_v57  ;;  %v11659_v34 = vld [vmem:[#allocation2 + $0x20] sm:$0xff]   ;;  %9154 = vmatpush3.bf16.msra.mxu0 %v11552_v8  ;;  %v9657_v44 = vld [vmem:[%s12197_s2 + $0xd0] sm:$0xff]  }
 0x43b   :  { %v4546_v28 = vsel %vm11639_vm15, %v4543_v52, %v4545_v23  ;;  %6048 = vst [vmem:[#allocation2 + $0x20] sm:$0xf] %v9761_v57  ;;  %6049 = vst [vmem:[#allocation2 + $0x24] sm:$0xf] %v9761_v57  ;;  %9155 = vmatprep.subr.bf16.mxu0 %v9617_v56  ;;  %v9660_v23 = vld [vmem:[%s12197_s2 + $0xc0] sm:$0xff]  }
 0x43c   :  { %4547 = vst [vmem:[#allocation2 + $0x28] sm:$0x7] %v4546_v28 }
 0x43d   :  { %4551 = vst.msk [vmem:[#allocation2 + $0x28] sm:$0x3] %vm4442_vm2, %v4549_v18  ;;  %v4651_v26 = vpop.permute.xlu1 %4650  ;;  %v9652_v18 = vld [vmem:[%s12197_s2 + $0x148] sm:$0xff]  }
 0x43e   :  { %v4654_v4 = vsel %vm11639_vm15, %v4651_v26, %v4653_v43  ;;  %v4579_v51 = vpop.permute.xlu0 %4578  ;;  %v9619_v8 = vld [vmem:[#allocation2 + $0x18] sm:$0xff]   ;;  %9156 = vmatpush3.bf16.msra.mxu0 %v9617_v56  ;;  %v9656_v56 = vld [vmem:[%s12197_s2 + $0x140] sm:$0xff]  }
 0x43f   :  { %v11672_v53 = vld [vmem:[#allocation2 + $0x18] sm:$0xff]   ;;  %4655 = vst [vmem:[#allocation2 + $0x50] sm:$0x7] %v4654_v4  ;;  %v4582_v54 = vsel %vm11639_vm15, %v4579_v51, %v4581_v24  ;;  %9117 = vmatprep.mubr.bf16.mxu0 %v9619_v8  ;;  %9146 = vmatmul.mubr.bf16.gmra.mxu1 %v9619_v8 }
 0x440   :  { %6047 = vst [vmem:[#allocation2 + $0x1c] sm:$0xf] %v9761_v57  ;;  %6046 = vst [vmem:[#allocation2 + $0x18] sm:$0xf] %v9761_v57  ;;  %9149 = vmatprep.mubr.bf16.mxu1 %v9620_v22  ;;  %9157 = vmatprep.subr.bf16.mxu0 %v9621_v5 }
 0x441   :  { %4583 = vst [vmem:[#allocation2 + $0x40] sm:$0x7] %v4582_v54  ;;  %v4657_v38 = vpop.permute.xlu1 %4656  ;;  %9118 = vmatmul.mubr.bf16.gmra.mxu0 %v9620_v22 }
 0x442   :  { %4587 = vst.msk [vmem:[#allocation2 + $0x40] sm:$0x3] %vm4442_vm2, %v4585_v10  ;;  %4659 = vst.msk [vmem:[#allocation2 + $0x50] sm:$0x3] %vm4442_vm2, %v4657_v38  ;;  %v4615_v46 = vpop.permute.xlu0 %4614  ;;  %9158 = vmatpush3.bf16.msra.mxu0 %v9621_v5 }
 0x443   :  { %v4618_v20 = vsel %vm11639_vm15, %v4615_v46, %v4617_v25  ;;  %9159 = vmatprep.subr.bf16.mxu0 %v9623_v62 }
 0x444   :  { %4619 = vst [vmem:[#allocation2 + $0x48] sm:$0x7] %v4618_v20  ;;  %v9624_v0 = vld [vmem:[#allocation2 + $0x28] sm:$0xff]  }
 0x445   :  { %v11688_v36 = vld [vmem:[#allocation2 + $0x28] sm:$0xff]   ;;  %9121 = vmatprep.mubr.bf16.mxu0 %v9624_v0  ;;  %v4693_v6 = vpop.permute.xlu1 %4692 }
 0x446   :  { %v4621_v42 = vpop.permute.xlu0 %4620  ;;  %6051 = vst [vmem:[#allocation2 + $0x2c] sm:$0xf] %v9761_v57  ;;  %6050 = vst [vmem:[#allocation2 + $0x28] sm:$0xf] %v9761_v57  ;;  %9160 = vmatpush3.bf16.msra.mxu0 %v9623_v62 }
 0x447   :  { %4623 = vst.msk [vmem:[#allocation2 + $0x48] sm:$0x3] %vm4442_vm2, %v4621_v42  ;;  %9150 = vmatmul.mubr.bf16.gmra.mxu1 %v9624_v0  ;;  %9161 = vmatprep.subr.bf16.mxu0 %v9626_v63 }
 0x448   :  { %9197 = vmatprep.mubr.bf16.mxu1 %v11625_v58 }
 0x449   :  { %v11697_v16 = vld [vmem:[#allocation2 + $0x40] sm:$0xff]   ;;  %9122 = vmatmul.mubr.bf16.gmra.mxu0 %v11631_v7  ;;  %v9636_v7 = vld [vmem:[%s12197_s2 + $0x170] sm:$0xff]  }
 0x44a   :  { %v9649_v60 = vld [vmem:[#allocation2 + $0x40] sm:$0xff]   ;;  %v4687_v37 = vpop.permute.xlu0 %4686  ;;  %9162 = vmatpush3.bf16.msra.mxu0 %v9626_v63  ;;  %9169 = vmatprep.mubr.bf16.mxu0 %v11655_v19  ;;  %v9658_v10 = vld [vmem:[#allocation2 + $0x50] sm:$0xff]   ;;  %v9664_v19 = vld [vmem:[#allocation2 + $0x68] sm:$0xff]  }
 0x44b   :  { %6056 = vst [vmem:[#allocation2 + $0x40] sm:$0xf] %v9761_v57  ;;  %6057 = vst [vmem:[#allocation2 + $0x44] sm:$0xf] %v9761_v57  ;;  %v4690_v27 = vsel %vm11639_vm15, %v4687_v37, %v4689_v49  ;;  %9163 = vmatprep.subr.bf16.mxu0 %v9630_v31  ;;  %vm6097_vm15 = vcmask 778752  }
 0x44c   :  { %4691 = vst [vmem:[#allocation2 + $0x58] sm:$0x7] %v4690_v27 }
 0x44d   :  { %4695 = vst.msk [vmem:[#allocation2 + $0x58] sm:$0x3] %vm4442_vm2, %v4693_v6  ;;  %vm12246_vm2 = vmmov 0  }
 0x44e   :  { %v11712_v12 = vld [vmem:[#allocation2 + $0x48] sm:$0xff]   ;;  %9164 = vmatpush3.bf16.msra.mxu0 %v9630_v31 }
 0x44f   :  { %v11714_v33 = vld [vmem:[#allocation2 + $0x48] sm:$0xff]   ;;  %9198 = vmatmul.mubr.bf16.vlgmr.msra.gmra.mxu1 %v11697_v16  ;;  %9165 = vmatprep.subr.bf16.mxu0 %v9634_v40 }
 0x450   :  { %6059 = vst [vmem:[#allocation2 + $0x4c] sm:$0xf] %v9761_v57  ;;  %6058 = vst [vmem:[#allocation2 + $0x48] sm:$0xf] %v9761_v57  ;;  %9238 = vmatpush3.bf16.msra.mxu1 %v11622_v35  ;;  %9201 = vmatprep.mubr.bf16.mxu1 %v11712_v12  ;;  %v9641_v57 = vld [vmem:[%s12197_s2 + $0xf8] sm:$0xff]   ;;  %v11733_v35 = vld [vmem:[#allocation2 + $0x50] sm:$0xff]  }
 0x451   :  { %9239 = vmatprep.subr.bf16.mxu1 %v9636_v7 }
 0x452   :  { %9166 = vmatpush3.bf16.msra.mxu0 %v9634_v40  ;;  %v9143_v52 = vpop.f32.mrf.mxu1  ;;  %v9665_v40 = vld [vmem:[%s12197_s2 + $0x1b8] sm:$0xff]  }
 0x453   :  { %9167 = vmatprep.subr.bf16.mxu0 %v9637_v47 }
 0x454   :  { %9240 = vmatpush3.bf16.msra.mxu1 %v9636_v7  ;;  %v9640_v55 = vld [vmem:[#allocation2 + $0x58] sm:$0xff]   ;;  %v4997_v22 = vpop.f32.mrf.mxu1  ;;  %v9666_v7 = vld [vmem:[%s12197_s2 + $0x1b0] sm:$0xff]  }
 0x455   :  { %9241 = vmatprep.subr.bf16.mxu1 %v9638_v13 }
 0x456   :  { %9168 = vmatpush3.bf16.msra.mxu0 %v9637_v47  ;;  %v11780_v28 = vpop.f32.mrf.mxu1  ;;  %v9670_v47 = vld [vmem:[%s12197_s2 + $0x1f8] sm:$0xff]  }
 0x457   :  { %9202 = vmatmul.mubr.bf16.gmra.mxu1 %v11733_v35  ;;  %9209 = vmatprep.subr.bf16.mxu0 %v9641_v57 }
 0x458   :  { %9242 = vmatpush3.bf16.msra.mxu1 %v9638_v13  ;;  %9205 = vmatprep.mubr.bf16.mxu1 %v9640_v55  ;;  %v5000_v26 = vpop.f32.mrf.mxu1 }
 0x459   :  { %9170 = vmatmul.mubr.bf16.vlgmr.msra.gmra.mxu0 %v11672_v53  ;;  %9243 = vmatprep.subr.bf16.mxu1 %v9643_v45 }
 0x45a   :  { %9173 = vmatprep.mubr.bf16.mxu0 %v11659_v34  ;;  %9210 = vmatpush3.bf16.msra.mxu0 %v9641_v57  ;;  %v9672_v57 = vld [vmem:[%s12197_s2 + $0x1f0] sm:$0xff]  }
 0x45b   :  { %9211 = vmatprep.subr.bf16.mxu0 %v9644_v59 }
 0x45c   :  { %9244 = vmatpush3.bf16.msra.mxu1 %v9643_v45 }
 0x45d   :  { %9245 = vmatprep.subr.bf16.mxu1 %v9645_v21 }
 0x45e   :  { %9212 = vmatpush3.bf16.msra.mxu0 %v9644_v59  ;;  %v9677_v59 = vld [vmem:[#allocation2] sm:$0xff]  }
 0x45f   :  { %9206 = vmatmul.mubr.bf16.gmra.mxu1 %v9646_v9  ;;  %9213 = vmatprep.subr.bf16.mxu0 %v9648_v1 }
 0x460   :  { %9246 = vmatpush3.bf16.msra.mxu1 %v9645_v21  ;;  %9253 = vmatprep.mubr.bf16.mxu1 %v9649_v60  ;;  %v11837_v21 = vld [vmem:[#allocation2 + $0x8] sm:$0xff]  }
 0x461   :  { %9174 = vmatmul.mubr.bf16.gmra.mxu0 %v11688_v36  ;;  %9247 = vmatprep.subr.bf16.mxu1 %v9650_v61 }
 0x462   :  { %9214 = vmatpush3.bf16.msra.mxu0 %v9648_v1  ;;  %9177 = vmatprep.mubr.bf16.mxu0 %v11633_v50  ;;  %v9659_v50 = vld [vmem:[%s12197_s2 + $0xc8] sm:$0xff]  }
 0x463   :  { %9215 = vmatprep.subr.bf16.mxu0 %v9651_v11 }
 0x464   :  { %9248 = vmatpush3.bf16.msra.mxu1 %v9650_v61 }
 0x465   :  { %9249 = vmatprep.subr.bf16.mxu1 %v9652_v18 }
 0x466   :  { %9216 = vmatpush3.bf16.msra.mxu0 %v9651_v11  ;;  %v9674_v11 = vld [vmem:[%s12197_s2 + $0x1e8] sm:$0xff]  }
 0x467   :  { %9217 = vmatprep.subr.bf16.mxu0 %v9655_v48 }
 0x468   :  { %9250 = vmatpush3.bf16.msra.mxu1 %v9652_v18 }
 0x469   :  { %9178 = vmatmul.mubr.bf16.gmra.mxu0 %v11627_v32  ;;  %9251 = vmatprep.subr.bf16.mxu1 %v9656_v56  ;;  %v9663_v32 = vld [vmem:[#allocation2 + $0x60] sm:$0xff]  }
 0x46a   :  { %9218 = vmatpush3.bf16.msra.mxu0 %v9655_v48  ;;  %9225 = vmatprep.mubr.bf16.mxu0 %v11635_v17  ;;  %v9661_v17 = vld [vmem:[#allocation2 + $0x58] sm:$0xff]  }
 0x46b   :  { %9219 = vmatprep.subr.bf16.mxu0 %v9657_v44 }
 0x46c   :  { %9252 = vmatpush3.bf16.msra.mxu1 %v9656_v56 }
 0x46d   :  { %9289 = vmatprep.subr.bf16.mxu1 %v9665_v40 }
 0x46e   :  { %9220 = vmatpush3.bf16.msra.mxu0 %v9657_v44 }
 0x46f   :  { %9254 = vmatmul.mubr.bf16.vlgmr.msra.gmra.mxu1 %v11714_v33  ;;  %9221 = vmatprep.subr.bf16.mxu0 %v9659_v50 }
 0x470   :  { %9257 = vmatprep.mubr.bf16.mxu1 %v9658_v10  ;;  %9290 = vmatpush3.bf16.msra.mxu1 %v9665_v40 }
 0x471   :  { %9291 = vmatprep.subr.bf16.mxu1 %v9666_v7 }
 0x472   :  { %9222 = vmatpush3.bf16.msra.mxu0 %v9659_v50 }
 0x473   :  { %9223 = vmatprep.subr.bf16.mxu0 %v9660_v23 }
 0x474   :  { %9292 = vmatpush3.bf16.msra.mxu1 %v9666_v7 }
 0x476   :  { %9224 = vmatpush3.bf16.msra.mxu0 %v9660_v23  ;;  %v9668_v23 = vld [vmem:[%s12197_s2 + $0x1a0] sm:$0xff]  }
 0x477   :  { %9258 = vmatmul.mubr.bf16.gmra.mxu1 %v9661_v17  ;;  %9265 = vmatprep.subr.bf16.mxu0 %v9670_v47 }
 0x478   :  { %9261 = vmatprep.mubr.bf16.mxu1 %v9663_v32 }
 0x479   :  { %9226 = vmatmul.mubr.bf16.vlgmr.msra.gmra.mxu0 %v11625_v58 }
 0x47a   :  { %9229 = vmatprep.mubr.bf16.mxu0 %v11697_v16  ;;  %9266 = vmatpush3.bf16.msra.mxu0 %v9670_v47 }
 0x47b   :  { %9267 = vmatprep.subr.bf16.mxu0 %v9672_v57 }
 0x47e   :  { %9268 = vmatpush3.bf16.msra.mxu0 %v9672_v57 }
 0x47f   :  { %9262 = vmatmul.mubr.bf16.gmra.mxu1 %v9664_v19  ;;  %9269 = vmatprep.subr.bf16.mxu0 %v9674_v11  ;;  %v9676_v19 = vld [vmem:[%s12197_s2 + $0x1e0] sm:$0xff]  }
 0x480   :  { %9305 = vmatprep.mubr.bf16.mxu1 %v9677_v59 }
 0x481   :  { %9230 = vmatmul.mubr.bf16.gmra.mxu0 %v11712_v12 }
 0x482   :  { %9233 = vmatprep.mubr.bf16.mxu0 %v11733_v35  ;;  %9270 = vmatpush3.bf16.msra.mxu0 %v9674_v11 }
 0x483   :  { %9271 = vmatprep.subr.bf16.mxu0 %v9676_v19 }
 0x486   :  { %9272 = vmatpush3.bf16.msra.mxu0 %v9676_v19 }
 0x489   :  { %9234 = vmatmul.mubr.bf16.gmra.mxu0 %v9640_v55  ;;  %v9667_v55 = vld [vmem:[%s12197_s2 + $0x1a8] sm:$0xff]  }
 0x48a   :  { %9281 = vmatprep.mubr.bf16.mxu0 %v11837_v21  ;;  %9293 = vmatprep.subr.bf16.mxu1 %v9667_v55 }
 0x48b   :  { %9294 = vmatpush3.bf16.msra.mxu1 %v9667_v55 }
 0x48c   :  { %9295 = vmatprep.subr.bf16.mxu1 %v9668_v23 }
 0x48f   :  { %9296 = vmatpush3.bf16.msra.mxu1 %v9668_v23 }
 0x4f9   :  { %v9115_v34 = vpop.f32.mrf.mxu0 }
 0x4fa   :  { %v5006_v6 = vadd.f32 %v9143_v52, %v9115_v34 }
 0x4fb   :  { %v4862_v43 = vpop.f32.mrf.mxu0 }
 0x4fc   :  { %v4998_v9 = vadd.f32 %v4997_v22, %v4862_v43 }
 0x4fd   :  { %v11782_v24 = vpop.f32.mrf.mxu0 }
 0x4ff   :  { %v4865_v5 = vpop.f32.mrf.mxu0  ;;  %v9147_v58 = vpop.f32.mrf.mxu1 }
 0x500   :  { %v5001_v18 = vadd.f32 %v5000_v26, %v4865_v5 }
 0x501   :  { %v9119_v4 = vpop.f32.mrf.mxu0  ;;  %v5013_v51 = vpop.f32.mrf.mxu1 }
 0x502   :  { %v5022_v50 = vadd.f32 %v9147_v58, %v9119_v4 }
 0x503   :  { %v4878_v8 = vpop.f32.mrf.mxu0  ;;  %v11784_v53 = vpop.f32.mrf.mxu1 }
 0x504   :  { %v5014_v52 = vadd.f32 %v5013_v51, %v4878_v8  ;;  %v9669_v51 = vld [vmem:[%s12197_s2 + $0x198] sm:$0xff]   ;;  %v5009_v8 = vadd.f32 %v11780_v28, %v11782_v24  ;;  %v9671_v28 = vld [vmem:[%s12197_s2 + $0x190] sm:$0xff]  }
 0x505   :  { %v11786_v54 = vpop.f32.mrf.mxu0  ;;  %v11788_v62 = vpop.f32.mrf.mxu1  ;;  %9297 = vmatprep.subr.bf16.mxu1 %v9669_v51 }
 0x506   :  { %9298 = vmatpush3.bf16.msra.mxu1 %v9669_v51 }
 0x507   :  { %v11790_v38 = vpop.f32.mrf.mxu0  ;;  %v11792_v25 = vpop.f32.mrf.mxu1  ;;  %9299 = vmatprep.subr.bf16.mxu1 %v9671_v28 }
 0x509   :  { %v11794_v46 = vpop.f32.mrf.mxu1  ;;  %v11796_v63 = vpop.f32.mrf.mxu0 }
 0x50a   :  { %9300 = vmatpush3.bf16.msra.mxu1 %v9671_v28 }
 0x50b   :  { %v11798_v20 = vpop.f32.mrf.mxu1  ;;  %v11802_v36 = vpop.f32.mrf.mxu0 }
 0x50d   :  { %v11800_v0 = vpop.f32.mrf.mxu1  ;;  %v11808_v16 = vpop.f32.mrf.mxu0 }
 0x50f   :  { %v11804_v42 = vpop.f32.mrf.mxu1  ;;  %v11814_v37 = vpop.f32.mrf.mxu0 }
 0x511   :  { %v11806_v31 = vpop.f32.mrf.mxu1 }
 0x513   :  { %v11810_v60 = vpop.f32.mrf.mxu1 }
 0x515   :  { %v11812_v49 = vpop.f32.mrf.mxu1 }
 0x517   :  { %v11816_v27 = vpop.f32.mrf.mxu1 }
 0x519   :  { %v9171_v12 = vpop.f32.mrf.mxu0  ;;  %v11824_v33 = vpop.f32.mrf.mxu1 }
 0x51a   :  { %v5240_v13 = vadd.f32 %v9171_v12, %v5006_v6 }
 0x51b   :  { %v5191_v45 = vpop.f32.mrf.mxu0  ;;  %v11832_v35 = vpop.f32.mrf.mxu1 }
 0x51c   :  { %5400 = vst [vmem:[#allocation3 + $0x10] sm:$0xff] %v5240_v13  ;;  %v5238_v48 = vadd.f32 %v5191_v45, %v4998_v9  ;;  %v11864_v58 = vsel %vm11853_vm4, %v5240_v13, 0.0  ;;  %v5017_v9 = vadd.f32 %v11788_v62, %v11790_v38  ;;  %v9675_v38 = vld [vmem:[%s12197_s2 + $0x180] sm:$0xff]  }
 0x51d   :  { %v9172_v1 = vpop.f32.mrf.mxu0  ;;  %v11839_v61 = vpop.f32.mrf.mxu1  ;;  %v5370_v7 = vmul.f32 %v11864_v58, %v5240_v13  ;;  %v5030_v13 = vadd.f32 %v11794_v46, %v11802_v36 }
 0x51e   :  { %v5368_v43 = vmul.f32 0.0, %v5238_v48  ;;  %v5241_v12 = vadd.f32 %v9172_v1, %v5009_v8 }
 0x51f   :  { %v5194_v56 = vpop.f32.mrf.mxu0  ;;  %v11846_v44 = vpop.f32.mrf.mxu1 }
 0x520   :  { %v5239_v10 = vadd.f32 %v5194_v56, %v5001_v18  ;;  %v5371_v1 = vmul.f32 0.0, %v5241_v12  ;;  %v9673_v56 = vld [vmem:[%s12197_s2 + $0x188] sm:$0xff]  }
 0x521   :  { %v9175_v17 = vpop.f32.mrf.mxu0  ;;  %v11860_v5 = vpop.f32.mrf.mxu1  ;;  %9301 = vmatprep.subr.bf16.mxu1 %v9673_v56 }
 0x522   :  { %v5369_v22 = vmul.f32 0.0, %v5239_v10  ;;  %v5244_v34 = vadd.f32 %v9175_v17, %v5022_v50  ;;  %9302 = vmatpush3.bf16.msra.mxu1 %v9673_v56 }
 0x523   :  { %v5207_v26 = vpop.f32.mrf.mxu0  ;;  %v11879_v45 = vpop.f32.mrf.mxu1  ;;  %9303 = vmatprep.subr.bf16.mxu1 %v9675_v38 }
 0x524   :  { %5404 = vst [vmem:[#allocation3 + $0x30] sm:$0xff] %v5244_v34  ;;  %v5242_v4 = vadd.f32 %v5207_v26, %v5014_v52  ;;  %v5380_v6 = vadd.f32 %v5369_v22, %v5368_v43  ;;  %v5344_v52 = vsel %vm5308_vm8, %v5244_v34, 0.0  ;;  %v9678_v43 = vld [vmem:[%s12197_s2 + $0x1f8] sm:$0xff]   ;;  %v5025_v26 = vadd.f32 %v11784_v53, %v11786_v54 }
 0x525   :  { %v9176_v40 = vpop.f32.mrf.mxu0  ;;  %v11892_v18 = vpop.f32.mrf.mxu1  ;;  %v5374_v8 = vmul.f32 %v5344_v52, %v5244_v34  ;;  %v5033_v34 = vadd.f32 %v11800_v0, %v11814_v37  ;;  %v5038_v0 = vadd.f32 %v11792_v25, %v11796_v63  ;;  %v5041_v63 = vadd.f32 %v11798_v20, %v11808_v16 }
 0x526   :  { %5402 = vst [vmem:[#allocation3 + $0x20] sm:$0xff] %v5242_v4  ;;  %v5381_v24 = vadd.f32 %v5380_v6, %v5370_v7  ;;  %v5342_v59 = vsel %vm11875_vm6, %v5242_v4, 0.0  ;;  %v5245_v6 = vadd.f32 %v9176_v40, %v5025_v26  ;;  %9304 = vmatpush3.bf16.msra.mxu1 %v9675_v38 }
 0x527   :  { %v5210_v57 = vpop.f32.mrf.mxu0  ;;  %v5372_v50 = vmul.f32 %v5342_v59, %v5242_v4  ;;  %9337 = vmatprep.subr.bf16.mxu1 %v9678_v43  ;;  %v5353_v37 = vadd.f32 %v5342_v59, %v11864_v58 }
 0x528   :  { %v5243_v10 = vadd.f32 %v5210_v57, %v5017_v9  ;;  %v5382_v46 = vadd.f32 %v5381_v24, %v5371_v1  ;;  %v5375_v40 = vmul.f32 0.0, %v5245_v6 }
 0x529   :  { %v11884_v55 = vpop.f32.mrf.mxu0  ;;  %9306 = vmatmul.mubr.bf16.vlgmr.msra.gmra.mxu1 %v11837_v21  ;;  %v5355_v58 = vadd.f32 %v5353_v37, %v5344_v52 }
 0x52a   :  { %v5373_v23 = vmul.f32 0.0, %v5243_v10  ;;  %v5383_v17 = vadd.f32 %v5382_v46, %v5372_v50  ;;  %9338 = vmatpush3.bf16.msra.mxu1 %v9678_v43 }
 0x52b   :  { %v5223_v11 = vpop.f32.mrf.mxu0 }
 0x52c   :  { %v5246_v48 = vadd.f32 %v5223_v11, %v5030_v13  ;;  %v5384_v4 = vadd.f32 %v5383_v17, %v5373_v23  ;;  %v5248_v17 = vadd.f32 %v11884_v55, %v5038_v0 }
 0x52d   :  { %v11910_v30 = vpop.f32.mrf.mxu0 }
 0x52e   :  { %5406 = vst [vmem:[#allocation3 + $0x40] sm:$0xff] %v5246_v48  ;;  %v5385_v7 = vadd.f32 %v5384_v4, %v5374_v8  ;;  %v5346_v53 = vsel %vm5310_vm0, %v5246_v48, 0.0 }
 0x52f   :  { %v9255_v62 = vpop.f32.mrf.mxu1  ;;  %v5226_v39 = vpop.f32.mrf.mxu0  ;;  %v5376_v9 = vmul.f32 %v5346_v53, %v5246_v48 }
 0x530   :  { %v5247_v1 = vadd.f32 %v5226_v39, %v5033_v34  ;;  %v5386_v11 = vadd.f32 %v5385_v7, %v5375_v40  ;;  %v5378_v39 = vmul.f32 0.0, %v5248_v17  ;;  %v5357_v7 = vadd.f32 %v5355_v58, %v5346_v53 }
 0x531   :  { %v5902_v41 = vpop.f32.mrf.mxu1 }
 0x532   :  { %v5387_v38 = vadd.f32 %v5386_v11, %v5376_v9 }
 0x533   :  { %v9256_v19 = vpop.f32.mrf.mxu1 }
 0x535   :  { %v5905_v51 = vpop.f32.mrf.mxu1 }
 0x537   :  { %v9259_v3 = vpop.f32.mrf.mxu1 }
 0x539   :  { %v9227_v12 = vpop.f32.mrf.mxu0  ;;  %v5918_v57 = vpop.f32.mrf.mxu1 }
 0x53a   :  { %v5718_v54 = vadd.f32 %v9227_v12, %v11804_v42  ;;  %v5249_v12 = vadd.f32 %v11910_v30, %v5041_v63  ;;  %v5361_v30 = vrot.slane %v5357_v7, 4 }
 0x53b   :  { %v5709_v28 = vpop.f32.mrf.mxu0  ;;  %v9260_v50 = vpop.f32.mrf.mxu1 }
 0x53c   :  { %v5951_v24 = vadd.f32 %v9255_v62, %v5718_v54  ;;  %v5710_v13 = vadd.f32 %v5709_v28, %v11806_v31  ;;  %v5377_v62 = vmul.f32 0.0, %v5247_v1  ;;  %v5362_v36 = vadd.f32 %v5361_v30, %v5357_v7 }
 0x53d   :  { %v9228_v56 = vpop.f32.mrf.mxu0 }
 0x53e   :  { %6023 = vst [vmem:[#allocation3 + $0x70] sm:$0xff] %v5951_v24  ;;  %v5721_v42 = vadd.f32 %v9228_v56, %v11810_v60  ;;  %v5949_v21 = vadd.f32 %v5902_v41, %v5710_v13  ;;  %v5963_v60 = vsel %vm11853_vm4, %v5951_v24, 0.0  ;;  %v5921_v41 = vpop.f32.mrf.mxu1  ;;  %v5388_v59 = vadd.f32 %v5387_v38, %v5377_v62  ;;  %vm12160_vm4 = vmand %vm2425_vm10, %vm6699_vm3 }
 0x53f   :  { %v5712_v10 = vpop.f32.mrf.mxu0  ;;  %v5993_v6 = vmul.f32 %v5963_v60, %v5951_v24  ;;  %v5379_v13 = vmul.f32 0.0, %v5249_v12 }
 0x540   :  { %v5713_v46 = vadd.f32 %v5712_v10, %v11812_v49  ;;  %v5952_v43 = vadd.f32 %v9256_v19, %v5721_v42  ;;  %v5991_v49 = vmul.f32 0.0, %v5949_v21  ;;  %v5389_v34 = vadd.f32 %v5388_v59, %v5378_v39 }
 0x541   :  { %v9231_v31 = vpop.f32.mrf.mxu0 }
 0x542   :  { %v5950_v48 = vadd.f32 %v5905_v51, %v5713_v46  ;;  %v5734_v23 = vadd.f32 %v9231_v31, %v11816_v27  ;;  %v9263_v27 = vpop.f32.mrf.mxu1  ;;  %v5390_v42 = vadd.f32 %v5389_v34, %v5379_v13 }
 0x543   :  { %v5725_v26 = vpop.f32.mrf.mxu0 }
 0x544   :  { %v5992_v4 = vmul.f32 0.0, %v5950_v48  ;;  %v5955_v8 = vadd.f32 %v9259_v3, %v5734_v23  ;;  %v5726_v25 = vadd.f32 %v5725_v26, %v11824_v33  ;;  %v5994_v3 = vmul.f32 0.0, %v5952_v43  ;;  %v5934_v28 = vpop.f32.mrf.mxu1 }
 0x545   :  { %v9232_v51 = vpop.f32.mrf.mxu0 }
 0x546   :  { %v6003_v55 = vadd.f32 %v5992_v4, %v5991_v49  ;;  %6027 = vst [vmem:[#allocation3 + $0x90] sm:$0xff] %v5955_v8  ;;  %v5953_v32 = vadd.f32 %v5918_v57, %v5726_v25  ;;  %v5737_v19 = vadd.f32 %v9232_v51, %v11832_v35  ;;  %v5967_v47 = vsel %vm5308_vm8, %v5955_v8, 0.0  ;;  %v9264_v10 = vpop.f32.mrf.mxu1 }
 0x547   :  { %v5728_v54 = vpop.f32.mrf.mxu0  ;;  %v5363_v4 = vrot.slane %v5362_v36, 2 }
 0x548   :  { %v6004_v33 = vadd.f32 %v6003_v55, %v5993_v6  ;;  %v5965_v20 = vsel %vm11875_vm6, %v5953_v32, 0.0  ;;  %6025 = vst [vmem:[#allocation3 + $0x80] sm:$0xff] %v5953_v32  ;;  %v5956_v16 = vadd.f32 %v9260_v50, %v5737_v19  ;;  %v5729_v52 = vadd.f32 %v5728_v54, %v11839_v61  ;;  %v5937_v43 = vpop.f32.mrf.mxu1  ;;  %vm12171_vm6 = vmand %vm2427_vm12, %vm6701_vm5 }
 0x549   :  { %v5995_v40 = vmul.f32 %v5965_v20, %v5953_v32  ;;  %v9235_v57 = vpop.f32.mrf.mxu0  ;;  %v5976_v9 = vadd.f32 %v5965_v20, %v5963_v60  ;;  %v5364_v51 = vadd.f32 %v5363_v4, %v5362_v36  ;;  %v6133_v36 = vld [vmem:[#allocation3 + $0x71] ss:$2 sm:$0x3] }
 0x54a   :  { %6028 = vst [vmem:[#allocation3 + $0x98] sm:$0xff] %v5956_v16  ;;  %v5954_v35 = vadd.f32 %v5921_v41, %v5729_v52  ;;  %v6005_v24 = vadd.f32 %v6004_v33, %v5994_v3  ;;  %v5750_v53 = vadd.f32 %v9235_v57, %v11846_v44  ;;  %v5997_v44 = vmul.f32 %v5967_v47, %v5955_v8 }
 0x54b   :  { %v5741_v1 = vpop.f32.mrf.mxu0  ;;  %v5998_v37 = vmul.f32 0.0, %v5956_v16  ;;  %v5978_v62 = vadd.f32 %v5976_v9, %v5967_v47  ;;  %v5391_v41 = vrot.slane %v5390_v42, 4  ;;  %v5365_v39 = vrot.slane %v5364_v51, 1 }
 0x54c   :  { %v5996_v61 = vmul.f32 0.0, %v5954_v35  ;;  %v6006_v11 = vadd.f32 %v6005_v24, %v5995_v40  ;;  %6026 = vst [vmem:[#allocation3 + $0x88] sm:$0xff] %v5954_v35  ;;  %v5959_v56 = vadd.f32 %v9263_v27, %v5750_v53  ;;  %v5742_v50 = vadd.f32 %v5741_v1, %v11860_v5  ;;  %v6062_v1 = vld [vmem:[#allocation3 + $0x21] ss:$2 sm:$0x3] }
 0x54d   :  { %v9236_v21 = vpop.f32.mrf.mxu0  ;;  %v5392_v22 = vadd.f32 %v5391_v41, %v5390_v42  ;;  %v5366_v33 = vadd.f32 %v5365_v39, %v5364_v51  ;;  %v6061_v42 = vld [vmem:[#allocation3 + $0x12] ss:$2 sm:$0x3] }
 0x54e   :  { %v6007_v46 = vadd.f32 %v6006_v11, %v5996_v61  ;;  %6031 = vst [vmem:[#allocation3 + $0xb0] sm:$0xff] %v5959_v56  ;;  %v5957_v0 = vadd.f32 %v5934_v28, %v5742_v50  ;;  %v5753_v15 = vadd.f32 %v9236_v21, %v11879_v45  ;;  %v6001_v63 = vmul.f32 0.0, %v5959_v56  ;;  %v6063_v61 = vld [vmem:[#allocation3 + $0x22] ss:$2 sm:$0x3]  ;;  %v9685_v39 = vld [vmem:[%s12197_s2 + $0x1e0] sm:$0xff]  }
 0x54f   :  { %v5744_v38 = vpop.f32.mrf.mxu0  ;;  %v5393_v55 = vrot.slane %v5392_v22, 2  ;;  %v6101_v11 = vld [vmem:[#allocation3 + $0x41] ss:$2 sm:$0x3] }
 0x550   :  { %v6008_v31 = vadd.f32 %v6007_v46, %v5997_v44  ;;  %v5969_v5 = vsel %vm5310_vm0, %v5957_v0, 0.0  ;;  %6029 = vst [vmem:[#allocation3 + $0xa0] sm:$0xff] %v5957_v0  ;;  %v5960_v48 = vadd.f32 %v9264_v10, %v5753_v15  ;;  %v5745_v23 = vadd.f32 %v5744_v38, %v11892_v18  ;;  %v6102_v56 = vld [vmem:[#allocation3 + $0x42] ss:$2 sm:$0x3] }
 0x551   :  { %v5980_v17 = vadd.f32 %v5978_v62, %v5969_v5  ;;  %v5999_v60 = vmul.f32 %v5969_v5, %v5957_v0  ;;  %v5394_v12 = vadd.f32 %v5393_v55, %v5392_v22  ;;  %v6060_v50 = vld [vmem:[#allocation3 + $0x11] ss:$2 sm:$0x3]  ;;  %v6135_v10 = vld [vmem:[#allocation3 + $0x81] ss:$2 sm:$0x3]  ;;  %v6065_v62 = vmax.f32 %v6062_v1, %v6063_v61 }
 0x552   :  { %6032 = vst [vmem:[#allocation3 + $0xb8] sm:$0xff] %v5960_v48  ;;  %v5958_v45 = vadd.f32 %v5937_v43, %v5745_v23  ;;  %v6009_v26 = vadd.f32 %v6008_v31, %v5998_v37  ;;  %v6002_v27 = vmul.f32 0.0, %v5960_v48  ;;  %v6136_v21 = vld [vmem:[#allocation3 + $0x82] ss:$2 sm:$0x3]  ;;  %v6104_v5 = vmax.f32 %v6101_v11, %v6102_v56  ;;  %v9683_v22 = vld [vmem:[%s12197_s2 + $0x1e8] sm:$0xff]  }
 0x553   :  { %v5984_v49 = vrot.slane %v5980_v17, 4  ;;  %v5395_v16 = vrot.slane %v5394_v12, 1  ;;  %v6099_v44 = vld [vmem:[#allocation3 + $0x31] ss:$2 sm:$0x3]  ;;  %v6138_v48 = vmax.f32 %v6135_v10, %v6136_v21  ;;  %v6064_v43 = vmax.f32 %v6060_v50, %v6061_v42  ;;  %v9689_v1 = vld [vmem:[%s12197_s2 + $0x1d0] sm:$0xff]  }
 0x554   :  { %v6000_v8 = vmul.f32 0.0, %v5958_v45  ;;  %v6010_v25 = vadd.f32 %v6009_v26, %v5999_v60  ;;  %6030 = vst [vmem:[#allocation3 + $0xa8] sm:$0xff] %v5958_v45  ;;  %v6100_v46 = vld [vmem:[#allocation3 + $0x32] ss:$2 sm:$0x3]  ;;  %v9681_v60 = vld [vmem:[%s12197_s2 + $0x1f0] sm:$0xff]  }
 0x555   :  { %v5985_v2 = vadd.f32 %v5984_v49, %v5980_v17  ;;  %v5396_v28 = vadd.f32 %v5395_v16, %v5394_v12  ;;  %v6134_v37 = vld [vmem:[#allocation3 + $0x72] ss:$2 sm:$0x3]  ;;  %v6167_v38 = vld [vmem:[#allocation3 + $0x91] ss:$2 sm:$0x3]  ;;  %v6103_v41 = vmax.f32 %v6099_v44, %v6100_v46  ;;  %9339 = vmatprep.subr.bf16.mxu1 %v9681_v60  ;;  %v6066_v49 = vmax.f32 %v6064_v43, %v6065_v62 }
 0x556   :  { %v6011_v58 = vadd.f32 %v6010_v25, %v6000_v8  ;;  %v6169_v31 = vld [vmem:[#allocation3 + $0x92] ss:$2 sm:$0x3]  ;;  %v9680_v17 = vld [vmem:[%s12197_s2 + $0x1d8] sm:$0xff]   ;;  %v6137_v45 = vmax.f32 %v6133_v36, %v6134_v37  ;;  %9340 = vmatpush3.bf16.msra.mxu1 %v9681_v60  ;;  %v9692_v42 = vld [vmem:[%s12197_s2 + $0x1c8] sm:$0xff]  }
 0x557   :  { %v5986_v59 = vrot.slane %v5985_v2, 2  ;;  %v6170_v0 = vld [vmem:[#allocation3 + $0xa1] ss:$2 sm:$0x3]  ;;  %v6173_v26 = vmax.f32 %v6167_v38, %v6169_v31  ;;  %9273 = vmatprep.subr.bf16.mxu0 %v9680_v17  ;;  %v6105_v4 = vmax.f32 %v6103_v41, %v6104_v5  ;;  %9341 = vmatprep.subr.bf16.mxu1 %v9683_v22  ;;  %v9700_v62 = vld [vmem:[%s12197_s2 + $0x238] sm:$0xff]  }
 0x558   :  { %v6012_v18 = vadd.f32 %v6011_v58, %v6001_v63  ;;  %v6172_v15 = vld [vmem:[#allocation3 + $0xa2] ss:$2 sm:$0x3]  ;;  %9274 = vmatpush3.bf16.msra.mxu0 %v9680_v17  ;;  %v6139_v8 = vmax.f32 %v6137_v45, %v6138_v48 }
 0x559   :  { %v5987_v6 = vadd.f32 %v5986_v59, %v5985_v2  ;;  %v6174_v23 = vmax.f32 %v6170_v0, %v6172_v15  ;;  %v9682_v2 = vld [vmem:[%s12197_s2 + $0x1d0] sm:$0xff]   ;;  %v9695_v0 = vld [vmem:[%s12197_s2 + $0x1c0] sm:$0xff]  }
 0x55a   :  { %v6013_v32 = vadd.f32 %v6012_v18, %v6002_v27  ;;  %9275 = vmatprep.subr.bf16.mxu0 %v9682_v2  ;;  %9342 = vmatpush3.bf16.msra.mxu1 %v9683_v22  ;;  %v9732_v5 = vld [vmem:[%s12198_s3 + $0x30] sm:$0xff]  }
 0x55b   :  { %v5988_v19 = vrot.slane %v5987_v6, 1  ;;  %v6175_v25 = vmax.f32 %v6173_v26, %v6174_v23  ;;  %9343 = vmatprep.subr.bf16.mxu1 %v9685_v39 }
 0x55c   :  { %v6014_v7 = vrot.slane %v6013_v32, 4  ;;  %9276 = vmatpush3.bf16.msra.mxu0 %v9682_v2 }
 0x55d   :  { %v5989_v3 = vadd.f32 %v5988_v19, %v5987_v6  ;;  %v9684_v19 = vld [vmem:[%s12197_s2 + $0x1c8] sm:$0xff]  }
 0x55e   :  { %v6015_v54 = vadd.f32 %v6014_v7, %v6013_v32  ;;  %9277 = vmatprep.subr.bf16.mxu0 %v9684_v19  ;;  %9344 = vmatpush3.bf16.msra.mxu1 %v9685_v39  ;;  %v9703_v39 = vld [vmem:[%s12197_s2 + $0x218] sm:$0xff]  }
 0x55f   :  { %v5990_v52 = vadd.f32 %v5989_v3, %v5366_v33 }
 0x560   :  { %v6016_v20 = vrot.slane %v6015_v54, 2  ;;  %9278 = vmatpush3.bf16.msra.mxu0 %v9684_v19 }
 0x561   :  { %v6033_v57 = vmul.f32 0.03125, %v5990_v52 }
 0x562   :  { %v6017_v34 = vadd.f32 %v6016_v20, %v6015_v54 }
 0x563   :  { %v6035_v30 = vmul.f32 %v6033_v57, %v6033_v57  ;;  %v6067_v63 = vsub.f32 %v6066_v49, %v6033_v57  ;;  %v6106_v58 = vsub.f32 %v6105_v4, %v6033_v57  ;;  %v6140_v59 = vsub.f32 %v6139_v8, %v6033_v57 }
 0x564   :  { %v6018_v40 = vrot.slane %v6017_v34, 1  ;;  %v6176_v51 = vsub.f32 %v6175_v25, %v6033_v57  ;;  %v9691_v25 = vld [vmem:[%s12197_s2 + $0x230] sm:$0xff]  }
 0x566   :  { %v6019_v35 = vadd.f32 %v6018_v40, %v6017_v34  ;;  %v9686_v34 = vld [vmem:[%s12197_s2 + $0x1c0] sm:$0xff]   ;;  %v9687_v40 = vld [vmem:[%s12197_s2 + $0x1d8] sm:$0xff]  }
 0x567   :  { %9279 = vmatprep.subr.bf16.mxu0 %v9686_v34  ;;  %9345 = vmatprep.subr.bf16.mxu1 %v9687_v40 }
 0x568   :  { %v6020_v24 = vadd.f32 %v6019_v35, %v5396_v28  ;;  %9280 = vmatpush3.bf16.msra.mxu0 %v9686_v34  ;;  %9346 = vmatpush3.bf16.msra.mxu1 %v9687_v40  ;;  %v9711_v34 = vld [vmem:[%s12197_s2 + $0x200] sm:$0xff]   ;;  %v9712_v40 = vld [vmem:[%s12197_s2 + $0x218] sm:$0xff]  }
 0x569   :  { %9347 = vmatprep.subr.bf16.mxu1 %v9689_v1 }
 0x56a   :  { %v6034_v53 = vmul.f32 0.03125, %v6020_v24 }
 0x56c   :  { %v6036_v13 = vsub.f32 %v6034_v53, %v6035_v30  ;;  %9348 = vmatpush3.bf16.msra.mxu1 %v9689_v1  ;;  %v9722_v1 = vld [vmem:[%s12197_s2 + $0x1a0] sm:$0xff]  }
 0x56d   :  { %9349 = vmatprep.subr.bf16.mxu1 %v9692_v42 }
 0x56e   :  { %v6037_v47 = vmax.f32 %v6036_v13, 0.0 }
 0x570   :  { %v6038_v9 = vadd.f32 1e-05, %v6037_v47  ;;  %9350 = vmatpush3.bf16.msra.mxu1 %v9692_v42  ;;  %v9725_v42 = vld [vmem:[%s12197_s2 + $0x190] sm:$0xff]  }
 0x571   :  { %9351 = vmatprep.subr.bf16.mxu1 %v9695_v0 }
 0x572   :  { %9753 = vrsqrt.f32 %v6038_v9  ;;  %v9688_v9 = vld [vmem:[%s12197_s2 + $0x238] sm:$0xff]  }
 0x573   :  { %9313 = vmatprep.subr.bf16.mxu0 %v9688_v9 }
 0x574   :  { %9352 = vmatpush3.bf16.msra.mxu1 %v9695_v0 }
 0x575   :  { %9385 = vmatprep.subr.bf16.mxu1 %v9700_v62 }
 0x57f   :  { %v9754_v27 = vpop.eup %9753 }
 0x580   :  { %v6068_v18 = vmul.f32 %v9754_v27, %v6067_v63  ;;  %v6107_v6 = vmul.f32 %v9754_v27, %v6106_v58  ;;  %v6141_v55 = vmul.f32 %v9754_v27, %v6140_v59  ;;  %v6177_v32 = vmul.f32 %v9754_v27, %v6176_v51  ;;  %v9694_v59 = vld [vmem:[%s12197_s2 + $0x228] sm:$0xff]  }
 0x581   :  { %v12045_v51 = vld [vmem:[#allocation2 + $0x28] sm:$0xff]  }
 0x582   :  { %v6069_v7 = vmax.f32 %v6068_v18, 0.0  ;;  %v6108_v12 = vmax.f32 %v6107_v6, 0.0  ;;  %v6142_v3 = vmax.f32 %v6141_v55, 0.0  ;;  %v6178_v54 = vmax.f32 %v6177_v32, 0.0  ;;  %v9696_v6 = vld [vmem:[#allocation2 + $0x20] sm:$0xff]  }
 0x583   :  { %v9698_v55 = vld [vmem:[%s12197_s2 + $0x220] sm:$0xff]  }
 0x584   :  { %v8148_v33 = vpack.c.bf16 %v6069_v7, %v6069_v7  ;;  %v8149_v20 = vpack.c.bf16 %v6108_v12, %v6108_v12  ;;  %v8150_v16 = vpack.c.bf16 %v6142_v3, %v6142_v3  ;;  %v8151_v52 = vpack.c.bf16 %v6178_v54, %v6178_v54  ;;  %v9704_v12 = vld [vmem:[%s12197_s2 + $0x230] sm:$0xff]   ;;  %v9706_v54 = vld [vmem:[%s12197_s2 + $0x228] sm:$0xff]  }
 0x585   :  { %v9705_v3 = vld [vmem:[%s12197_s2 + $0x210] sm:$0xff]  }
 0x586   :  { %6094 = vrot.lane.b32.xlu1 %v8148_v33, %s9764_s24  ;;  %v6074_v28 = vrot.slane %v8148_v33, 7  ;;  %v6113_v57 = vrot.slane %v8149_v20, 7  ;;  %v6079_v35 = vshrl.u32 %v8148_v33, 16  ;;  %v6147_v24 = vrot.slane %v8150_v16, 7 }
 0x587   :  { %v6117_v53 = vshrl.u32 %v8149_v20, 16  ;;  %v6183_v30 = vrot.slane %v8151_v52, 7  ;;  %v6082_v47 = vshll.u32 %v8148_v33, 16  ;;  %v6151_v56 = vshrl.u32 %v8150_v16, 16  ;;  %v9707_v33 = vld [vmem:[#allocation2 + $0x40] sm:$0xff]  }
 0x588   :  { %v6081_v13 = vrot.slane %v6079_v35, 7  ;;  %6077 = vst.msk [vmem:[#allocation2 + $0x10] sm:$0x2] %vm6076_vm14, %v6074_v28  ;;  %6115 = vst.msk [vmem:[#allocation2 + $0x18] sm:$0x2] %vm6076_vm14, %v6113_v57  ;;  %v6120_v50 = vshll.u32 %v8149_v20, 16 }
 0x589   :  { %6149 = vst.msk [vmem:[#allocation2 + $0x30] sm:$0x2] %vm6076_vm14, %v6147_v24  ;;  %6185 = vst.msk [vmem:[#allocation2 + $0x38] sm:$0x2] %vm6076_vm14, %v6183_v30  ;;  %v6119_v11 = vrot.slane %v6117_v53, 7  ;;  %v6153_v21 = vrot.slane %v6151_v56, 7 }
 0x58a   :  { %6129 = vrot.lane.b32.xlu1 %v8149_v20, %s9764_s24  ;;  %v6084_v61 = vor.u32 %v6082_v47, %v6081_v13  ;;  %v6187_v44 = vshrl.u32 %v8151_v52, 16  ;;  %v6154_v46 = vshll.u32 %v8150_v16, 16  ;;  %v6190_v37 = vshll.u32 %v8151_v52, 16  ;;  %v9709_v20 = vld [vmem:[%s12197_s2 + $0x208] sm:$0xff]   ;;  %v9714_v28 = vld [vmem:[%s12197_s2 + $0x1b8] sm:$0xff]   ;;  %v9715_v57 = vld [vmem:[%s12197_s2 + $0x210] sm:$0xff]  }
 0x58b   :  { %v6122_v10 = vor.u32 %v6120_v50, %v6119_v11  ;;  %v9716_v24 = vld [vmem:[%s12197_s2 + $0x1b0] sm:$0xff]   ;;  %v9717_v53 = vld [vmem:[%s12197_s2 + $0x208] sm:$0xff]   ;;  %v9718_v30 = vld [vmem:[#allocation2 + $0x20] sm:$0xff]  }
 0x58c   :  { %6085 = vrot.lane.b32.xlu0 %v6084_v61, %s9765_s29  ;;  %v6156_v15 = vor.u32 %v6154_v46, %v6153_v21  ;;  %v6189_v36 = vrot.slane %v6187_v44, 7  ;;  %v9720_v13 = vld [vmem:[%s12197_s2 + $0x1a8] sm:$0xff]   ;;  %v9721_v47 = vld [vmem:[%s12197_s2 + $0x200] sm:$0xff]   ;;  %v9724_v50 = vld [vmem:[%s12197_s2 + $0x198] sm:$0xff]  }
 0x58d   :  { %v9728_v61 = vld [vmem:[#allocation2 + $0x20] sm:$0xff]   ;;  %v9726_v21 = vld [vmem:[%s12197_s2 + $0x188] sm:$0xff]   ;;  %v9760_v46 = vld [vmem:[#allocation4] sm:$0xff] }
 0x58e   :  { %6163 = vrot.lane.b32.xlu1 %v8150_v16, %s9764_s24  ;;  %v6192_v38 = vor.u32 %v6190_v37, %v6189_v36  ;;  %v9710_v16 = vld [vmem:[%s12197_s2 + $0x220] sm:$0xff]  }
 0x58f   :  { %v6091_v23 = vld [vmem:[#allocation2 + $0x10] sm:$0x3]  ;;  %v6126_v43 = vld [vmem:[#allocation2 + $0x18] sm:$0x3]  ;;  %v9729_v11 = vld [vmem:[#allocation2 + $0x40] sm:$0xff]  }
 0x590   :  { %6123 = vrot.lane.b32.xlu0 %v6122_v10, %s9765_s29  ;;  %v6160_v49 = vld [vmem:[#allocation2 + $0x30] sm:$0x3]  ;;  %v6196_v22 = vld [vmem:[#allocation2 + $0x38] sm:$0x3]  ;;  %v9730_v10 = vld [vmem:[#allocation2 + $0x48] sm:$0xff]  }
 0x591   :  { %v9727_v44 = vld [vmem:[%s12197_s2 + $0x180] sm:$0xff]  }
 0x592   :  { %6199 = vrot.lane.b32.xlu1 %v8151_v52, %s9764_s24 }
 0x594   :  { %6157 = vrot.lane.b32.xlu0 %v6156_v15, %s9765_s29 }
 0x598   :  { %6193 = vrot.lane.b32.xlu0 %v6192_v38, %s9765_s29  ;;  %v9731_v38 = vld [vmem:[%s12198_s3 + $0x38] sm:$0xff]  }
 0x5e9   :  { %v9307_v0 = vpop.f32.mrf.mxu1 }
 0x5eb   :  { %v6472_v15 = vpop.f32.mrf.mxu1 }
 0x5ed   :  { %v9308_v36 = vpop.f32.mrf.mxu1 }
 0x5f8   :  { %v6095_v31 = vpop.permute.xlu1 %6094 }
 0x5fc   :  { %v6130_v60 = vpop.permute.xlu1 %6129 }
 0x5fe   :  { %v6086_v48 = vpop.permute.xlu0 %6085 }
 0x5ff   :  { %v6092_v17 = vsel %vm12024_vm13, %v6086_v48, %v6091_v23 }
 0x600   :  { %6093 = vst [vmem:[#allocation2 + $0x10] sm:$0x3] %v6092_v17  ;;  %v6164_v26 = vpop.permute.xlu1 %6163  ;;  %v9733_v17 = vld [vmem:[%s12198_s3 + $0x28] sm:$0xff]  }
 0x601   :  { %6098 = vst.msk [vmem:[#allocation2 + $0x10] sm:$0x1] %vm6097_vm15, %v6095_v31 }
 0x602   :  { %v6124_v41 = vpop.permute.xlu0 %6123 }
 0x603   :  { %v6127_v45 = vsel %vm12024_vm13, %v6124_v41, %v6126_v43  ;;  %v9734_v41 = vld [vmem:[%s12198_s3 + $0x20] sm:$0xff]  }
 0x604   :  { %6128 = vst [vmem:[#allocation2 + $0x18] sm:$0x3] %v6127_v45  ;;  %v6200_v27 = vpop.permute.xlu1 %6199 }
 0x605   :  { %6132 = vst.msk [vmem:[#allocation2 + $0x18] sm:$0x1] %vm6097_vm15, %v6130_v60 }
 0x606   :  { %v6158_v4 = vpop.permute.xlu0 %6157 }
 0x607   :  { %v6161_v8 = vsel %vm12024_vm13, %v6158_v4, %v6160_v49  ;;  %v9735_v49 = vld [vmem:[%s12198_s3 + $0x18] sm:$0xff]  }
 0x608   :  { %6162 = vst [vmem:[#allocation2 + $0x30] sm:$0x3] %v6161_v8  ;;  %v9690_v2 = vld [vmem:[#allocation2 + $0x10] sm:$0xff]  }
 0x609   :  { %6166 = vst.msk [vmem:[#allocation2 + $0x30] sm:$0x1] %vm6097_vm15, %v6164_v26  ;;  %9282 = vmatmul.mubr.bf16.vlgmr.msra.gmra.mxu0 %v9690_v2  ;;  %9309 = vmatprep.mubr.bf16.mxu1 %v9690_v2  ;;  %v9697_v32 = vld [vmem:[#allocation2 + $0x10] sm:$0xff]  }
 0x60a   :  { %v6194_v63 = vpop.permute.xlu0 %6193  ;;  %9314 = vmatpush3.bf16.msra.mxu0 %v9688_v9  ;;  %v9719_v9 = vld [vmem:[#allocation2 + $0x28] sm:$0xff]  }
 0x60b   :  { %v6197_v58 = vsel %vm12024_vm13, %v6194_v63, %v6196_v22  ;;  %9315 = vmatprep.subr.bf16.mxu0 %v9691_v25  ;;  %v9737_v63 = vld [vmem:[%s12198_s3 + $0x8] sm:$0xff]  }
 0x60c   :  { %6198 = vst [vmem:[#allocation2 + $0x38] sm:$0x3] %v6197_v58  ;;  %v9693_v18 = vld [vmem:[#allocation2 + $0x18] sm:$0xff]  }
 0x60d   :  { %6202 = vst.msk [vmem:[#allocation2 + $0x38] sm:$0x1] %vm6097_vm15, %v6200_v27  ;;  %9285 = vmatprep.mubr.bf16.mxu0 %v9693_v18  ;;  %9310 = vmatmul.mubr.bf16.gmra.mxu1 %v9693_v18  ;;  %v9713_v35 = vld [vmem:[#allocation2 + $0x18] sm:$0xff]  }
 0x60e   :  { %9316 = vmatpush3.bf16.msra.mxu0 %v9691_v25  ;;  %9353 = vmatprep.mubr.bf16.mxu1 %v12045_v51  ;;  %v9736_v25 = vld [vmem:[%s12198_s3 + $0x10] sm:$0xff]  }
 0x60f   :  { %9317 = vmatprep.subr.bf16.mxu0 %v9694_v59 }
 0x610   :  { %v12052_v19 = vld [vmem:[#allocation2 + $0x30] sm:$0xff]  }
 0x611   :  { %9286 = vmatmul.mubr.bf16.gmra.mxu0 %v9696_v6  ;;  %v9708_v52 = vld [vmem:[#allocation2 + $0x30] sm:$0xff]  }
 0x612   :  { %9318 = vmatpush3.bf16.msra.mxu0 %v9694_v59  ;;  %9329 = vmatprep.mubr.bf16.mxu0 %v9697_v32 }
 0x613   :  { %9319 = vmatprep.subr.bf16.mxu0 %v9698_v55 }
 0x614   :  { %v12057_v7 = vld [vmem:[#allocation2 + $0x38] sm:$0xff]  }
 0x615   :  { %9354 = vmatmul.mubr.bf16.vlgmr.msra.gmra.mxu1 %v12052_v19  ;;  %v9723_v56 = vld [vmem:[#allocation2 + $0x38] sm:$0xff]  }
 0x616   :  { %9320 = vmatpush3.bf16.msra.mxu0 %v9698_v55  ;;  %9386 = vmatpush3.bf16.msra.mxu1 %v9700_v62  ;;  %v6475_v62 = vpop.f32.mrf.mxu1 }
 0x617   :  { %9357 = vmatprep.mubr.bf16.mxu1 %v12057_v7  ;;  %9321 = vmatprep.subr.bf16.mxu0 %v9703_v39 }
 0x618   :  { %9387 = vmatprep.subr.bf16.mxu1 %v9704_v12 }
 0x61a   :  { %9322 = vmatpush3.bf16.msra.mxu0 %v9703_v39  ;;  %9388 = vmatpush3.bf16.msra.mxu1 %v9704_v12 }
 0x61b   :  { %9323 = vmatprep.subr.bf16.mxu0 %v9705_v3  ;;  %9389 = vmatprep.subr.bf16.mxu1 %v9706_v54 }
 0x61d   :  { %9358 = vmatmul.mubr.bf16.gmra.mxu1 %v9707_v33 }
 0x61e   :  { %9324 = vmatpush3.bf16.msra.mxu0 %v9705_v3  ;;  %9390 = vmatpush3.bf16.msra.mxu1 %v9706_v54 }
 0x61f   :  { %9401 = vmatprep.mubr.bf16.mxu1 %v9708_v52  ;;  %9325 = vmatprep.subr.bf16.mxu0 %v9709_v20 }
 0x620   :  { %9391 = vmatprep.subr.bf16.mxu1 %v9710_v16 }
 0x622   :  { %9326 = vmatpush3.bf16.msra.mxu0 %v9709_v20  ;;  %9392 = vmatpush3.bf16.msra.mxu1 %v9710_v16 }
 0x623   :  { %9327 = vmatprep.subr.bf16.mxu0 %v9711_v34  ;;  %9393 = vmatprep.subr.bf16.mxu1 %v9712_v40 }
 0x626   :  { %9328 = vmatpush3.bf16.msra.mxu0 %v9711_v34  ;;  %9394 = vmatpush3.bf16.msra.mxu1 %v9712_v40 }
 0x627   :  { %9361 = vmatprep.subr.bf16.mxu0 %v9714_v28  ;;  %9395 = vmatprep.subr.bf16.mxu1 %v9715_v57 }
 0x629   :  { %9330 = vmatmul.mubr.bf16.vlgmr.msra.gmra.mxu0 %v9713_v35 }
 0x62a   :  { %9362 = vmatpush3.bf16.msra.mxu0 %v9714_v28  ;;  %9396 = vmatpush3.bf16.msra.mxu1 %v9715_v57 }
 0x62b   :  { %9363 = vmatprep.subr.bf16.mxu0 %v9716_v24  ;;  %9397 = vmatprep.subr.bf16.mxu1 %v9717_v53 }
 0x62c   :  { %9333 = vmatprep.mubr.bf16.mxu0 %v9718_v30 }
 0x62e   :  { %9364 = vmatpush3.bf16.msra.mxu0 %v9716_v24  ;;  %9398 = vmatpush3.bf16.msra.mxu1 %v9717_v53 }
 0x62f   :  { %9365 = vmatprep.subr.bf16.mxu0 %v9720_v13  ;;  %9399 = vmatprep.subr.bf16.mxu1 %v9721_v47 }
 0x631   :  { %9334 = vmatmul.mubr.bf16.gmra.mxu0 %v9719_v9 }
 0x632   :  { %9366 = vmatpush3.bf16.msra.mxu0 %v9720_v13  ;;  %9400 = vmatpush3.bf16.msra.mxu1 %v9721_v47 }
 0x633   :  { %9367 = vmatprep.subr.bf16.mxu0 %v9722_v1  ;;  %9377 = vmatprep.mubr.bf16.mxu0 %v9728_v61 }
 0x635   :  { %9402 = vmatmul.mubr.bf16.vlgmr.msra.gmra.mxu1 %v9723_v56 }
 0x636   :  { %9368 = vmatpush3.bf16.msra.mxu0 %v9722_v1  ;;  %9405 = vmatprep.mubr.bf16.mxu1 %v9729_v11 }
 0x637   :  { %9369 = vmatprep.subr.bf16.mxu0 %v9724_v50 }
 0x63a   :  { %9370 = vmatpush3.bf16.msra.mxu0 %v9724_v50 }
 0x63b   :  { %9371 = vmatprep.subr.bf16.mxu0 %v9725_v42 }
 0x63d   :  { %9406 = vmatmul.mubr.bf16.gmra.mxu1 %v9730_v10 }
 0x63e   :  { %9372 = vmatpush3.bf16.msra.mxu0 %v9725_v42 }
 0x63f   :  { %9373 = vmatprep.subr.bf16.mxu0 %v9726_v21 }
 0x642   :  { %9374 = vmatpush3.bf16.msra.mxu0 %v9726_v21 }
 0x643   :  { %9375 = vmatprep.subr.bf16.mxu0 %v9727_v44 }
 0x646   :  { %9376 = vmatpush3.bf16.msra.mxu0 %v9727_v44 }
 0x647   :  { %9409 = vmatprep.subr.bf16.mxu0 %v9760_v46 }
 0x649   :  { %9378 = vmatmul.mubr.bf16.vlgmr.msra.gmra.mxu0 %v12045_v51  ;;  %v9738_v51 = vld [vmem:[%s12198_s3] sm:$0xff]  }
 0x64a   :  { %9381 = vmatprep.mubr.bf16.mxu0 %v12052_v19  ;;  %9410 = vmatpush3.bf16.msra.mxu0 %v9731_v38 }
 0x64b   :  { %9411 = vmatprep.subr.bf16.mxu0 %v9760_v46 }
 0x64e   :  { %9412 = vmatpush3.bf16.msra.mxu0 %v9732_v5 }
 0x64f   :  { %9413 = vmatprep.subr.bf16.mxu0 %v9760_v46 }
 0x651   :  { %9382 = vmatmul.mubr.bf16.gmra.mxu0 %v12057_v7 }
 0x652   :  { %9425 = vmatprep.mubr.msk.bf16.mxu0 %vm12246_vm2, %v9760_v46  ;;  %9414 = vmatpush3.bf16.msra.mxu0 %v9733_v17 }
 0x653   :  { %9415 = vmatprep.subr.bf16.mxu0 %v9760_v46 }
 0x656   :  { %9416 = vmatpush3.bf16.msra.mxu0 %v9734_v41 }
 0x657   :  { %9417 = vmatprep.subr.bf16.mxu0 %v9760_v46 }
 0x65a   :  { %9418 = vmatpush3.bf16.msra.mxu0 %v9735_v49 }
 0x65b   :  { %9419 = vmatprep.subr.bf16.mxu0 %v9760_v46 }
 0x65e   :  { %9420 = vmatpush3.bf16.msra.mxu0 %v9736_v25 }
 0x65f   :  { %9421 = vmatprep.subr.bf16.mxu0 %v9760_v46 }
 0x662   :  { %9422 = vmatpush3.bf16.msra.mxu0 %v9737_v63 }
 0x663   :  { %9423 = vmatprep.subr.bf16.mxu0 %v9760_v46 }
 0x666   :  { %9424 = vmatpush3.bf16.msra.mxu0 %v9738_v51 }
 0x6c9   :  { %v9283_v37 = vpop.f32.mrf.mxu0 }
 0x6ca   :  { %v6481_v27 = vadd.f32 %v9307_v0, %v9283_v37 }
 0x6cb   :  { %v6353_v31 = vpop.f32.mrf.mxu0 }
 0x6cc   :  { %v6473_v55 = vadd.f32 %v6472_v15, %v6353_v31 }
 0x6cd   :  { %v9311_v48 = vpop.f32.mrf.mxu1  ;;  %v9284_v23 = vpop.f32.mrf.mxu0 }
 0x6ce   :  { %v6484_v39 = vadd.f32 %v9308_v36, %v9284_v23 }
 0x6cf   :  { %v6488_v60 = vpop.f32.mrf.mxu1  ;;  %v6356_v43 = vpop.f32.mrf.mxu0 }
 0x6d0   :  { %v6476_v54 = vadd.f32 %v6475_v62, %v6356_v43 }
 0x6d1   :  { %v9312_v45 = vpop.f32.mrf.mxu1  ;;  %v9287_v26 = vpop.f32.mrf.mxu0 }
 0x6d2   :  { %v6497_v52 = vadd.f32 %v9311_v48, %v9287_v26 }
 0x6d3   :  { %v6491_v4 = vpop.f32.mrf.mxu1  ;;  %v6369_v8 = vpop.f32.mrf.mxu0 }
 0x6d4   :  { %v6489_v28 = vadd.f32 %v6488_v60, %v6369_v8 }
 0x6d5   :  { %v12137_v2 = vpop.f32.mrf.mxu1  ;;  %v9288_v22 = vpop.f32.mrf.mxu0 }
 0x6d6   :  { %v6500_v53 = vadd.f32 %v9312_v45, %v9288_v22 }
 0x6d7   :  { %v12142_v58 = vpop.f32.mrf.mxu1  ;;  %v6372_v59 = vpop.f32.mrf.mxu0 }
 0x6d8   :  { %v6492_v47 = vadd.f32 %v6491_v4, %v6372_v59 }
 0x6d9   :  { %v12147_v18 = vpop.f32.mrf.mxu1 }
 0x6db   :  { %v12149_v12 = vpop.f32.mrf.mxu1 }
 0x6dd   :  { %v12151_v20 = vpop.f32.mrf.mxu1 }
 0x6df   :  { %v12153_v35 = vpop.f32.mrf.mxu1 }
 0x6e1   :  { %v12156_v1 = vpop.f32.mrf.mxu1 }
 0x6e3   :  { %v12164_v42 = vpop.f32.mrf.mxu1 }
 0x6e9   :  { %v9331_v6 = vpop.f32.mrf.mxu0 }
 0x6ea   :  { %v6667_v32 = vadd.f32 %v9331_v6, %v6481_v27 }
 0x6eb   :  { %v6634_v19 = vpop.f32.mrf.mxu0 }
 0x6ec   :  { %6775 = vst [vmem:[#allocation3 + $0x10] sm:$0xff] %v6667_v32  ;;  %v6665_v7 = vadd.f32 %v6634_v19, %v6473_v55  ;;  %v6731_v21 = vsel %vm12160_vm4, %v6667_v32, 0.0 }
 0x6ed   :  { %v9332_v3 = vpop.f32.mrf.mxu0  ;;  %v6753_v0 = vmul.f32 %v6731_v21, %v6667_v32 }
 0x6ee   :  { %6773 = vst [vmem:[#allocation3] sm:$0xff] %v6665_v7  ;;  %v6668_v33 = vadd.f32 %v9332_v3, %v6484_v39  ;;  %v6751_v10 = vmul.f32 0.0, %v6665_v7 }
 0x6ef   :  { %v6637_v16 = vpop.f32.mrf.mxu0 }
 0x6f0   :  { %6776 = vst [vmem:[#allocation3 + $0x18] sm:$0xff] %v6668_v33  ;;  %v6666_v34 = vadd.f32 %v6637_v16, %v6476_v54  ;;  %v6754_v62 = vmul.f32 0.0, %v6668_v33 }
 0x6f1   :  { %v9335_v40 = vpop.f32.mrf.mxu0 }
 0x6f2   :  { %6774 = vst [vmem:[#allocation3 + $0x8] sm:$0xff] %v6666_v34  ;;  %v6671_v57 = vadd.f32 %v9335_v40, %v6497_v52  ;;  %v6752_v50 = vmul.f32 0.0, %v6666_v34 }
 0x6f3   :  { %v6650_v24 = vpop.f32.mrf.mxu0 }
 0x6f4   :  { %6779 = vst [vmem:[#allocation3 + $0x30] sm:$0xff] %v6671_v57  ;;  %v6669_v30 = vadd.f32 %v6650_v24, %v6489_v28  ;;  %v6759_v44 = vadd.f32 %v6752_v50, %v6751_v10  ;;  %v6757_v59 = vmul.f32 0.0, %v6671_v57 }
 0x6f5   :  { %v9336_v13 = vpop.f32.mrf.mxu0  ;;  %v9403_v46 = vpop.f32.mrf.mxu1 }
 0x6f6   :  { %6777 = vst [vmem:[#allocation3 + $0x20] sm:$0xff] %v6669_v30  ;;  %v6672_v9 = vadd.f32 %v9336_v13, %v6500_v53  ;;  %v6760_v15 = vadd.f32 %v6759_v44, %v6753_v0  ;;  %v6733_v36 = vsel %vm12171_vm6, %v6669_v30, 0.0 }
 0x6f7   :  { %v6653_v61 = vpop.f32.mrf.mxu0  ;;  %v7209_v37 = vpop.f32.mrf.mxu1  ;;  %v6755_v38 = vmul.f32 %v6733_v36, %v6669_v30  ;;  %v6740_v22 = vadd.f32 %v6733_v36, %v6731_v21 }
 0x6f8   :  { %6780 = vst [vmem:[#allocation3 + $0x38] sm:$0xff] %v6672_v9  ;;  %v6670_v11 = vadd.f32 %v6653_v61, %v6492_v47  ;;  %v6761_v31 = vadd.f32 %v6760_v15, %v6754_v62  ;;  %v6758_v39 = vmul.f32 0.0, %v6672_v9 }
 0x6f9   :  { %v9404_v5 = vpop.f32.mrf.mxu1  ;;  %v6744_v19 = vrot.slane %v6740_v22, 4 }
 0x6fa   :  { %6778 = vst [vmem:[#allocation3 + $0x28] sm:$0xff] %v6670_v11  ;;  %v6756_v23 = vmul.f32 0.0, %v6670_v11  ;;  %v6762_v17 = vadd.f32 %v6761_v31, %v6755_v38 }
 0x6fb   :  { %v7212_v43 = vpop.f32.mrf.mxu1 }
 0x6fc   :  { %v6763_v4 = vadd.f32 %v6762_v17, %v6756_v23 }
 0x6fd   :  { %v9407_v49 = vpop.f32.mrf.mxu1 }
 0x6fe   :  { %v6764_v55 = vadd.f32 %v6763_v4, %v6757_v59 }
 0x700   :  { %v6765_v34 = vadd.f32 %v6764_v55, %v6758_v39  ;;  %v7310_v39 = vld [vmem:[#allocation3 + $0x22] sm:$0x1] }
 0x702   :  { %v6766_v50 = vrot.slane %v6765_v34, 4 }
 0x704   :  { %v6767_v36 = vadd.f32 %v6766_v50, %v6765_v34 }
 0x709   :  { %v9379_v48 = vpop.f32.mrf.mxu0 }
 0x70a   :  { %v7057_v60 = vadd.f32 %v9379_v48, %v12137_v2  ;;  %v7225_v2 = vpop.f32.mrf.mxu1  ;;  %v6768_v48 = vrot.slane %v6767_v36, 2 }
 0x70b   :  { %v7048_v14 = vpop.f32.mrf.mxu0 }
 0x70c   :  { %v7242_v41 = vadd.f32 %v9403_v46, %v7057_v60  ;;  %v7049_v45 = vadd.f32 %v7048_v14, %v12142_v58  ;;  %v6769_v14 = vadd.f32 %v6768_v48, %v6767_v36 }
 0x70d   :  { %v9380_v26 = vpop.f32.mrf.mxu0 }
 0x70e   :  { %7294 = vst [vmem:[#allocation3 + $0x50] sm:$0xff] %v7242_v41  ;;  %v7240_v8 = vadd.f32 %v7209_v37, %v7049_v45  ;;  %v7060_v25 = vadd.f32 %v9380_v26, %v12147_v18  ;;  %v7250_v7 = vsel %vm12160_vm4, %v7242_v41, 0.0  ;;  %v6770_v4 = vrot.slane %v6769_v14, 1 }
 0x70f   :  { %v7051_v63 = vpop.f32.mrf.mxu0  ;;  %v7272_v40 = vmul.f32 %v7250_v7, %v7242_v41 }
 0x710   :  { %7292 = vst [vmem:[#allocation3 + $0x40] sm:$0xff] %v7240_v8  ;;  %v7243_v51 = vadd.f32 %v9404_v5, %v7060_v25  ;;  %v7052_v27 = vadd.f32 %v7051_v63, %v12149_v12  ;;  %v7270_v3 = vmul.f32 0.0, %v7240_v8  ;;  %v9408_v12 = vpop.f32.mrf.mxu1  ;;  %v6771_v63 = vadd.f32 %v6770_v4, %v6769_v14 }
 0x711   :  { %v9383_v6 = vpop.f32.mrf.mxu0 }
 0x712   :  { %7295 = vst [vmem:[#allocation3 + $0x58] sm:$0xff] %v7243_v51  ;;  %v7241_v32 = vadd.f32 %v7212_v43, %v7052_v27  ;;  %v7073_v58 = vadd.f32 %v9383_v6, %v12151_v20  ;;  %v6745_v20 = vadd.f32 %v6744_v19, %v6740_v22  ;;  %v7273_v30 = vmul.f32 0.0, %v7243_v51  ;;  %v7228_v11 = vpop.f32.mrf.mxu1  ;;  %v7309_v19 = vld [vmem:[#allocation3 + $0x21] sm:$0x1] }
 0x713   :  { %v7064_v18 = vpop.f32.mrf.mxu0 }
 0x714   :  { %v7271_v54 = vmul.f32 0.0, %v7241_v32  ;;  %7293 = vst [vmem:[#allocation3 + $0x48] sm:$0xff] %v7241_v32  ;;  %v7246_v33 = vadd.f32 %v9407_v49, %v7073_v58  ;;  %v7065_v16 = vadd.f32 %v7064_v18, %v12153_v35  ;;  %v6746_v46 = vrot.slane %v6745_v20, 2 }
 0x715   :  { %v9384_v52 = vpop.f32.mrf.mxu0 }
 0x716   :  { %v7278_v28 = vadd.f32 %v7271_v54, %v7270_v3  ;;  %7298 = vst [vmem:[#allocation3 + $0x70] sm:$0xff] %v7246_v33  ;;  %v7244_v57 = vadd.f32 %v7225_v2, %v7065_v16  ;;  %v7076_v24 = vadd.f32 %v9384_v52, %v12156_v1  ;;  %v7276_v29 = vmul.f32 0.0, %v7246_v33  ;;  %v7307_v3 = vld [vmem:[#allocation3 + $0x11] sm:$0x1]  ;;  %v7308_v54 = vld [vmem:[#allocation3 + $0x12] sm:$0x1] }
 0x717   :  { %v7067_v53 = vpop.f32.mrf.mxu0  ;;  %v6747_v38 = vadd.f32 %v6746_v46, %v6745_v20  ;;  %v7318_v33 = vld [vmem:[#allocation3 + $0x51] sm:$0x1]  ;;  %v7319_v16 = vld [vmem:[#allocation3 + $0x52] sm:$0x1]  ;;  %v7311_v34 = vmax.f32 %v7307_v3, %v7308_v54 }
 0x718   :  { %v7279_v13 = vadd.f32 %v7278_v28, %v7272_v40  ;;  %v7252_v47 = vsel %vm12171_vm6, %v7244_v57, 0.0  ;;  %7296 = vst [vmem:[#allocation3 + $0x60] sm:$0xff] %v7244_v57  ;;  %v7068_v9 = vadd.f32 %v7067_v53, %v12164_v42  ;;  %v7247_v56 = vadd.f32 %v9408_v12, %v7076_v24 }
 0x719   :  { %v7259_v35 = vadd.f32 %v7252_v47, %v7250_v7  ;;  %v7274_v61 = vmul.f32 %v7252_v47, %v7244_v57  ;;  %v6748_v60 = vrot.slane %v6747_v38, 1  ;;  %v7312_v12 = vmax.f32 %v7309_v19, %v7310_v39 }
 0x71a   :  { %v7245_v10 = vadd.f32 %v7228_v11, %v7068_v9  ;;  %v7280_v21 = vadd.f32 %v7279_v13, %v7273_v30  ;;  %7299 = vst [vmem:[#allocation3 + $0x78] sm:$0xff] %v7247_v56  ;;  %v7277_v42 = vmul.f32 0.0, %v7247_v56  ;;  %v7322_v40 = vmax.f32 %v7318_v33, %v7319_v16  ;;  %v8115_v11 = vld [vmem:[%s12199_s4] ss:$0 sm:$0xff] }
 0x71b   :  { %v7263_v44 = vrot.slane %v7259_v35, 4  ;;  %v6749_v26 = vadd.f32 %v6748_v60, %v6747_v38  ;;  %v7313_v28 = vmax.f32 %v7311_v34, %v7312_v12 }
 0x71c   :  { %v7275_v1 = vmul.f32 0.0, %v7245_v10  ;;  %v7281_v0 = vadd.f32 %v7280_v21, %v7274_v61  ;;  %7297 = vst [vmem:[#allocation3 + $0x68] sm:$0xff] %v7245_v10 }
 0x71d   :  { %v7264_v15 = vadd.f32 %v7263_v44, %v7259_v35 }
 0x71e   :  { %v7282_v37 = vadd.f32 %v7281_v0, %v7275_v1 }
 0x71f   :  { %v7265_v62 = vrot.slane %v7264_v15, 2  ;;  %v7320_v7 = vld [vmem:[#allocation3 + $0x61] sm:$0x1]  ;;  %v7321_v18 = vld [vmem:[#allocation3 + $0x62] sm:$0x1] }
 0x720   :  { %v7283_v31 = vadd.f32 %v7282_v37, %v7276_v29  ;;  %v7323_v52 = vmax.f32 %v7320_v7, %v7321_v18 }
 0x721   :  { %v7266_v5 = vadd.f32 %v7265_v62, %v7264_v15 }
 0x722   :  { %v7284_v23 = vadd.f32 %v7283_v31, %v7277_v42  ;;  %v7324_v57 = vmax.f32 %v7322_v40, %v7323_v52 }
 0x723   :  { %v7267_v17 = vrot.slane %v7266_v5, 1 }
 0x724   :  { %v7285_v43 = vrot.slane %v7284_v23, 4 }
 0x725   :  { %v7268_v41 = vadd.f32 %v7267_v17, %v7266_v5 }
 0x726   :  { %v7286_v45 = vadd.f32 %v7285_v43, %v7284_v23 }
 0x727   :  { %v7269_v8 = vadd.f32 %v7268_v41, %v6749_v26 }
 0x728   :  { %v7287_v49 = vrot.slane %v7286_v45, 2 }
 0x729   :  { %v7300_v59 = vmul.f32 0.125, %v7269_v8 }
 0x72a   :  { %v7288_v25 = vadd.f32 %v7287_v49, %v7286_v45 }
 0x72b   :  { %v7302_v2 = vmul.f32 %v7300_v59, %v7300_v59  ;;  %v7314_v20 = vsub.f32 %v7313_v28, %v7300_v59  ;;  %v7325_v24 = vsub.f32 %v7324_v57, %v7300_v59 }
 0x72c   :  { %v7289_v22 = vrot.slane %v7288_v25, 1 }
 0x72e   :  { %v7290_v51 = vadd.f32 %v7289_v22, %v7288_v25 }
 0x730   :  { %v7291_v27 = vadd.f32 %v7290_v51, %v6771_v63 }
 0x732   :  { %v7301_v6 = vmul.f32 0.125, %v7291_v27 }
 0x734   :  { %v7303_v55 = vsub.f32 %v7301_v6, %v7302_v2 }
 0x736   :  { %v7304_v32 = vmax.f32 %v7303_v55, 0.0 }
 0x738   :  { %v7305_v58 = vadd.f32 1e-05, %v7304_v32 }
 0x73a   :  { %9755 = vrsqrt.f32 %v7305_v58 }
 0x747   :  { %v9756_v53 = vpop.eup %9755 }
 0x748   :  { %v7315_v30 = vmul.f32 %v9756_v53, %v7314_v20  ;;  %v7326_v13 = vmul.f32 %v9756_v53, %v7325_v24 }
 0x74a   :  { %v7316_v47 = vmax.f32 %v7315_v30, 0.0  ;;  %v7327_v9 = vmax.f32 %v7326_v13, 0.0 }
 0x74c   :  { %7317 = vst [vmem:[#allocation4] sm:$0x1] %v7316_v47  ;;  %7328 = vst [vmem:[#allocation4 + $0x1] sm:$0x1] %v7327_v9 }
 0x753   :  { %v7329_v35 = vld [vmem:[#allocation4] sm:$0xff] }
 0x754   :  { %v7330_v61 = vpack.c.bf16 %v7329_v35, %v7329_v35 }
 0x756   :  { %9426 = vmatmul.mubr.bf16.vlgmr.msra.gmra.mxu0 %v7330_v61 }
 0x816   :  { %v7436_v56 = vpop.f32.mrf.mxu0 }
 0x817   :  { %v7437_v50 = vadd.f32 %v8115_v11, %v7436_v56 }
 0x818   :  { %v9427_v10 = vpop.f32.mrf.mxu0 }
 0x819   :  { %7442 = vst [vmem:[%s12200_s5] sm:$0xff] %v7437_v50 }
 0x81a   :  { %v7439_v21 = vpop.f32.mrf.mxu0 }
 0x81c   :  { %v9428_v44 = vpop.f32.mrf.mxu0 }

</bundles_post_ra>
